<compile_context>
chip_gen: v7x
topology: tpu7x:2x2x1
jax: 0.10.0
libtpu: 0.0.40
codegen_flags: <defaults>
</compile_context>

<pallas_src>
import math
import functools

import jax
import jax.numpy as jnp
from jax.experimental import pallas as pl
from jax.experimental.pallas import tpu as pltpu


# Matmul compute dtype (accumulation is always f32).
COMPUTE_DTYPE = jnp.bfloat16
_MASK_NEG = -1e30


def _layer_norm(x, w, b, eps=1e-5):
    mu = jnp.mean(x, axis=-1, keepdims=True)
    xc = x - mu
    var = jnp.mean(xc * xc, axis=-1, keepdims=True)
    return xc * jax.lax.rsqrt(var + eps) * w + b


def encoder_layer_kernel(x_ref, mask_ref, wqkv_ref, bqkv_ref, wo_ref, bo_ref,
                         w1_ref, b1_ref, w2_ref, b2_ref,
                         ln1w_ref, ln1b_ref, ln2w_ref, ln2b_ref,
                         o_ref, *, num_heads, in_scale):
    M, C = x_ref.shape                        # M = tile_batch * S  (2-D slab)
    H = num_heads
    Dh = C // H

    x = x_ref[...].astype(jnp.float32)
    if in_scale != 1.0:                       # fused src * sqrt(d_model)
        x = x * in_scale

    # ---- QKV projection: one big (M, C) x (C, 3C) matmul (bf16 MXU, f32 acc) ----
    xw = x.astype(COMPUTE_DTYPE)
    qkv = jnp.dot(xw, wqkv_ref[...],
                  preferred_element_type=jnp.float32) + bqkv_ref[0]   # (M, 3C)
    # NOTE: 1/sqrt(Dh) is folded into the Q columns of wqkv host-side.

    mask = mask_ref[...]                      # (M, M) additive block-diagonal mask
    wo = wo_ref[...]                          # (C, C)

    # ---- attention: per-head, dense (M, M) masked scores, no concats ------------
    attn = jnp.zeros((M, C), jnp.float32)
    for h in range(H):
        lo = h * Dh
        q = qkv[:, lo:lo + Dh].astype(COMPUTE_DTYPE)               # (M, Dh)
        k = qkv[:, C + lo:C + lo + Dh].astype(COMPUTE_DTYPE)
        v = qkv[:, 2 * C + lo:2 * C + lo + Dh].astype(COMPUTE_DTYPE)

        s = jnp.einsum('qd,kd->qk', q, k,
                       preferred_element_type=jnp.float32) + mask   # (M, M)
        s = s - jnp.max(s, axis=-1, keepdims=True)
        p = jnp.exp(s)                                              # masked -> 0
        p = p * pl.reciprocal(jnp.sum(p, axis=-1, keepdims=True), approx=True)
        o = jnp.dot(p.astype(COMPUTE_DTYPE), v,
                    preferred_element_type=jnp.float32)             # (M, Dh)
        # accumulate the output projection per head (replaces the head-merge concat)
        attn = attn + jnp.dot(o.astype(COMPUTE_DTYPE), wo[lo:lo + Dh, :],
                              preferred_element_type=jnp.float32)
    attn = attn + bo_ref[0]

    # ---- add & norm 1 ------------------------------------------------------------
    x1 = _layer_norm(x + attn, ln1w_ref[0], ln1b_ref[0])

    # ---- feed-forward (relu) -------------------------------------------------------
    h1 = jnp.dot(x1.astype(COMPUTE_DTYPE), w1_ref[...],
                 preferred_element_type=jnp.float32) + b1_ref[0]
    h1 = jnp.maximum(h1, 0.0)
    y = jnp.dot(h1.astype(COMPUTE_DTYPE), w2_ref[...],
                preferred_element_type=jnp.float32) + b2_ref[0]

    # ---- add & norm 2 --------------------------------------------------------------
    x2 = _layer_norm(x1 + y, ln2w_ref[0], ln2b_ref[0])
    o_ref[...] = x2.astype(o_ref.dtype)       # lane/sublane-dense (M, C) store


def _vmem_profile():
    """(vmem_limit_bytes, two_tensorcores) — generation aware, safe fallback."""
    cap = 0
    try:
        cap = int(getattr(pltpu.get_tpu_info(), "vmem_capacity_bytes", 0) or 0)
    except Exception:
        cap = 0
    if cap <= 0:
        return 64 * 2**20, False              # unknown chip: previously-validated value
    two_tc = cap <= 64 * 2**20                # v7x: 64 MiB / TC, 2 TCs
    limit = max(32 * 2**20, min(cap - 12 * 2**20, 100 * 2**20))
    return limit, two_tc


def _act_bytes(tb, *, S, C, Fd, H, in_item, out_item):
    """Per-grid-step VMEM activation footprint (f32 + bf16 copies + dbl-buffered I/O)."""
    M = tb * S
    io = 2 * M * C * (in_item + out_item)       # double-buffered in/out blocks
    msk = 2 * M * M * 4                         # additive mask (double-buffered)
    main = M * C * 6                            # x f32 + bf16
    main += M * 3 * C * 6                       # qkv f32 + bf16
    main += M * C * 4 * 4                       # attn, x1, y, out (f32)
    main += M * Fd * 6                          # h1 f32 + bf16
    head = M * M * 10 + 3 * M * (C // H) * 2 + M * (C // H) * 4   # s, p(+bf16), q/k/v, o
    return int(1.4 * (io + msk + main + head))  # fudge for compiler temporaries


def _pick_batch_tile(batch, S, act_fn, budget, two_cores):
    divs = [d for d in range(1, batch + 1) if batch % d == 0]
    # (8,128) rule: block rows (tb*S) must be a multiple of 8, or the full array.
    valid = [d for d in divs if (d * S) % 8 == 0] or [batch]
    if two_cores and batch >= 2:
        multi = [d for d in valid if d <= batch // 2]
        if multi:
            valid = multi                        # keep both v7x TensorCores busy
    # bound the masked-attention overcompute (scores are (tb*S)^2 per head)
    capped = [d for d in valid if d * S <= 512] or [min(valid)]
    fit = [d for d in capped if act_fn(d) <= budget] or [min(capped)]
    return max(fit)


def encoder_layer(x, p, *, num_heads, in_scale=1.0, out_dtype=None):
    """One nn.TransformerEncoderLayer (eval mode). x: (BATCH, S, C)."""
    BATCH, S, C = x.shape
    Fd = p['w1'].shape[1]
    H = num_heads
    out_dtype = out_dtype or x.dtype
    in_item = jnp.dtype(x.dtype).itemsize
    out_item = jnp.dtype(out_dtype).itemsize

    vmem_limit, two_tc = _vmem_profile()
    # double-buffered weight footprint (bf16 matrices + f32 vectors)
    wbytes = 2 * (2 * (3 * C * C + C * C + 2 * C * Fd) + 4 * (Fd + 9 * C))
    budget = max(vmem_limit - wbytes - 6 * 2**20, 2 * 2**20)

    act_fn = functools.partial(_act_bytes, S=S, C=C, Fd=Fd, H=H,
                               in_item=in_item, out_item=out_item)
    tb = _pick_batch_tile(BATCH, S, act_fn, budget, two_tc)
    M = tb * S
    grid = (BATCH // tb,)

    # flatten to a lane/sublane-dense 2-D slab (free, row-major)
    x2 = x.reshape(BATCH * S, C)

    # additive block-diagonal mask: rows/cols in the same batch element attend.
    blk = jnp.repeat(jnp.arange(tb, dtype=jnp.int32), S)
    mask = jnp.where(blk[:, None] == blk[None, :], 0.0, _MASK_NEG).astype(jnp.float32)

    def wspec(shape):
        # grid-invariant block: stays VMEM-resident across grid steps.
        return pl.BlockSpec(shape, lambda i: (0,) * len(shape))

    in_specs = [
        pl.BlockSpec((M, C), lambda i: (i, 0)),   # x slab (tb batch rows per step)
        wspec((M, M)),                            # additive mask
        wspec((C, 3 * C)), wspec((1, 3 * C)),     # in_proj (pre-transposed, q-scaled)
        wspec((C, C)), wspec((1, C)),             # out_proj
        wspec((C, Fd)), wspec((1, Fd)),           # linear1
        wspec((Fd, C)), wspec((1, C)),            # linear2
        wspec((1, C)), wspec((1, C)),             # norm1
        wspec((1, C)), wspec((1, C)),             # norm2
    ]
    out_spec = pl.BlockSpec((M, C), lambda i: (i, 0))

    flops = 2 * BATCH * S * C * (4 * C + 2 * Fd) + 4 * BATCH * S * M * C
    trans = (BATCH // tb) * H * M * M
    bytes_accessed = (BATCH * S * C * (in_item + out_item) + wbytes // 2 + M * M * 4)

    kernel = functools.partial(encoder_layer_kernel,
                               num_heads=H, in_scale=float(in_scale))
    y2 = pl.pallas_call(
        kernel,
        out_shape=jax.ShapeDtypeStruct((BATCH * S, C), out_dtype),
        grid_spec=pltpu.PrefetchScalarGridSpec(
            num_scalar_prefetch=0,
            grid=grid,
            in_specs=in_specs,
            out_specs=out_spec,
        ),
        compiler_params=pltpu.CompilerParams(
            dimension_semantics=("parallel",),
            vmem_limit_bytes=int(vmem_limit),
        ),
        cost_estimate=pl.CostEstimate(flops=int(flops),
                                      transcendentals=int(trans),
                                      bytes_accessed=int(bytes_accessed)),
    )(x2, mask, p['wqkv'], p['bqkv'], p['wo'], p['bo'],
      p['w1'], p['b1'], p['w2'], p['b2'],
      p['ln1w'], p['ln1b'], p['ln2w'], p['ln2b'])
    return y2.reshape(BATCH, S, C)


def init_encoder_layer_params(key, C, Fd, num_heads):
    ks = jax.random.split(key, 7)

    def u(k, shape, fan_in):
        bound = 1.0 / math.sqrt(fan_in)
        return jax.random.uniform(k, shape, jnp.float32, -bound, bound)

    Dh = C // num_heads
    qscale = 1.0 / math.sqrt(Dh)

    # Linear weights are stored pre-transposed to (in_features, out_features); the
    # 1/sqrt(Dh) attention scale is folded into the Q columns of wqkv (when loading
    # a PyTorch checkpoint, transpose the nn.Linear / in_proj weights and also scale
    # in_proj weight/bias[:C] by 1/sqrt(Dh)).
    wqkv = u(ks[0], (C, 3 * C), C)
    wqkv = wqkv.at[:, :C].multiply(qscale)
    bqkv = jnp.zeros((1, 3 * C), jnp.float32)
    bqkv = bqkv.at[:, :C].multiply(qscale)

    wdt = COMPUTE_DTYPE
    return {
        'wqkv': wqkv.astype(wdt),
        'bqkv': bqkv,
        'wo':   u(ks[1], (C, C), C).astype(wdt),
        'bo':   u(ks[2], (1, C), C),
        'w1':   u(ks[3], (C, Fd), C).astype(wdt),
        'b1':   u(ks[4], (1, Fd), C),
        'w2':   u(ks[5], (Fd, C), Fd).astype(wdt),
        'b2':   u(ks[6], (1, C), Fd),
        'ln1w': jnp.ones((1, C), jnp.float32),
        'ln1b': jnp.zeros((1, C), jnp.float32),
        'ln2w': jnp.ones((1, C), jnp.float32),
        'ln2b': jnp.zeros((1, C), jnp.float32),
    }


def st_transformer_forward(src, t_params, s_params, *, num_heads):
    """src: (B, N, T, C) -> (B, N, T, C), matching ST_TransformerLayers.forward."""
    B, N, T, C = src.shape
    scale0 = math.sqrt(C)                      # src * sqrt(d_model), fused below
    if not t_params:
        return src * scale0
    out = src
    n_layers = len(t_params)
    for i, (tp, sp) in enumerate(zip(t_params, s_params)):
        last = (i == n_layers - 1)
        # temporal attention: sequence = T, batch = B*N (free reshape)
        xt = out.reshape(B * N, T, C)
        xt = encoder_layer(xt, tp, num_heads=num_heads,
                           in_scale=scale0 if i == 0 else 1.0,
                           out_dtype=jnp.bfloat16)
        out = xt.reshape(B, N, T, C)
        # spatial attention: sequence = N, batch = B*T (bf16 handoff halves the
        # HBM traffic of the permutes)
        xs = jnp.transpose(out, (0, 2, 1, 3)).reshape(B * T, N, C)
        xs = encoder_layer(xs, sp, num_heads=num_heads,
                           out_dtype=src.dtype if last else jnp.bfloat16)
        out = jnp.transpose(xs.reshape(B, T, N, C), (0, 2, 1, 3))
    return out


if __name__ == "__main__":
    # hid_dim = 128 keeps every block's minor dim at exactly 128 lanes.
    B, N, T, C = 2, 4, 8, 128
    n_layers = 2
    mlp_ratio = 4
    num_heads = 4
    Fd = C * mlp_ratio

    key = jax.random.PRNGKey(0)
    k_src, k_params = jax.random.split(key)
    src = jax.random.normal(k_src, (B, N, T, C), jnp.float32)

    keys = jax.random.split(k_params, 2 * n_layers)
    t_params = [init_encoder_layer_params(keys[2 * i], C, Fd, num_heads)
                for i in range(n_layers)]
    s_params = [init_encoder_layer_params(keys[2 * i + 1], C, Fd, num_heads)
                for i in range(n_layers)]

    fwd = jax.jit(functools.partial(st_transformer_forward, num_heads=num_heads))
    out = fwd(src, t_params, s_params)
    out = jax.block_until_ready(out)
    assert out.shape == (B, N, T, C)
    assert out.dtype == src.dtype
    assert bool(jnp.all(jnp.isfinite(out)))
    print("KERNEL_OK")
</pallas_src>

<mosaic_0001>
module attributes {stable_mosaic.version = 11 : i64} {
  func.func @encoder_layer_kernel(%arg0: i32, %arg1: memref<64x128xbf16, #tpu.memory_space<vmem>>, %arg2: memref<64x64xf32, #tpu.memory_space<vmem>>, %arg3: memref<128x384xbf16, #tpu.memory_space<vmem>>, %arg4: memref<1x384xf32, #tpu.memory_space<vmem>>, %arg5: memref<128x128xbf16, #tpu.memory_space<vmem>>, %arg6: memref<1x128xf32, #tpu.memory_space<vmem>>, %arg7: memref<128x512xbf16, #tpu.memory_space<vmem>>, %arg8: memref<1x512xf32, #tpu.memory_space<vmem>>, %arg9: memref<512x128xbf16, #tpu.memory_space<vmem>>, %arg10: memref<1x128xf32, #tpu.memory_space<vmem>>, %arg11: memref<1x128xf32, #tpu.memory_space<vmem>>, %arg12: memref<1x128xf32, #tpu.memory_space<vmem>>, %arg13: memref<1x128xf32, #tpu.memory_space<vmem>>, %arg14: memref<1x128xf32, #tpu.memory_space<vmem>>, %arg15: memref<64x128xbf16, #tpu.memory_space<vmem>>) attributes {dimension_semantics = [#tpu.dimension_semantics<parallel>], iteration_bounds = array<i64: 1>, scalar_prefetch = 0 : i64, scratch_operands = 0 : i64, tpu.core_type = #tpu.core_type<tc>, window_params = [{transform_indices = @transform_0, window_bounds = array<i64: 64, 128>}, {pipeline_mode = #tpu.pipeline_mode<synchronous>, transform_indices = @transform_1, window_bounds = array<i64: 64, 64>}, {pipeline_mode = #tpu.pipeline_mode<synchronous>, transform_indices = @transform_2, window_bounds = array<i64: 128, 384>}, {pipeline_mode = #tpu.pipeline_mode<synchronous>, transform_indices = @transform_3, window_bounds = array<i64: 1, 384>}, {pipeline_mode = #tpu.pipeline_mode<synchronous>, transform_indices = @transform_4, window_bounds = array<i64: 128, 128>}, {pipeline_mode = #tpu.pipeline_mode<synchronous>, transform_indices = @transform_5, window_bounds = array<i64: 1, 128>}, {pipeline_mode = #tpu.pipeline_mode<synchronous>, transform_indices = @transform_6, window_bounds = array<i64: 128, 512>}, {pipeline_mode = #tpu.pipeline_mode<synchronous>, transform_indices = @transform_7, window_bounds = array<i64: 1, 512>}, {pipeline_mode = #tpu.pipeline_mode<synchronous>, transform_indices = @transform_8, window_bounds = array<i64: 512, 128>}, {pipeline_mode = #tpu.pipeline_mode<synchronous>, transform_indices = @transform_9, window_bounds = array<i64: 1, 128>}, {pipeline_mode = #tpu.pipeline_mode<synchronous>, transform_indices = @transform_10, window_bounds = array<i64: 1, 128>}, {pipeline_mode = #tpu.pipeline_mode<synchronous>, transform_indices = @transform_11, window_bounds = array<i64: 1, 128>}, {pipeline_mode = #tpu.pipeline_mode<synchronous>, transform_indices = @transform_12, window_bounds = array<i64: 1, 128>}, {pipeline_mode = #tpu.pipeline_mode<synchronous>, transform_indices = @transform_13, window_bounds = array<i64: 1, 128>}, {transform_indices = @transform_14, window_bounds = array<i64: 64, 128>}]} {
    %c0 = arith.constant 0 : index
    %c0_0 = arith.constant 0 : index
    %0 = vector.load %arg1[%c0, %c0_0] : memref<64x128xbf16, #tpu.memory_space<vmem>>, vector<64x128xbf16>
    %1 = arith.extf %0 : vector<64x128xbf16> to vector<64x128xf32>
    %2 = arith.truncf %1 : vector<64x128xf32> to vector<64x128xbf16>
    %c0_1 = arith.constant 0 : index
    %c0_2 = arith.constant 0 : index
    %3 = vector.load %arg3[%c0_1, %c0_2] : memref<128x384xbf16, #tpu.memory_space<vmem>>, vector<128x384xbf16>
    %cst = arith.constant dense<0.000000e+00> : vector<64x384xf32>
    %4 = tpu.matmul %2, %3, %cst {dimension_numbers = #tpu.dot_dimension_numbers<[1], [0], [0], [1], [0, 0, 1, 1], [], []>} : vector<64x128xbf16>, vector<128x384xbf16>, vector<64x384xf32> -> vector<64x384xf32>
    %c0_3 = arith.constant 0 : index
    %c0_4 = arith.constant 0 : index
    %5 = vector.load %arg4[%c0_3, %c0_4] : memref<1x384xf32, #tpu.memory_space<vmem>>, vector<1x384xf32>
    %6 = vector.shape_cast %5 : vector<1x384xf32> to vector<384xf32>
    %7 = vector.shape_cast %6 : vector<384xf32> to vector<1x384xf32>
    %8 = vector.broadcast %7 : vector<1x384xf32> to vector<64x384xf32>
    %9 = arith.addf %4, %8 : vector<64x384xf32>
    %c0_5 = arith.constant 0 : index
    %c0_6 = arith.constant 0 : index
    %10 = vector.load %arg2[%c0_5, %c0_6] : memref<64x64xf32, #tpu.memory_space<vmem>>, vector<64x64xf32>
    %c0_7 = arith.constant 0 : index
    %c0_8 = arith.constant 0 : index
    %11 = vector.load %arg5[%c0_7, %c0_8] : memref<128x128xbf16, #tpu.memory_space<vmem>>, vector<128x128xbf16>
    %cst_9 = arith.constant 0.000000e+00 : f32
    %12 = vector.broadcast %cst_9 : f32 to vector<64x128xf32>
    %13 = vector.extract_strided_slice %9 {offsets = [0, 0], sizes = [64, 32], strides = [1, 1]} : vector<64x384xf32> to vector<64x32xf32>
    %14 = arith.truncf %13 : vector<64x32xf32> to vector<64x32xbf16>
    %15 = vector.extract_strided_slice %9 {offsets = [0, 128], sizes = [64, 32], strides = [1, 1]} : vector<64x384xf32> to vector<64x32xf32>
    %16 = arith.truncf %15 : vector<64x32xf32> to vector<64x32xbf16>
    %17 = vector.extract_strided_slice %9 {offsets = [0, 256], sizes = [64, 32], strides = [1, 1]} : vector<64x384xf32> to vector<64x32xf32>
    %18 = arith.truncf %17 : vector<64x32xf32> to vector<64x32xbf16>
    "tpu.trace_start"() <{level = 10 : i32, message = "qd,kd->qk"}> : () -> ()
    %cst_10 = arith.constant dense<0.000000e+00> : vector<64x64xf32>
    %19 = tpu.matmul %14, %16, %cst_10 {dimension_numbers = #tpu.dot_dimension_numbers<[1], [1], [0], [0], [0, 0, 1, 0], [], []>} : vector<64x32xbf16>, vector<64x32xbf16>, vector<64x64xf32> -> vector<64x64xf32>
    "tpu.trace_stop"() : () -> ()
    %20 = arith.addf %19, %10 : vector<64x64xf32>
    %cst_11 = arith.constant dense<0xFF800000> : vector<64xf32>
    %21 = vector.multi_reduction <maximumf>, %20, %cst_11 [1] : vector<64x64xf32> to vector<64xf32>
    %22 = vector.shape_cast %21 : vector<64xf32> to vector<64x1xf32>
    %23 = vector.broadcast %22 : vector<64x1xf32> to vector<64x64xf32>
    %24 = arith.subf %20, %23 : vector<64x64xf32>
    %25 = math.exp %24 : vector<64x64xf32>
    %cst_12 = arith.constant dense<0.000000e+00> : vector<64xf32>
    %26 = vector.multi_reduction <add>, %25, %cst_12 [1] : vector<64x64xf32> to vector<64xf32>
    %27 = vector.shape_cast %26 : vector<64xf32> to vector<64x1xf32>
    %28 = tpu.reciprocal %27 {approx = true} : vector<64x1xf32> -> vector<64x1xf32>
    %29 = vector.broadcast %28 : vector<64x1xf32> to vector<64x64xf32>
    %30 = arith.mulf %25, %29 : vector<64x64xf32>
    %31 = arith.truncf %30 : vector<64x64xf32> to vector<64x64xbf16>
    %cst_13 = arith.constant dense<0.000000e+00> : vector<64x32xf32>
    %32 = tpu.matmul %31, %18, %cst_13 {dimension_numbers = #tpu.dot_dimension_numbers<[1], [0], [0], [1], [0, 0, 1, 1], [], []>} : vector<64x64xbf16>, vector<64x32xbf16>, vector<64x32xf32> -> vector<64x32xf32>
    %33 = arith.truncf %32 : vector<64x32xf32> to vector<64x32xbf16>
    %34 = vector.extract_strided_slice %11 {offsets = [0, 0], sizes = [32, 128], strides = [1, 1]} : vector<128x128xbf16> to vector<32x128xbf16>
    %cst_14 = arith.constant dense<0.000000e+00> : vector<64x128xf32>
    %35 = tpu.matmul %33, %34, %cst_14 {dimension_numbers = #tpu.dot_dimension_numbers<[1], [0], [0], [1], [0, 0, 1, 1], [], []>} : vector<64x32xbf16>, vector<32x128xbf16>, vector<64x128xf32> -> vector<64x128xf32>
    %36 = arith.addf %12, %35 : vector<64x128xf32>
    %37 = vector.extract_strided_slice %9 {offsets = [0, 32], sizes = [64, 32], strides = [1, 1]} : vector<64x384xf32> to vector<64x32xf32>
    %38 = arith.truncf %37 : vector<64x32xf32> to vector<64x32xbf16>
    %39 = vector.extract_strided_slice %9 {offsets = [0, 160], sizes = [64, 32], strides = [1, 1]} : vector<64x384xf32> to vector<64x32xf32>
    %40 = arith.truncf %39 : vector<64x32xf32> to vector<64x32xbf16>
    %41 = vector.extract_strided_slice %9 {offsets = [0, 288], sizes = [64, 32], strides = [1, 1]} : vector<64x384xf32> to vector<64x32xf32>
    %42 = arith.truncf %41 : vector<64x32xf32> to vector<64x32xbf16>
    "tpu.trace_start"() <{level = 10 : i32, message = "qd,kd->qk"}> : () -> ()
    %cst_15 = arith.constant dense<0.000000e+00> : vector<64x64xf32>
    %43 = tpu.matmul %38, %40, %cst_15 {dimension_numbers = #tpu.dot_dimension_numbers<[1], [1], [0], [0], [0, 0, 1, 0], [], []>} : vector<64x32xbf16>, vector<64x32xbf16>, vector<64x64xf32> -> vector<64x64xf32>
    "tpu.trace_stop"() : () -> ()
    %44 = arith.addf %43, %10 : vector<64x64xf32>
    %cst_16 = arith.constant dense<0xFF800000> : vector<64xf32>
    %45 = vector.multi_reduction <maximumf>, %44, %cst_16 [1] : vector<64x64xf32> to vector<64xf32>
    %46 = vector.shape_cast %45 : vector<64xf32> to vector<64x1xf32>
    %47 = vector.broadcast %46 : vector<64x1xf32> to vector<64x64xf32>
    %48 = arith.subf %44, %47 : vector<64x64xf32>
    %49 = math.exp %48 : vector<64x64xf32>
    %cst_17 = arith.constant dense<0.000000e+00> : vector<64xf32>
    %50 = vector.multi_reduction <add>, %49, %cst_17 [1] : vector<64x64xf32> to vector<64xf32>
    %51 = vector.shape_cast %50 : vector<64xf32> to vector<64x1xf32>
    %52 = tpu.reciprocal %51 {approx = true} : vector<64x1xf32> -> vector<64x1xf32>
    %53 = vector.broadcast %52 : vector<64x1xf32> to vector<64x64xf32>
    %54 = arith.mulf %49, %53 : vector<64x64xf32>
    %55 = arith.truncf %54 : vector<64x64xf32> to vector<64x64xbf16>
    %cst_18 = arith.constant dense<0.000000e+00> : vector<64x32xf32>
    %56 = tpu.matmul %55, %42, %cst_18 {dimension_numbers = #tpu.dot_dimension_numbers<[1], [0], [0], [1], [0, 0, 1, 1], [], []>} : vector<64x64xbf16>, vector<64x32xbf16>, vector<64x32xf32> -> vector<64x32xf32>
    %57 = arith.truncf %56 : vector<64x32xf32> to vector<64x32xbf16>
    %58 = vector.extract_strided_slice %11 {offsets = [32, 0], sizes = [32, 128], strides = [1, 1]} : vector<128x128xbf16> to vector<32x128xbf16>
    %cst_19 = arith.constant dense<0.000000e+00> : vector<64x128xf32>
    %59 = tpu.matmul %57, %58, %cst_19 {dimension_numbers = #tpu.dot_dimension_numbers<[1], [0], [0], [1], [0, 0, 1, 1], [], []>} : vector<64x32xbf16>, vector<32x128xbf16>, vector<64x128xf32> -> vector<64x128xf32>
    %60 = arith.addf %36, %59 : vector<64x128xf32>
    %61 = vector.extract_strided_slice %9 {offsets = [0, 64], sizes = [64, 32], strides = [1, 1]} : vector<64x384xf32> to vector<64x32xf32>
    %62 = arith.truncf %61 : vector<64x32xf32> to vector<64x32xbf16>
    %63 = vector.extract_strided_slice %9 {offsets = [0, 192], sizes = [64, 32], strides = [1, 1]} : vector<64x384xf32> to vector<64x32xf32>
    %64 = arith.truncf %63 : vector<64x32xf32> to vector<64x32xbf16>
    %65 = vector.extract_strided_slice %9 {offsets = [0, 320], sizes = [64, 32], strides = [1, 1]} : vector<64x384xf32> to vector<64x32xf32>
    %66 = arith.truncf %65 : vector<64x32xf32> to vector<64x32xbf16>
    "tpu.trace_start"() <{level = 10 : i32, message = "qd,kd->qk"}> : () -> ()
    %cst_20 = arith.constant dense<0.000000e+00> : vector<64x64xf32>
    %67 = tpu.matmul %62, %64, %cst_20 {dimension_numbers = #tpu.dot_dimension_numbers<[1], [1], [0], [0], [0, 0, 1, 0], [], []>} : vector<64x32xbf16>, vector<64x32xbf16>, vector<64x64xf32> -> vector<64x64xf32>
    "tpu.trace_stop"() : () -> ()
    %68 = arith.addf %67, %10 : vector<64x64xf32>
    %cst_21 = arith.constant dense<0xFF800000> : vector<64xf32>
    %69 = vector.multi_reduction <maximumf>, %68, %cst_21 [1] : vector<64x64xf32> to vector<64xf32>
    %70 = vector.shape_cast %69 : vector<64xf32> to vector<64x1xf32>
    %71 = vector.broadcast %70 : vector<64x1xf32> to vector<64x64xf32>
    %72 = arith.subf %68, %71 : vector<64x64xf32>
    %73 = math.exp %72 : vector<64x64xf32>
    %cst_22 = arith.constant dense<0.000000e+00> : vector<64xf32>
    %74 = vector.multi_reduction <add>, %73, %cst_22 [1] : vector<64x64xf32> to vector<64xf32>
    %75 = vector.shape_cast %74 : vector<64xf32> to vector<64x1xf32>
    %76 = tpu.reciprocal %75 {approx = true} : vector<64x1xf32> -> vector<64x1xf32>
    %77 = vector.broadcast %76 : vector<64x1xf32> to vector<64x64xf32>
    %78 = arith.mulf %73, %77 : vector<64x64xf32>
    %79 = arith.truncf %78 : vector<64x64xf32> to vector<64x64xbf16>
    %cst_23 = arith.constant dense<0.000000e+00> : vector<64x32xf32>
    %80 = tpu.matmul %79, %66, %cst_23 {dimension_numbers = #tpu.dot_dimension_numbers<[1], [0], [0], [1], [0, 0, 1, 1], [], []>} : vector<64x64xbf16>, vector<64x32xbf16>, vector<64x32xf32> -> vector<64x32xf32>
    %81 = arith.truncf %80 : vector<64x32xf32> to vector<64x32xbf16>
    %82 = vector.extract_strided_slice %11 {offsets = [64, 0], sizes = [32, 128], strides = [1, 1]} : vector<128x128xbf16> to vector<32x128xbf16>
    %cst_24 = arith.constant dense<0.000000e+00> : vector<64x128xf32>
    %83 = tpu.matmul %81, %82, %cst_24 {dimension_numbers = #tpu.dot_dimension_numbers<[1], [0], [0], [1], [0, 0, 1, 1], [], []>} : vector<64x32xbf16>, vector<32x128xbf16>, vector<64x128xf32> -> vector<64x128xf32>
    %84 = arith.addf %60, %83 : vector<64x128xf32>
    %85 = vector.extract_strided_slice %9 {offsets = [0, 96], sizes = [64, 32], strides = [1, 1]} : vector<64x384xf32> to vector<64x32xf32>
    %86 = arith.truncf %85 : vector<64x32xf32> to vector<64x32xbf16>
    %87 = vector.extract_strided_slice %9 {offsets = [0, 224], sizes = [64, 32], strides = [1, 1]} : vector<64x384xf32> to vector<64x32xf32>
    %88 = arith.truncf %87 : vector<64x32xf32> to vector<64x32xbf16>
    %89 = vector.extract_strided_slice %9 {offsets = [0, 352], sizes = [64, 32], strides = [1, 1]} : vector<64x384xf32> to vector<64x32xf32>
    %90 = arith.truncf %89 : vector<64x32xf32> to vector<64x32xbf16>
    "tpu.trace_start"() <{level = 10 : i32, message = "qd,kd->qk"}> : () -> ()
    %cst_25 = arith.constant dense<0.000000e+00> : vector<64x64xf32>
    %91 = tpu.matmul %86, %88, %cst_25 {dimension_numbers = #tpu.dot_dimension_numbers<[1], [1], [0], [0], [0, 0, 1, 0], [], []>} : vector<64x32xbf16>, vector<64x32xbf16>, vector<64x64xf32> -> vector<64x64xf32>
    "tpu.trace_stop"() : () -> ()
    %92 = arith.addf %91, %10 : vector<64x64xf32>
    %cst_26 = arith.constant dense<0xFF800000> : vector<64xf32>
    %93 = vector.multi_reduction <maximumf>, %92, %cst_26 [1] : vector<64x64xf32> to vector<64xf32>
    %94 = vector.shape_cast %93 : vector<64xf32> to vector<64x1xf32>
    %95 = vector.broadcast %94 : vector<64x1xf32> to vector<64x64xf32>
    %96 = arith.subf %92, %95 : vector<64x64xf32>
    %97 = math.exp %96 : vector<64x64xf32>
    %cst_27 = arith.constant dense<0.000000e+00> : vector<64xf32>
    %98 = vector.multi_reduction <add>, %97, %cst_27 [1] : vector<64x64xf32> to vector<64xf32>
    %99 = vector.shape_cast %98 : vector<64xf32> to vector<64x1xf32>
    %100 = tpu.reciprocal %99 {approx = true} : vector<64x1xf32> -> vector<64x1xf32>
    %101 = vector.broadcast %100 : vector<64x1xf32> to vector<64x64xf32>
    %102 = arith.mulf %97, %101 : vector<64x64xf32>
    %103 = arith.truncf %102 : vector<64x64xf32> to vector<64x64xbf16>
    %cst_28 = arith.constant dense<0.000000e+00> : vector<64x32xf32>
    %104 = tpu.matmul %103, %90, %cst_28 {dimension_numbers = #tpu.dot_dimension_numbers<[1], [0], [0], [1], [0, 0, 1, 1], [], []>} : vector<64x64xbf16>, vector<64x32xbf16>, vector<64x32xf32> -> vector<64x32xf32>
    %105 = arith.truncf %104 : vector<64x32xf32> to vector<64x32xbf16>
    %106 = vector.extract_strided_slice %11 {offsets = [96, 0], sizes = [32, 128], strides = [1, 1]} : vector<128x128xbf16> to vector<32x128xbf16>
    %cst_29 = arith.constant dense<0.000000e+00> : vector<64x128xf32>
    %107 = tpu.matmul %105, %106, %cst_29 {dimension_numbers = #tpu.dot_dimension_numbers<[1], [0], [0], [1], [0, 0, 1, 1], [], []>} : vector<64x32xbf16>, vector<32x128xbf16>, vector<64x128xf32> -> vector<64x128xf32>
    %108 = arith.addf %84, %107 : vector<64x128xf32>
    %c0_30 = arith.constant 0 : index
    %c0_31 = arith.constant 0 : index
    %109 = vector.load %arg6[%c0_30, %c0_31] : memref<1x128xf32, #tpu.memory_space<vmem>>, vector<1x128xf32>
    %110 = vector.shape_cast %109 : vector<1x128xf32> to vector<128xf32>
    %111 = vector.shape_cast %110 : vector<128xf32> to vector<1x128xf32>
    %112 = vector.broadcast %111 : vector<1x128xf32> to vector<64x128xf32>
    %113 = arith.addf %108, %112 : vector<64x128xf32>
    %114 = arith.addf %1, %113 : vector<64x128xf32>
    %c0_32 = arith.constant 0 : index
    %c0_33 = arith.constant 0 : index
    %115 = vector.load %arg11[%c0_32, %c0_33] : memref<1x128xf32, #tpu.memory_space<vmem>>, vector<1x128xf32>
    %116 = vector.shape_cast %115 : vector<1x128xf32> to vector<128xf32>
    %c0_34 = arith.constant 0 : index
    %c0_35 = arith.constant 0 : index
    %117 = vector.load %arg12[%c0_34, %c0_35] : memref<1x128xf32, #tpu.memory_space<vmem>>, vector<1x128xf32>
    %118 = vector.shape_cast %117 : vector<1x128xf32> to vector<128xf32>
    %cst_36 = arith.constant dense<0.000000e+00> : vector<64xf32>
    %119 = vector.multi_reduction <add>, %114, %cst_36 [1] : vector<64x128xf32> to vector<64xf32>
    %120 = vector.shape_cast %119 : vector<64xf32> to vector<64x1xf32>
    %cst_37 = arith.constant 1.280000e+02 : f32
    %121 = vector.broadcast %cst_37 : f32 to vector<64x1xf32>
    %122 = arith.divf %120, %121 : vector<64x1xf32>
    %123 = vector.broadcast %122 : vector<64x1xf32> to vector<64x128xf32>
    %124 = arith.subf %114, %123 : vector<64x128xf32>
    %125 = arith.mulf %124, %124 : vector<64x128xf32>
    %cst_38 = arith.constant dense<0.000000e+00> : vector<64xf32>
    %126 = vector.multi_reduction <add>, %125, %cst_38 [1] : vector<64x128xf32> to vector<64xf32>
    %127 = vector.shape_cast %126 : vector<64xf32> to vector<64x1xf32>
    %cst_39 = arith.constant 1.280000e+02 : f32
    %128 = vector.broadcast %cst_39 : f32 to vector<64x1xf32>
    %129 = arith.divf %127, %128 : vector<64x1xf32>
    %cst_40 = arith.constant 9.99999974E-6 : f32
    %130 = vector.broadcast %cst_40 : f32 to vector<64x1xf32>
    %131 = arith.addf %129, %130 : vector<64x1xf32>
    %132 = math.rsqrt %131 : vector<64x1xf32>
    %133 = vector.broadcast %132 : vector<64x1xf32> to vector<64x128xf32>
    %134 = arith.mulf %124, %133 : vector<64x128xf32>
    %135 = vector.shape_cast %116 : vector<128xf32> to vector<1x128xf32>
    %136 = vector.broadcast %135 : vector<1x128xf32> to vector<64x128xf32>
    %137 = arith.mulf %134, %136 : vector<64x128xf32>
    %138 = vector.shape_cast %118 : vector<128xf32> to vector<1x128xf32>
    %139 = vector.broadcast %138 : vector<1x128xf32> to vector<64x128xf32>
    %140 = arith.addf %137, %139 : vector<64x128xf32>
    %141 = arith.truncf %140 : vector<64x128xf32> to vector<64x128xbf16>
    %c0_41 = arith.constant 0 : index
    %c0_42 = arith.constant 0 : index
    %142 = vector.load %arg7[%c0_41, %c0_42] : memref<128x512xbf16, #tpu.memory_space<vmem>>, vector<128x512xbf16>
    %cst_43 = arith.constant dense<0.000000e+00> : vector<64x512xf32>
    %143 = tpu.matmul %141, %142, %cst_43 {dimension_numbers = #tpu.dot_dimension_numbers<[1], [0], [0], [1], [0, 0, 1, 1], [], []>} : vector<64x128xbf16>, vector<128x512xbf16>, vector<64x512xf32> -> vector<64x512xf32>
    %c0_44 = arith.constant 0 : index
    %c0_45 = arith.constant 0 : index
    %144 = vector.load %arg8[%c0_44, %c0_45] : memref<1x512xf32, #tpu.memory_space<vmem>>, vector<1x512xf32>
    %145 = vector.shape_cast %144 : vector<1x512xf32> to vector<512xf32>
    %146 = vector.shape_cast %145 : vector<512xf32> to vector<1x512xf32>
    %147 = vector.broadcast %146 : vector<1x512xf32> to vector<64x512xf32>
    %148 = arith.addf %143, %147 : vector<64x512xf32>
    %cst_46 = arith.constant 0.000000e+00 : f32
    %149 = vector.broadcast %cst_46 : f32 to vector<64x512xf32>
    %150 = arith.maximumf %148, %149 : vector<64x512xf32>
    %151 = arith.truncf %150 : vector<64x512xf32> to vector<64x512xbf16>
    %c0_47 = arith.constant 0 : index
    %c0_48 = arith.constant 0 : index
    %152 = vector.load %arg9[%c0_47, %c0_48] : memref<512x128xbf16, #tpu.memory_space<vmem>>, vector<512x128xbf16>
    %cst_49 = arith.constant dense<0.000000e+00> : vector<64x128xf32>
    %153 = tpu.matmul %151, %152, %cst_49 {dimension_numbers = #tpu.dot_dimension_numbers<[1], [0], [0], [1], [0, 0, 1, 1], [], []>} : vector<64x512xbf16>, vector<512x128xbf16>, vector<64x128xf32> -> vector<64x128xf32>
    %c0_50 = arith.constant 0 : index
    %c0_51 = arith.constant 0 : index
    %154 = vector.load %arg10[%c0_50, %c0_51] : memref<1x128xf32, #tpu.memory_space<vmem>>, vector<1x128xf32>
    %155 = vector.shape_cast %154 : vector<1x128xf32> to vector<128xf32>
    %156 = vector.shape_cast %155 : vector<128xf32> to vector<1x128xf32>
    %157 = vector.broadcast %156 : vector<1x128xf32> to vector<64x128xf32>
    %158 = arith.addf %153, %157 : vector<64x128xf32>
    %159 = arith.addf %140, %158 : vector<64x128xf32>
    %c0_52 = arith.constant 0 : index
    %c0_53 = arith.constant 0 : index
    %160 = vector.load %arg13[%c0_52, %c0_53] : memref<1x128xf32, #tpu.memory_space<vmem>>, vector<1x128xf32>
    %161 = vector.shape_cast %160 : vector<1x128xf32> to vector<128xf32>
    %c0_54 = arith.constant 0 : index
    %c0_55 = arith.constant 0 : index
    %162 = vector.load %arg14[%c0_54, %c0_55] : memref<1x128xf32, #tpu.memory_space<vmem>>, vector<1x128xf32>
    %163 = vector.shape_cast %162 : vector<1x128xf32> to vector<128xf32>
    %cst_56 = arith.constant dense<0.000000e+00> : vector<64xf32>
    %164 = vector.multi_reduction <add>, %159, %cst_56 [1] : vector<64x128xf32> to vector<64xf32>
    %165 = vector.shape_cast %164 : vector<64xf32> to vector<64x1xf32>
    %cst_57 = arith.constant 1.280000e+02 : f32
    %166 = vector.broadcast %cst_57 : f32 to vector<64x1xf32>
    %167 = arith.divf %165, %166 : vector<64x1xf32>
    %168 = vector.broadcast %167 : vector<64x1xf32> to vector<64x128xf32>
    %169 = arith.subf %159, %168 : vector<64x128xf32>
    %170 = arith.mulf %169, %169 : vector<64x128xf32>
    %cst_58 = arith.constant dense<0.000000e+00> : vector<64xf32>
    %171 = vector.multi_reduction <add>, %170, %cst_58 [1] : vector<64x128xf32> to vector<64xf32>
    %172 = vector.shape_cast %171 : vector<64xf32> to vector<64x1xf32>
    %cst_59 = arith.constant 1.280000e+02 : f32
    %173 = vector.broadcast %cst_59 : f32 to vector<64x1xf32>
    %174 = arith.divf %172, %173 : vector<64x1xf32>
    %cst_60 = arith.constant 9.99999974E-6 : f32
    %175 = vector.broadcast %cst_60 : f32 to vector<64x1xf32>
    %176 = arith.addf %174, %175 : vector<64x1xf32>
    %177 = math.rsqrt %176 : vector<64x1xf32>
    %178 = vector.broadcast %177 : vector<64x1xf32> to vector<64x128xf32>
    %179 = arith.mulf %169, %178 : vector<64x128xf32>
    %180 = vector.shape_cast %161 : vector<128xf32> to vector<1x128xf32>
    %181 = vector.broadcast %180 : vector<1x128xf32> to vector<64x128xf32>
    %182 = arith.mulf %179, %181 : vector<64x128xf32>
    %183 = vector.shape_cast %163 : vector<128xf32> to vector<1x128xf32>
    %184 = vector.broadcast %183 : vector<1x128xf32> to vector<64x128xf32>
    %185 = arith.addf %182, %184 : vector<64x128xf32>
    %186 = arith.truncf %185 : vector<64x128xf32> to vector<64x128xbf16>
    %c0_61 = arith.constant 0 : index
    %c0_62 = arith.constant 0 : index
    %187 = vector.load %arg15[%c0_61, %c0_62] : memref<64x128xbf16, #tpu.memory_space<vmem>>, vector<64x128xbf16>
    tpu.vector_store %arg15[%c0_61, %c0_62], %186 {strides = array<i32>} : memref<64x128xbf16, #tpu.memory_space<vmem>>, vector<64x128xbf16>,
    return
  }
  func.func @transform_0(%arg0: i32) -> (i32, i32) {
    %c0_i32 = arith.constant 0 : i32
    %c0_i32_0 = arith.constant 0 : i32
    return %arg0, %c0_i32 : i32, i32
  }
  func.func @transform_1(%arg0: i32) -> (i32, i32) {
    %c0_i32 = arith.constant 0 : i32
    %c0_i32_0 = arith.constant 0 : i32
    %c0_i32_1 = arith.constant 0 : i32
    return %c0_i32, %c0_i32_0 : i32, i32
  }
  func.func @transform_2(%arg0: i32) -> (i32, i32) {
    %c0_i32 = arith.constant 0 : i32
    %c0_i32_0 = arith.constant 0 : i32
    %c0_i32_1 = arith.constant 0 : i32
    return %c0_i32, %c0_i32_0 : i32, i32
  }
  func.func @transform_3(%arg0: i32) -> (i32, i32) {
    %c0_i32 = arith.constant 0 : i32
    %c0_i32_0 = arith.constant 0 : i32
    %c0_i32_1 = arith.constant 0 : i32
    return %c0_i32, %c0_i32_0 : i32, i32
  }
  func.func @transform_4(%arg0: i32) -> (i32, i32) {
    %c0_i32 = arith.constant 0 : i32
    %c0_i32_0 = arith.constant 0 : i32
    %c0_i32_1 = arith.constant 0 : i32
    return %c0_i32, %c0_i32_0 : i32, i32
  }
  func.func @transform_5(%arg0: i32) -> (i32, i32) {
    %c0_i32 = arith.constant 0 : i32
    %c0_i32_0 = arith.constant 0 : i32
    %c0_i32_1 = arith.constant 0 : i32
    return %c0_i32, %c0_i32_0 : i32, i32
  }
  func.func @transform_6(%arg0: i32) -> (i32, i32) {
    %c0_i32 = arith.constant 0 : i32
    %c0_i32_0 = arith.constant 0 : i32
    %c0_i32_1 = arith.constant 0 : i32
    return %c0_i32, %c0_i32_0 : i32, i32
  }
  func.func @transform_7(%arg0: i32) -> (i32, i32) {
    %c0_i32 = arith.constant 0 : i32
    %c0_i32_0 = arith.constant 0 : i32
    %c0_i32_1 = arith.constant 0 : i32
    return %c0_i32, %c0_i32_0 : i32, i32
  }
  func.func @transform_8(%arg0: i32) -> (i32, i32) {
    %c0_i32 = arith.constant 0 : i32
    %c0_i32_0 = arith.constant 0 : i32
    %c0_i32_1 = arith.constant 0 : i32
    return %c0_i32, %c0_i32_0 : i32, i32
  }
  func.func @transform_9(%arg0: i32) -> (i32, i32) {
    %c0_i32 = arith.constant 0 : i32
    %c0_i32_0 = arith.constant 0 : i32
    %c0_i32_1 = arith.constant 0 : i32
    return %c0_i32, %c0_i32_0 : i32, i32
  }
  func.func @transform_10(%arg0: i32) -> (i32, i32) {
    %c0_i32 = arith.constant 0 : i32
    %c0_i32_0 = arith.constant 0 : i32
    %c0_i32_1 = arith.constant 0 : i32
    return %c0_i32, %c0_i32_0 : i32, i32
  }
  func.func @transform_11(%arg0: i32) -> (i32, i32) {
    %c0_i32 = arith.constant 0 : i32
    %c0_i32_0 = arith.constant 0 : i32
    %c0_i32_1 = arith.constant 0 : i32
    return %c0_i32, %c0_i32_0 : i32, i32
  }
  func.func @transform_12(%arg0: i32) -> (i32, i32) {
    %c0_i32 = arith.constant 0 : i32
    %c0_i32_0 = arith.constant 0 : i32
    %c0_i32_1 = arith.constant 0 : i32
    return %c0_i32, %c0_i32_0 : i32, i32
  }
  func.func @transform_13(%arg0: i32) -> (i32, i32) {
    %c0_i32 = arith.constant 0 : i32
    %c0_i32_0 = arith.constant 0 : i32
    %c0_i32_1 = arith.constant 0 : i32
    return %c0_i32, %c0_i32_0 : i32, i32
  }
  func.func @transform_14(%arg0: i32) -> (i32, i32) {
    %c0_i32 = arith.constant 0 : i32
    %c0_i32_0 = arith.constant 0 : i32
    return %arg0, %c0_i32 : i32, i32
  }
}

module attributes {stable_mosaic.version = 11 : i64} {
  func.func @encoder_layer_kernel(%arg0: i32, %arg1: memref<64x128xf32, #tpu.memory_space<vmem>>, %arg2: memref<64x64xf32, #tpu.memory_space<vmem>>, %arg3: memref<128x384xbf16, #tpu.memory_space<vmem>>, %arg4: memref<1x384xf32, #tpu.memory_space<vmem>>, %arg5: memref<128x128xbf16, #tpu.memory_space<vmem>>, %arg6: memref<1x128xf32, #tpu.memory_space<vmem>>, %arg7: memref<128x512xbf16, #tpu.memory_space<vmem>>, %arg8: memref<1x512xf32, #tpu.memory_space<vmem>>, %arg9: memref<512x128xbf16, #tpu.memory_space<vmem>>, %arg10: memref<1x128xf32, #tpu.memory_space<vmem>>, %arg11: memref<1x128xf32, #tpu.memory_space<vmem>>, %arg12: memref<1x128xf32, #tpu.memory_space<vmem>>, %arg13: memref<1x128xf32, #tpu.memory_space<vmem>>, %arg14: memref<1x128xf32, #tpu.memory_space<vmem>>, %arg15: memref<64x128xbf16, #tpu.memory_space<vmem>>) attributes {dimension_semantics = [#tpu.dimension_semantics<parallel>], iteration_bounds = array<i64: 1>, scalar_prefetch = 0 : i64, scratch_operands = 0 : i64, tpu.core_type = #tpu.core_type<tc>, window_params = [{transform_indices = @transform_0, window_bounds = array<i64: 64, 128>}, {pipeline_mode = #tpu.pipeline_mode<synchronous>, transform_indices = @transform_1, window_bounds = array<i64: 64, 64>}, {pipeline_mode = #tpu.pipeline_mode<synchronous>, transform_indices = @transform_2, window_bounds = array<i64: 128, 384>}, {pipeline_mode = #tpu.pipeline_mode<synchronous>, transform_indices = @transform_3, window_bounds = array<i64: 1, 384>}, {pipeline_mode = #tpu.pipeline_mode<synchronous>, transform_indices = @transform_4, window_bounds = array<i64: 128, 128>}, {pipeline_mode = #tpu.pipeline_mode<synchronous>, transform_indices = @transform_5, window_bounds = array<i64: 1, 128>}, {pipeline_mode = #tpu.pipeline_mode<synchronous>, transform_indices = @transform_6, window_bounds = array<i64: 128, 512>}, {pipeline_mode = #tpu.pipeline_mode<synchronous>, transform_indices = @transform_7, window_bounds = array<i64: 1, 512>}, {pipeline_mode = #tpu.pipeline_mode<synchronous>, transform_indices = @transform_8, window_bounds = array<i64: 512, 128>}, {pipeline_mode = #tpu.pipeline_mode<synchronous>, transform_indices = @transform_9, window_bounds = array<i64: 1, 128>}, {pipeline_mode = #tpu.pipeline_mode<synchronous>, transform_indices = @transform_10, window_bounds = array<i64: 1, 128>}, {pipeline_mode = #tpu.pipeline_mode<synchronous>, transform_indices = @transform_11, window_bounds = array<i64: 1, 128>}, {pipeline_mode = #tpu.pipeline_mode<synchronous>, transform_indices = @transform_12, window_bounds = array<i64: 1, 128>}, {pipeline_mode = #tpu.pipeline_mode<synchronous>, transform_indices = @transform_13, window_bounds = array<i64: 1, 128>}, {transform_indices = @transform_14, window_bounds = array<i64: 64, 128>}]} {
    %c0 = arith.constant 0 : index
    %c0_0 = arith.constant 0 : index
    %0 = vector.load %arg1[%c0, %c0_0] : memref<64x128xf32, #tpu.memory_space<vmem>>, vector<64x128xf32>
    %cst = arith.constant 11.3137083 : f32
    %1 = vector.broadcast %cst : f32 to vector<64x128xf32>
    %2 = arith.mulf %0, %1 : vector<64x128xf32>
    %3 = arith.truncf %2 : vector<64x128xf32> to vector<64x128xbf16>
    %c0_1 = arith.constant 0 : index
    %c0_2 = arith.constant 0 : index
    %4 = vector.load %arg3[%c0_1, %c0_2] : memref<128x384xbf16, #tpu.memory_space<vmem>>, vector<128x384xbf16>
    %cst_3 = arith.constant dense<0.000000e+00> : vector<64x384xf32>
    %5 = tpu.matmul %3, %4, %cst_3 {dimension_numbers = #tpu.dot_dimension_numbers<[1], [0], [0], [1], [0, 0, 1, 1], [], []>} : vector<64x128xbf16>, vector<128x384xbf16>, vector<64x384xf32> -> vector<64x384xf32>
    %c0_4 = arith.constant 0 : index
    %c0_5 = arith.constant 0 : index
    %6 = vector.load %arg4[%c0_4, %c0_5] : memref<1x384xf32, #tpu.memory_space<vmem>>, vector<1x384xf32>
    %7 = vector.shape_cast %6 : vector<1x384xf32> to vector<384xf32>
    %8 = vector.shape_cast %7 : vector<384xf32> to vector<1x384xf32>
    %9 = vector.broadcast %8 : vector<1x384xf32> to vector<64x384xf32>
    %10 = arith.addf %5, %9 : vector<64x384xf32>
    %c0_6 = arith.constant 0 : index
    %c0_7 = arith.constant 0 : index
    %11 = vector.load %arg2[%c0_6, %c0_7] : memref<64x64xf32, #tpu.memory_space<vmem>>, vector<64x64xf32>
    %c0_8 = arith.constant 0 : index
    %c0_9 = arith.constant 0 : index
    %12 = vector.load %arg5[%c0_8, %c0_9] : memref<128x128xbf16, #tpu.memory_space<vmem>>, vector<128x128xbf16>
    %cst_10 = arith.constant 0.000000e+00 : f32
    %13 = vector.broadcast %cst_10 : f32 to vector<64x128xf32>
    %14 = vector.extract_strided_slice %10 {offsets = [0, 0], sizes = [64, 32], strides = [1, 1]} : vector<64x384xf32> to vector<64x32xf32>
    %15 = arith.truncf %14 : vector<64x32xf32> to vector<64x32xbf16>
    %16 = vector.extract_strided_slice %10 {offsets = [0, 128], sizes = [64, 32], strides = [1, 1]} : vector<64x384xf32> to vector<64x32xf32>
    %17 = arith.truncf %16 : vector<64x32xf32> to vector<64x32xbf16>
    %18 = vector.extract_strided_slice %10 {offsets = [0, 256], sizes = [64, 32], strides = [1, 1]} : vector<64x384xf32> to vector<64x32xf32>
    %19 = arith.truncf %18 : vector<64x32xf32> to vector<64x32xbf16>
    "tpu.trace_start"() <{level = 10 : i32, message = "qd,kd->qk"}> : () -> ()
    %cst_11 = arith.constant dense<0.000000e+00> : vector<64x64xf32>
    %20 = tpu.matmul %15, %17, %cst_11 {dimension_numbers = #tpu.dot_dimension_numbers<[1], [1], [0], [0], [0, 0, 1, 0], [], []>} : vector<64x32xbf16>, vector<64x32xbf16>, vector<64x64xf32> -> vector<64x64xf32>
    "tpu.trace_stop"() : () -> ()
    %21 = arith.addf %20, %11 : vector<64x64xf32>
    %cst_12 = arith.constant dense<0xFF800000> : vector<64xf32>
    %22 = vector.multi_reduction <maximumf>, %21, %cst_12 [1] : vector<64x64xf32> to vector<64xf32>
    %23 = vector.shape_cast %22 : vector<64xf32> to vector<64x1xf32>
    %24 = vector.broadcast %23 : vector<64x1xf32> to vector<64x64xf32>
    %25 = arith.subf %21, %24 : vector<64x64xf32>
    %26 = math.exp %25 : vector<64x64xf32>
    %cst_13 = arith.constant dense<0.000000e+00> : vector<64xf32>
    %27 = vector.multi_reduction <add>, %26, %cst_13 [1] : vector<64x64xf32> to vector<64xf32>
    %28 = vector.shape_cast %27 : vector<64xf32> to vector<64x1xf32>
    %29 = tpu.reciprocal %28 {approx = true} : vector<64x1xf32> -> vector<64x1xf32>
    %30 = vector.broadcast %29 : vector<64x1xf32> to vector<64x64xf32>
    %31 = arith.mulf %26, %30 : vector<64x64xf32>
    %32 = arith.truncf %31 : vector<64x64xf32> to vector<64x64xbf16>
    %cst_14 = arith.constant dense<0.000000e+00> : vector<64x32xf32>
    %33 = tpu.matmul %32, %19, %cst_14 {dimension_numbers = #tpu.dot_dimension_numbers<[1], [0], [0], [1], [0, 0, 1, 1], [], []>} : vector<64x64xbf16>, vector<64x32xbf16>, vector<64x32xf32> -> vector<64x32xf32>
    %34 = arith.truncf %33 : vector<64x32xf32> to vector<64x32xbf16>
    %35 = vector.extract_strided_slice %12 {offsets = [0, 0], sizes = [32, 128], strides = [1, 1]} : vector<128x128xbf16> to vector<32x128xbf16>
    %cst_15 = arith.constant dense<0.000000e+00> : vector<64x128xf32>
    %36 = tpu.matmul %34, %35, %cst_15 {dimension_numbers = #tpu.dot_dimension_numbers<[1], [0], [0], [1], [0, 0, 1, 1], [], []>} : vector<64x32xbf16>, vector<32x128xbf16>, vector<64x128xf32> -> vector<64x128xf32>
    %37 = arith.addf %13, %36 : vector<64x128xf32>
    %38 = vector.extract_strided_slice %10 {offsets = [0, 32], sizes = [64, 32], strides = [1, 1]} : vector<64x384xf32> to vector<64x32xf32>
    %39 = arith.truncf %38 : vector<64x32xf32> to vector<64x32xbf16>
    %40 = vector.extract_strided_slice %10 {offsets = [0, 160], sizes = [64, 32], strides = [1, 1]} : vector<64x384xf32> to vector<64x32xf32>
    %41 = arith.truncf %40 : vector<64x32xf32> to vector<64x32xbf16>
    %42 = vector.extract_strided_slice %10 {offsets = [0, 288], sizes = [64, 32], strides = [1, 1]} : vector<64x384xf32> to vector<64x32xf32>
    %43 = arith.truncf %42 : vector<64x32xf32> to vector<64x32xbf16>
    "tpu.trace_start"() <{level = 10 : i32, message = "qd,kd->qk"}> : () -> ()
    %cst_16 = arith.constant dense<0.000000e+00> : vector<64x64xf32>
    %44 = tpu.matmul %39, %41, %cst_16 {dimension_numbers = #tpu.dot_dimension_numbers<[1], [1], [0], [0], [0, 0, 1, 0], [], []>} : vector<64x32xbf16>, vector<64x32xbf16>, vector<64x64xf32> -> vector<64x64xf32>
    "tpu.trace_stop"() : () -> ()
    %45 = arith.addf %44, %11 : vector<64x64xf32>
    %cst_17 = arith.constant dense<0xFF800000> : vector<64xf32>
    %46 = vector.multi_reduction <maximumf>, %45, %cst_17 [1] : vector<64x64xf32> to vector<64xf32>
    %47 = vector.shape_cast %46 : vector<64xf32> to vector<64x1xf32>
    %48 = vector.broadcast %47 : vector<64x1xf32> to vector<64x64xf32>
    %49 = arith.subf %45, %48 : vector<64x64xf32>
    %50 = math.exp %49 : vector<64x64xf32>
    %cst_18 = arith.constant dense<0.000000e+00> : vector<64xf32>
    %51 = vector.multi_reduction <add>, %50, %cst_18 [1] : vector<64x64xf32> to vector<64xf32>
    %52 = vector.shape_cast %51 : vector<64xf32> to vector<64x1xf32>
    %53 = tpu.reciprocal %52 {approx = true} : vector<64x1xf32> -> vector<64x1xf32>
    %54 = vector.broadcast %53 : vector<64x1xf32> to vector<64x64xf32>
    %55 = arith.mulf %50, %54 : vector<64x64xf32>
    %56 = arith.truncf %55 : vector<64x64xf32> to vector<64x64xbf16>
    %cst_19 = arith.constant dense<0.000000e+00> : vector<64x32xf32>
    %57 = tpu.matmul %56, %43, %cst_19 {dimension_numbers = #tpu.dot_dimension_numbers<[1], [0], [0], [1], [0, 0, 1, 1], [], []>} : vector<64x64xbf16>, vector<64x32xbf16>, vector<64x32xf32> -> vector<64x32xf32>
    %58 = arith.truncf %57 : vector<64x32xf32> to vector<64x32xbf16>
    %59 = vector.extract_strided_slice %12 {offsets = [32, 0], sizes = [32, 128], strides = [1, 1]} : vector<128x128xbf16> to vector<32x128xbf16>
    %cst_20 = arith.constant dense<0.000000e+00> : vector<64x128xf32>
    %60 = tpu.matmul %58, %59, %cst_20 {dimension_numbers = #tpu.dot_dimension_numbers<[1], [0], [0], [1], [0, 0, 1, 1], [], []>} : vector<64x32xbf16>, vector<32x128xbf16>, vector<64x128xf32> -> vector<64x128xf32>
    %61 = arith.addf %37, %60 : vector<64x128xf32>
    %62 = vector.extract_strided_slice %10 {offsets = [0, 64], sizes = [64, 32], strides = [1, 1]} : vector<64x384xf32> to vector<64x32xf32>
    %63 = arith.truncf %62 : vector<64x32xf32> to vector<64x32xbf16>
    %64 = vector.extract_strided_slice %10 {offsets = [0, 192], sizes = [64, 32], strides = [1, 1]} : vector<64x384xf32> to vector<64x32xf32>
    %65 = arith.truncf %64 : vector<64x32xf32> to vector<64x32xbf16>
    %66 = vector.extract_strided_slice %10 {offsets = [0, 320], sizes = [64, 32], strides = [1, 1]} : vector<64x384xf32> to vector<64x32xf32>
    %67 = arith.truncf %66 : vector<64x32xf32> to vector<64x32xbf16>
    "tpu.trace_start"() <{level = 10 : i32, message = "qd,kd->qk"}> : () -> ()
    %cst_21 = arith.constant dense<0.000000e+00> : vector<64x64xf32>
    %68 = tpu.matmul %63, %65, %cst_21 {dimension_numbers = #tpu.dot_dimension_numbers<[1], [1], [0], [0], [0, 0, 1, 0], [], []>} : vector<64x32xbf16>, vector<64x32xbf16>, vector<64x64xf32> -> vector<64x64xf32>
    "tpu.trace_stop"() : () -> ()
    %69 = arith.addf %68, %11 : vector<64x64xf32>
    %cst_22 = arith.constant dense<0xFF800000> : vector<64xf32>
    %70 = vector.multi_reduction <maximumf>, %69, %cst_22 [1] : vector<64x64xf32> to vector<64xf32>
    %71 = vector.shape_cast %70 : vector<64xf32> to vector<64x1xf32>
    %72 = vector.broadcast %71 : vector<64x1xf32> to vector<64x64xf32>
    %73 = arith.subf %69, %72 : vector<64x64xf32>
    %74 = math.exp %73 : vector<64x64xf32>
    %cst_23 = arith.constant dense<0.000000e+00> : vector<64xf32>
    %75 = vector.multi_reduction <add>, %74, %cst_23 [1] : vector<64x64xf32> to vector<64xf32>
    %76 = vector.shape_cast %75 : vector<64xf32> to vector<64x1xf32>
    %77 = tpu.reciprocal %76 {approx = true} : vector<64x1xf32> -> vector<64x1xf32>
    %78 = vector.broadcast %77 : vector<64x1xf32> to vector<64x64xf32>
    %79 = arith.mulf %74, %78 : vector<64x64xf32>
    %80 = arith.truncf %79 : vector<64x64xf32> to vector<64x64xbf16>
    %cst_24 = arith.constant dense<0.000000e+00> : vector<64x32xf32>
    %81 = tpu.matmul %80, %67, %cst_24 {dimension_numbers = #tpu.dot_dimension_numbers<[1], [0], [0], [1], [0, 0, 1, 1], [], []>} : vector<64x64xbf16>, vector<64x32xbf16>, vector<64x32xf32> -> vector<64x32xf32>
    %82 = arith.truncf %81 : vector<64x32xf32> to vector<64x32xbf16>
    %83 = vector.extract_strided_slice %12 {offsets = [64, 0], sizes = [32, 128], strides = [1, 1]} : vector<128x128xbf16> to vector<32x128xbf16>
    %cst_25 = arith.constant dense<0.000000e+00> : vector<64x128xf32>
    %84 = tpu.matmul %82, %83, %cst_25 {dimension_numbers = #tpu.dot_dimension_numbers<[1], [0], [0], [1], [0, 0, 1, 1], [], []>} : vector<64x32xbf16>, vector<32x128xbf16>, vector<64x128xf32> -> vector<64x128xf32>
    %85 = arith.addf %61, %84 : vector<64x128xf32>
    %86 = vector.extract_strided_slice %10 {offsets = [0, 96], sizes = [64, 32], strides = [1, 1]} : vector<64x384xf32> to vector<64x32xf32>
    %87 = arith.truncf %86 : vector<64x32xf32> to vector<64x32xbf16>
    %88 = vector.extract_strided_slice %10 {offsets = [0, 224], sizes = [64, 32], strides = [1, 1]} : vector<64x384xf32> to vector<64x32xf32>
    %89 = arith.truncf %88 : vector<64x32xf32> to vector<64x32xbf16>
    %90 = vector.extract_strided_slice %10 {offsets = [0, 352], sizes = [64, 32], strides = [1, 1]} : vector<64x384xf32> to vector<64x32xf32>
    %91 = arith.truncf %90 : vector<64x32xf32> to vector<64x32xbf16>
    "tpu.trace_start"() <{level = 10 : i32, message = "qd,kd->qk"}> : () -> ()
    %cst_26 = arith.constant dense<0.000000e+00> : vector<64x64xf32>
    %92 = tpu.matmul %87, %89, %cst_26 {dimension_numbers = #tpu.dot_dimension_numbers<[1], [1], [0], [0], [0, 0, 1, 0], [], []>} : vector<64x32xbf16>, vector<64x32xbf16>, vector<64x64xf32> -> vector<64x64xf32>
    "tpu.trace_stop"() : () -> ()
    %93 = arith.addf %92, %11 : vector<64x64xf32>
    %cst_27 = arith.constant dense<0xFF800000> : vector<64xf32>
    %94 = vector.multi_reduction <maximumf>, %93, %cst_27 [1] : vector<64x64xf32> to vector<64xf32>
    %95 = vector.shape_cast %94 : vector<64xf32> to vector<64x1xf32>
    %96 = vector.broadcast %95 : vector<64x1xf32> to vector<64x64xf32>
    %97 = arith.subf %93, %96 : vector<64x64xf32>
    %98 = math.exp %97 : vector<64x64xf32>
    %cst_28 = arith.constant dense<0.000000e+00> : vector<64xf32>
    %99 = vector.multi_reduction <add>, %98, %cst_28 [1] : vector<64x64xf32> to vector<64xf32>
    %100 = vector.shape_cast %99 : vector<64xf32> to vector<64x1xf32>
    %101 = tpu.reciprocal %100 {approx = true} : vector<64x1xf32> -> vector<64x1xf32>
    %102 = vector.broadcast %101 : vector<64x1xf32> to vector<64x64xf32>
    %103 = arith.mulf %98, %102 : vector<64x64xf32>
    %104 = arith.truncf %103 : vector<64x64xf32> to vector<64x64xbf16>
    %cst_29 = arith.constant dense<0.000000e+00> : vector<64x32xf32>
    %105 = tpu.matmul %104, %91, %cst_29 {dimension_numbers = #tpu.dot_dimension_numbers<[1], [0], [0], [1], [0, 0, 1, 1], [], []>} : vector<64x64xbf16>, vector<64x32xbf16>, vector<64x32xf32> -> vector<64x32xf32>
    %106 = arith.truncf %105 : vector<64x32xf32> to vector<64x32xbf16>
    %107 = vector.extract_strided_slice %12 {offsets = [96, 0], sizes = [32, 128], strides = [1, 1]} : vector<128x128xbf16> to vector<32x128xbf16>
    %cst_30 = arith.constant dense<0.000000e+00> : vector<64x128xf32>
    %108 = tpu.matmul %106, %107, %cst_30 {dimension_numbers = #tpu.dot_dimension_numbers<[1], [0], [0], [1], [0, 0, 1, 1], [], []>} : vector<64x32xbf16>, vector<32x128xbf16>, vector<64x128xf32> -> vector<64x128xf32>
    %109 = arith.addf %85, %108 : vector<64x128xf32>
    %c0_31 = arith.constant 0 : index
    %c0_32 = arith.constant 0 : index
    %110 = vector.load %arg6[%c0_31, %c0_32] : memref<1x128xf32, #tpu.memory_space<vmem>>, vector<1x128xf32>
    %111 = vector.shape_cast %110 : vector<1x128xf32> to vector<128xf32>
    %112 = vector.shape_cast %111 : vector<128xf32> to vector<1x128xf32>
    %113 = vector.broadcast %112 : vector<1x128xf32> to vector<64x128xf32>
    %114 = arith.addf %109, %113 : vector<64x128xf32>
    %115 = arith.addf %2, %114 : vector<64x128xf32>
    %c0_33 = arith.constant 0 : index
    %c0_34 = arith.constant 0 : index
    %116 = vector.load %arg11[%c0_33, %c0_34] : memref<1x128xf32, #tpu.memory_space<vmem>>, vector<1x128xf32>
    %117 = vector.shape_cast %116 : vector<1x128xf32> to vector<128xf32>
    %c0_35 = arith.constant 0 : index
    %c0_36 = arith.constant 0 : index
    %118 = vector.load %arg12[%c0_35, %c0_36] : memref<1x128xf32, #tpu.memory_space<vmem>>, vector<1x128xf32>
    %119 = vector.shape_cast %118 : vector<1x128xf32> to vector<128xf32>
    %cst_37 = arith.constant dense<0.000000e+00> : vector<64xf32>
    %120 = vector.multi_reduction <add>, %115, %cst_37 [1] : vector<64x128xf32> to vector<64xf32>
    %121 = vector.shape_cast %120 : vector<64xf32> to vector<64x1xf32>
    %cst_38 = arith.constant 1.280000e+02 : f32
    %122 = vector.broadcast %cst_38 : f32 to vector<64x1xf32>
    %123 = arith.divf %121, %122 : vector<64x1xf32>
    %124 = vector.broadcast %123 : vector<64x1xf32> to vector<64x128xf32>
    %125 = arith.subf %115, %124 : vector<64x128xf32>
    %126 = arith.mulf %125, %125 : vector<64x128xf32>
    %cst_39 = arith.constant dense<0.000000e+00> : vector<64xf32>
    %127 = vector.multi_reduction <add>, %126, %cst_39 [1] : vector<64x128xf32> to vector<64xf32>
    %128 = vector.shape_cast %127 : vector<64xf32> to vector<64x1xf32>
    %cst_40 = arith.constant 1.280000e+02 : f32
    %129 = vector.broadcast %cst_40 : f32 to vector<64x1xf32>
    %130 = arith.divf %128, %129 : vector<64x1xf32>
    %cst_41 = arith.constant 9.99999974E-6 : f32
    %131 = vector.broadcast %cst_41 : f32 to vector<64x1xf32>
    %132 = arith.addf %130, %131 : vector<64x1xf32>
    %133 = math.rsqrt %132 : vector<64x1xf32>
    %134 = vector.broadcast %133 : vector<64x1xf32> to vector<64x128xf32>
    %135 = arith.mulf %125, %134 : vector<64x128xf32>
    %136 = vector.shape_cast %117 : vector<128xf32> to vector<1x128xf32>
    %137 = vector.broadcast %136 : vector<1x128xf32> to vector<64x128xf32>
    %138 = arith.mulf %135, %137 : vector<64x128xf32>
    %139 = vector.shape_cast %119 : vector<128xf32> to vector<1x128xf32>
    %140 = vector.broadcast %139 : vector<1x128xf32> to vector<64x128xf32>
    %141 = arith.addf %138, %140 : vector<64x128xf32>
    %142 = arith.truncf %141 : vector<64x128xf32> to vector<64x128xbf16>
    %c0_42 = arith.constant 0 : index
    %c0_43 = arith.constant 0 : index
    %143 = vector.load %arg7[%c0_42, %c0_43] : memref<128x512xbf16, #tpu.memory_space<vmem>>, vector<128x512xbf16>
    %cst_44 = arith.constant dense<0.000000e+00> : vector<64x512xf32>
    %144 = tpu.matmul %142, %143, %cst_44 {dimension_numbers = #tpu.dot_dimension_numbers<[1], [0], [0], [1], [0, 0, 1, 1], [], []>} : vector<64x128xbf16>, vector<128x512xbf16>, vector<64x512xf32> -> vector<64x512xf32>
    %c0_45 = arith.constant 0 : index
    %c0_46 = arith.constant 0 : index
    %145 = vector.load %arg8[%c0_45, %c0_46] : memref<1x512xf32, #tpu.memory_space<vmem>>, vector<1x512xf32>
    %146 = vector.shape_cast %145 : vector<1x512xf32> to vector<512xf32>
    %147 = vector.shape_cast %146 : vector<512xf32> to vector<1x512xf32>
    %148 = vector.broadcast %147 : vector<1x512xf32> to vector<64x512xf32>
    %149 = arith.addf %144, %148 : vector<64x512xf32>
    %cst_47 = arith.constant 0.000000e+00 : f32
    %150 = vector.broadcast %cst_47 : f32 to vector<64x512xf32>
    %151 = arith.maximumf %149, %150 : vector<64x512xf32>
    %152 = arith.truncf %151 : vector<64x512xf32> to vector<64x512xbf16>
    %c0_48 = arith.constant 0 : index
    %c0_49 = arith.constant 0 : index
    %153 = vector.load %arg9[%c0_48, %c0_49] : memref<512x128xbf16, #tpu.memory_space<vmem>>, vector<512x128xbf16>
    %cst_50 = arith.constant dense<0.000000e+00> : vector<64x128xf32>
    %154 = tpu.matmul %152, %153, %cst_50 {dimension_numbers = #tpu.dot_dimension_numbers<[1], [0], [0], [1], [0, 0, 1, 1], [], []>} : vector<64x512xbf16>, vector<512x128xbf16>, vector<64x128xf32> -> vector<64x128xf32>
    %c0_51 = arith.constant 0 : index
    %c0_52 = arith.constant 0 : index
    %155 = vector.load %arg10[%c0_51, %c0_52] : memref<1x128xf32, #tpu.memory_space<vmem>>, vector<1x128xf32>
    %156 = vector.shape_cast %155 : vector<1x128xf32> to vector<128xf32>
    %157 = vector.shape_cast %156 : vector<128xf32> to vector<1x128xf32>
    %158 = vector.broadcast %157 : vector<1x128xf32> to vector<64x128xf32>
    %159 = arith.addf %154, %158 : vector<64x128xf32>
    %160 = arith.addf %141, %159 : vector<64x128xf32>
    %c0_53 = arith.constant 0 : index
    %c0_54 = arith.constant 0 : index
    %161 = vector.load %arg13[%c0_53, %c0_54] : memref<1x128xf32, #tpu.memory_space<vmem>>, vector<1x128xf32>
    %162 = vector.shape_cast %161 : vector<1x128xf32> to vector<128xf32>
    %c0_55 = arith.constant 0 : index
    %c0_56 = arith.constant 0 : index
    %163 = vector.load %arg14[%c0_55, %c0_56] : memref<1x128xf32, #tpu.memory_space<vmem>>, vector<1x128xf32>
    %164 = vector.shape_cast %163 : vector<1x128xf32> to vector<128xf32>
    %cst_57 = arith.constant dense<0.000000e+00> : vector<64xf32>
    %165 = vector.multi_reduction <add>, %160, %cst_57 [1] : vector<64x128xf32> to vector<64xf32>
    %166 = vector.shape_cast %165 : vector<64xf32> to vector<64x1xf32>
    %cst_58 = arith.constant 1.280000e+02 : f32
    %167 = vector.broadcast %cst_58 : f32 to vector<64x1xf32>
    %168 = arith.divf %166, %167 : vector<64x1xf32>
    %169 = vector.broadcast %168 : vector<64x1xf32> to vector<64x128xf32>
    %170 = arith.subf %160, %169 : vector<64x128xf32>
    %171 = arith.mulf %170, %170 : vector<64x128xf32>
    %cst_59 = arith.constant dense<0.000000e+00> : vector<64xf32>
    %172 = vector.multi_reduction <add>, %171, %cst_59 [1] : vector<64x128xf32> to vector<64xf32>
    %173 = vector.shape_cast %172 : vector<64xf32> to vector<64x1xf32>
    %cst_60 = arith.constant 1.280000e+02 : f32
    %174 = vector.broadcast %cst_60 : f32 to vector<64x1xf32>
    %175 = arith.divf %173, %174 : vector<64x1xf32>
    %cst_61 = arith.constant 9.99999974E-6 : f32
    %176 = vector.broadcast %cst_61 : f32 to vector<64x1xf32>
    %177 = arith.addf %175, %176 : vector<64x1xf32>
    %178 = math.rsqrt %177 : vector<64x1xf32>
    %179 = vector.broadcast %178 : vector<64x1xf32> to vector<64x128xf32>
    %180 = arith.mulf %170, %179 : vector<64x128xf32>
    %181 = vector.shape_cast %162 : vector<128xf32> to vector<1x128xf32>
    %182 = vector.broadcast %181 : vector<1x128xf32> to vector<64x128xf32>
    %183 = arith.mulf %180, %182 : vector<64x128xf32>
    %184 = vector.shape_cast %164 : vector<128xf32> to vector<1x128xf32>
    %185 = vector.broadcast %184 : vector<1x128xf32> to vector<64x128xf32>
    %186 = arith.addf %183, %185 : vector<64x128xf32>
    %187 = arith.truncf %186 : vector<64x128xf32> to vector<64x128xbf16>
    %c0_62 = arith.constant 0 : index
    %c0_63 = arith.constant 0 : index
    %188 = vector.load %arg15[%c0_62, %c0_63] : memref<64x128xbf16, #tpu.memory_space<vmem>>, vector<64x128xbf16>
    tpu.vector_store %arg15[%c0_62, %c0_63], %187 {strides = array<i32>} : memref<64x128xbf16, #tpu.memory_space<vmem>>, vector<64x128xbf16>,
    return
  }
  func.func @transform_0(%arg0: i32) -> (i32, i32) {
    %c0_i32 = arith.constant 0 : i32
    %c0_i32_0 = arith.constant 0 : i32
    return %arg0, %c0_i32 : i32, i32
  }
  func.func @transform_1(%arg0: i32) -> (i32, i32) {
    %c0_i32 = arith.constant 0 : i32
    %c0_i32_0 = arith.constant 0 : i32
    %c0_i32_1 = arith.constant 0 : i32
    return %c0_i32, %c0_i32_0 : i32, i32
  }
  func.func @transform_2(%arg0: i32) -> (i32, i32) {
    %c0_i32 = arith.constant 0 : i32
    %c0_i32_0 = arith.constant 0 : i32
    %c0_i32_1 = arith.constant 0 : i32
    return %c0_i32, %c0_i32_0 : i32, i32
  }
  func.func @transform_3(%arg0: i32) -> (i32, i32) {
    %c0_i32 = arith.constant 0 : i32
    %c0_i32_0 = arith.constant 0 : i32
    %c0_i32_1 = arith.constant 0 : i32
    return %c0_i32, %c0_i32_0 : i32, i32
  }
  func.func @transform_4(%arg0: i32) -> (i32, i32) {
    %c0_i32 = arith.constant 0 : i32
    %c0_i32_0 = arith.constant 0 : i32
    %c0_i32_1 = arith.constant 0 : i32
    return %c0_i32, %c0_i32_0 : i32, i32
  }
  func.func @transform_5(%arg0: i32) -> (i32, i32) {
    %c0_i32 = arith.constant 0 : i32
    %c0_i32_0 = arith.constant 0 : i32
    %c0_i32_1 = arith.constant 0 : i32
    return %c0_i32, %c0_i32_0 : i32, i32
  }
  func.func @transform_6(%arg0: i32) -> (i32, i32) {
    %c0_i32 = arith.constant 0 : i32
    %c0_i32_0 = arith.constant 0 : i32
    %c0_i32_1 = arith.constant 0 : i32
    return %c0_i32, %c0_i32_0 : i32, i32
  }
  func.func @transform_7(%arg0: i32) -> (i32, i32) {
    %c0_i32 = arith.constant 0 : i32
    %c0_i32_0 = arith.constant 0 : i32
    %c0_i32_1 = arith.constant 0 : i32
    return %c0_i32, %c0_i32_0 : i32, i32
  }
  func.func @transform_8(%arg0: i32) -> (i32, i32) {
    %c0_i32 = arith.constant 0 : i32
    %c0_i32_0 = arith.constant 0 : i32
    %c0_i32_1 = arith.constant 0 : i32
    return %c0_i32, %c0_i32_0 : i32, i32
  }
  func.func @transform_9(%arg0: i32) -> (i32, i32) {
    %c0_i32 = arith.constant 0 : i32
    %c0_i32_0 = arith.constant 0 : i32
    %c0_i32_1 = arith.constant 0 : i32
    return %c0_i32, %c0_i32_0 : i32, i32
  }
  func.func @transform_10(%arg0: i32) -> (i32, i32) {
    %c0_i32 = arith.constant 0 : i32
    %c0_i32_0 = arith.constant 0 : i32
    %c0_i32_1 = arith.constant 0 : i32
    return %c0_i32, %c0_i32_0 : i32, i32
  }
  func.func @transform_11(%arg0: i32) -> (i32, i32) {
    %c0_i32 = arith.constant 0 : i32
    %c0_i32_0 = arith.constant 0 : i32
    %c0_i32_1 = arith.constant 0 : i32
    return %c0_i32, %c0_i32_0 : i32, i32
  }
  func.func @transform_12(%arg0: i32) -> (i32, i32) {
    %c0_i32 = arith.constant 0 : i32
    %c0_i32_0 = arith.constant 0 : i32
    %c0_i32_1 = arith.constant 0 : i32
    return %c0_i32, %c0_i32_0 : i32, i32
  }
  func.func @transform_13(%arg0: i32) -> (i32, i32) {
    %c0_i32 = arith.constant 0 : i32
    %c0_i32_0 = arith.constant 0 : i32
    %c0_i32_1 = arith.constant 0 : i32
    return %c0_i32, %c0_i32_0 : i32, i32
  }
  func.func @transform_14(%arg0: i32) -> (i32, i32) {
    %c0_i32 = arith.constant 0 : i32
    %c0_i32_0 = arith.constant 0 : i32
    return %arg0, %c0_i32 : i32, i32
  }
}

module attributes {stable_mosaic.version = 11 : i64} {
  func.func @encoder_layer_kernel(%arg0: i32, %arg1: memref<64x128xbf16, #tpu.memory_space<vmem>>, %arg2: memref<64x64xf32, #tpu.memory_space<vmem>>, %arg3: memref<128x384xbf16, #tpu.memory_space<vmem>>, %arg4: memref<1x384xf32, #tpu.memory_space<vmem>>, %arg5: memref<128x128xbf16, #tpu.memory_space<vmem>>, %arg6: memref<1x128xf32, #tpu.memory_space<vmem>>, %arg7: memref<128x512xbf16, #tpu.memory_space<vmem>>, %arg8: memref<1x512xf32, #tpu.memory_space<vmem>>, %arg9: memref<512x128xbf16, #tpu.memory_space<vmem>>, %arg10: memref<1x128xf32, #tpu.memory_space<vmem>>, %arg11: memref<1x128xf32, #tpu.memory_space<vmem>>, %arg12: memref<1x128xf32, #tpu.memory_space<vmem>>, %arg13: memref<1x128xf32, #tpu.memory_space<vmem>>, %arg14: memref<1x128xf32, #tpu.memory_space<vmem>>, %arg15: memref<64x128xf32, #tpu.memory_space<vmem>>) attributes {dimension_semantics = [#tpu.dimension_semantics<parallel>], iteration_bounds = array<i64: 1>, scalar_prefetch = 0 : i64, scratch_operands = 0 : i64, tpu.core_type = #tpu.core_type<tc>, window_params = [{transform_indices = @transform_0, window_bounds = array<i64: 64, 128>}, {pipeline_mode = #tpu.pipeline_mode<synchronous>, transform_indices = @transform_1, window_bounds = array<i64: 64, 64>}, {pipeline_mode = #tpu.pipeline_mode<synchronous>, transform_indices = @transform_2, window_bounds = array<i64: 128, 384>}, {pipeline_mode = #tpu.pipeline_mode<synchronous>, transform_indices = @transform_3, window_bounds = array<i64: 1, 384>}, {pipeline_mode = #tpu.pipeline_mode<synchronous>, transform_indices = @transform_4, window_bounds = array<i64: 128, 128>}, {pipeline_mode = #tpu.pipeline_mode<synchronous>, transform_indices = @transform_5, window_bounds = array<i64: 1, 128>}, {pipeline_mode = #tpu.pipeline_mode<synchronous>, transform_indices = @transform_6, window_bounds = array<i64: 128, 512>}, {pipeline_mode = #tpu.pipeline_mode<synchronous>, transform_indices = @transform_7, window_bounds = array<i64: 1, 512>}, {pipeline_mode = #tpu.pipeline_mode<synchronous>, transform_indices = @transform_8, window_bounds = array<i64: 512, 128>}, {pipeline_mode = #tpu.pipeline_mode<synchronous>, transform_indices = @transform_9, window_bounds = array<i64: 1, 128>}, {pipeline_mode = #tpu.pipeline_mode<synchronous>, transform_indices = @transform_10, window_bounds = array<i64: 1, 128>}, {pipeline_mode = #tpu.pipeline_mode<synchronous>, transform_indices = @transform_11, window_bounds = array<i64: 1, 128>}, {pipeline_mode = #tpu.pipeline_mode<synchronous>, transform_indices = @transform_12, window_bounds = array<i64: 1, 128>}, {pipeline_mode = #tpu.pipeline_mode<synchronous>, transform_indices = @transform_13, window_bounds = array<i64: 1, 128>}, {transform_indices = @transform_14, window_bounds = array<i64: 64, 128>}]} {
    %c0 = arith.constant 0 : index
    %c0_0 = arith.constant 0 : index
    %0 = vector.load %arg1[%c0, %c0_0] : memref<64x128xbf16, #tpu.memory_space<vmem>>, vector<64x128xbf16>
    %1 = arith.extf %0 : vector<64x128xbf16> to vector<64x128xf32>
    %2 = arith.truncf %1 : vector<64x128xf32> to vector<64x128xbf16>
    %c0_1 = arith.constant 0 : index
    %c0_2 = arith.constant 0 : index
    %3 = vector.load %arg3[%c0_1, %c0_2] : memref<128x384xbf16, #tpu.memory_space<vmem>>, vector<128x384xbf16>
    %cst = arith.constant dense<0.000000e+00> : vector<64x384xf32>
    %4 = tpu.matmul %2, %3, %cst {dimension_numbers = #tpu.dot_dimension_numbers<[1], [0], [0], [1], [0, 0, 1, 1], [], []>} : vector<64x128xbf16>, vector<128x384xbf16>, vector<64x384xf32> -> vector<64x384xf32>
    %c0_3 = arith.constant 0 : index
    %c0_4 = arith.constant 0 : index
    %5 = vector.load %arg4[%c0_3, %c0_4] : memref<1x384xf32, #tpu.memory_space<vmem>>, vector<1x384xf32>
    %6 = vector.shape_cast %5 : vector<1x384xf32> to vector<384xf32>
    %7 = vector.shape_cast %6 : vector<384xf32> to vector<1x384xf32>
    %8 = vector.broadcast %7 : vector<1x384xf32> to vector<64x384xf32>
    %9 = arith.addf %4, %8 : vector<64x384xf32>
    %c0_5 = arith.constant 0 : index
    %c0_6 = arith.constant 0 : index
    %10 = vector.load %arg2[%c0_5, %c0_6] : memref<64x64xf32, #tpu.memory_space<vmem>>, vector<64x64xf32>
    %c0_7 = arith.constant 0 : index
    %c0_8 = arith.constant 0 : index
    %11 = vector.load %arg5[%c0_7, %c0_8] : memref<128x128xbf16, #tpu.memory_space<vmem>>, vector<128x128xbf16>
    %cst_9 = arith.constant 0.000000e+00 : f32
    %12 = vector.broadcast %cst_9 : f32 to vector<64x128xf32>
    %13 = vector.extract_strided_slice %9 {offsets = [0, 0], sizes = [64, 32], strides = [1, 1]} : vector<64x384xf32> to vector<64x32xf32>
    %14 = arith.truncf %13 : vector<64x32xf32> to vector<64x32xbf16>
    %15 = vector.extract_strided_slice %9 {offsets = [0, 128], sizes = [64, 32], strides = [1, 1]} : vector<64x384xf32> to vector<64x32xf32>
    %16 = arith.truncf %15 : vector<64x32xf32> to vector<64x32xbf16>
    %17 = vector.extract_strided_slice %9 {offsets = [0, 256], sizes = [64, 32], strides = [1, 1]} : vector<64x384xf32> to vector<64x32xf32>
    %18 = arith.truncf %17 : vector<64x32xf32> to vector<64x32xbf16>
    "tpu.trace_start"() <{level = 10 : i32, message = "qd,kd->qk"}> : () -> ()
    %cst_10 = arith.constant dense<0.000000e+00> : vector<64x64xf32>
    %19 = tpu.matmul %14, %16, %cst_10 {dimension_numbers = #tpu.dot_dimension_numbers<[1], [1], [0], [0], [0, 0, 1, 0], [], []>} : vector<64x32xbf16>, vector<64x32xbf16>, vector<64x64xf32> -> vector<64x64xf32>
    "tpu.trace_stop"() : () -> ()
    %20 = arith.addf %19, %10 : vector<64x64xf32>
    %cst_11 = arith.constant dense<0xFF800000> : vector<64xf32>
    %21 = vector.multi_reduction <maximumf>, %20, %cst_11 [1] : vector<64x64xf32> to vector<64xf32>
    %22 = vector.shape_cast %21 : vector<64xf32> to vector<64x1xf32>
    %23 = vector.broadcast %22 : vector<64x1xf32> to vector<64x64xf32>
    %24 = arith.subf %20, %23 : vector<64x64xf32>
    %25 = math.exp %24 : vector<64x64xf32>
    %cst_12 = arith.constant dense<0.000000e+00> : vector<64xf32>
    %26 = vector.multi_reduction <add>, %25, %cst_12 [1] : vector<64x64xf32> to vector<64xf32>
    %27 = vector.shape_cast %26 : vector<64xf32> to vector<64x1xf32>
    %28 = tpu.reciprocal %27 {approx = true} : vector<64x1xf32> -> vector<64x1xf32>
    %29 = vector.broadcast %28 : vector<64x1xf32> to vector<64x64xf32>
    %30 = arith.mulf %25, %29 : vector<64x64xf32>
    %31 = arith.truncf %30 : vector<64x64xf32> to vector<64x64xbf16>
    %cst_13 = arith.constant dense<0.000000e+00> : vector<64x32xf32>
    %32 = tpu.matmul %31, %18, %cst_13 {dimension_numbers = #tpu.dot_dimension_numbers<[1], [0], [0], [1], [0, 0, 1, 1], [], []>} : vector<64x64xbf16>, vector<64x32xbf16>, vector<64x32xf32> -> vector<64x32xf32>
    %33 = arith.truncf %32 : vector<64x32xf32> to vector<64x32xbf16>
    %34 = vector.extract_strided_slice %11 {offsets = [0, 0], sizes = [32, 128], strides = [1, 1]} : vector<128x128xbf16> to vector<32x128xbf16>
    %cst_14 = arith.constant dense<0.000000e+00> : vector<64x128xf32>
    %35 = tpu.matmul %33, %34, %cst_14 {dimension_numbers = #tpu.dot_dimension_numbers<[1], [0], [0], [1], [0, 0, 1, 1], [], []>} : vector<64x32xbf16>, vector<32x128xbf16>, vector<64x128xf32> -> vector<64x128xf32>
    %36 = arith.addf %12, %35 : vector<64x128xf32>
    %37 = vector.extract_strided_slice %9 {offsets = [0, 32], sizes = [64, 32], strides = [1, 1]} : vector<64x384xf32> to vector<64x32xf32>
    %38 = arith.truncf %37 : vector<64x32xf32> to vector<64x32xbf16>
    %39 = vector.extract_strided_slice %9 {offsets = [0, 160], sizes = [64, 32], strides = [1, 1]} : vector<64x384xf32> to vector<64x32xf32>
    %40 = arith.truncf %39 : vector<64x32xf32> to vector<64x32xbf16>
    %41 = vector.extract_strided_slice %9 {offsets = [0, 288], sizes = [64, 32], strides = [1, 1]} : vector<64x384xf32> to vector<64x32xf32>
    %42 = arith.truncf %41 : vector<64x32xf32> to vector<64x32xbf16>
    "tpu.trace_start"() <{level = 10 : i32, message = "qd,kd->qk"}> : () -> ()
    %cst_15 = arith.constant dense<0.000000e+00> : vector<64x64xf32>
    %43 = tpu.matmul %38, %40, %cst_15 {dimension_numbers = #tpu.dot_dimension_numbers<[1], [1], [0], [0], [0, 0, 1, 0], [], []>} : vector<64x32xbf16>, vector<64x32xbf16>, vector<64x64xf32> -> vector<64x64xf32>
    "tpu.trace_stop"() : () -> ()
    %44 = arith.addf %43, %10 : vector<64x64xf32>
    %cst_16 = arith.constant dense<0xFF800000> : vector<64xf32>
    %45 = vector.multi_reduction <maximumf>, %44, %cst_16 [1] : vector<64x64xf32> to vector<64xf32>
    %46 = vector.shape_cast %45 : vector<64xf32> to vector<64x1xf32>
    %47 = vector.broadcast %46 : vector<64x1xf32> to vector<64x64xf32>
    %48 = arith.subf %44, %47 : vector<64x64xf32>
    %49 = math.exp %48 : vector<64x64xf32>
    %cst_17 = arith.constant dense<0.000000e+00> : vector<64xf32>
    %50 = vector.multi_reduction <add>, %49, %cst_17 [1] : vector<64x64xf32> to vector<64xf32>
    %51 = vector.shape_cast %50 : vector<64xf32> to vector<64x1xf32>
    %52 = tpu.reciprocal %51 {approx = true} : vector<64x1xf32> -> vector<64x1xf32>
    %53 = vector.broadcast %52 : vector<64x1xf32> to vector<64x64xf32>
    %54 = arith.mulf %49, %53 : vector<64x64xf32>
    %55 = arith.truncf %54 : vector<64x64xf32> to vector<64x64xbf16>
    %cst_18 = arith.constant dense<0.000000e+00> : vector<64x32xf32>
    %56 = tpu.matmul %55, %42, %cst_18 {dimension_numbers = #tpu.dot_dimension_numbers<[1], [0], [0], [1], [0, 0, 1, 1], [], []>} : vector<64x64xbf16>, vector<64x32xbf16>, vector<64x32xf32> -> vector<64x32xf32>
    %57 = arith.truncf %56 : vector<64x32xf32> to vector<64x32xbf16>
    %58 = vector.extract_strided_slice %11 {offsets = [32, 0], sizes = [32, 128], strides = [1, 1]} : vector<128x128xbf16> to vector<32x128xbf16>
    %cst_19 = arith.constant dense<0.000000e+00> : vector<64x128xf32>
    %59 = tpu.matmul %57, %58, %cst_19 {dimension_numbers = #tpu.dot_dimension_numbers<[1], [0], [0], [1], [0, 0, 1, 1], [], []>} : vector<64x32xbf16>, vector<32x128xbf16>, vector<64x128xf32> -> vector<64x128xf32>
    %60 = arith.addf %36, %59 : vector<64x128xf32>
    %61 = vector.extract_strided_slice %9 {offsets = [0, 64], sizes = [64, 32], strides = [1, 1]} : vector<64x384xf32> to vector<64x32xf32>
    %62 = arith.truncf %61 : vector<64x32xf32> to vector<64x32xbf16>
    %63 = vector.extract_strided_slice %9 {offsets = [0, 192], sizes = [64, 32], strides = [1, 1]} : vector<64x384xf32> to vector<64x32xf32>
    %64 = arith.truncf %63 : vector<64x32xf32> to vector<64x32xbf16>
    %65 = vector.extract_strided_slice %9 {offsets = [0, 320], sizes = [64, 32], strides = [1, 1]} : vector<64x384xf32> to vector<64x32xf32>
    %66 = arith.truncf %65 : vector<64x32xf32> to vector<64x32xbf16>
    "tpu.trace_start"() <{level = 10 : i32, message = "qd,kd->qk"}> : () -> ()
    %cst_20 = arith.constant dense<0.000000e+00> : vector<64x64xf32>
    %67 = tpu.matmul %62, %64, %cst_20 {dimension_numbers = #tpu.dot_dimension_numbers<[1], [1], [0], [0], [0, 0, 1, 0], [], []>} : vector<64x32xbf16>, vector<64x32xbf16>, vector<64x64xf32> -> vector<64x64xf32>
    "tpu.trace_stop"() : () -> ()
    %68 = arith.addf %67, %10 : vector<64x64xf32>
    %cst_21 = arith.constant dense<0xFF800000> : vector<64xf32>
    %69 = vector.multi_reduction <maximumf>, %68, %cst_21 [1] : vector<64x64xf32> to vector<64xf32>
    %70 = vector.shape_cast %69 : vector<64xf32> to vector<64x1xf32>
    %71 = vector.broadcast %70 : vector<64x1xf32> to vector<64x64xf32>
    %72 = arith.subf %68, %71 : vector<64x64xf32>
    %73 = math.exp %72 : vector<64x64xf32>
    %cst_22 = arith.constant dense<0.000000e+00> : vector<64xf32>
    %74 = vector.multi_reduction <add>, %73, %cst_22 [1] : vector<64x64xf32> to vector<64xf32>
    %75 = vector.shape_cast %74 : vector<64xf32> to vector<64x1xf32>
    %76 = tpu.reciprocal %75 {approx = true} : vector<64x1xf32> -> vector<64x1xf32>
    %77 = vector.broadcast %76 : vector<64x1xf32> to vector<64x64xf32>
    %78 = arith.mulf %73, %77 : vector<64x64xf32>
    %79 = arith.truncf %78 : vector<64x64xf32> to vector<64x64xbf16>
    %cst_23 = arith.constant dense<0.000000e+00> : vector<64x32xf32>
    %80 = tpu.matmul %79, %66, %cst_23 {dimension_numbers = #tpu.dot_dimension_numbers<[1], [0], [0], [1], [0, 0, 1, 1], [], []>} : vector<64x64xbf16>, vector<64x32xbf16>, vector<64x32xf32> -> vector<64x32xf32>
    %81 = arith.truncf %80 : vector<64x32xf32> to vector<64x32xbf16>
    %82 = vector.extract_strided_slice %11 {offsets = [64, 0], sizes = [32, 128], strides = [1, 1]} : vector<128x128xbf16> to vector<32x128xbf16>
    %cst_24 = arith.constant dense<0.000000e+00> : vector<64x128xf32>
    %83 = tpu.matmul %81, %82, %cst_24 {dimension_numbers = #tpu.dot_dimension_numbers<[1], [0], [0], [1], [0, 0, 1, 1], [], []>} : vector<64x32xbf16>, vector<32x128xbf16>, vector<64x128xf32> -> vector<64x128xf32>
    %84 = arith.addf %60, %83 : vector<64x128xf32>
    %85 = vector.extract_strided_slice %9 {offsets = [0, 96], sizes = [64, 32], strides = [1, 1]} : vector<64x384xf32> to vector<64x32xf32>
    %86 = arith.truncf %85 : vector<64x32xf32> to vector<64x32xbf16>
    %87 = vector.extract_strided_slice %9 {offsets = [0, 224], sizes = [64, 32], strides = [1, 1]} : vector<64x384xf32> to vector<64x32xf32>
    %88 = arith.truncf %87 : vector<64x32xf32> to vector<64x32xbf16>
    %89 = vector.extract_strided_slice %9 {offsets = [0, 352], sizes = [64, 32], strides = [1, 1]} : vector<64x384xf32> to vector<64x32xf32>
    %90 = arith.truncf %89 : vector<64x32xf32> to vector<64x32xbf16>
    "tpu.trace_start"() <{level = 10 : i32, message = "qd,kd->qk"}> : () -> ()
    %cst_25 = arith.constant dense<0.000000e+00> : vector<64x64xf32>
    %91 = tpu.matmul %86, %88, %cst_25 {dimension_numbers = #tpu.dot_dimension_numbers<[1], [1], [0], [0], [0, 0, 1, 0], [], []>} : vector<64x32xbf16>, vector<64x32xbf16>, vector<64x64xf32> -> vector<64x64xf32>
    "tpu.trace_stop"() : () -> ()
    %92 = arith.addf %91, %10 : vector<64x64xf32>
    %cst_26 = arith.constant dense<0xFF800000> : vector<64xf32>
    %93 = vector.multi_reduction <maximumf>, %92, %cst_26 [1] : vector<64x64xf32> to vector<64xf32>
    %94 = vector.shape_cast %93 : vector<64xf32> to vector<64x1xf32>
    %95 = vector.broadcast %94 : vector<64x1xf32> to vector<64x64xf32>
    %96 = arith.subf %92, %95 : vector<64x64xf32>
    %97 = math.exp %96 : vector<64x64xf32>
    %cst_27 = arith.constant dense<0.000000e+00> : vector<64xf32>
    %98 = vector.multi_reduction <add>, %97, %cst_27 [1] : vector<64x64xf32> to vector<64xf32>
    %99 = vector.shape_cast %98 : vector<64xf32> to vector<64x1xf32>
    %100 = tpu.reciprocal %99 {approx = true} : vector<64x1xf32> -> vector<64x1xf32>
    %101 = vector.broadcast %100 : vector<64x1xf32> to vector<64x64xf32>
    %102 = arith.mulf %97, %101 : vector<64x64xf32>
    %103 = arith.truncf %102 : vector<64x64xf32> to vector<64x64xbf16>
    %cst_28 = arith.constant dense<0.000000e+00> : vector<64x32xf32>
    %104 = tpu.matmul %103, %90, %cst_28 {dimension_numbers = #tpu.dot_dimension_numbers<[1], [0], [0], [1], [0, 0, 1, 1], [], []>} : vector<64x64xbf16>, vector<64x32xbf16>, vector<64x32xf32> -> vector<64x32xf32>
    %105 = arith.truncf %104 : vector<64x32xf32> to vector<64x32xbf16>
    %106 = vector.extract_strided_slice %11 {offsets = [96, 0], sizes = [32, 128], strides = [1, 1]} : vector<128x128xbf16> to vector<32x128xbf16>
    %cst_29 = arith.constant dense<0.000000e+00> : vector<64x128xf32>
    %107 = tpu.matmul %105, %106, %cst_29 {dimension_numbers = #tpu.dot_dimension_numbers<[1], [0], [0], [1], [0, 0, 1, 1], [], []>} : vector<64x32xbf16>, vector<32x128xbf16>, vector<64x128xf32> -> vector<64x128xf32>
    %108 = arith.addf %84, %107 : vector<64x128xf32>
    %c0_30 = arith.constant 0 : index
    %c0_31 = arith.constant 0 : index
    %109 = vector.load %arg6[%c0_30, %c0_31] : memref<1x128xf32, #tpu.memory_space<vmem>>, vector<1x128xf32>
    %110 = vector.shape_cast %109 : vector<1x128xf32> to vector<128xf32>
    %111 = vector.shape_cast %110 : vector<128xf32> to vector<1x128xf32>
    %112 = vector.broadcast %111 : vector<1x128xf32> to vector<64x128xf32>
    %113 = arith.addf %108, %112 : vector<64x128xf32>
    %114 = arith.addf %1, %113 : vector<64x128xf32>
    %c0_32 = arith.constant 0 : index
    %c0_33 = arith.constant 0 : index
    %115 = vector.load %arg11[%c0_32, %c0_33] : memref<1x128xf32, #tpu.memory_space<vmem>>, vector<1x128xf32>
    %116 = vector.shape_cast %115 : vector<1x128xf32> to vector<128xf32>
    %c0_34 = arith.constant 0 : index
    %c0_35 = arith.constant 0 : index
    %117 = vector.load %arg12[%c0_34, %c0_35] : memref<1x128xf32, #tpu.memory_space<vmem>>, vector<1x128xf32>
    %118 = vector.shape_cast %117 : vector<1x128xf32> to vector<128xf32>
    %cst_36 = arith.constant dense<0.000000e+00> : vector<64xf32>
    %119 = vector.multi_reduction <add>, %114, %cst_36 [1] : vector<64x128xf32> to vector<64xf32>
    %120 = vector.shape_cast %119 : vector<64xf32> to vector<64x1xf32>
    %cst_37 = arith.constant 1.280000e+02 : f32
    %121 = vector.broadcast %cst_37 : f32 to vector<64x1xf32>
    %122 = arith.divf %120, %121 : vector<64x1xf32>
    %123 = vector.broadcast %122 : vector<64x1xf32> to vector<64x128xf32>
    %124 = arith.subf %114, %123 : vector<64x128xf32>
    %125 = arith.mulf %124, %124 : vector<64x128xf32>
    %cst_38 = arith.constant dense<0.000000e+00> : vector<64xf32>
    %126 = vector.multi_reduction <add>, %125, %cst_38 [1] : vector<64x128xf32> to vector<64xf32>
    %127 = vector.shape_cast %126 : vector<64xf32> to vector<64x1xf32>
    %cst_39 = arith.constant 1.280000e+02 : f32
    %128 = vector.broadcast %cst_39 : f32 to vector<64x1xf32>
    %129 = arith.divf %127, %128 : vector<64x1xf32>
    %cst_40 = arith.constant 9.99999974E-6 : f32
    %130 = vector.broadcast %cst_40 : f32 to vector<64x1xf32>
    %131 = arith.addf %129, %130 : vector<64x1xf32>
    %132 = math.rsqrt %131 : vector<64x1xf32>
    %133 = vector.broadcast %132 : vector<64x1xf32> to vector<64x128xf32>
    %134 = arith.mulf %124, %133 : vector<64x128xf32>
    %135 = vector.shape_cast %116 : vector<128xf32> to vector<1x128xf32>
    %136 = vector.broadcast %135 : vector<1x128xf32> to vector<64x128xf32>
    %137 = arith.mulf %134, %136 : vector<64x128xf32>
    %138 = vector.shape_cast %118 : vector<128xf32> to vector<1x128xf32>
    %139 = vector.broadcast %138 : vector<1x128xf32> to vector<64x128xf32>
    %140 = arith.addf %137, %139 : vector<64x128xf32>
    %141 = arith.truncf %140 : vector<64x128xf32> to vector<64x128xbf16>
    %c0_41 = arith.constant 0 : index
    %c0_42 = arith.constant 0 : index
    %142 = vector.load %arg7[%c0_41, %c0_42] : memref<128x512xbf16, #tpu.memory_space<vmem>>, vector<128x512xbf16>
    %cst_43 = arith.constant dense<0.000000e+00> : vector<64x512xf32>
    %143 = tpu.matmul %141, %142, %cst_43 {dimension_numbers = #tpu.dot_dimension_numbers<[1], [0], [0], [1], [0, 0, 1, 1], [], []>} : vector<64x128xbf16>, vector<128x512xbf16>, vector<64x512xf32> -> vector<64x512xf32>
    %c0_44 = arith.constant 0 : index
    %c0_45 = arith.constant 0 : index
    %144 = vector.load %arg8[%c0_44, %c0_45] : memref<1x512xf32, #tpu.memory_space<vmem>>, vector<1x512xf32>
    %145 = vector.shape_cast %144 : vector<1x512xf32> to vector<512xf32>
    %146 = vector.shape_cast %145 : vector<512xf32> to vector<1x512xf32>
    %147 = vector.broadcast %146 : vector<1x512xf32> to vector<64x512xf32>
    %148 = arith.addf %143, %147 : vector<64x512xf32>
    %cst_46 = arith.constant 0.000000e+00 : f32
    %149 = vector.broadcast %cst_46 : f32 to vector<64x512xf32>
    %150 = arith.maximumf %148, %149 : vector<64x512xf32>
    %151 = arith.truncf %150 : vector<64x512xf32> to vector<64x512xbf16>
    %c0_47 = arith.constant 0 : index
    %c0_48 = arith.constant 0 : index
    %152 = vector.load %arg9[%c0_47, %c0_48] : memref<512x128xbf16, #tpu.memory_space<vmem>>, vector<512x128xbf16>
    %cst_49 = arith.constant dense<0.000000e+00> : vector<64x128xf32>
    %153 = tpu.matmul %151, %152, %cst_49 {dimension_numbers = #tpu.dot_dimension_numbers<[1], [0], [0], [1], [0, 0, 1, 1], [], []>} : vector<64x512xbf16>, vector<512x128xbf16>, vector<64x128xf32> -> vector<64x128xf32>
    %c0_50 = arith.constant 0 : index
    %c0_51 = arith.constant 0 : index
    %154 = vector.load %arg10[%c0_50, %c0_51] : memref<1x128xf32, #tpu.memory_space<vmem>>, vector<1x128xf32>
    %155 = vector.shape_cast %154 : vector<1x128xf32> to vector<128xf32>
    %156 = vector.shape_cast %155 : vector<128xf32> to vector<1x128xf32>
    %157 = vector.broadcast %156 : vector<1x128xf32> to vector<64x128xf32>
    %158 = arith.addf %153, %157 : vector<64x128xf32>
    %159 = arith.addf %140, %158 : vector<64x128xf32>
    %c0_52 = arith.constant 0 : index
    %c0_53 = arith.constant 0 : index
    %160 = vector.load %arg13[%c0_52, %c0_53] : memref<1x128xf32, #tpu.memory_space<vmem>>, vector<1x128xf32>
    %161 = vector.shape_cast %160 : vector<1x128xf32> to vector<128xf32>
    %c0_54 = arith.constant 0 : index
    %c0_55 = arith.constant 0 : index
    %162 = vector.load %arg14[%c0_54, %c0_55] : memref<1x128xf32, #tpu.memory_space<vmem>>, vector<1x128xf32>
    %163 = vector.shape_cast %162 : vector<1x128xf32> to vector<128xf32>
    %cst_56 = arith.constant dense<0.000000e+00> : vector<64xf32>
    %164 = vector.multi_reduction <add>, %159, %cst_56 [1] : vector<64x128xf32> to vector<64xf32>
    %165 = vector.shape_cast %164 : vector<64xf32> to vector<64x1xf32>
    %cst_57 = arith.constant 1.280000e+02 : f32
    %166 = vector.broadcast %cst_57 : f32 to vector<64x1xf32>
    %167 = arith.divf %165, %166 : vector<64x1xf32>
    %168 = vector.broadcast %167 : vector<64x1xf32> to vector<64x128xf32>
    %169 = arith.subf %159, %168 : vector<64x128xf32>
    %170 = arith.mulf %169, %169 : vector<64x128xf32>
    %cst_58 = arith.constant dense<0.000000e+00> : vector<64xf32>
    %171 = vector.multi_reduction <add>, %170, %cst_58 [1] : vector<64x128xf32> to vector<64xf32>
    %172 = vector.shape_cast %171 : vector<64xf32> to vector<64x1xf32>
    %cst_59 = arith.constant 1.280000e+02 : f32
    %173 = vector.broadcast %cst_59 : f32 to vector<64x1xf32>
    %174 = arith.divf %172, %173 : vector<64x1xf32>
    %cst_60 = arith.constant 9.99999974E-6 : f32
    %175 = vector.broadcast %cst_60 : f32 to vector<64x1xf32>
    %176 = arith.addf %174, %175 : vector<64x1xf32>
    %177 = math.rsqrt %176 : vector<64x1xf32>
    %178 = vector.broadcast %177 : vector<64x1xf32> to vector<64x128xf32>
    %179 = arith.mulf %169, %178 : vector<64x128xf32>
    %180 = vector.shape_cast %161 : vector<128xf32> to vector<1x128xf32>
    %181 = vector.broadcast %180 : vector<1x128xf32> to vector<64x128xf32>
    %182 = arith.mulf %179, %181 : vector<64x128xf32>
    %183 = vector.shape_cast %163 : vector<128xf32> to vector<1x128xf32>
    %184 = vector.broadcast %183 : vector<1x128xf32> to vector<64x128xf32>
    %185 = arith.addf %182, %184 : vector<64x128xf32>
    %c0_61 = arith.constant 0 : index
    %c0_62 = arith.constant 0 : index
    %186 = vector.load %arg15[%c0_61, %c0_62] : memref<64x128xf32, #tpu.memory_space<vmem>>, vector<64x128xf32>
    tpu.vector_store %arg15[%c0_61, %c0_62], %185 {strides = array<i32>} : memref<64x128xf32, #tpu.memory_space<vmem>>, vector<64x128xf32>,
    return
  }
  func.func @transform_0(%arg0: i32) -> (i32, i32) {
    %c0_i32 = arith.constant 0 : i32
    %c0_i32_0 = arith.constant 0 : i32
    return %arg0, %c0_i32 : i32, i32
  }
  func.func @transform_1(%arg0: i32) -> (i32, i32) {
    %c0_i32 = arith.constant 0 : i32
    %c0_i32_0 = arith.constant 0 : i32
    %c0_i32_1 = arith.constant 0 : i32
    return %c0_i32, %c0_i32_0 : i32, i32
  }
  func.func @transform_2(%arg0: i32) -> (i32, i32) {
    %c0_i32 = arith.constant 0 : i32
    %c0_i32_0 = arith.constant 0 : i32
    %c0_i32_1 = arith.constant 0 : i32
    return %c0_i32, %c0_i32_0 : i32, i32
  }
  func.func @transform_3(%arg0: i32) -> (i32, i32) {
    %c0_i32 = arith.constant 0 : i32
    %c0_i32_0 = arith.constant 0 : i32
    %c0_i32_1 = arith.constant 0 : i32
    return %c0_i32, %c0_i32_0 : i32, i32
  }
  func.func @transform_4(%arg0: i32) -> (i32, i32) {
    %c0_i32 = arith.constant 0 : i32
    %c0_i32_0 = arith.constant 0 : i32
    %c0_i32_1 = arith.constant 0 : i32
    return %c0_i32, %c0_i32_0 : i32, i32
  }
  func.func @transform_5(%arg0: i32) -> (i32, i32) {
    %c0_i32 = arith.constant 0 : i32
    %c0_i32_0 = arith.constant 0 : i32
    %c0_i32_1 = arith.constant 0 : i32
    return %c0_i32, %c0_i32_0 : i32, i32
  }
  func.func @transform_6(%arg0: i32) -> (i32, i32) {
    %c0_i32 = arith.constant 0 : i32
    %c0_i32_0 = arith.constant 0 : i32
    %c0_i32_1 = arith.constant 0 : i32
    return %c0_i32, %c0_i32_0 : i32, i32
  }
  func.func @transform_7(%arg0: i32) -> (i32, i32) {
    %c0_i32 = arith.constant 0 : i32
    %c0_i32_0 = arith.constant 0 : i32
    %c0_i32_1 = arith.constant 0 : i32
    return %c0_i32, %c0_i32_0 : i32, i32
  }
  func.func @transform_8(%arg0: i32) -> (i32, i32) {
    %c0_i32 = arith.constant 0 : i32
    %c0_i32_0 = arith.constant 0 : i32
    %c0_i32_1 = arith.constant 0 : i32
    return %c0_i32, %c0_i32_0 : i32, i32
  }
  func.func @transform_9(%arg0: i32) -> (i32, i32) {
    %c0_i32 = arith.constant 0 : i32
    %c0_i32_0 = arith.constant 0 : i32
    %c0_i32_1 = arith.constant 0 : i32
    return %c0_i32, %c0_i32_0 : i32, i32
  }
  func.func @transform_10(%arg0: i32) -> (i32, i32) {
    %c0_i32 = arith.constant 0 : i32
    %c0_i32_0 = arith.constant 0 : i32
    %c0_i32_1 = arith.constant 0 : i32
    return %c0_i32, %c0_i32_0 : i32, i32
  }
  func.func @transform_11(%arg0: i32) -> (i32, i32) {
    %c0_i32 = arith.constant 0 : i32
    %c0_i32_0 = arith.constant 0 : i32
    %c0_i32_1 = arith.constant 0 : i32
    return %c0_i32, %c0_i32_0 : i32, i32
  }
  func.func @transform_12(%arg0: i32) -> (i32, i32) {
    %c0_i32 = arith.constant 0 : i32
    %c0_i32_0 = arith.constant 0 : i32
    %c0_i32_1 = arith.constant 0 : i32
    return %c0_i32, %c0_i32_0 : i32, i32
  }
  func.func @transform_13(%arg0: i32) -> (i32, i32) {
    %c0_i32 = arith.constant 0 : i32
    %c0_i32_0 = arith.constant 0 : i32
    %c0_i32_1 = arith.constant 0 : i32
    return %c0_i32, %c0_i32_0 : i32, i32
  }
  func.func @transform_14(%arg0: i32) -> (i32, i32) {
    %c0_i32 = arith.constant 0 : i32
    %c0_i32_0 = arith.constant 0 : i32
    return %arg0, %c0_i32 : i32, i32
  }
}

</mosaic_0001>

<bundles_post_ra>
// kernel: eq.29
= control target key start
LH: loop header
LB: loop body
LE: loop exit
PB: predicated region body
PF: predicated region fallthrough
CT: control target
= control target key end

     0   :  { %s67_s10 = smov 56   ;;  %s68_s11 = smov 40   ;;  %vm3_vm0 = vcmask 64512   ;;  %vm9_vm1 = vcmask 523712   ;;  %vm15_vm2 = vcmask 458112   ;;  %vm21_vm3 = vcmask 392512   ;;  %s111_s0 = inlined_call_operand.vmem [shape: s32[8,8], index: 0, kind: input, shape index: {}]   ;;  %s112_s1 = inlined_call_operand.vmem [shape: s32[64], index: 1, kind: output, shape index: {}]  }
   0x1   :  { %v53_v0 = vld [vmem:[%s111_s0 + $0x7] sm:$0x1]   ;;  %v55_v1 = vld [vmem:[%s111_s0 + $0x5] sm:$0x1]   ;;  %v54_v2 = vld [vmem:[%s111_s0 + $0x6] sm:$0x1]  }
   0x2   :  { %7 = vrot.lane.b32.xlu0 %v53_v0, %s67_s10  ;;  %19 = vrot.lane.b32.xlu1 %v55_v1, %s68_s11  ;;  %v56_v3 = vld [vmem:[%s111_s0 + $0x4] sm:$0x1]   ;;  %v2_v4 = vld [vmem:[%s111_s0] sm:$0x1]   ;;  %s69_s18 = smov 48   ;;  %s70_s19 = smov 32  }
   0x3   :  { %4 = vst.msk [vmem:[#allocation0] sm:$0x1] %vm3_vm0, %v2_v4   ;;  %v57_v5 = vld [vmem:[%s111_s0 + $0x3] sm:$0x1]   ;;  %v58_v6 = vld [vmem:[%s111_s0 + $0x2] sm:$0x1]  }
   0x4   :  { %s71_s24 = smov 24   ;;  %s72_s25 = smov 16   ;;  %v59_v7 = vld [vmem:[%s111_s0 + $0x1] sm:$0x1]   ;;  %vm27_vm4 = vcmask 326912   ;;  %vm33_vm5 = vcmask 261312  }
   0x5   :  { %s73_s0 = smov 8   ;;  %vm39_vm6 = vcmask 195712   ;;  %vm45_vm7 = vcmask 130112  }
   0x6   :  { %13 = vrot.lane.b32.xlu0 %v54_v2, %s69_s18  ;;  %25 = vrot.lane.b32.xlu1 %v56_v3, %s70_s19 }
   0xa   :  { %31 = vrot.lane.b32.xlu0 %v57_v5, %s71_s24  ;;  %37 = vrot.lane.b32.xlu1 %v58_v6, %s72_s25 }
   0xe   :  { %43 = vrot.lane.b32.xlu0 %v59_v7, %s73_s0 }
  0x74   :  { %v8_v8 = vpop.permute.xlu0 %7   ;;  %v20_v9 = vpop.permute.xlu1 %19  }
  0x75   :  { %10 = vst.msk [vmem:[#allocation0] sm:$0x1] %vm9_vm1, %v8_v8  }
  0x78   :  { %v14_v10 = vpop.permute.xlu0 %13   ;;  %v26_v11 = vpop.permute.xlu1 %25  }
  0x79   :  { %16 = vst.msk [vmem:[#allocation0] sm:$0x1] %vm15_vm2, %v14_v10  }
  0x7a   :  { %22 = vst.msk [vmem:[#allocation0] sm:$0x1] %vm21_vm3, %v20_v9  }
  0x7b   :  { %28 = vst.msk [vmem:[#allocation0] sm:$0x1] %vm27_vm4, %v26_v11  }
  0x7c   :  { %v32_v12 = vpop.permute.xlu0 %31   ;;  %v38_v13 = vpop.permute.xlu1 %37  }
  0x7d   :  { %34 = vst.msk [vmem:[#allocation0] sm:$0x1] %vm33_vm5, %v32_v12  }
  0x7e   :  { %40 = vst.msk [vmem:[#allocation0] sm:$0x1] %vm39_vm6, %v38_v13  }
  0x80   :  { %v44_v14 = vpop.permute.xlu0 %43  }
  0x81   :  { %46 = vst.msk [vmem:[#allocation0] sm:$0x1] %vm45_vm7, %v44_v14  }
  0x88   :  { %v50_v15 = vld [vmem:[#allocation0] sm:$0x1] }
  0x89   :  { %52 = vst [vmem:[%s112_s1] sm:$0x1] %v50_v15 }

// kernel: eq.36
= control target key start
LH: loop header
LB: loop body
LE: loop exit
PB: predicated region body
PF: predicated region fallthrough
CT: control target
= control target key end

     0   :  { %s131_s10 = smov 60   ;;  %s132_s11 = smov 52   ;;  %vm3_vm0 = vcmask 31744   ;;  %vm9_vm1 = vcmask 523744   ;;  %vm15_vm2 = vcmask 490944   ;;  %vm21_vm3 = vcmask 458144   ;;  %s207_s0 = inlined_call_operand.vmem [shape: s32[16,4], index: 0, kind: input, shape index: {}]   ;;  %s208_s1 = inlined_call_operand.vmem [shape: s32[64], index: 1, kind: output, shape index: {}]  }
   0x1   :  { %v101_v0 = vld [vmem:[%s207_s0 + $0xf] sm:$0x1]   ;;  %v103_v1 = vld [vmem:[%s207_s0 + $0xd] sm:$0x1]   ;;  %v102_v2 = vld [vmem:[%s207_s0 + $0xe] sm:$0x1]  }
   0x2   :  { %7 = vrot.lane.b32.xlu0 %v101_v0, %s131_s10  ;;  %19 = vrot.lane.b32.xlu1 %v103_v1, %s132_s11  ;;  %v104_v3 = vld [vmem:[%s207_s0 + $0xc] sm:$0x1]   ;;  %s133_s16 = smov 56   ;;  %s134_s17 = smov 48   ;;  %v105_v4 = vld [vmem:[%s207_s0 + $0xb] sm:$0x1]  }
   0x3   :  { %v106_v5 = vld [vmem:[%s207_s0 + $0xa] sm:$0x1]   ;;  %v2_v6 = vld [vmem:[%s207_s0] sm:$0x1]   ;;  %s135_s24 = smov 44   ;;  %s136_s25 = smov 40  }
   0x4   :  { %4 = vst.msk [vmem:[#allocation0] sm:$0x1] %vm3_vm0, %v2_v6   ;;  %v107_v7 = vld [vmem:[%s207_s0 + $0x9] sm:$0x1]   ;;  %v108_v8 = vld [vmem:[%s207_s0 + $0x8] sm:$0x1]  }
   0x5   :  { %s137_s30 = smov 36   ;;  %s138_s2 = smov 32   ;;  %v109_v9 = vld [vmem:[%s207_s0 + $0x7] sm:$0x1]   ;;  %v110_v10 = vld [vmem:[%s207_s0 + $0x6] sm:$0x1]  }
   0x6   :  { %13 = vrot.lane.b32.xlu0 %v102_v2, %s133_s16  ;;  %25 = vrot.lane.b32.xlu1 %v104_v3, %s134_s17  ;;  %s139_s7 = smov 28   ;;  %s140_s8 = smov 24   ;;  %v111_v11 = vld [vmem:[%s207_s0 + $0x5] sm:$0x1]   ;;  %v112_v12 = vld [vmem:[%s207_s0 + $0x4] sm:$0x1]  }
   0x7   :  { %s141_s13 = smov 20   ;;  %s142_s14 = smov 16   ;;  %v113_v13 = vld [vmem:[%s207_s0 + $0x3] sm:$0x1]   ;;  %v114_v14 = vld [vmem:[%s207_s0 + $0x2] sm:$0x1]  }
   0x8   :  { %s143_s19 = smov 12   ;;  %s144_s20 = smov 8   ;;  %v115_v15 = vld [vmem:[%s207_s0 + $0x1] sm:$0x1]   ;;  %vm27_vm4 = vcmask 425344   ;;  %vm33_vm5 = vcmask 392544  }
   0x9   :  { %s145_s0 = smov 4   ;;  %vm39_vm6 = vcmask 359744   ;;  %vm45_vm7 = vcmask 326944   ;;  %vm51_vm8 = vcmask 294144   ;;  %vm57_vm9 = vcmask 261344  }
   0xa   :  { %31 = vrot.lane.b32.xlu0 %v105_v4, %s135_s24  ;;  %37 = vrot.lane.b32.xlu1 %v106_v5, %s136_s25  ;;  %vm63_vm10 = vcmask 228544   ;;  %vm69_vm11 = vcmask 195744   ;;  %vm75_vm12 = vcmask 162944   ;;  %vm81_vm13 = vcmask 130144  }
   0xb   :  { %vm87_vm14 = vcmask 97344   ;;  %vm93_vm15 = vcmask 64544  }
   0xe   :  { %43 = vrot.lane.b32.xlu0 %v107_v7, %s137_s30  ;;  %49 = vrot.lane.b32.xlu1 %v108_v8, %s138_s2 }
  0x12   :  { %55 = vrot.lane.b32.xlu0 %v109_v9, %s139_s7  ;;  %61 = vrot.lane.b32.xlu1 %v110_v10, %s140_s8 }
  0x16   :  { %67 = vrot.lane.b32.xlu0 %v111_v11, %s141_s13  ;;  %73 = vrot.lane.b32.xlu1 %v112_v12, %s142_s14 }
  0x1a   :  { %79 = vrot.lane.b32.xlu0 %v113_v13, %s143_s19  ;;  %85 = vrot.lane.b32.xlu1 %v114_v14, %s144_s20 }
  0x1e   :  { %91 = vrot.lane.b32.xlu0 %v115_v15, %s145_s0 }
  0x74   :  { %v8_v16 = vpop.permute.xlu0 %7   ;;  %v20_v17 = vpop.permute.xlu1 %19  }
  0x75   :  { %10 = vst.msk [vmem:[#allocation0] sm:$0x1] %vm9_vm1, %v8_v16  }
  0x78   :  { %v14_v18 = vpop.permute.xlu0 %13   ;;  %v26_v19 = vpop.permute.xlu1 %25  }
  0x79   :  { %16 = vst.msk [vmem:[#allocation0] sm:$0x1] %vm15_vm2, %v14_v18  }
  0x7a   :  { %22 = vst.msk [vmem:[#allocation0] sm:$0x1] %vm21_vm3, %v20_v17  }
  0x7b   :  { %28 = vst.msk [vmem:[#allocation0] sm:$0x1] %vm27_vm4, %v26_v19  }
  0x7c   :  { %v32_v20 = vpop.permute.xlu0 %31   ;;  %v38_v21 = vpop.permute.xlu1 %37  }
  0x7d   :  { %34 = vst.msk [vmem:[#allocation0] sm:$0x1] %vm33_vm5, %v32_v20  }
  0x7e   :  { %40 = vst.msk [vmem:[#allocation0] sm:$0x1] %vm39_vm6, %v38_v21  }
  0x80   :  { %v44_v22 = vpop.permute.xlu0 %43   ;;  %v50_v23 = vpop.permute.xlu1 %49  }
  0x81   :  { %46 = vst.msk [vmem:[#allocation0] sm:$0x1] %vm45_vm7, %v44_v22  }
  0x82   :  { %52 = vst.msk [vmem:[#allocation0] sm:$0x1] %vm51_vm8, %v50_v23  }
  0x84   :  { %v56_v24 = vpop.permute.xlu0 %55   ;;  %v62_v25 = vpop.permute.xlu1 %61  }
  0x85   :  { %58 = vst.msk [vmem:[#allocation0] sm:$0x1] %vm57_vm9, %v56_v24  }
  0x86   :  { %64 = vst.msk [vmem:[#allocation0] sm:$0x1] %vm63_vm10, %v62_v25  }
  0x88   :  { %v68_v26 = vpop.permute.xlu0 %67   ;;  %v74_v27 = vpop.permute.xlu1 %73  }
  0x89   :  { %70 = vst.msk [vmem:[#allocation0] sm:$0x1] %vm69_vm11, %v68_v26  }
  0x8a   :  { %76 = vst.msk [vmem:[#allocation0] sm:$0x1] %vm75_vm12, %v74_v27  }
  0x8c   :  { %v80_v28 = vpop.permute.xlu0 %79   ;;  %v86_v29 = vpop.permute.xlu1 %85  }
  0x8d   :  { %82 = vst.msk [vmem:[#allocation0] sm:$0x1] %vm81_vm13, %v80_v28  }
  0x8e   :  { %88 = vst.msk [vmem:[#allocation0] sm:$0x1] %vm87_vm14, %v86_v29  }
  0x90   :  { %v92_v30 = vpop.permute.xlu0 %91  }
  0x91   :  { %94 = vst.msk [vmem:[#allocation0] sm:$0x1] %vm93_vm15, %v92_v30  }
  0x98   :  { %v98_v31 = vld [vmem:[#allocation0] sm:$0x1] }
  0x99   :  { %100 = vst [vmem:[%s208_s1] sm:$0x1] %v98_v31 }

// kernel: st_transformer_forward.4
= control target key start
LH: loop header
LB: loop body
LE: loop exit
PB: predicated region body
PF: predicated region fallthrough
CT: control target
= control target key end

     0   :  { %19 = vsyncpa [#allocation3], 0  ;;  %s5616_s0 = inlined_call_operand.hbm [shape: f32[64,128], index: 0, kind: input, shape index: {}]   ;;  %s5617_s1 = inlined_call_operand.hbm [shape: f32[64,64], index: 1, kind: input, shape index: {}]   ;;  %s5618_s2 = inlined_call_operand.hbm [shape: bf16[128,384], index: 2, kind: input, shape index: {}]   ;;  %s5619_s3 = inlined_call_operand.hbm [shape: f32[1,384], index: 3, kind: input, shape index: {}]   ;;  %s5620_s4 = inlined_call_operand.hbm [shape: bf16[128,128], index: 4, kind: input, shape index: {}]   ;;  %s5621_s5 = inlined_call_operand.hbm [shape: f32[1,128], index: 5, kind: input, shape index: {}]   ;;  %s5622_s6 = inlined_call_operand.hbm [shape: bf16[128,512], index: 6, kind: input, shape index: {}]   ;;  %s5623_s7 = inlined_call_operand.hbm [shape: f32[1,512], index: 7, kind: input, shape index: {}]   ;;  %s5624_s8 = inlined_call_operand.hbm [shape: bf16[512,128], index: 8, kind: input, shape index: {}]   ;;  %s5625_s9 = inlined_call_operand.hbm [shape: f32[1,128], index: 9, kind: input, shape index: {}]   ;;  %s5626_s10 = inlined_call_operand.hbm [shape: f32[1,128], index: 10, kind: input, shape index: {}]   ;;  %s5627_s11 = inlined_call_operand.hbm [shape: f32[1,128], index: 11, kind: input, shape index: {}]   ;;  %s5628_s12 = inlined_call_operand.hbm [shape: f32[1,128], index: 12, kind: input, shape index: {}]   ;;  %s5629_s13 = inlined_call_operand.hbm [shape: f32[1,128], index: 13, kind: input, shape index: {}]   ;;  %s5630_s14 = inlined_call_operand.hbm [shape: bf16[64,128], index: 14, kind: output, shape index: {}]  }
   0x1   :  { %20 = vsyncpa [#allocation6], 0 }
   0x2   :  { %21 = vsyncpa [#allocation9], 0 }
   0x3   :  { %22 = vsyncpa [#allocation12], 0 }
   0x4   :  { %23 = vsyncpa [#allocation15], 0 }
   0x5   :  { %24 = vsyncpa [#allocation18], 0 }
   0x6   :  { %25 = vsyncpa [#allocation21], 0 }
   0x7   :  { %26 = vsyncpa [#allocation24], 0 }
   0x8   :  { %27 = vsyncpa [#allocation4], 0  ;;  %s4520_s29 = smov [#allocation5]   ;;  %s4521_s15 = smov [#allocation8]  }
   0x9   :  { %s45_s30 = sshll.u32 %s4520_s29, 4  ;;  %s70_s16 = sshll.u32 %s4521_s15, 4  ;;  %s46_s30 = int_to_ptr.vmem [resolvable:$true] %s45_s30  ;;  %s4621_s16 = int_to_ptr.vmem [resolvable:$true] %s70_s16 }
   0xa   :  { %s4172_s19 = scalar_lea.hbm %s5617_s1, 1024 }
   0xb   :  { %p4173_p0 = scmp.ne.s32.totalorder %s5617_s1, %s4172_s19  ;;  %p4176_p1 = scmp.lt.u32.totalorder %s4172_s19, %s5617_s1 }
   0xd   :  { %p4178_p2 = pnand %p4176_p1, %p4173_p0 }
   0xf   :  { %4181 = shalt.err (!%p4178_p2)
}
  0x10   :  { %s4182_s24 = scalar_lea.vmem %s46_s30, 1024  ;;  %p4187_p4 = scmp.lt.s32.totalorder %s46_s30, %s46_s30 }
  0x11   :  { %p4183_p3 = scmp.ne.s32.totalorder %s46_s30, %s4182_s24  ;;  %p4188_p5 = scmp.lt.s32.totalorder %s4182_s24, %s4182_s24 }
  0x13   :  { %p4189_p6 = por %p4188_p5, %p4187_p4 }
  0x15   :  { %p4190_p7 = pnand %p4189_p6, %p4183_p3 }
  0x17   :  { %4193 = shalt.err (!%p4190_p7)
}
  0x18   :  { %s4522_s25 = smov 128   ;;  %s4523_s26 = smov 8  }
  0x19   :  { %51 = dma.hbm_to_vmem [thread:$0]  %s5617_s1, 1024, %s46_s30, [#allocation6], %s4522_s25, %s4522_s25, %s4523_s26  }
  0x1a   :  { %s4194_s17 = scalar_lea.hbm %s5619_s3, 48 }
  0x1b   :  { %p4195_p8 = scmp.ne.s32.totalorder %s5619_s3, %s4194_s17  ;;  %p4198_p9 = scmp.lt.u32.totalorder %s4194_s17, %s5619_s3 }
  0x1d   :  { %p4200_p10 = pnand %p4198_p9, %p4195_p8 }
  0x1f   :  { %4203 = shalt.err (!%p4200_p10)
}
  0x20   :  { %s4204_s22 = scalar_lea.vmem %s4621_s16, 48  ;;  %s4208_s1 = scalar_lea.vmem %s4621_s16, 64 }
  0x21   :  { %p4205_p11 = scmp.ne.s32.totalorder %s4621_s16, %s4204_s22  ;;  %p4209_p12 = scmp.lt.s32.totalorder %s4621_s16, %s4621_s16 }
  0x22   :  { %p4210_p13 = scmp.lt.s32.totalorder %s4208_s1, %s4204_s22 }
  0x24   :  { %p4211_p0 = por %p4210_p13, %p4209_p12 }
  0x26   :  { %p4212_p1 = pnand %p4211_p0, %p4205_p11 }
  0x28   :  { %4215 = shalt.err (!%p4212_p1)
}
  0x29   :  { %73 = dma.hbm_to_vmem [thread:$0]  %s5619_s3, 48, %s4621_s16, [#allocation9]  }
  0x2a   :  { %s4524_s24 = smov [#allocation11]   ;;  %s4525_s28 = smov [#allocation14]  }
  0x2b   :  { %s92_s27 = sshll.u32 %s4524_s24, 4  ;;  %s114_s29 = sshll.u32 %s4525_s28, 4  ;;  %s93_s27 = int_to_ptr.vmem [resolvable:$true] %s92_s27  ;;  %s115_s29 = int_to_ptr.vmem [resolvable:$true] %s114_s29 }
  0x2c   :  { %s4216_s18 = scalar_lea.hbm %s5621_s5, 16 }
  0x2d   :  { %p4217_p2 = scmp.ne.s32.totalorder %s5621_s5, %s4216_s18  ;;  %p4220_p3 = scmp.lt.u32.totalorder %s4216_s18, %s5621_s5 }
  0x2f   :  { %p4222_p4 = pnand %p4220_p3, %p4217_p2 }
  0x31   :  { %4225 = shalt.err (!%p4222_p4)
}
  0x32   :  { %s4226_s3 = scalar_lea.vmem %s93_s27, 16  ;;  %s4230_s16 = scalar_lea.vmem %s93_s27, 32 }
  0x33   :  { %p4227_p5 = scmp.ne.s32.totalorder %s93_s27, %s4226_s3  ;;  %p4231_p6 = scmp.lt.s32.totalorder %s93_s27, %s93_s27 }
  0x34   :  { %p4232_p7 = scmp.lt.s32.totalorder %s4230_s16, %s4226_s3 }
  0x36   :  { %p4233_p8 = por %p4232_p7, %p4231_p6 }
  0x38   :  { %p4234_p9 = pnand %p4233_p8, %p4227_p5 }
  0x3a   :  { %4237 = shalt.err (!%p4234_p9)
}
  0x3b   :  { %95 = dma.hbm_to_vmem [thread:$0]  %s5621_s5, 16, %s93_s27, [#allocation12]  }
  0x3c   :  { %s4238_s28 = scalar_lea.hbm %s5623_s7, 64 }
  0x3d   :  { %p4239_p10 = scmp.ne.s32.totalorder %s5623_s7, %s4238_s28  ;;  %p4242_p11 = scmp.lt.u32.totalorder %s4238_s28, %s5623_s7 }
  0x3f   :  { %p4244_p12 = pnand %p4242_p11, %p4239_p10 }
  0x41   :  { %4247 = shalt.err (!%p4244_p12)
}
  0x42   :  { %s4248_s20 = scalar_lea.vmem %s115_s29, 64  ;;  %p4253_p0 = scmp.lt.s32.totalorder %s115_s29, %s115_s29 }
  0x43   :  { %p4249_p13 = scmp.ne.s32.totalorder %s115_s29, %s4248_s20  ;;  %p4254_p1 = scmp.lt.s32.totalorder %s4248_s20, %s4248_s20 }
  0x45   :  { %p4255_p2 = por %p4254_p1, %p4253_p0 }
  0x47   :  { %p4256_p3 = pnand %p4255_p2, %p4249_p13 }
  0x49   :  { %4259 = shalt.err (!%p4256_p3)
}
  0x4a   :  { %117 = dma.hbm_to_vmem [thread:$0]  %s5623_s7, 64, %s115_s29, [#allocation15]  }
  0x4b   :  { %s4526_s21 = smov [#allocation17]   ;;  %s4527_s3 = smov [#allocation20]  }
  0x4c   :  { %s136_s22 = sshll.u32 %s4526_s21, 4  ;;  %s156_s16 = sshll.u32 %s4527_s3, 4  ;;  %s137_s22 = int_to_ptr.vmem [resolvable:$true] %s136_s22  ;;  %s157_s16 = int_to_ptr.vmem [resolvable:$true] %s156_s16 }
  0x4d   :  { %s4260_s23 = scalar_lea.hbm %s5625_s9, 16 }
  0x4e   :  { %p4261_p4 = scmp.ne.s32.totalorder %s5625_s9, %s4260_s23  ;;  %p4264_p5 = scmp.lt.u32.totalorder %s4260_s23, %s5625_s9 }
  0x50   :  { %p4266_p6 = pnand %p4264_p5, %p4261_p4 }
  0x52   :  { %4269 = shalt.err (!%p4266_p6)
}
  0x53   :  { %s4270_s7 = scalar_lea.vmem %s137_s22, 16  ;;  %s4274_s29 = scalar_lea.vmem %s137_s22, 32 }
  0x54   :  { %p4271_p7 = scmp.ne.s32.totalorder %s137_s22, %s4270_s7  ;;  %p4275_p8 = scmp.lt.s32.totalorder %s137_s22, %s137_s22 }
  0x55   :  { %p4276_p9 = scmp.lt.s32.totalorder %s4274_s29, %s4270_s7 }
  0x57   :  { %p4277_p10 = por %p4276_p9, %p4275_p8 }
  0x59   :  { %p4278_p11 = pnand %p4277_p10, %p4271_p7 }
  0x5b   :  { %4281 = shalt.err (!%p4278_p11)
}
  0x5c   :  { %139 = dma.hbm_to_vmem [thread:$0]  %s5625_s9, 16, %s137_s22, [#allocation18]  }
  0x5d   :  { %s4282_s27 = scalar_lea.hbm %s5627_s11, 16 }
  0x5e   :  { %p4283_p12 = scmp.ne.s32.totalorder %s5627_s11, %s4282_s27  ;;  %p4286_p13 = scmp.lt.u32.totalorder %s4282_s27, %s5627_s11 }
  0x60   :  { %p4288_p0 = pnand %p4286_p13, %p4283_p12 }
  0x62   :  { %4291 = shalt.err (!%p4288_p0)
}
  0x63   :  { %s4292_s23 = scalar_lea.vmem %s157_s16, 16  ;;  %s4296_s24 = scalar_lea.vmem %s157_s16, 32 }
  0x64   :  { %p4293_p1 = scmp.ne.s32.totalorder %s157_s16, %s4292_s23  ;;  %p4297_p2 = scmp.lt.s32.totalorder %s157_s16, %s157_s16 }
  0x65   :  { %p4298_p3 = scmp.lt.s32.totalorder %s4296_s24, %s4292_s23 }
  0x67   :  { %p4299_p4 = por %p4298_p3, %p4297_p2 }
  0x69   :  { %p4300_p5 = pnand %p4299_p4, %p4293_p1 }
  0x6b   :  { %4303 = shalt.err (!%p4300_p5)
}
  0x6c   :  { %159 = dma.hbm_to_vmem [thread:$0]  %s5627_s11, 16, %s157_s16, [#allocation21]  }
  0x6d   :  { %s4528_s28 = smov [#allocation2]   ;;  %s4529_s17 = smov [#allocation7]  }
  0x6e   :  { %s33_s15 = sshll.u32 %s4528_s28, 4  ;;  %s57_s7 = sshll.u32 %s4529_s17, 4  ;;  %s34_s15 = int_to_ptr.vmem [resolvable:$true] %s33_s15  ;;  %s4704_s7 = int_to_ptr.vmem [resolvable:$true] %s57_s7 }
  0x6f   :  { %s4304_s19 = scalar_lea.hbm %s5616_s0, 1024 }
  0x70   :  { %p4305_p6 = scmp.ne.s32.totalorder %s5616_s0, %s4304_s19  ;;  %p4308_p7 = scmp.lt.u32.totalorder %s4304_s19, %s5616_s0 }
  0x72   :  { %p4310_p8 = pnand %p4308_p7, %p4305_p6 }
  0x74   :  { %4313 = shalt.err (!%p4310_p8)
}
  0x75   :  { %s4314_s11 = scalar_lea.vmem %s34_s15, 1024  ;;  %p4319_p10 = scmp.lt.s32.totalorder %s34_s15, %s34_s15 }
  0x76   :  { %p4315_p9 = scmp.ne.s32.totalorder %s34_s15, %s4314_s11  ;;  %p4320_p11 = scmp.lt.s32.totalorder %s4314_s11, %s4314_s11 }
  0x78   :  { %p4321_p12 = por %p4320_p11, %p4319_p10 }
  0x7a   :  { %p4322_p13 = pnand %p4321_p12, %p4315_p9 }
  0x7c   :  { %4325 = shalt.err (!%p4322_p13)
}
  0x7d   :  { %39 = dma.hbm_to_vmem [thread:$0]  %s5616_s0, 1024, %s34_s15, [#allocation3], %s4522_s25, %s4522_s25, %s4523_s26  }
  0x7e   :  { %s4326_s23 = scalar_lea.hbm %s5618_s2, 3072 }
  0x7f   :  { %p4327_p0 = scmp.ne.s32.totalorder %s5618_s2, %s4326_s23  ;;  %p4330_p1 = scmp.lt.u32.totalorder %s4326_s23, %s5618_s2 }
  0x81   :  { %p4332_p2 = pnand %p4330_p1, %p4327_p0 }
  0x83   :  { %4335 = shalt.err (!%p4332_p2)
}
  0x84   :  { %s4336_s17 = scalar_lea.vmem %s4704_s7, 3072  ;;  %p4341_p4 = scmp.lt.s32.totalorder %s4704_s7, %s4704_s7 }
  0x85   :  { %p4337_p3 = scmp.ne.s32.totalorder %s4704_s7, %s4336_s17  ;;  %p4342_p5 = scmp.lt.s32.totalorder %s4336_s17, %s4336_s17 }
  0x87   :  { %p4343_p6 = por %p4342_p5, %p4341_p4 }
  0x89   :  { %p4344_p7 = pnand %p4343_p6, %p4337_p3 }
  0x8b   :  { %4347 = shalt.err (!%p4344_p7)
}
  0x8c   :  { %s4530_s0 = smov 192   ;;  %s4531_s25 = smov 12  }
  0x8d   :  { %63 = dma.hbm_to_vmem [thread:$0]  %s5618_s2, 3072, %s4704_s7, [#allocation6], %s4530_s0, %s4530_s0, %s4531_s25  }
  0x8e   :  { %s4532_s29 = smov [#allocation10]   ;;  %s4348_s5 = scalar_lea.hbm %s5620_s4, 1024 }
  0x8f   :  { %s79_s18 = sshll.u32 %s4532_s29, 4  ;;  %p4349_p8 = scmp.ne.s32.totalorder %s5620_s4, %s4348_s5  ;;  %s80_s18 = int_to_ptr.vmem [resolvable:$true] %s79_s18 }
  0x90   :  { %p4352_p9 = scmp.lt.u32.totalorder %s4348_s5, %s5620_s4 }
  0x92   :  { %p4354_p10 = pnand %p4352_p9, %p4349_p8 }
  0x94   :  { %4357 = shalt.err (!%p4354_p10)
}
  0x95   :  { %s4358_s3 = scalar_lea.vmem %s80_s18, 1024  ;;  %p4363_p12 = scmp.lt.s32.totalorder %s80_s18, %s80_s18 }
  0x96   :  { %p4359_p11 = scmp.ne.s32.totalorder %s80_s18, %s4358_s3  ;;  %p4364_p13 = scmp.lt.s32.totalorder %s4358_s3, %s4358_s3 }
  0x98   :  { %p4365_p0 = por %p4364_p13, %p4363_p12 }
  0x9a   :  { %p4366_p1 = pnand %p4365_p0, %p4359_p11 }
  0x9c   :  { %4369 = shalt.err (!%p4366_p1)
}
  0x9d   :  { %s4533_s2 = smov 64   ;;  %s4534_s7 = smov 4  }
  0x9e   :  { %85 = dma.hbm_to_vmem [thread:$0]  %s5620_s4, 1024, %s80_s18, [#allocation9], %s4533_s2, %s4533_s2, %s4534_s7  }
  0x9f   :  { %s4535_s23 = smov [#allocation13]   ;;  %s4370_s28 = scalar_lea.hbm %s5622_s6, 4096 }
  0xa0   :  { %s101_s24 = sshll.u32 %s4535_s23, 4  ;;  %p4371_p2 = scmp.ne.s32.totalorder %s5622_s6, %s4370_s28  ;;  %s102_s24 = int_to_ptr.vmem [resolvable:$true] %s101_s24 }
  0xa1   :  { %p4374_p3 = scmp.lt.u32.totalorder %s4370_s28, %s5622_s6 }
  0xa3   :  { %p4376_p4 = pnand %p4374_p3, %p4371_p2 }
  0xa5   :  { %4379 = shalt.err (!%p4376_p4)
}
  0xa6   :  { %s4380_s15 = scalar_lea.vmem %s102_s24, 4096  ;;  %p4385_p6 = scmp.lt.s32.totalorder %s102_s24, %s102_s24 }
  0xa7   :  { %p4381_p5 = scmp.ne.s32.totalorder %s102_s24, %s4380_s15  ;;  %p4386_p7 = scmp.lt.s32.totalorder %s4380_s15, %s4380_s15 }
  0xa9   :  { %p4387_p8 = por %p4386_p7, %p4385_p6 }
  0xab   :  { %p4388_p9 = pnand %p4387_p8, %p4381_p5 }
  0xad   :  { %4391 = shalt.err (!%p4388_p9)
}
  0xae   :  { %s4536_s4 = smov 256   ;;  %s4537_s29 = smov 16  }
  0xaf   :  { %107 = dma.hbm_to_vmem [thread:$0]  %s5622_s6, 4096, %s102_s24, [#allocation12], %s4536_s4, %s4536_s4, %s4537_s29  }
  0xb0   :  { %s4538_s20 = smov [#allocation16]   ;;  %s4539_s27 = smov [#allocation19]  }
  0xb1   :  { %s123_s5 = sshll.u32 %s4538_s20, 4  ;;  %s146_s21 = sshll.u32 %s4539_s27, 4  ;;  %s124_s5 = int_to_ptr.vmem [resolvable:$true] %s123_s5  ;;  %s147_s21 = int_to_ptr.vmem [resolvable:$true] %s146_s21 }
  0xb2   :  { %s4392_s3 = scalar_lea.hbm %s5624_s8, 4096 }
  0xb3   :  { %p4393_p10 = scmp.ne.s32.totalorder %s5624_s8, %s4392_s3  ;;  %p4396_p11 = scmp.lt.u32.totalorder %s4392_s3, %s5624_s8 }
  0xb5   :  { %p4398_p12 = pnand %p4396_p11, %p4393_p10 }
  0xb7   :  { %4401 = shalt.err (!%p4398_p12)
}
  0xb8   :  { %s4402_s6 = scalar_lea.vmem %s124_s5, 4096  ;;  %p4407_p0 = scmp.lt.s32.totalorder %s124_s5, %s124_s5 }
  0xb9   :  { %p4403_p13 = scmp.ne.s32.totalorder %s124_s5, %s4402_s6  ;;  %p4408_p1 = scmp.lt.s32.totalorder %s4402_s6, %s4402_s6 }
  0xbb   :  { %p4409_p2 = por %p4408_p1, %p4407_p0 }
  0xbd   :  { %p4410_p3 = pnand %p4409_p2, %p4403_p13 }
  0xbf   :  { %4413 = shalt.err (!%p4410_p3)
}
  0xc0   :  { %129 = dma.hbm_to_vmem [thread:$0]  %s5624_s8, 4096, %s124_s5, [#allocation15], %s4533_s2, %s4533_s2, %s4534_s7  }
  0xc1   :  { %s4414_s0 = scalar_lea.hbm %s5626_s10, 16 }
  0xc2   :  { %p4415_p4 = scmp.ne.s32.totalorder %s5626_s10, %s4414_s0  ;;  %p4418_p5 = scmp.lt.u32.totalorder %s4414_s0, %s5626_s10 }
  0xc4   :  { %p4420_p6 = pnand %p4418_p5, %p4415_p4 }
  0xc6   :  { %4423 = shalt.err (!%p4420_p6)
}
  0xc7   :  { %s4424_s29 = scalar_lea.vmem %s147_s21, 16  ;;  %s4428_s18 = scalar_lea.vmem %s147_s21, 32 }
  0xc8   :  { %p4425_p7 = scmp.ne.s32.totalorder %s147_s21, %s4424_s29  ;;  %p4429_p8 = scmp.lt.s32.totalorder %s147_s21, %s147_s21 }
  0xc9   :  { %p4430_p9 = scmp.lt.s32.totalorder %s4428_s18, %s4424_s29 }
  0xcb   :  { %p4431_p10 = por %p4430_p9, %p4429_p8 }
  0xcd   :  { %p4432_p11 = pnand %p4431_p10, %p4425_p7 }
  0xcf   :  { %4435 = shalt.err (!%p4432_p11)
}
  0xd0   :  { %149 = dma.hbm_to_vmem [thread:$0]  %s5626_s10, 16, %s147_s21, [#allocation18]  }
  0xd1   :  { %s4540_s20 = smov [#allocation22]   ;;  %s4541_s27 = smov [#allocation23]  }
  0xd2   :  { %s166_s5 = sshll.u32 %s4540_s20, 4  ;;  %s176_s11 = sshll.u32 %s4541_s27, 4  ;;  %s167_s5 = int_to_ptr.vmem [resolvable:$true] %s166_s5  ;;  %s177_s11 = int_to_ptr.vmem [resolvable:$true] %s176_s11 }
  0xd3   :  { %s4436_s1 = scalar_lea.hbm %s5628_s12, 16 }
  0xd4   :  { %p4437_p12 = scmp.ne.s32.totalorder %s5628_s12, %s4436_s1  ;;  %p4440_p13 = scmp.lt.u32.totalorder %s4436_s1, %s5628_s12 }
  0xd6   :  { %p4442_p0 = pnand %p4440_p13, %p4437_p12 }
  0xd8   :  { %4445 = shalt.err (!%p4442_p0)
}
  0xd9   :  { %s4446_s10 = scalar_lea.vmem %s167_s5, 16  ;;  %s4450_s21 = scalar_lea.vmem %s167_s5, 32 }
  0xda   :  { %p4447_p1 = scmp.ne.s32.totalorder %s167_s5, %s4446_s10  ;;  %p4451_p2 = scmp.lt.s32.totalorder %s167_s5, %s167_s5 }
  0xdb   :  { %p4452_p3 = scmp.lt.s32.totalorder %s4450_s21, %s4446_s10 }
  0xdd   :  { %p4453_p4 = por %p4452_p3, %p4451_p2 }
  0xdf   :  { %p4454_p5 = pnand %p4453_p4, %p4447_p1 }
  0xe1   :  { %4457 = shalt.err (!%p4454_p5)
}
  0xe2   :  { %169 = dma.hbm_to_vmem [thread:$0]  %s5628_s12, 16, %s167_s5, [#allocation21]  }
  0xe3   :  { %s4458_s0 = scalar_lea.hbm %s5629_s13, 16 }
  0xe4   :  { %p4459_p6 = scmp.ne.s32.totalorder %s5629_s13, %s4458_s0  ;;  %p4462_p7 = scmp.lt.u32.totalorder %s4458_s0, %s5629_s13 }
  0xe6   :  { %p4464_p8 = pnand %p4462_p7, %p4459_p6 }
  0xe8   :  { %4467 = shalt.err (!%p4464_p8)
}
  0xe9   :  { %s4468_s29 = scalar_lea.vmem %s177_s11, 16  ;;  %s4472_s18 = scalar_lea.vmem %s177_s11, 32 }
  0xea   :  { %p4469_p9 = scmp.ne.s32.totalorder %s177_s11, %s4468_s29  ;;  %p4473_p10 = scmp.lt.s32.totalorder %s177_s11, %s177_s11 }
  0xeb   :  { %p4474_p11 = scmp.lt.s32.totalorder %s4472_s18, %s4468_s29 }
  0xed   :  { %p4475_p12 = por %p4474_p11, %p4473_p10 }
  0xef   :  { %p4476_p13 = pnand %p4475_p12, %p4469_p9 }
  0xf1   :  { %4479 = shalt.err (!%p4476_p13)
}
  0xf2   :  { %179 = dma.hbm_to_vmem [thread:$0]  %s5629_s13, 16, %s177_s11, [#allocation24]  }
  0xf3   :  { %4502 = dma.done.wait [#allocation3], 1024  }
  0xf4   :  { %4503 = vsyncadd [#allocation3], 4294966272 }
  0xf5   :  { %4504 = dma.done.wait [#allocation6], 4096  }
  0xf6   :  { %4505 = vsyncadd [#allocation6], 4294963200 }
  0xf7   :  { %4506 = dma.done.wait [#allocation9], 1072  }
  0xf8   :  { %4507 = vsyncadd [#allocation9], 4294966224 }
  0xf9   :  { %4508 = dma.done.wait [#allocation12], 4112  }
  0xfa   :  { %4509 = vsyncadd [#allocation12], 4294963184 }
  0xfb   :  { %4510 = dma.done.wait [#allocation15], 4160  }
  0xfc   :  { %4511 = vsyncadd [#allocation15], 4294963136 }
  0xfd   :  { %4512 = dma.done.wait [#allocation18], 32  }
  0xfe   :  { %4513 = vsyncadd [#allocation18], 4294967264 }
  0xff   :  { %4514 = dma.done.wait [#allocation21], 32  }
 0x100   :  { %4515 = vsyncadd [#allocation21], 4294967264 }
 0x101   :  { %4516 = dma.done.wait [#allocation24], 16  }
 0x102   :  { %4517 = vsyncadd [#allocation24], 4294967280  ;;  %v4542_v0 = vmov 0   ;;  %v3884_v1 = vld [vmem:[#allocation7 + $0x4] ss:$12 sps:$4 sm:$0xff]   ;;  %v224_v10 = vld [vmem:[#allocation2 + $0x8] sm:$0xff]  ;;  %v277_v37 = vlaneseq }
 0x103   :  { %452 = vmatprep.mubr.bf16.mxu0 %v4542_v0  ;;  %v3886_v2 = vld [vmem:[#allocation7] ss:$12 sps:$4 sm:$0xff]   ;;  %420 = vmatprep.subr.bf16.mxu0 %v3884_v1  ;;  %v3887_v3 = vld [vmem:[#allocation7 + $0x1c] ss:$12 sps:$4 sm:$0xff]   ;;  %v3889_v4 = vld [vmem:[#allocation7 + $0x18] ss:$12 sps:$4 sm:$0xff]  }
 0x104   :  { %421 = vmatpush1.bf16.msra.mxu0 %v3886_v2  ;;  %v3890_v5 = vld [vmem:[#allocation7 + $0x34] ss:$12 sps:$4 sm:$0xff]   ;;  %v3892_v6 = vld [vmem:[#allocation7 + $0x30] ss:$12 sps:$4 sm:$0xff]   ;;  %v3893_v7 = vld [vmem:[#allocation7 + $0x4c] ss:$12 sps:$4 sm:$0xff]  }
 0x105   :  { %422 = vmatprep.subr.bf16.mxu0 %v3887_v3  ;;  %v223_v8 = vld [vmem:[#allocation2] sm:$0xff]  ;;  %v3895_v9 = vld [vmem:[#allocation7 + $0x48] ss:$12 sps:$4 sm:$0xff]   ;;  %v4819_v13 = vmul.f32 11.313708, %v224_v10  ;;  %v226_v23 = vld [vmem:[#allocation2 + $0x18] sm:$0xff] }
 0x106   :  { %v4817_v11 = vmul.f32 11.313708, %v223_v8  ;;  %v3896_v12 = vld [vmem:[#allocation7 + $0x64] ss:$12 sps:$4 sm:$0xff]   ;;  %v3898_v15 = vld [vmem:[#allocation7 + $0x60] ss:$12 sps:$4 sm:$0xff]  }
 0x107   :  { %v3899_v16 = vld [vmem:[#allocation7 + $0x7c] ss:$12 sps:$4 sm:$0xff]   ;;  %v3901_v17 = vld [vmem:[#allocation7 + $0x78] ss:$12 sps:$4 sm:$0xff]   ;;  %v3902_v18 = vld [vmem:[#allocation7 + $0x94] ss:$12 sps:$4 sm:$0xff]  }
 0x108   :  { %423 = vmatpush1.bf16.msra.mxu0 %v3889_v4  ;;  %v239_v14 = vpack.c.bf16 %v4819_v13, %v4817_v11  ;;  %v3904_v19 = vld [vmem:[#allocation7 + $0x90] ss:$12 sps:$4 sm:$0xff]   ;;  %v3905_v20 = vld [vmem:[#allocation7 + $0xac] ss:$12 sps:$4 sm:$0xff]   ;;  %v3907_v21 = vld [vmem:[#allocation7 + $0xa8] ss:$12 sps:$4 sm:$0xff]  }
 0x109   :  { %424 = vmatprep.subr.bf16.mxu0 %v3890_v5  ;;  %v225_v22 = vld [vmem:[#allocation2 + $0x10] sm:$0xff]  ;;  %v227_v24 = vld [vmem:[#allocation2 + $0x20] sm:$0xff]  ;;  %v228_v25 = vld [vmem:[#allocation2 + $0x28] sm:$0xff]  ;;  %v4825_v29 = vmul.f32 11.313708, %v226_v23  ;;  %v4853_v38 = vshrl.u32 %v277_v37, 7 }
 0x10a   :  { %3634 = vmatprep.mubr.bf16.mxu1 %v239_v14  ;;  %v229_v26 = vld [vmem:[#allocation2 + $0x30] sm:$0xff]  ;;  %v4823_v27 = vmul.f32 11.313708, %v225_v22  ;;  %v230_v28 = vld [vmem:[#allocation2 + $0x38] sm:$0xff]  ;;  %v4827_v30 = vmul.f32 11.313708, %v227_v24 }
 0x10b   :  { %v4829_v31 = vmul.f32 11.313708, %v228_v25  ;;  %v4832_v32 = vmul.f32 11.313708, %v229_v26  ;;  %v4834_v33 = vmul.f32 11.313708, %v230_v28 }
 0x10c   :  { %425 = vmatpush1.bf16.msra.mxu0 %v3892_v6  ;;  %v4838_v34 = vpack.c.bf16 %v4825_v29, %v4823_v27  ;;  %v5633_v39 = vsub.s32 0, %v4853_v38  ;;  %v4856_v40 = vld [vmem:[#allocation8] sm:$0x7]  ;;  %v5631_v41 = vsub.s32 1, %v4853_v38  ;;  %vm594_vm0 = vcmask 261120   ;;  %s4543_s13 = smov 96  }
 0x10d   :  { %426 = vmatprep.subr.bf16.mxu0 %v3893_v7  ;;  %v4844_v35 = vpack.c.bf16 %v4829_v31, %v4827_v30  ;;  %v4850_v36 = vpack.c.bf16 %v4834_v33, %v4832_v32  ;;  %v3908_v28 = vld [vmem:[#allocation7 + $0x8] ss:$12 sps:$4 sm:$0xff]   ;;  %v3909_v37 = vld [vmem:[#allocation7 + $0x20] ss:$12 sps:$4 sm:$0xff]   ;;  %vm684_vm1 = vcmask 523264   ;;  %s4544_s19 = smov 32  }
 0x10e   :  { %v280_v42 = vrot.slane %v4856_v40, %v5633_v39  ;;  %v284_v44 = vrot.slane %v4856_v40, %v5631_v41  ;;  %3618 = vmatprep.subr.bf16.mxu1 %v3908_v28  ;;  %s4545_s20 = smov [#allocation25]  }
 0x10f   :  { %3619 = vmatpush3.bf16.msra.mxu1 %v3908_v28  ;;  %s3230_s5 = sshll.u32 %s4545_s20, 4  ;;  %s3231_s5 = int_to_ptr.vmem [resolvable:$true] %s3230_s5 }
 0x110   :  { %427 = vmatpush1.bf16.msra.mxu0 %v3895_v9  ;;  %3620 = vmatprep.subr.bf16.mxu1 %v3909_v37  ;;  %s4480_s27 = scalar_lea.vmem %s3231_s5, 512  ;;  %p4485_p1 = scmp.lt.s32.totalorder %s3231_s5, %s3231_s5 }
 0x111   :  { %428 = vmatprep.subr.bf16.mxu0 %v3896_v12  ;;  %p4481_p0 = scmp.ne.s32.totalorder %s3231_s5, %s4480_s27  ;;  %p4486_p2 = scmp.lt.s32.totalorder %s4480_s27, %s4480_s27 }
 0x113   :  { %3621 = vmatpush3.bf16.msra.mxu1 %v3909_v37  ;;  %p4487_p3 = por %p4486_p2, %p4485_p1 }
 0x114   :  { %429 = vmatpush1.bf16.msra.mxu0 %v3898_v15 }
 0x115   :  { %430 = vmatprep.subr.bf16.mxu0 %v3899_v16  ;;  %p4488_p4 = pnand %p4487_p3, %p4481_p0 }
 0x118   :  { %431 = vmatpush1.bf16.msra.mxu0 %v3901_v17 }
 0x119   :  { %432 = vmatprep.subr.bf16.mxu0 %v3902_v18 }
 0x11c   :  { %433 = vmatpush1.bf16.msra.mxu0 %v3904_v19 }
 0x11d   :  { %434 = vmatprep.subr.bf16.mxu0 %v3905_v20 }
 0x120   :  { %435 = vmatpush1.bf16.msra.mxu0 %v3907_v21 }
 0x123   :  { %453 = vmatmul.mubr.bf16.vlgmr.msra.gmra.mrb[0].mxu0 %v239_v14 }
 0x124   :  { %462 = vmatprep.mubr.bf16.mxu0 %v4542_v0 }
 0x12b   :  { %463 = vmatmul.mubr.bf16.gmra.mrb[4].mxu0 %v4838_v34 }
 0x12c   :  { %472 = vmatprep.mubr.bf16.mxu0 %v4542_v0 }
 0x133   :  { %473 = vmatmul.mubr.bf16.gmra.mrb[8].mxu0 %v4844_v35 }
 0x134   :  { %482 = vmatprep.mubr.bf16.mxu0 %v4542_v0 }
 0x13b   :  { %483 = vmatmul.mubr.bf16.gmra.mrb[12].mxu0 %v4850_v36 }
 0x1f6   :  { %v454_v43 = vpop.f32.mrb[0].mxu0 }
 0x1f7   :  { %v456_v45 = vpop.f32.mrb[1].mxu0  ;;  %v455_v47 = vadd.f32 %v454_v43, %v280_v42  ;;  %v3911_v43 = vld [vmem:[#allocation7 + $0x50] ss:$12 sps:$4 sm:$0xff]  }
 0x1f8   :  { %v458_v46 = vpop.f32.mrb[2].mxu0  ;;  %v457_v50 = vadd.f32 %v456_v45, %v284_v44  ;;  %v3913_v45 = vld [vmem:[#allocation7 + $0x80] ss:$12 sps:$4 sm:$0xff]  }
 0x1f9   :  { %v459_v48 = vadd.f32 %v458_v46, %v280_v42  ;;  %v460_v49 = vpop.f32.mrb[3].mxu0  ;;  %v3914_v46 = vld [vmem:[#allocation7 + $0x98] ss:$12 sps:$4 sm:$0xff]  }
 0x1fa   :  { %v461_v51 = vadd.f32 %v460_v49, %v284_v44  ;;  %v4910_v49 = vld [vmem:[#allocation5] sm:$0xff] }
 0x1fb   :  { %v4865_v52 = vpack.c.bf16 %v459_v48, %v455_v47  ;;  %v3915_v47 = vld [vmem:[#allocation7 + $0xb0] ss:$12 sps:$4 sm:$0xff]  }
 0x1fc   :  { %v4867_v53 = vpack.c.bf16 %v461_v51, %v457_v50  ;;  %v4908_v48 = vld [vmem:[#allocation5 + $0x10] sm:$0xff]  ;;  %v4912_v51 = vld [vmem:[#allocation5 + $0x18] sm:$0xff] }
 0x1fd   :  { %3650 = vmatprep.mubr.msk.bf16.mxu0 %vm594_vm0, %v4865_v52 }
 0x1fe   :  { %v464_v54 = vpop.f32.mrb[4].mxu0  ;;  %3842 = vmatprep.subr.msk.bf16.mxu0 %vm594_vm0, %v4867_v53  ;;  %v608_v55 = vsel %vm594_vm0, %v4867_v53, 0 }
 0x1ff   :  { %v466_v56 = vpop.f32.mrb[5].mxu0  ;;  %3643 = vmatpush3.bf16.xpose.msra.mxu0 %v608_v55  ;;  %v465_v58 = vadd.f32 %v464_v54, %v280_v42 }
 0x200   :  { %v468_v57 = vpop.f32.mrb[6].mxu0  ;;  %v467_v61 = vadd.f32 %v466_v56, %v284_v44  ;;  %v4915_v56 = vld [vmem:[#allocation5 + $0x8] sm:$0xff] }
 0x201   :  { %v469_v59 = vadd.f32 %v468_v57, %v280_v42  ;;  %v470_v60 = vpop.f32.mrb[7].mxu0 }
 0x202   :  { %v471_v62 = vadd.f32 %v470_v60, %v284_v44 }
 0x203   :  { %v4875_v63 = vpack.c.bf16 %v469_v59, %v465_v58 }
 0x204   :  { %v4877_v1 = vpack.c.bf16 %v471_v62, %v467_v61  ;;  %v4923_v62 = vld [vmem:[#allocation5 + $0x20] sm:$0xff] }
 0x206   :  { %v474_v2 = vpop.f32.mrb[8].mxu0  ;;  %3843 = vmatprep.subr.msk.bf16.mxu0 %vm594_vm0, %v4877_v1  ;;  %v611_v3 = vsel %vm594_vm0, %v4877_v1, 0 }
 0x207   :  { %v476_v4 = vpop.f32.mrb[9].mxu0  ;;  %3645 = vmatpush3.bf16.xpose.msra.mxu0 %v611_v3  ;;  %v475_v6 = vadd.f32 %v474_v2, %v280_v42 }
 0x208   :  { %v478_v5 = vpop.f32.mrb[10].mxu0  ;;  %v477_v9 = vadd.f32 %v476_v4, %v284_v44  ;;  %v4926_v4 = vld [vmem:[#allocation5 + $0x30] sm:$0xff] }
 0x209   :  { %v479_v7 = vadd.f32 %v478_v5, %v280_v42  ;;  %v480_v8 = vpop.f32.mrb[11].mxu0 }
 0x20a   :  { %v481_v10 = vadd.f32 %v480_v8, %v284_v44 }
 0x20b   :  { %v4883_v12 = vpack.c.bf16 %v479_v7, %v475_v6  ;;  %v4928_v6 = vld [vmem:[#allocation5 + $0x28] sm:$0xff] }
 0x20c   :  { %v4885_v14 = vpack.c.bf16 %v481_v10, %v477_v9  ;;  %v4931_v9 = vld [vmem:[#allocation5 + $0x38] sm:$0xff] }
 0x20e   :  { %v484_v15 = vpop.f32.mrb[12].mxu0  ;;  %3844 = vmatprep.subr.msk.bf16.mxu0 %vm594_vm0, %v4885_v14  ;;  %v614_v16 = vsel %vm594_vm0, %v4885_v14, 0 }
 0x20f   :  { %v486_v17 = vpop.f32.mrb[13].mxu0  ;;  %3647 = vmatpush3.bf16.xpose.msra.mxu0 %v614_v16  ;;  %v485_v19 = vadd.f32 %v484_v15, %v280_v42 }
 0x210   :  { %v488_v18 = vpop.f32.mrb[14].mxu0  ;;  %v487_v22 = vadd.f32 %v486_v17, %v284_v44 }
 0x211   :  { %v489_v20 = vadd.f32 %v488_v18, %v280_v42  ;;  %v490_v21 = vpop.f32.mrb[15].mxu0  ;;  %v3910_v42 = vld [vmem:[#allocation7 + $0x38] ss:$12 sps:$4 sm:$0xff]  }
 0x212   :  { %v491_v23 = vadd.f32 %v490_v21, %v284_v44  ;;  %3622 = vmatprep.subr.bf16.mxu1 %v3910_v42  ;;  %v3912_v44 = vld [vmem:[#allocation7 + $0x68] ss:$12 sps:$4 sm:$0xff]  }
 0x213   :  { %v4891_v24 = vpack.c.bf16 %v489_v20, %v485_v19  ;;  %3623 = vmatpush3.bf16.msra.mxu1 %v3910_v42 }
 0x214   :  { %v4893_v25 = vpack.c.bf16 %v491_v23, %v487_v22  ;;  %3624 = vmatprep.subr.bf16.mxu1 %v3911_v43  ;;  %v5632_v22 = vsub.s32 2, %v4853_v38 }
 0x216   :  { %3845 = vmatprep.subr.msk.bf16.mxu0 %vm594_vm0, %v4893_v25  ;;  %v617_v26 = vsel %vm594_vm0, %v4893_v25, 0  ;;  %v4950_v23 = vrot.slane %v4856_v40, %v5632_v22 }
 0x217   :  { %3649 = vmatpush3.bf16.xpose.msra.mxu0 %v617_v26  ;;  %3625 = vmatpush3.bf16.msra.mxu1 %v3911_v43 }
 0x218   :  { %3626 = vmatprep.subr.bf16.mxu1 %v3912_v44 }
 0x21b   :  { %3627 = vmatpush3.bf16.msra.mxu1 %v3912_v44 }
 0x21c   :  { %3628 = vmatprep.subr.bf16.mxu1 %v3913_v45 }
 0x21e   :  { %3651 = vmatmul.mubr.msk.bf16.vlgmr.msra.gmra.mrb[16].mxu0 %vm594_vm0, %v4875_v63 }
 0x21f   :  { %3654 = vmatprep.mubr.msk.bf16.mxu0 %vm594_vm0, %v4883_v12  ;;  %3629 = vmatpush3.bf16.msra.mxu1 %v3913_v45 }
 0x220   :  { %3630 = vmatprep.subr.bf16.mxu1 %v3914_v46 }
 0x223   :  { %3631 = vmatpush3.bf16.msra.mxu1 %v3914_v46 }
 0x224   :  { %3632 = vmatprep.subr.bf16.mxu1 %v3915_v47 }
 0x226   :  { %3655 = vmatmul.mubr.msk.bf16.gmra.mrb[20].mxu0 %vm594_vm0, %v4891_v24 }
 0x227   :  { %3633 = vmatpush3.bf16.msra.mxu1 %v3915_v47 }
 0x22a   :  { %3635 = vmatmul.mubr.bf16.vlgmr.msra.gmra.mrb[0].mxu1 %v4838_v34 }
 0x22b   :  { %3638 = vmatprep.mubr.bf16.mxu1 %v4844_v35 }
 0x232   :  { %3639 = vmatmul.mubr.bf16.gmra.mrb[4].mxu1 %v4850_v36 }
 0x2f1   :  { %v3652_v50 = vpop.f32.mrb[16].mxu0 }
 0x2f2   :  { %v662_v54 = vadd.f32 %v3652_v50, %v4908_v48  ;;  %v653_v55 = vpop.f32.mrb[17].mxu0 }
 0x2f3   :  { %v654_v57 = vadd.f32 %v653_v55, %v4910_v49  ;;  %v3653_v34 = vpop.f32.mrb[18].mxu0 }
 0x2f4   :  { %v665_v35 = vadd.f32 %v3653_v34, %v4912_v51  ;;  %v656_v58 = vpop.f32.mrb[19].mxu0  ;;  %v691_v36 = vsel %vm684_vm1, %v662_v54, -inf }
 0x2f5   :  { %v657_v59 = vadd.f32 %v656_v58, %v4915_v56  ;;  %692 = vmax.xlane.f32.xlu1 %v691_v36  ;;  %v685_v60 = vsel %vm684_vm1, %v654_v57, -inf }
 0x2f6   :  { %686 = vmax.xlane.f32.xlu0 %v685_v60  ;;  %v694_v61 = vsel %vm684_vm1, %v665_v35, -inf }
 0x2f7   :  { %v688_v3 = vsel %vm684_vm1, %v657_v59, -inf }
 0x2f9   :  { %695 = vmax.xlane.f32.xlu1 %v694_v61  ;;  %v3656_v2 = vpop.f32.mrb[20].mxu0 }
 0x2fa   :  { %v669_v5 = vpop.f32.mrb[21].mxu0  ;;  %689 = vmax.xlane.f32.xlu0 %v688_v3  ;;  %v678_v15 = vadd.f32 %v3656_v2, %v4926_v4 }
 0x2fb   :  { %v670_v7 = vadd.f32 %v669_v5, %v4923_v62  ;;  %v3657_v8 = vpop.f32.mrb[22].mxu0 }
 0x2fc   :  { %v672_v10 = vpop.f32.mrb[23].mxu0  ;;  %v4939_v18 = vadd.f32 %v3657_v8, %v4931_v9  ;;  %v703_v20 = vsel %vm684_vm1, %v678_v15, -inf }
 0x2fd   :  { %v4935_v16 = vadd.f32 %v672_v10, %v4928_v6  ;;  %v697_v17 = vsel %vm684_vm1, %v670_v7, -inf  ;;  %v3636_v26 = vpop.f32.mrb[0].mxu1 }
 0x2fe   :  { %698 = vmax.xlane.f32.xlu0 %v697_v17  ;;  %v706_v21 = vsel %vm684_vm1, %v4939_v18, -inf  ;;  %v536_v28 = vadd.f32 %v3636_v26, %v4950_v23  ;;  %v527_v37 = vpop.f32.mrb[1].mxu1 }
 0x2ff   :  { %v700_v19 = vsel %vm684_vm1, %v4935_v16, -inf  ;;  %v528_v42 = vadd.f32 %v527_v37, %v4950_v23  ;;  %v3637_v43 = vpop.f32.mrb[2].mxu1 }
 0x300   :  { %701 = vmax.xlane.f32.xlu1 %v700_v19  ;;  %v539_v44 = vadd.f32 %v3637_v43, %v4950_v23  ;;  %v530_v45 = vpop.f32.mrb[3].mxu1 }
 0x301   :  { %v531_v46 = vadd.f32 %v530_v45, %v4950_v23 }
 0x302   :  { %704 = vmax.xlane.f32.xlu0 %v703_v20  ;;  %v4956_v47 = vpack.c.bf16 %v539_v44, %v536_v28 }
 0x303   :  { %v4958_v50 = vpack.c.bf16 %v531_v46, %v528_v42 }
 0x304   :  { %707 = vmax.xlane.f32.xlu1 %v706_v21 }
 0x305   :  { %3658 = vmatprep.subr.bf16.mxu1 %v4958_v50 }
 0x306   :  { %3659 = vmatpush3.bf16.msra.mxu1 %v4958_v50 }
 0x307   :  { %3660 = vmatprep.subr.bf16.mxu1 %v4956_v47 }
 0x30a   :  { %3661 = vmatpush3.bf16.msra.mxu1 %v4956_v47 }
 0x382   :  { %v693_v40 = vpop.xlane.xlu1 %692 }
 0x383   :  { %v711_v55 = vsub.f32 %v662_v54, %v693_v40  ;;  %v687_v34 = vpop.xlane.xlu0 %686  ;;  %v3640_v40 = vpop.f32.mrb[4].mxu1 }
 0x384   :  { %v709_v58 = vsub.f32 %v654_v57, %v687_v34 }
 0x385   :  { %v721_v36 = vmul.f32 1.442695, %v711_v55  ;;  %v543_v55 = vpop.f32.mrb[5].mxu1 }
 0x386   :  { %v717_v60 = vmul.f32 1.442695, %v709_v58  ;;  %v696_v61 = vpop.xlane.xlu1 %695  ;;  %v3641_v34 = vpop.f32.mrb[6].mxu1  ;;  %v544_v58 = vadd.f32 %v543_v55, %v4950_v23 }
 0x387   :  { %4004 = vpow2.f32 %v721_v36  ;;  %v712_v2 = vsub.f32 %v665_v35, %v696_v61  ;;  %v690_v3 = vpop.xlane.xlu0 %689  ;;  %v546_v36 = vpop.f32.mrb[7].mxu1 }
 0x388   :  { %v710_v5 = vsub.f32 %v657_v59, %v690_v3  ;;  %4006 = vpow2.f32 %v717_v60  ;;  %v547_v60 = vadd.f32 %v546_v36, %v4950_v23  ;;  %v555_v3 = vadd.f32 %v3641_v34, %v4950_v23 }
 0x389   :  { %v723_v8 = vmul.f32 1.442695, %v712_v2  ;;  %v552_v2 = vadd.f32 %v3640_v40, %v4950_v23 }
 0x38a   :  { %v719_v10 = vmul.f32 1.442695, %v710_v5  ;;  %v4990_v61 = vpack.c.bf16 %v547_v60, %v544_v58 }
 0x38b   :  { %4008 = vpow2.f32 %v723_v8  ;;  %v699_v17 = vpop.xlane.xlu0 %698  ;;  %v4998_v5 = vpack.c.bf16 %v555_v3, %v552_v2 }
 0x38c   :  { %4010 = vpow2.f32 %v719_v10  ;;  %v713_v54 = vsub.f32 %v670_v7, %v699_v17  ;;  %3662 = vmatprep.subr.bf16.mxu1 %v4990_v61 }
 0x38d   :  { %3663 = vmatpush3.bf16.msra.mxu1 %v4990_v61  ;;  %v702_v8 = vpop.xlane.xlu1 %701 }
 0x38e   :  { %v725_v57 = vmul.f32 1.442695, %v713_v54  ;;  %3664 = vmatprep.subr.bf16.mxu1 %v4998_v5  ;;  %v714_v17 = vsub.f32 %v4935_v16, %v702_v8 }
 0x38f   :  { %v705_v19 = vpop.xlane.xlu0 %704 }
 0x390   :  { %v715_v20 = vsub.f32 %v678_v15, %v705_v19  ;;  %v727_v19 = vmul.f32 1.442695, %v714_v17 }
 0x391   :  { %v4964_v21 = vpop.eup %4004  ;;  %3665 = vmatpush3.bf16.msra.mxu1 %v4998_v5  ;;  %v708_v10 = vpop.xlane.xlu1 %707 }
 0x392   :  { %v729_v26 = vmul.f32 1.442695, %v715_v20  ;;  %v739_v28 = vsel %vm684_vm1, %v4964_v21, 0.0  ;;  %v4968_v37 = vpop.eup %4006  ;;  %v716_v23 = vsub.f32 %v4939_v18, %v708_v10 }
 0x393   :  { %740 = vadd.xlane.f32.xlu0 %v739_v28  ;;  %v733_v7 = vsel %vm684_vm1, %v4968_v37, 0.0 }
 0x394   :  { %4012 = vpow2.f32 %v729_v26  ;;  %v731_v54 = vmul.f32 1.442695, %v716_v23 }
 0x395   :  { %v4970_v35 = vpop.eup %4008  ;;  %4014 = vpow2.f32 %v725_v57 }
 0x396   :  { %v742_v59 = vsel %vm684_vm1, %v4970_v35, 0.0  ;;  %v4976_v15 = vpop.eup %4010  ;;  %4016 = vpow2.f32 %v731_v54 }
 0x397   :  { %743 = vadd.xlane.f32.xlu1 %v742_v59  ;;  %734 = vadd.xlane.f32.xlu0 %v733_v7  ;;  %v736_v42 = vsel %vm684_vm1, %v4976_v15, 0.0  ;;  %4018 = vpow2.f32 %v727_v19 }
 0x39b   :  { %737 = vadd.xlane.f32.xlu1 %v736_v42 }
 0x39e   :  { %v4980_v43 = vpop.eup %4012 }
 0x39f   :  { %v751_v44 = vsel %vm684_vm1, %v4980_v43, 0.0  ;;  %v4984_v45 = vpop.eup %4014 }
 0x3a0   :  { %752 = vadd.xlane.f32.xlu0 %v751_v44  ;;  %v745_v46 = vsel %vm684_vm1, %v4984_v45, 0.0  ;;  %v4017_v20 = vpop.eup %4016 }
 0x3a1   :  { %v754_v57 = vsel %vm684_vm1, %v4017_v20, 0.0  ;;  %v4019_v26 = vpop.eup %4018 }
 0x3a2   :  { %v748_v28 = vsel %vm684_vm1, %v4019_v26, 0.0 }
 0x3a4   :  { %746 = vadd.xlane.f32.xlu0 %v745_v46 }
 0x3ac   :  { %876 = vrot.lane.b32.xlu1 %v4877_v1, %s4543_s13 }
 0x3b0   :  { %878 = vrot.lane.b32.xlu1 %v4885_v14, %s4543_s13 }
 0x3ba   :  { %874 = vrot.lane.b32.xlu0 %v4867_v53, %s4543_s13 }
 0x3be   :  { %862 = vrot.lane.b32.xlu0 %v4865_v52, %s4543_s13 }
 0x3c2   :  { %866 = vrot.lane.b32.xlu0 %v4883_v12, %s4543_s13 }
 0x3d4   :  { %755 = vadd.xlane.f32.xlu1 %v754_v57 }
 0x3d8   :  { %749 = vadd.xlane.f32.xlu1 %v748_v28 }
 0x3e9   :  { %880 = vrot.lane.b32.xlu1 %v4893_v25, %s4543_s13 }
 0x3ed   :  { %864 = vrot.lane.b32.xlu1 %v4875_v63, %s4543_s13 }
 0x3f1   :  { %868 = vrot.lane.b32.xlu1 %v4891_v24, %s4543_s13 }
 0x420   :  { %v741_v16 = vpop.xlane.xlu0 %740 }
 0x424   :  { %v744_v18 = vpop.xlane.xlu1 %743  ;;  %v735_v59 = vpop.xlane.xlu0 %734 }
 0x425   :  { %4020 = vrcp.f32 %v744_v18 }
 0x426   :  { %4022 = vrcp.f32 %v735_v59 }
 0x427   :  { %4024 = vrcp.f32 %v741_v16 }
 0x428   :  { %v738_v7 = vpop.xlane.xlu1 %737 }
 0x429   :  { %4026 = vrcp.f32 %v738_v7 }
 0x42c   :  { %v877_v17 = vpop.permute.xlu1 %876 }
 0x42d   :  { %v753_v42 = vpop.xlane.xlu0 %752 }
 0x42f   :  { %v4021_v44 = vpop.eup %4020 }
 0x430   :  { %v4023_v46 = vpop.eup %4022  ;;  %v768_v58 = vmul.f32 %v4021_v44, %v4970_v35  ;;  %v879_v35 = vpop.permute.xlu1 %878 }
 0x431   :  { %v747_v40 = vpop.xlane.xlu0 %746  ;;  %v4025_v55 = vpop.eup %4024  ;;  %v765_v36 = vmul.f32 %v4023_v46, %v4968_v37  ;;  %v898_v37 = vsel %vm594_vm0, %v877_v17, 0 }
 0x432   :  { %v767_v2 = vmul.f32 %v4025_v55, %v4964_v21  ;;  %v901_v21 = vsel %vm594_vm0, %v879_v35, 0 }
 0x433   :  { %v4027_v34 = vpop.eup %4026 }
 0x434   :  { %v766_v60 = vmul.f32 %v4027_v34, %v4976_v15  ;;  %v774_v10 = vpack.c.bf16 %v768_v58, %v767_v2 }
 0x435   :  { %v875_v3 = vpop.permute.xlu0 %874 }
 0x436   :  { %3846 = vmatprep.subr.msk.bf16.mxu1 %vm594_vm0, %v875_v3  ;;  %v773_v8 = vpack.c.bf16 %v766_v60, %v765_v36  ;;  %v895_v23 = vsel %vm594_vm0, %v875_v3, 0 }
 0x438   :  { %3666 = vmatprep.mubr.msk.bf16.mxu1 %vm684_vm1, %v773_v8 }
 0x439   :  { %3667 = vmatmul.mubr.msk.bf16.vlgmr.msra.gmra.mrb[8].mxu1 %vm684_vm1, %v774_v10  ;;  %v863_v34 = vpop.permute.xlu0 %862 }
 0x43a   :  { %3675 = vmatpush3.bf16.xpose.msra.mxu1 %v895_v23 }
 0x43b   :  { %3847 = vmatprep.subr.msk.bf16.mxu1 %vm594_vm0, %v877_v17 }
 0x43d   :  { %v867_v36 = vpop.permute.xlu0 %866 }
 0x442   :  { %3677 = vmatpush3.bf16.xpose.msra.mxu1 %v898_v37 }
 0x443   :  { %3848 = vmatprep.subr.msk.bf16.mxu1 %vm594_vm0, %v879_v35 }
 0x44a   :  { %3679 = vmatpush3.bf16.xpose.msra.mxu1 %v901_v21 }
 0x461   :  { %v756_v15 = vpop.xlane.xlu1 %755 }
 0x462   :  { %4028 = vrcp.f32 %v756_v15 }
 0x463   :  { %4030 = vrcp.f32 %v747_v40 }
 0x464   :  { %4032 = vrcp.f32 %v753_v42 }
 0x465   :  { %v750_v54 = vpop.xlane.xlu1 %749 }
 0x466   :  { %4034 = vrcp.f32 %v750_v54 }
 0x469   :  { %v881_v19 = vpop.permute.xlu1 %880 }
 0x46a   :  { %3849 = vmatprep.subr.msk.bf16.mxu1 %vm594_vm0, %v881_v19  ;;  %v904_v57 = vsel %vm594_vm0, %v881_v19, 0 }
 0x46b   :  { %3681 = vmatpush3.bf16.xpose.msra.mxu1 %v904_v57 }
 0x46c   :  { %v4029_v28 = vpop.eup %4028 }
 0x46d   :  { %v4031_v16 = vpop.eup %4030  ;;  %v772_v7 = vmul.f32 %v4029_v28, %v4017_v20  ;;  %v865_v58 = vpop.permute.xlu1 %864 }
 0x46e   :  { %v4033_v18 = vpop.eup %4032  ;;  %v769_v44 = vmul.f32 %v4031_v16, %v4984_v45 }
 0x46f   :  { %v771_v55 = vmul.f32 %v4033_v18, %v4980_v43 }
 0x470   :  { %v4035_v59 = vpop.eup %4034 }
 0x471   :  { %v770_v46 = vmul.f32 %v4035_v59, %v4019_v26  ;;  %v776_v42 = vpack.c.bf16 %v772_v7, %v771_v55  ;;  %v869_v20 = vpop.permute.xlu1 %868 }
 0x473   :  { %v775_v40 = vpack.c.bf16 %v770_v46, %v769_v44 }
 0x475   :  { %3670 = vmatprep.mubr.msk.bf16.mxu1 %vm684_vm1, %v775_v40 }
 0x476   :  { %3671 = vmatmul.mubr.msk.bf16.gmra.mrb[12].mxu1 %vm684_vm1, %v776_v42 }
 0x477   :  { %3682 = vmatprep.mubr.msk.bf16.mxu1 %vm594_vm0, %v863_v34 }
 0x47e   :  { %3683 = vmatmul.mubr.msk.bf16.vlgmr.msra.gmra.mrb[16].mxu1 %vm594_vm0, %v865_v58 }
 0x47f   :  { %3686 = vmatprep.mubr.msk.bf16.mxu1 %vm594_vm0, %v867_v36 }
 0x486   :  { %3687 = vmatmul.mubr.msk.bf16.gmra.mrb[20].mxu1 %vm594_vm0, %v869_v20 }
 0x50c   :  { %v5042_v45 = vpop.f32.mrb[8].mxu1 }
 0x50d   :  { %v5044_v43 = vpop.f32.mrb[9].mxu1 }
 0x50e   :  { %v5046_v26 = vpop.f32.mrb[10].mxu1 }
 0x50f   :  { %v855_v60 = vpack.c.bf16 %v5046_v26, %v5042_v45  ;;  %v5050_v2 = vpop.f32.mrb[11].mxu1 }
 0x510   :  { %v854_v3 = vpack.c.bf16 %v5050_v2, %v5044_v43 }
 0x549   :  { %v5054_v8 = vpop.f32.mrb[12].mxu1 }
 0x54a   :  { %v5056_v10 = vpop.f32.mrb[13].mxu1 }
 0x54b   :  { %v5058_v23 = vpop.f32.mrb[14].mxu1 }
 0x54c   :  { %v5062_v37 = vpop.f32.mrb[15].mxu1 }
 0x54d   :  { %v5634_v43 = vpack.c.bf16 %v5062_v37, %v5056_v10  ;;  %v5635_v10 = vpack.c.bf16 %v5058_v23, %v5054_v8 }
 0x551   :  { %v3684_v21 = vpop.f32.mrb[16].mxu1 }
 0x552   :  { %v949_v15 = vadd.f32 %v3684_v21, %v4908_v48  ;;  %v940_v54 = vpop.f32.mrb[17].mxu1 }
 0x553   :  { %v3685_v19 = vpop.f32.mrb[18].mxu1  ;;  %v941_v57 = vadd.f32 %v940_v54, %v4910_v49 }
 0x554   :  { %v943_v28 = vpop.f32.mrb[19].mxu1  ;;  %v977_v16 = vsel %vm684_vm1, %v949_v15, -inf  ;;  %v952_v7 = vadd.f32 %v3685_v19, %v4912_v51 }
 0x555   :  { %v944_v18 = vadd.f32 %v943_v28, %v4915_v56  ;;  %978 = vmax.xlane.f32.xlu0 %v977_v16  ;;  %v971_v44 = vsel %vm684_vm1, %v941_v57, -inf }
 0x556   :  { %v980_v58 = vsel %vm684_vm1, %v952_v7, -inf }
 0x557   :  { %v974_v59 = vsel %vm684_vm1, %v944_v18, -inf }
 0x558   :  { %975 = vmax.xlane.f32.xlu1 %v974_v59 }
 0x559   :  { %972 = vmax.xlane.f32.xlu0 %v971_v44  ;;  %v3688_v46 = vpop.f32.mrb[20].mxu1 }
 0x55a   :  { %v956_v55 = vpop.f32.mrb[21].mxu1  ;;  %v965_v42 = vadd.f32 %v3688_v46, %v4926_v4 }
 0x55b   :  { %v3689_v40 = vpop.f32.mrb[22].mxu1  ;;  %v957_v36 = vadd.f32 %v956_v55, %v4923_v62 }
 0x55c   :  { %v959_v34 = vpop.f32.mrb[23].mxu1  ;;  %v989_v20 = vsel %vm684_vm1, %v965_v42, -inf  ;;  %v968_v54 = vadd.f32 %v3689_v40, %v4931_v9 }
 0x55d   :  { %981 = vmax.xlane.f32.xlu0 %v980_v58  ;;  %v983_v21 = vsel %vm684_vm1, %v957_v36, -inf  ;;  %v5086_v19 = vadd.f32 %v959_v34, %v4928_v6 }
 0x55e   :  { %v992_v28 = vsel %vm684_vm1, %v968_v54, -inf }
 0x55f   :  { %v986_v16 = vsel %vm684_vm1, %v5086_v19, -inf }
 0x561   :  { %990 = vmax.xlane.f32.xlu0 %v989_v20 }
 0x565   :  { %984 = vmax.xlane.f32.xlu0 %v983_v21 }
 0x569   :  { %1069 = vrot.lane.b32.xlu1 %v4956_v47, %s4543_s13 }
 0x56d   :  { %1071 = vrot.lane.b32.xlu1 %v4990_v61, %s4543_s13 }
 0x57b   :  { %1067 = vrot.lane.b32.xlu0 %v4958_v50, %s4543_s13 }
 0x591   :  { %993 = vmax.xlane.f32.xlu1 %v992_v28 }
 0x595   :  { %987 = vmax.xlane.f32.xlu1 %v986_v16 }
 0x5a6   :  { %1073 = vrot.lane.b32.xlu1 %v4998_v5, %s4543_s13 }
 0x5e2   :  { %v979_v59 = vpop.xlane.xlu0 %978 }
 0x5e3   :  { %v997_v44 = vsub.f32 %v949_v15, %v979_v59 }
 0x5e5   :  { %v1007_v46 = vmul.f32 1.442695, %v997_v44  ;;  %v976_v55 = vpop.xlane.xlu1 %975 }
 0x5e6   :  { %v973_v58 = vpop.xlane.xlu0 %972  ;;  %v996_v20 = vsub.f32 %v944_v18, %v976_v55 }
 0x5e7   :  { %4036 = vpow2.f32 %v1007_v46  ;;  %v995_v40 = vsub.f32 %v941_v57, %v973_v58 }
 0x5e8   :  { %v1005_v28 = vmul.f32 1.442695, %v996_v20 }
 0x5e9   :  { %v1003_v34 = vmul.f32 1.442695, %v995_v40 }
 0x5ea   :  { %v982_v21 = vpop.xlane.xlu0 %981 }
 0x5eb   :  { %4038 = vpow2.f32 %v1003_v34  ;;  %v998_v41 = vsub.f32 %v952_v7, %v982_v21  ;;  %v1070_v7 = vpop.permute.xlu1 %1069 }
 0x5ed   :  { %v1009_v22 = vmul.f32 1.442695, %v998_v41 }
 0x5ee   :  { %v991_v39 = vpop.xlane.xlu0 %990 }
 0x5ef   :  { %4040 = vpow2.f32 %v1009_v22  ;;  %v1001_v16 = vsub.f32 %v965_v42, %v991_v39  ;;  %v1072_v42 = vpop.permute.xlu1 %1071 }
 0x5f0   :  { %4042 = vpow2.f32 %v1005_v28 }
 0x5f1   :  { %v5093_v17 = vpop.eup %4036  ;;  %v1015_v35 = vmul.f32 1.442695, %v1001_v16 }
 0x5f2   :  { %v985_v15 = vpop.xlane.xlu0 %984  ;;  %v1025_v59 = vsel %vm684_vm1, %v5093_v17, 0.0 }
 0x5f3   :  { %4044 = vpow2.f32 %v1015_v35  ;;  %v999_v57 = vsub.f32 %v957_v36, %v985_v15  ;;  %1026 = vadd.xlane.f32.xlu0 %v1025_v59 }
 0x5f5   :  { %v5097_v18 = vpop.eup %4038  ;;  %v1011_v44 = vmul.f32 1.442695, %v999_v57 }
 0x5f6   :  { %v1068_v46 = vpop.permute.xlu0 %1067  ;;  %v1019_v41 = vsel %vm684_vm1, %v5097_v18, 0.0 }
 0x5f7   :  { %4046 = vpow2.f32 %v1011_v44  ;;  %1020 = vadd.xlane.f32.xlu0 %v1019_v41  ;;  %3690 = vmatprep.subr.bf16.mxu1 %v1068_v46  ;;  %v3916_v41 = vld [vmem:[#allocation10 + $0x10] sm:$0xff]  }
 0x5f8   :  { %3691 = vmatpush3.bf16.msra.mxu1 %v1068_v46  ;;  %3706 = vmatprep.subr.bf16.mxu0 %v3916_v41 }
 0x5f9   :  { %v5101_v39 = vpop.eup %4040  ;;  %3692 = vmatprep.subr.bf16.mxu1 %v1070_v7  ;;  %3707 = vmatpush3.bf16.msra.mxu0 %v3916_v41 }
 0x5fa   :  { %v1028_v22 = vsel %vm684_vm1, %v5101_v39, 0.0  ;;  %v5105_v35 = vpop.eup %4042 }
 0x5fb   :  { %1029 = vadd.xlane.f32.xlu1 %v1028_v22  ;;  %v1022_v55 = vsel %vm684_vm1, %v5105_v35, 0.0 }
 0x5fc   :  { %3693 = vmatpush3.bf16.msra.mxu1 %v1070_v7 }
 0x5fd   :  { %v5107_v36 = vpop.eup %4044  ;;  %3694 = vmatprep.subr.bf16.mxu1 %v1072_v42 }
 0x5fe   :  { %v1037_v58 = vsel %vm684_vm1, %v5107_v36, 0.0 }
 0x5ff   :  { %1023 = vadd.xlane.f32.xlu1 %v1022_v55  ;;  %1038 = vadd.xlane.f32.xlu0 %v1037_v58 }
 0x600   :  { %3695 = vmatpush3.bf16.msra.mxu1 %v1072_v42 }
 0x601   :  { %v5113_v40 = vpop.eup %4046 }
 0x602   :  { %v1031_v20 = vsel %vm684_vm1, %v5113_v40, 0.0 }
 0x603   :  { %1032 = vadd.xlane.f32.xlu0 %v1031_v20 }
 0x610   :  { %1348 = vrot.lane.b32.xlu1 %v4877_v1, %s4533_s2 }
 0x614   :  { %1350 = vrot.lane.b32.xlu1 %v4885_v14, %s4533_s2 }
 0x61e   :  { %v994_v34 = vpop.xlane.xlu1 %993 }
 0x61f   :  { %v1002_v21 = vsub.f32 %v968_v54, %v994_v34 }
 0x621   :  { %v1017_v28 = vmul.f32 1.442695, %v1002_v21 }
 0x622   :  { %v988_v16 = vpop.xlane.xlu1 %987 }
 0x623   :  { %4048 = vpow2.f32 %v1017_v28  ;;  %v1000_v15 = vsub.f32 %v5086_v19, %v988_v16 }
 0x625   :  { %v1013_v59 = vmul.f32 1.442695, %v1000_v15 }
 0x626   :  { %v1074_v57 = vpop.permute.xlu1 %1073 }
 0x627   :  { %3696 = vmatprep.subr.bf16.mxu1 %v1074_v57  ;;  %4050 = vpow2.f32 %v1013_v59 }
 0x628   :  { %3697 = vmatpush3.bf16.msra.mxu1 %v1074_v57 }
 0x62d   :  { %v5122_v44 = vpop.eup %4048 }
 0x62e   :  { %v1040_v7 = vsel %vm684_vm1, %v5122_v44, 0.0 }
 0x62f   :  { %1041 = vadd.xlane.f32.xlu0 %v1040_v7 }
 0x631   :  { %v5126_v46 = vpop.eup %4050 }
 0x632   :  { %v1034_v54 = vsel %vm684_vm1, %v5126_v46, 0.0 }
 0x638   :  { %1035 = vadd.xlane.f32.xlu1 %v1034_v54 }
 0x645   :  { %1346 = vrot.lane.b32.xlu0 %v4867_v53, %s4533_s2 }
 0x649   :  { %1352 = vrot.lane.b32.xlu1 %v4893_v25, %s4533_s2  ;;  %1338 = vrot.lane.b32.xlu0 %v4865_v52, %s4533_s2 }
 0x64d   :  { %1340 = vrot.lane.b32.xlu1 %v4875_v63, %s4533_s2  ;;  %1342 = vrot.lane.b32.xlu0 %v4883_v12, %s4533_s2 }
 0x651   :  { %1344 = vrot.lane.b32.xlu1 %v4891_v24, %s4533_s2  ;;  %1733 = vrot.lane.b32.xlu0 %v4867_v53, %s4544_s19 }
 0x655   :  { %1735 = vrot.lane.b32.xlu1 %v4877_v1, %s4544_s19  ;;  %1737 = vrot.lane.b32.xlu0 %v4885_v14, %s4544_s19 }
 0x659   :  { %1739 = vrot.lane.b32.xlu1 %v4893_v25, %s4544_s19  ;;  %1725 = vrot.lane.b32.xlu0 %v4865_v52, %s4544_s19 }
 0x65d   :  { %1727 = vrot.lane.b32.xlu1 %v4875_v63, %s4544_s19  ;;  %1729 = vrot.lane.b32.xlu0 %v4883_v12, %s4544_s19 }
 0x661   :  { %1731 = vrot.lane.b32.xlu1 %v4891_v24, %s4544_s19 }
 0x680   :  { %v1027_v53 = vpop.xlane.xlu0 %1026 }
 0x684   :  { %v1021_v1 = vpop.xlane.xlu0 %1020 }
 0x688   :  { %v1030_v19 = vpop.xlane.xlu1 %1029 }
 0x689   :  { %4052 = vrcp.f32 %v1030_v19 }
 0x68a   :  { %4054 = vrcp.f32 %v1021_v1 }
 0x68b   :  { %4056 = vrcp.f32 %v1027_v53 }
 0x68c   :  { %v1024_v14 = vpop.xlane.xlu1 %1023  ;;  %v1039_v34 = vpop.xlane.xlu0 %1038 }
 0x68d   :  { %4058 = vrcp.f32 %v1024_v14 }
 0x690   :  { %v1033_v21 = vpop.xlane.xlu0 %1032  ;;  %v1349_v28 = vpop.permute.xlu1 %1348 }
 0x693   :  { %v4053_v52 = vpop.eup %4052 }
 0x694   :  { %v4055_v25 = vpop.eup %4054  ;;  %v1054_v12 = vmul.f32 %v4053_v52, %v5101_v39  ;;  %v1351_v59 = vpop.permute.xlu1 %1350 }
 0x695   :  { %v4057_v63 = vpop.eup %4056  ;;  %v1051_v42 = vmul.f32 %v4055_v25, %v5097_v18  ;;  %v1370_v18 = vsel %vm594_vm0, %v1349_v28, 0  ;;  %v1373_v41 = vsel %vm594_vm0, %v1351_v59, 0 }
 0x696   :  { %v1053_v55 = vmul.f32 %v4057_v63, %v5093_v17 }
 0x697   :  { %v4059_v22 = vpop.eup %4058 }
 0x698   :  { %v1052_v24 = vmul.f32 %v4059_v22, %v5105_v35  ;;  %v1060_v20 = vpack.c.bf16 %v1054_v12, %v1053_v55 }
 0x69a   :  { %v1059_v58 = vpack.c.bf16 %v1052_v24, %v1051_v42 }
 0x69c   :  { %3698 = vmatprep.mubr.msk.bf16.mxu1 %vm684_vm1, %v1059_v58 }
 0x69d   :  { %3699 = vmatmul.mubr.msk.bf16.vlgmr.msra.gmra.mrb[24].mxu1 %vm684_vm1, %v1060_v20 }
 0x6bc   :  { %v1042_v16 = vpop.xlane.xlu0 %1041 }
 0x6bd   :  { %4060 = vrcp.f32 %v1042_v16 }
 0x6be   :  { %4062 = vrcp.f32 %v1033_v21 }
 0x6bf   :  { %4064 = vrcp.f32 %v1039_v34 }
 0x6c0   :  { %v1347_v15 = vpop.permute.xlu0 %1346 }
 0x6c1   :  { %v1367_v39 = vsel %vm594_vm0, %v1347_v15, 0  ;;  %3850 = vmatprep.subr.msk.bf16.mxu1 %vm594_vm0, %v1347_v15 }
 0x6c2   :  { %3731 = vmatpush3.bf16.xpose.msra.mxu1 %v1367_v39 }
 0x6c3   :  { %3851 = vmatprep.subr.msk.bf16.mxu1 %vm594_vm0, %v1349_v28  ;;  %v3917_v28 = vld [vmem:[#allocation10 + $0x18] sm:$0xff]  }
 0x6c4   :  { %v1339_v7 = vpop.permute.xlu0 %1338  ;;  %3708 = vmatprep.subr.bf16.mxu0 %v3917_v28 }
 0x6c5   :  { %v1036_v17 = vpop.xlane.xlu1 %1035  ;;  %3709 = vmatpush3.bf16.msra.mxu0 %v3917_v28 }
 0x6c6   :  { %4066 = vrcp.f32 %v1036_v17  ;;  %v3918_v17 = vld [vmem:[#allocation10] sm:$0xff]  }
 0x6c7   :  { %v4061_v35 = vpop.eup %4060  ;;  %3718 = vmatprep.subr.bf16.mxu0 %v3918_v17 }
 0x6c8   :  { %v4063_v57 = vpop.eup %4062  ;;  %v1058_v19 = vmul.f32 %v4061_v35, %v5122_v44  ;;  %v1343_v22 = vpop.permute.xlu0 %1342 }
 0x6c9   :  { %v4065_v54 = vpop.eup %4064  ;;  %v1353_v1 = vpop.permute.xlu1 %1352  ;;  %v1055_v14 = vmul.f32 %v4063_v57, %v5113_v40 }
 0x6ca   :  { %3733 = vmatpush3.bf16.xpose.msra.mxu1 %v1370_v18  ;;  %v1057_v25 = vmul.f32 %v4065_v54, %v5107_v36  ;;  %v1376_v44 = vsel %vm594_vm0, %v1353_v1, 0 }
 0x6cb   :  { %3852 = vmatprep.subr.msk.bf16.mxu1 %vm594_vm0, %v1351_v59 }
 0x6cc   :  { %v1062_v12 = vpack.c.bf16 %v1058_v19, %v1057_v25  ;;  %v1734_v40 = vpop.permute.xlu0 %1733 }
 0x6cd   :  { %v1341_v42 = vpop.permute.xlu1 %1340  ;;  %v1754_v36 = vsel %vm594_vm0, %v1734_v40, 0 }
 0x6d0   :  { %v4067_v53 = vpop.eup %4066  ;;  %v1738_v55 = vpop.permute.xlu0 %1737 }
 0x6d1   :  { %v1056_v52 = vmul.f32 %v4067_v53, %v5126_v46  ;;  %v1345_v46 = vpop.permute.xlu1 %1344  ;;  %v1760_v34 = vsel %vm594_vm0, %v1738_v55, 0 }
 0x6d2   :  { %3735 = vmatpush3.bf16.xpose.msra.mxu1 %v1373_v41 }
 0x6d3   :  { %3853 = vmatprep.subr.msk.bf16.mxu1 %vm594_vm0, %v1353_v1  ;;  %v1061_v63 = vpack.c.bf16 %v1056_v52, %v1055_v14  ;;  %v3919_v1 = vld [vmem:[#allocation10 + $0x8] sm:$0xff]  }
 0x6d4   :  { %v1726_v58 = vpop.permute.xlu0 %1725 }
 0x6d5   :  { %3702 = vmatprep.mubr.msk.bf16.mxu1 %vm684_vm1, %v1061_v63  ;;  %v1736_v24 = vpop.permute.xlu1 %1735 }
 0x6d6   :  { %3703 = vmatmul.mubr.msk.bf16.gmra.mrb[28].mxu1 %vm684_vm1, %v1062_v12  ;;  %v1757_v20 = vsel %vm594_vm0, %v1736_v24, 0 }
 0x6d7   :  { %3738 = vmatprep.mubr.msk.bf16.mxu1 %vm594_vm0, %v1339_v7 }
 0x6d8   :  { %v1730_v59 = vpop.permute.xlu0 %1729 }
 0x6d9   :  { %v1740_v21 = vpop.permute.xlu1 %1739 }
 0x6da   :  { %3737 = vmatpush3.bf16.xpose.msra.mxu1 %v1376_v44  ;;  %v1763_v16 = vsel %vm594_vm0, %v1740_v21, 0 }
 0x6db   :  { %3854 = vmatprep.subr.msk.bf16.mxu1 %vm594_vm0, %v1734_v40 }
 0x6dd   :  { %v1728_v15 = vpop.permute.xlu1 %1727 }
 0x6e1   :  { %3739 = vmatmul.mubr.msk.bf16.vlgmr.msra.gmra.mrb[32].mxu1 %vm594_vm0, %v1341_v42  ;;  %v1732_v39 = vpop.permute.xlu1 %1731 }
 0x6e2   :  { %3742 = vmatprep.mubr.msk.bf16.mxu1 %vm594_vm0, %v1343_v22  ;;  %3775 = vmatpush3.bf16.xpose.msra.mxu1 %v1754_v36 }
 0x6e3   :  { %3855 = vmatprep.subr.msk.bf16.mxu1 %vm594_vm0, %v1736_v24 }
 0x6e9   :  { %3743 = vmatmul.mubr.msk.bf16.gmra.mrb[36].mxu1 %vm594_vm0, %v1345_v46 }
 0x6ea   :  { %3777 = vmatpush3.bf16.xpose.msra.mxu1 %v1757_v20  ;;  %3782 = vmatprep.mubr.msk.bf16.mxu1 %vm594_vm0, %v1726_v58 }
 0x6eb   :  { %3856 = vmatprep.subr.msk.bf16.mxu1 %vm594_vm0, %v1738_v55 }
 0x6f2   :  { %3779 = vmatpush3.bf16.xpose.msra.mxu1 %v1760_v34 }
 0x6f3   :  { %3857 = vmatprep.subr.msk.bf16.mxu1 %vm594_vm0, %v1740_v21 }
 0x6fa   :  { %3781 = vmatpush3.bf16.xpose.msra.mxu1 %v1763_v16 }
 0x701   :  { %3783 = vmatmul.mubr.msk.bf16.vlgmr.msra.gmra.mrb[40].mxu1 %vm594_vm0, %v1728_v15 }
 0x702   :  { %3786 = vmatprep.mubr.msk.bf16.mxu1 %vm594_vm0, %v1730_v59 }
 0x709   :  { %3787 = vmatmul.mubr.msk.bf16.gmra.mrb[44].mxu1 %vm594_vm0, %v1732_v39 }
 0x70a   :  { %2504 = vmatprep.mubr.bf16.mxu1 %v4542_v0 }
 0x770   :  { %v3700_v18 = vpop.f32.mrb[24].mxu1 }
 0x771   :  { %v1125_v35 = vpop.f32.mrb[25].mxu1 }
 0x772   :  { %v3701_v57 = vpop.f32.mrb[26].mxu1 }
 0x773   :  { %v1157_v7 = vpack.c.bf16 %v3701_v57, %v3700_v18  ;;  %v1128_v54 = vpop.f32.mrb[27].mxu1 }
 0x774   :  { %v1156_v53 = vpack.c.bf16 %v1128_v54, %v1125_v35 }
 0x776   :  { %3710 = vmatprep.mubr.msk.bf16.mxu0 %vm594_vm0, %v1156_v53 }
 0x777   :  { %3711 = vmatmul.mubr.msk.bf16.vlgmr.msra.gmra.mrb[24].mxu0 %vm594_vm0, %v1157_v7 }
 0x778   :  { %3719 = vmatpush3.bf16.msra.mxu0 %v3918_v17 }
 0x779   :  { %3720 = vmatprep.subr.bf16.mxu0 %v3919_v1 }
 0x77c   :  { %3721 = vmatpush3.bf16.msra.mxu0 %v3919_v1 }
 0x7a9   :  { %v3704_v19 = vpop.f32.mrb[28].mxu1 }
 0x7aa   :  { %v1141_v41 = vpop.f32.mrb[29].mxu1 }
 0x7ab   :  { %v3705_v14 = vpop.f32.mrb[30].mxu1 }
 0x7ac   :  { %v1159_v52 = vpack.c.bf16 %v3705_v14, %v3704_v19  ;;  %v1144_v25 = vpop.f32.mrb[31].mxu1 }
 0x7ad   :  { %v1158_v63 = vpack.c.bf16 %v1144_v25, %v1141_v41 }
 0x7af   :  { %3714 = vmatprep.mubr.msk.bf16.mxu0 %vm594_vm0, %v1158_v63 }
 0x7b0   :  { %3715 = vmatmul.mubr.msk.bf16.gmra.mrb[28].mxu0 %vm594_vm0, %v1159_v52 }
 0x7b1   :  { %3722 = vmatprep.mubr.msk.bf16.mxu0 %vm594_vm0, %v854_v3 }
 0x7b4   :  { %v3740_v22 = vpop.f32.mrb[32].mxu1 }
 0x7b5   :  { %v1412_v12 = vpop.f32.mrb[33].mxu1  ;;  %v1421_v46 = vadd.f32 %v3740_v22, %v4908_v48 }
 0x7b6   :  { %v1413_v42 = vadd.f32 %v1412_v12, %v4910_v49  ;;  %v3741_v44 = vpop.f32.mrb[34].mxu1 }
 0x7b7   :  { %v1415_v40 = vpop.f32.mrb[35].mxu1  ;;  %v1424_v48 = vadd.f32 %v3741_v44, %v4912_v51 }
 0x7b8   :  { %v1416_v36 = vadd.f32 %v1415_v40, %v4915_v56  ;;  %3723 = vmatmul.mubr.msk.bf16.vlgmr.msra.gmra.mrb[24].mxu0 %vm594_vm0, %v855_v60  ;;  %v1443_v24 = vsel %vm684_vm1, %v1413_v42, -inf  ;;  %v1449_v56 = vsel %vm684_vm1, %v1421_v46, -inf }
 0x7b9   :  { %3726 = vmatprep.mubr.msk.bf16.mxu0 %vm594_vm0, %v5634_v43  ;;  %1444 = vmax.xlane.f32.xlu0 %v1443_v24  ;;  %v1452_v37 = vsel %vm684_vm1, %v1424_v48, -inf }
 0x7ba   :  { %v1446_v49 = vsel %vm684_vm1, %v1416_v36, -inf }
 0x7bb   :  { %1447 = vmax.xlane.f32.xlu1 %v1446_v49 }
 0x7bc   :  { %v3744_v2 = vpop.f32.mrb[36].mxu1 }
 0x7bd   :  { %1450 = vmax.xlane.f32.xlu0 %v1449_v56  ;;  %v1428_v45 = vpop.f32.mrb[37].mxu1 }
 0x7be   :  { %v3745_v26 = vpop.f32.mrb[38].mxu1  ;;  %v1429_v3 = vadd.f32 %v1428_v45, %v4923_v62  ;;  %v1437_v62 = vadd.f32 %v3744_v2, %v4926_v4 }
 0x7bf   :  { %v1431_v60 = vpop.f32.mrb[39].mxu1  ;;  %v5228_v51 = vadd.f32 %v3745_v26, %v4931_v9 }
 0x7c0   :  { %v5220_v55 = vadd.f32 %v1431_v60, %v4928_v6  ;;  %3727 = vmatmul.mubr.msk.bf16.gmra.mrb[28].mxu0 %vm594_vm0, %v5635_v10  ;;  %v1455_v6 = vsel %vm684_vm1, %v1429_v3, -inf  ;;  %v1461_v23 = vsel %vm684_vm1, %v1437_v62, -inf }
 0x7c1   :  { %1453 = vmax.xlane.f32.xlu0 %v1452_v37  ;;  %v1464_v8 = vsel %vm684_vm1, %v5228_v51, -inf }
 0x7c2   :  { %v1458_v58 = vsel %vm684_vm1, %v5220_v55, -inf }
 0x7c3   :  { %1459 = vmax.xlane.f32.xlu1 %v1458_v58 }
 0x7c5   :  { %1456 = vmax.xlane.f32.xlu0 %v1455_v6  ;;  %v4164_v6 = vld [vmem:[#allocation5] sm:$0xff] }
 0x7c7   :  { %1465 = vmax.xlane.f32.xlu1 %v1464_v8 }
 0x7c9   :  { %1462 = vmax.xlane.f32.xlu0 %v1461_v23 }
 0x7d4   :  { %v5237_v20 = vpop.f32.mrb[40].mxu1 }
 0x7d5   :  { %v1799_v9 = vpop.f32.mrb[41].mxu1 }
 0x7d6   :  { %v5239_v34 = vpop.f32.mrb[42].mxu1  ;;  %v5285_v8 = vadd.f32 %v4164_v6, %v1799_v9  ;;  %v4166_v9 = vld [vmem:[#allocation5 + $0x18] sm:$0xff] }
 0x7d7   :  { %v5241_v21 = vpop.f32.mrb[43].mxu1 }
 0x7dc   :  { %v5243_v28 = vpop.f32.mrb[44].mxu1 }
 0x7dd   :  { %v5245_v4 = vpop.f32.mrb[45].mxu1 }
 0x7de   :  { %v5247_v16 = vpop.f32.mrb[46].mxu1 }
 0x7df   :  { %v5249_v15 = vpop.f32.mrb[47].mxu1 }
 0x846   :  { %v1445_v59 = vpop.xlane.xlu0 %1444 }
 0x847   :  { %v1467_v39 = vsub.f32 %v1413_v42, %v1445_v59 }
 0x848   :  { %v1448_v17 = vpop.xlane.xlu1 %1447 }
 0x849   :  { %v1475_v57 = vmul.f32 1.442695, %v1467_v39  ;;  %v1468_v7 = vsub.f32 %v1416_v36, %v1448_v17  ;;  %v4165_v39 = vld [vmem:[#allocation5 + $0x10] sm:$0xff]  ;;  %v1830_v17 = vsel %vm684_vm1, %v5285_v8, -inf }
 0x84a   :  { %v1451_v18 = vpop.xlane.xlu0 %1450 }
 0x84b   :  { %v1469_v35 = vsub.f32 %v1421_v46, %v1451_v18  ;;  %v1477_v19 = vmul.f32 1.442695, %v1468_v7  ;;  %v5299_v18 = vadd.f32 %v4166_v9, %v5239_v34 }
 0x84d   :  { %v1479_v54 = vmul.f32 1.442695, %v1469_v35  ;;  %v1839_v7 = vsel %vm684_vm1, %v5299_v18, -inf }
 0x84e   :  { %v1454_v53 = vpop.xlane.xlu0 %1453 }
 0x84f   :  { %4068 = vpow2.f32 %v1479_v54  ;;  %v1470_v1 = vsub.f32 %v1424_v48, %v1454_v53  ;;  %v4168_v54 = vld [vmem:[#allocation5 + $0x30] sm:$0xff] }
 0x850   :  { %4070 = vpow2.f32 %v1475_v57  ;;  %v1460_v26 = vpop.xlane.xlu1 %1459  ;;  %v4167_v57 = vld [vmem:[#allocation5 + $0x20] sm:$0xff]  ;;  %v5309_v53 = vadd.f32 %v4168_v54, %v5243_v28  ;;  %v4170_v28 = vld [vmem:[#allocation5 + $0x28] sm:$0xff] }
 0x851   :  { %v1481_v41 = vmul.f32 1.442695, %v1470_v1  ;;  %v1472_v10 = vsub.f32 %v5220_v55, %v1460_v26 }
 0x852   :  { %v1457_v14 = vpop.xlane.xlu0 %1456  ;;  %v1848_v1 = vsel %vm684_vm1, %v5309_v53, -inf }
 0x853   :  { %4072 = vpow2.f32 %v1481_v41  ;;  %v1471_v52 = vsub.f32 %v1429_v3, %v1457_v14  ;;  %v1485_v58 = vmul.f32 1.442695, %v1472_v10  ;;  %v5323_v41 = vadd.f32 %v4170_v28, %v5249_v15 }
 0x854   :  { %4074 = vpow2.f32 %v1477_v19  ;;  %v1466_v60 = vpop.xlane.xlu1 %1465 }
 0x855   :  { %v1483_v12 = vmul.f32 1.442695, %v1471_v52  ;;  %v1474_v3 = vsub.f32 %v5228_v51, %v1466_v60  ;;  %v5292_v51 = vadd.f32 %v4165_v39, %v5237_v20  ;;  %v5304_v20 = vadd.f32 %v4167_v57, %v5245_v4  ;;  %v4169_v4 = vld [vmem:[#allocation5 + $0x8] sm:$0xff]  ;;  %v4171_v52 = vld [vmem:[#allocation5 + $0x38] sm:$0xff] }
 0x856   :  { %v1463_v25 = vpop.xlane.xlu0 %1462  ;;  %v5320_v19 = vadd.f32 %v4169_v4, %v5241_v21  ;;  %v3920_v39 = vld [vmem:[#allocation10 + $0x20] sm:$0xff]  }
 0x857   :  { %v1473_v63 = vsub.f32 %v1437_v62, %v1463_v25  ;;  %v1489_v37 = vmul.f32 1.442695, %v1474_v3  ;;  %v1836_v35 = vsel %vm684_vm1, %v5292_v51, -inf  ;;  %v1842_v34 = vsel %vm684_vm1, %v5304_v20, -inf }
 0x858   :  { %v1833_v14 = vsel %vm684_vm1, %v5320_v19, -inf  ;;  %v5328_v25 = vadd.f32 %v4171_v52, %v5247_v16 }
 0x859   :  { %v5251_v22 = vpop.eup %4068  ;;  %v1487_v42 = vmul.f32 1.442695, %v1473_v63  ;;  %v1845_v63 = vsel %vm684_vm1, %v5323_v41, -inf }
 0x85a   :  { %v1497_v44 = vsel %vm684_vm1, %v5251_v22, 0.0  ;;  %v5255_v40 = vpop.eup %4070 }
 0x85b   :  { %4076 = vpow2.f32 %v1487_v42  ;;  %1498 = vadd.xlane.f32.xlu0 %v1497_v44  ;;  %v1491_v36 = vsel %vm684_vm1, %v5255_v40, 0.0 }
 0x85c   :  { %4078 = vpow2.f32 %v1483_v12 }
 0x85d   :  { %v5257_v46 = vpop.eup %4072  ;;  %4080 = vpow2.f32 %v1489_v37 }
 0x85e   :  { %v1500_v24 = vsel %vm684_vm1, %v5257_v46, 0.0  ;;  %v5263_v43 = vpop.eup %4074  ;;  %4082 = vpow2.f32 %v1485_v58 }
 0x85f   :  { %1492 = vadd.xlane.f32.xlu0 %v1491_v36  ;;  %1501 = vadd.xlane.f32.xlu1 %v1500_v24  ;;  %v1494_v49 = vsel %vm684_vm1, %v5263_v43, 0.0 }
 0x863   :  { %1495 = vadd.xlane.f32.xlu1 %v1494_v49 }
 0x865   :  { %v5267_v48 = vpop.eup %4076 }
 0x866   :  { %v1509_v2 = vsel %vm684_vm1, %v5267_v48, 0.0  ;;  %v5271_v56 = vpop.eup %4078 }
 0x867   :  { %1510 = vadd.xlane.f32.xlu0 %v1509_v2  ;;  %v1503_v45 = vsel %vm684_vm1, %v5271_v56, 0.0  ;;  %v5283_v62 = vpop.eup %4080 }
 0x868   :  { %v1512_v23 = vsel %vm684_vm1, %v5283_v62, 0.0  ;;  %v5289_v59 = vpop.eup %4082 }
 0x869   :  { %v1506_v55 = vsel %vm684_vm1, %v5289_v59, 0.0 }
 0x86b   :  { %1504 = vadd.xlane.f32.xlu0 %v1503_v45 }
 0x874   :  { %1537 = vrot.lane.b32.xlu1 %v4956_v47, %s4533_s2 }
 0x878   :  { %1539 = vrot.lane.b32.xlu1 %v4990_v61, %s4533_s2 }
 0x881   :  { %1535 = vrot.lane.b32.xlu0 %v4958_v50, %s4533_s2 }
 0x89c   :  { %1513 = vadd.xlane.f32.xlu1 %v1512_v23 }
 0x8a0   :  { %1507 = vadd.xlane.f32.xlu1 %v1506_v55  ;;  %1831 = vmax.xlane.f32.xlu0 %v1830_v17 }
 0x8a4   :  { %1837 = vmax.xlane.f32.xlu0 %v1836_v35 }
 0x8a8   :  { %1840 = vmax.xlane.f32.xlu0 %v1839_v7 }
 0x8ac   :  { %1843 = vmax.xlane.f32.xlu0 %v1842_v34  ;;  %v3921_v34 = vld [vmem:[#allocation10 + $0x28] sm:$0xff]  }
 0x8b0   :  { %1849 = vmax.xlane.f32.xlu0 %v1848_v1 }
 0x8b1   :  { %1541 = vrot.lane.b32.xlu1 %v4998_v5, %s4533_s2 }
 0x8c6   :  { %1922 = vrot.lane.b32.xlu0 %v4958_v50, %s4544_s19  ;;  %v1851_v50 = vsel %vm684_vm1, %v5328_v25, -inf }
 0x8d5   :  { %1834 = vmax.xlane.f32.xlu1 %v1833_v14 }
 0x8d9   :  { %1846 = vmax.xlane.f32.xlu1 %v1845_v63 }
 0x8dd   :  { %1852 = vmax.xlane.f32.xlu1 %v1851_v50 }
 0x8e8   :  { %v1499_v21 = vpop.xlane.xlu0 %1498 }
 0x8ec   :  { %v1502_v12 = vpop.xlane.xlu1 %1501  ;;  %v1493_v15 = vpop.xlane.xlu0 %1492 }
 0x8ed   :  { %4084 = vrcp.f32 %v1493_v15 }
 0x8f0   :  { %v1496_v42 = vpop.xlane.xlu1 %1495 }
 0x8f1   :  { %4086 = vrcp.f32 %v1496_v42 }
 0x8f2   :  { %4088 = vrcp.f32 %v1502_v12 }
 0x8f3   :  { %4090 = vrcp.f32 %v1499_v21 }
 0x8f4   :  { %v1511_v44 = vpop.xlane.xlu0 %1510  ;;  %v1538_v16 = vpop.permute.xlu1 %1537 }
 0x8f7   :  { %v4085_v24 = vpop.eup %4084 }
 0x8f8   :  { %v1505_v36 = vpop.xlane.xlu0 %1504  ;;  %v1523_v45 = vmul.f32 %v4085_v24, %v5255_v40  ;;  %v1540_v3 = vpop.permute.xlu1 %1539 }
 0x8fb   :  { %v4087_v49 = vpop.eup %4086 }
 0x8fc   :  { %v1536_v2 = vpop.permute.xlu0 %1535  ;;  %v1524_v26 = vmul.f32 %v4087_v49, %v5263_v43  ;;  %v4089_v37 = vpop.eup %4088 }
 0x8fd   :  { %3746 = vmatprep.subr.bf16.mxu0 %v1536_v2  ;;  %v4091_v43 = vpop.eup %4090  ;;  %v1526_v6 = vmul.f32 %v4089_v37, %v5257_v46 }
 0x8fe   :  { %3747 = vmatpush3.bf16.msra.mxu0 %v1536_v2  ;;  %v1531_v60 = vpack.c.bf16 %v1524_v26, %v1523_v45  ;;  %v1525_v9 = vmul.f32 %v4091_v43, %v5251_v22 }
 0x8ff   :  { %3748 = vmatprep.subr.bf16.mxu0 %v1538_v16 }
 0x900   :  { %3754 = vmatprep.mubr.msk.bf16.mxu0 %vm684_vm1, %v1531_v60  ;;  %v1532_v57 = vpack.c.bf16 %v1526_v6, %v1525_v9 }
 0x902   :  { %3749 = vmatpush3.bf16.msra.mxu0 %v1538_v16 }
 0x903   :  { %3750 = vmatprep.subr.bf16.mxu0 %v1540_v3 }
 0x906   :  { %3751 = vmatpush3.bf16.msra.mxu0 %v1540_v3 }
 0x929   :  { %v1514_v10 = vpop.xlane.xlu1 %1513 }
 0x92a   :  { %4092 = vrcp.f32 %v1514_v10 }
 0x92b   :  { %4094 = vrcp.f32 %v1505_v36 }
 0x92c   :  { %4096 = vrcp.f32 %v1511_v44 }
 0x92d   :  { %v1508_v40 = vpop.xlane.xlu1 %1507  ;;  %v1832_v58 = vpop.xlane.xlu0 %1831 }
 0x92e   :  { %4098 = vrcp.f32 %v1508_v40  ;;  %v1854_v23 = vsub.f32 %v5285_v8, %v1832_v58 }
 0x930   :  { %v1862_v7 = vmul.f32 1.442695, %v1854_v23 }
 0x931   :  { %v1542_v55 = vpop.permute.xlu1 %1541  ;;  %v1838_v17 = vpop.xlane.xlu0 %1837 }
 0x932   :  { %v1856_v35 = vsub.f32 %v5292_v51, %v1838_v17  ;;  %3752 = vmatprep.subr.bf16.mxu0 %v1542_v55 }
 0x933   :  { %3753 = vmatpush3.bf16.msra.mxu0 %v1542_v55 }
 0x934   :  { %v1866_v54 = vmul.f32 1.442695, %v1856_v35  ;;  %3762 = vmatprep.subr.bf16.mxu0 %v3920_v39  ;;  %v4093_v1 = vpop.eup %4092 }
 0x935   :  { %v1841_v4 = vpop.xlane.xlu0 %1840  ;;  %v4095_v28 = vpop.eup %4094  ;;  %v1530_v14 = vmul.f32 %v4093_v1, %v5283_v62 }
 0x936   :  { %4100 = vpow2.f32 %v1866_v54  ;;  %v1857_v46 = vsub.f32 %v5299_v18, %v1841_v4  ;;  %3755 = vmatmul.mubr.msk.bf16.vlgmr.msra.gmra.mrb[32].mxu0 %vm684_vm1, %v1532_v57  ;;  %v4097_v8 = vpop.eup %4096  ;;  %v1527_v63 = vmul.f32 %v4095_v28, %v5271_v56 }
 0x937   :  { %3763 = vmatpush3.bf16.msra.mxu0 %v3920_v39  ;;  %4102 = vpow2.f32 %v1862_v7  ;;  %v1529_v21 = vmul.f32 %v4097_v8, %v5267_v48 }
 0x938   :  { %v4099_v22 = vpop.eup %4098  ;;  %v1868_v51 = vmul.f32 1.442695, %v1857_v46  ;;  %3764 = vmatprep.subr.bf16.mxu0 %v3921_v34 }
 0x939   :  { %v1844_v52 = vpop.xlane.xlu0 %1843  ;;  %v1528_v50 = vmul.f32 %v4099_v22, %v5289_v59  ;;  %v1534_v18 = vpack.c.bf16 %v1530_v14, %v1529_v21 }
 0x93a   :  { %4104 = vpow2.f32 %v1868_v51  ;;  %v1858_v2 = vsub.f32 %v5304_v20, %v1844_v52 }
 0x93b   :  { %v1533_v12 = vpack.c.bf16 %v1528_v50, %v1527_v63  ;;  %3765 = vmatpush3.bf16.msra.mxu0 %v3921_v34 }
 0x93c   :  { %v1870_v3 = vmul.f32 1.442695, %v1858_v2 }
 0x93d   :  { %3758 = vmatprep.mubr.msk.bf16.mxu0 %vm684_vm1, %v1533_v12  ;;  %v1850_v15 = vpop.xlane.xlu0 %1849 }
 0x93e   :  { %3759 = vmatmul.mubr.msk.bf16.gmra.mrb[36].mxu0 %vm684_vm1, %v1534_v18  ;;  %v1860_v24 = vsub.f32 %v5309_v53, %v1850_v15 }
 0x940   :  { %v5349_v42 = vpop.eup %4100  ;;  %v1874_v45 = vmul.f32 1.442695, %v1860_v24 }
 0x941   :  { %v5351_v62 = vpop.permute.xlu0 %1922  ;;  %v1884_v56 = vsel %vm684_vm1, %v5349_v42, 0.0  ;;  %v5355_v44 = vpop.eup %4102 }
 0x942   :  { %1885 = vadd.xlane.f32.xlu0 %v1884_v56  ;;  %3790 = vmatprep.subr.bf16.mxu0 %v5351_v62  ;;  %v1878_v59 = vsel %vm684_vm1, %v5355_v44, 0.0 }
 0x944   :  { %v5358_v48 = vpop.eup %4104 }
 0x945   :  { %v1887_v36 = vsel %vm684_vm1, %v5358_v48, 0.0 }
 0x946   :  { %1879 = vadd.xlane.f32.xlu0 %v1878_v59  ;;  %1888 = vadd.xlane.f32.xlu1 %v1887_v36 }
 0x95c   :  { %1926 = vrot.lane.b32.xlu0 %v4990_v61, %s4544_s19 }
 0x960   :  { %1928 = vrot.lane.b32.xlu0 %v4998_v5, %s4544_s19 }
 0x962   :  { %v1835_v49 = vpop.xlane.xlu1 %1834 }
 0x963   :  { %v1855_v16 = vsub.f32 %v5320_v19, %v1835_v49 }
 0x965   :  { %v1864_v26 = vmul.f32 1.442695, %v1855_v16 }
 0x966   :  { %v1847_v60 = vpop.xlane.xlu1 %1846 }
 0x967   :  { %4106 = vpow2.f32 %v1864_v26  ;;  %v1859_v61 = vsub.f32 %v5323_v41, %v1847_v60 }
 0x968   :  { %4108 = vpow2.f32 %v1874_v45 }
 0x969   :  { %4110 = vpow2.f32 %v1870_v3  ;;  %v1872_v53 = vmul.f32 1.442695, %v1859_v61 }
 0x96a   :  { %v1853_v10 = vpop.xlane.xlu1 %1852 }
 0x96b   :  { %v1861_v37 = vsub.f32 %v5328_v25, %v1853_v10 }
 0x96d   :  { %v1876_v5 = vmul.f32 1.442695, %v1861_v37  ;;  %v3923_v37 = vld [vmem:[#allocation10 + $0x38] sm:$0xff]  }
 0x96f   :  { %4112 = vpow2.f32 %v1876_v5 }
 0x970   :  { %4114 = vpow2.f32 %v1872_v53 }
 0x971   :  { %v4107_v40 = vpop.eup %4106 }
 0x972   :  { %v1881_v19 = vsel %vm684_vm1, %v4107_v40, 0.0  ;;  %v5374_v58 = vpop.eup %4108 }
 0x973   :  { %1882 = vadd.xlane.f32.xlu1 %v1881_v19  ;;  %v1896_v20 = vsel %vm684_vm1, %v5374_v58, 0.0  ;;  %v5378_v43 = vpop.eup %4110 }
 0x974   :  { %v1890_v25 = vsel %vm684_vm1, %v5378_v43, 0.0 }
 0x977   :  { %1897 = vadd.xlane.f32.xlu1 %v1896_v20 }
 0x979   :  { %v5382_v41 = vpop.eup %4112 }
 0x97a   :  { %v1899_v6 = vsel %vm684_vm1, %v5382_v41, 0.0  ;;  %v4115_v23 = vpop.eup %4114 }
 0x97b   :  { %1891 = vadd.xlane.f32.xlu1 %v1890_v25  ;;  %v1893_v39 = vsel %vm684_vm1, %v4115_v23, 0.0 }
 0x97f   :  { %1900 = vadd.xlane.f32.xlu1 %v1899_v6 }
 0x983   :  { %1894 = vadd.xlane.f32.xlu1 %v1893_v39 }
 0x994   :  { %1924 = vrot.lane.b32.xlu1 %v4956_v47, %s4544_s19 }
 0x9cf   :  { %v1886_v17 = vpop.xlane.xlu0 %1885 }
 0x9d3   :  { %v1889_v55 = vpop.xlane.xlu1 %1888  ;;  %v1880_v57 = vpop.xlane.xlu0 %1879 }
 0x9d7   :  { %v1927_v63 = vpop.permute.xlu0 %1926 }
 0x9db   :  { %v1929_v16 = vpop.permute.xlu0 %1928 }
 0xa00   :  { %v1883_v9 = vpop.xlane.xlu1 %1882 }
 0xa01   :  { %4116 = vrcp.f32 %v1883_v9 }
 0xa02   :  { %4118 = vrcp.f32 %v1880_v57 }
 0xa03   :  { %4120 = vrcp.f32 %v1889_v55 }
 0xa04   :  { %v1898_v35 = vpop.xlane.xlu1 %1897  ;;  %4122 = vrcp.f32 %v1886_v17 }
 0xa08   :  { %v1892_v7 = vpop.xlane.xlu1 %1891 }
 0xa09   :  { %v3756_v54 = vpop.f32.mrb[32].mxu0  ;;  %4124 = vrcp.f32 %v1892_v7 }
 0xa0a   :  { %v1593_v34 = vpop.f32.mrb[33].mxu0 }
 0xa0b   :  { %v3757_v1 = vpop.f32.mrb[34].mxu0  ;;  %v4117_v47 = vpop.eup %4116 }
 0xa0c   :  { %v1625_v4 = vpack.c.bf16 %v3757_v1, %v3756_v54  ;;  %v1596_v28 = vpop.f32.mrb[35].mxu0  ;;  %v1901_v46 = vpop.xlane.xlu1 %1900  ;;  %v1911_v21 = vmul.f32 %v4117_v47, %v4107_v40 }
 0xa0d   :  { %v1624_v8 = vpack.c.bf16 %v1596_v28, %v1593_v34  ;;  %v4119_v14 = vpop.eup %4118 }
 0xa0e   :  { %v1910_v59 = vmul.f32 %v4119_v14, %v5355_v44  ;;  %v3922_v44 = vld [vmem:[#allocation10 + $0x30] sm:$0xff]  }
 0xa0f   :  { %3766 = vmatprep.mubr.msk.bf16.mxu0 %vm594_vm0, %v1624_v8 }
 0xa10   :  { %3767 = vmatmul.mubr.msk.bf16.vlgmr.msra.gmra.mrb[24].mxu0 %vm594_vm0, %v1625_v4  ;;  %v1895_v22 = vpop.xlane.xlu1 %1894  ;;  %v1918_v36 = vpack.c.bf16 %v1911_v21, %v1910_v59  ;;  %v3924_v59 = vld [vmem:[#allocation13] ss:$16 sps:$4 sm:$0xff]  }
 0xa11   :  { %4126 = vrcp.f32 %v1895_v22  ;;  %3791 = vmatpush3.bf16.msra.mxu0 %v5351_v62  ;;  %v3760_v51 = vpop.f32.mrb[36].mxu0  ;;  %v4121_v62 = vpop.eup %4120 }
 0xa12   :  { %v1609_v52 = vpop.f32.mrb[37].mxu0  ;;  %4128 = vrcp.f32 %v1901_v46  ;;  %v4123_v24 = vpop.eup %4122  ;;  %v1913_v45 = vmul.f32 %v4121_v62, %v5358_v48  ;;  %v3929_v62 = vld [vmem:[#allocation13 + $0xc] ss:$16 sps:$4 sm:$0xff]  }
 0xa13   :  { %v3761_v50 = vpop.f32.mrb[38].mxu0  ;;  %4130 = vrcp.f32 %v1898_v35  ;;  %v4125_v49 = vpop.eup %4124  ;;  %v1912_v60 = vmul.f32 %v4123_v24, %v5349_v42  ;;  %v3329_v35 = vld [vmem:[#allocation11] ss:$0 sm:$0xff]  ;;  %v3932_v24 = vld [vmem:[#allocation13 + $0x24] ss:$16 sps:$4 sm:$0xff]  }
 0xa14   :  { %v1627_v12 = vpack.c.bf16 %v3761_v50, %v3760_v51  ;;  %v1612_v18 = vpop.f32.mrb[39].mxu0  ;;  %v1925_v15 = vpop.permute.xlu1 %1924  ;;  %v1914_v3 = vmul.f32 %v4125_v49, %v5378_v43  ;;  %v3935_v49 = vld [vmem:[#allocation13 + $0x2c] ss:$16 sps:$4 sm:$0xff]  }
 0xa15   :  { %v1626_v56 = vpack.c.bf16 %v1612_v18, %v1609_v52  ;;  %3792 = vmatprep.subr.bf16.mxu0 %v1925_v15  ;;  %v1919_v10 = vpack.c.bf16 %v1913_v45, %v1912_v60 }
 0xa16   :  { %3793 = vmatpush3.bf16.msra.mxu0 %v1925_v15 }
 0xa17   :  { %3770 = vmatprep.mubr.msk.bf16.mxu0 %vm594_vm0, %v1626_v56  ;;  %3794 = vmatprep.subr.bf16.mxu0 %v1927_v63 }
 0xa18   :  { %3771 = vmatmul.mubr.msk.bf16.gmra.mrb[28].mxu0 %vm594_vm0, %v1627_v12 }
 0xa19   :  { %3798 = vmatprep.mubr.msk.bf16.mxu0 %vm684_vm1, %v1918_v36  ;;  %v3926_v36 = vld [vmem:[#allocation13 + $0x4] ss:$16 sps:$4 sm:$0xff]  }
 0xa1a   :  { %3795 = vmatpush3.bf16.msra.mxu0 %v1927_v63  ;;  %2472 = vmatprep.subr.bf16.mxu1 %v3926_v36  ;;  %v3969_v36 = vld [vmem:[#allocation13 + $0xe8] ss:$16 sps:$4 sm:$0xff]  }
 0xa1b   :  { %v4127_v2 = vpop.eup %4126  ;;  %3796 = vmatprep.subr.bf16.mxu0 %v1929_v16  ;;  %2473 = vmatpush1.bf16.msra.mxu1 %v3924_v59  ;;  %v3966_v59 = vld [vmem:[#allocation13 + $0xe0] ss:$16 sps:$4 sm:$0xff]  }
 0xa1c   :  { %v1915_v26 = vmul.f32 %v4127_v2, %v4115_v23  ;;  %v4129_v61 = vpop.eup %4128  ;;  %2474 = vmatprep.subr.bf16.mxu1 %v3932_v24 }
 0xa1d   :  { %v4131_v40 = vpop.eup %4130  ;;  %v1917_v48 = vmul.f32 %v4129_v61, %v5382_v41 }
 0xa1e   :  { %3797 = vmatpush3.bf16.msra.mxu0 %v1929_v16  ;;  %v1920_v5 = vpack.c.bf16 %v1915_v26, %v1914_v3  ;;  %v1916_v53 = vmul.f32 %v4131_v40, %v5374_v58 }
 0xa1f   :  { %3806 = vmatprep.subr.bf16.mxu0 %v3922_v44 }
 0xa20   :  { %v1921_v42 = vpack.c.bf16 %v1917_v48, %v1916_v53 }
 0xa21   :  { %3799 = vmatmul.mubr.msk.bf16.vlgmr.msra.gmra.mrb[40].mxu0 %vm684_vm1, %v1919_v10 }
 0xa22   :  { %3802 = vmatprep.mubr.msk.bf16.mxu0 %vm684_vm1, %v1920_v5  ;;  %3807 = vmatpush3.bf16.msra.mxu0 %v3922_v44 }
 0xa23   :  { %3808 = vmatprep.subr.bf16.mxu0 %v3923_v37 }
 0xa26   :  { %3809 = vmatpush3.bf16.msra.mxu0 %v3923_v37 }
 0xa27   :  { %2545 = vmatprep.subr.bf16.mxu0 %v3929_v62  ;;  %v3973_v62 = vld [vmem:[#allocation16 + $0xc0] sm:$0xff]  }
 0xa29   :  { %3803 = vmatmul.mubr.msk.bf16.gmra.mrb[44].mxu0 %vm684_vm1, %v1921_v42 }
 0xaf4   :  { %v3800_v19 = vpop.f32.mrb[40].mxu0 }
 0xaf5   :  { %v1980_v20 = vpop.f32.mrb[41].mxu0 }
 0xaf6   :  { %v3801_v43 = vpop.f32.mrb[42].mxu0 }
 0xaf7   :  { %v2012_v25 = vpack.c.bf16 %v3801_v43, %v3800_v19  ;;  %v1983_v6 = vpop.f32.mrb[43].mxu0 }
 0xaf8   :  { %v2011_v23 = vpack.c.bf16 %v1983_v6, %v1980_v20 }
 0xafa   :  { %3810 = vmatprep.mubr.msk.bf16.mxu0 %vm594_vm0, %v2011_v23 }
 0xafb   :  { %3811 = vmatmul.mubr.msk.bf16.vlgmr.msra.gmra.mrb[24].mxu0 %vm594_vm0, %v2012_v25 }
 0xafc   :  { %v3804_v39 = vpop.f32.mrb[44].mxu0 }
 0xafd   :  { %v1996_v55 = vpop.f32.mrb[45].mxu0 }
 0xafe   :  { %v3805_v41 = vpop.f32.mrb[46].mxu0 }
 0xaff   :  { %v2014_v17 = vpack.c.bf16 %v3805_v41, %v3804_v39  ;;  %v1999_v9 = vpop.f32.mrb[47].mxu0 }
 0xb00   :  { %v2013_v58 = vpack.c.bf16 %v1999_v9, %v1996_v55 }
 0xb02   :  { %3814 = vmatprep.mubr.msk.bf16.mxu0 %vm594_vm0, %v2013_v58 }
 0xb03   :  { %3815 = vmatmul.mubr.msk.bf16.gmra.mrb[28].mxu0 %vm594_vm0, %v2014_v17 }
 0xb04   :  { %2577 = vmatprep.mubr.bf16.mxu0 %v4542_v0 }
 0xbce   :  { %v3812_v57 = vpop.f32.mrb[24].mxu0 }
 0xbcf   :  { %v2073_v7 = vpop.f32.mrb[25].mxu0  ;;  %v2121_v4 = vadd.f32 %v3812_v57, %v3329_v35 }
 0xbd0   :  { %v2119_v54 = vadd.f32 %v3329_v35, %v2073_v7  ;;  %v3813_v34 = vpop.f32.mrb[26].mxu0 }
 0xbd1   :  { %v2076_v1 = vpop.f32.mrb[27].mxu0  ;;  %v2129_v47 = vadd.f32 %v2121_v4, %v4823_v27  ;;  %v2122_v22 = vadd.f32 %v3813_v34, %v3329_v35  ;;  %v3941_v34 = vld [vmem:[#allocation13 + $0x4c] ss:$16 sps:$4 sm:$0xff]   ;;  %v3939_v4 = vld [vmem:[#allocation13 + $0x48] ss:$16 sps:$4 sm:$0xff]  }
 0xbd2   :  { %v2127_v28 = vadd.f32 %v2119_v54, %v4817_v11  ;;  %v2120_v46 = vadd.f32 %v3329_v35, %v2076_v1  ;;  %v3938_v54 = vld [vmem:[#allocation13 + $0x44] ss:$16 sps:$4 sm:$0xff]   ;;  %v3936_v1 = vld [vmem:[#allocation13 + $0x40] ss:$16 sps:$4 sm:$0xff]  }
 0xbd3   :  { %v2130_v50 = vadd.f32 %v2122_v22, %v4825_v29  ;;  %v3927_v29 = vld [vmem:[#allocation13 + $0x8] ss:$16 sps:$4 sm:$0xff]   ;;  %v3950_v22 = vld [vmem:[#allocation13 + $0x84] ss:$16 sps:$4 sm:$0xff]  }
 0xbd4   :  { %v2128_v8 = vadd.f32 %v2120_v46, %v4819_v13  ;;  %2137 = vadd.xlane.f32.xlu0 %v2127_v28  ;;  %2546 = vmatpush1.bf16.msra.mxu0 %v3927_v29  ;;  %v3947_v46 = vld [vmem:[#allocation13 + $0x6c] ss:$16 sps:$4 sm:$0xff]   ;;  %v3972_v29 = vld [vmem:[#allocation16 + $0x40] sm:$0xff]  }
 0xbd5   :  { %2547 = vmatprep.subr.bf16.mxu0 %v3935_v49 }
 0xbd6   :  { %2139 = vadd.xlane.f32.xlu1 %v2128_v8  ;;  %v3816_v51 = vpop.f32.mrb[28].mxu0 }
 0xbd7   :  { %v2089_v14 = vpop.f32.mrb[29].mxu0  ;;  %v2125_v15 = vadd.f32 %v3816_v51, %v3329_v35  ;;  %v3953_v51 = vld [vmem:[#allocation13 + $0x8c] ss:$16 sps:$4 sm:$0xff]  }
 0xbd8   :  { %2141 = vadd.xlane.f32.xlu0 %v2129_v47  ;;  %v3817_v52 = vpop.f32.mrb[30].mxu0  ;;  %v2123_v21 = vadd.f32 %v3329_v35, %v2089_v14  ;;  %v3948_v14 = vld [vmem:[#allocation13 + $0x80] ss:$16 sps:$4 sm:$0xff]  }
 0xbd9   :  { %v2092_v63 = vpop.f32.mrb[31].mxu0  ;;  %v2126_v18 = vadd.f32 %v3817_v52, %v3329_v35  ;;  %v2133_v56 = vadd.f32 %v2125_v15, %v4832_v32  ;;  %v3951_v52 = vld [vmem:[#allocation13 + $0x88] ss:$16 sps:$4 sm:$0xff]   ;;  %v3960_v15 = vld [vmem:[#allocation13 + $0xc0] ss:$16 sps:$4 sm:$0xff]  }
 0xbda   :  { %v2124_v12 = vadd.f32 %v3329_v35, %v2092_v63  ;;  %v2131_v13 = vadd.f32 %v2123_v21, %v4827_v30  ;;  %v3933_v30 = vld [vmem:[#allocation13 + $0x28] ss:$16 sps:$4 sm:$0xff]   ;;  %v3956_v63 = vld [vmem:[#allocation13 + $0xa4] ss:$16 sps:$4 sm:$0xff]   ;;  %v3954_v21 = vld [vmem:[#allocation13 + $0xa0] ss:$16 sps:$4 sm:$0xff]  }
 0xbdb   :  { %v2134_v27 = vadd.f32 %v2126_v18, %v4834_v33  ;;  %2548 = vmatpush1.bf16.msra.mxu0 %v3933_v30  ;;  %v3962_v18 = vld [vmem:[#allocation13 + $0xc4] ss:$16 sps:$4 sm:$0xff]  }
 0xbdc   :  { %v2132_v11 = vadd.f32 %v2124_v12, %v4829_v31  ;;  %2143 = vadd.xlane.f32.xlu0 %v2130_v50  ;;  %v3930_v31 = vld [vmem:[#allocation13 + $0x20] ss:$16 sps:$4 sm:$0xff]   ;;  %2549 = vmatprep.subr.bf16.mxu0 %v3941_v34  ;;  %v3957_v12 = vld [vmem:[#allocation13 + $0xa8] ss:$16 sps:$4 sm:$0xff]  }
 0xbdd   :  { %2475 = vmatpush1.bf16.msra.mxu1 %v3930_v31 }
 0xbde   :  { %2147 = vadd.xlane.f32.xlu1 %v2132_v11  ;;  %2476 = vmatprep.subr.bf16.mxu1 %v3938_v54 }
 0xbdf   :  { %2550 = vmatpush1.bf16.msra.mxu0 %v3939_v4  ;;  %v5454_v4 = vld [vmem:[#allocation20] ss:$0 sm:$0xff] }
 0xbe0   :  { %2145 = vadd.xlane.f32.xlu0 %v2131_v13  ;;  %2551 = vmatprep.subr.bf16.mxu0 %v3947_v46 }
 0xbe1   :  { %2477 = vmatpush1.bf16.msra.mxu1 %v3936_v1 }
 0xbe2   :  { %2151 = vadd.xlane.f32.xlu1 %v2134_v27 }
 0xbe4   :  { %2149 = vadd.xlane.f32.xlu0 %v2133_v56 }
 0xc61   :  { %v2138_v33 = vpop.xlane.xlu0 %2137 }
 0xc62   :  { %v2154_v32 = vmul.f32 0.0078125, %v2138_v33 }
 0xc63   :  { %v2140_v16 = vpop.xlane.xlu1 %2139 }
 0xc64   :  { %v5417_v2 = vsub.f32 %v2127_v28, %v2154_v32  ;;  %v2155_v45 = vmul.f32 0.0078125, %v2140_v16  ;;  %v3944_v28 = vld [vmem:[#allocation13 + $0x64] ss:$16 sps:$4 sm:$0xff]  }
 0xc65   :  { %v2142_v44 = vpop.xlane.xlu0 %2141  ;;  %2478 = vmatprep.subr.bf16.mxu1 %v3944_v28 }
 0xc66   :  { %v5419_v26 = vsub.f32 %v2128_v8, %v2155_v45  ;;  %v2156_v60 = vmul.f32 0.0078125, %v2142_v44  ;;  %v2170_v3 = vmul.f32 %v5417_v2, %v5417_v2  ;;  %v3942_v8 = vld [vmem:[#allocation13 + $0x60] ss:$16 sps:$4 sm:$0xff]  }
 0xc67   :  { %2479 = vmatpush1.bf16.msra.mxu1 %v3942_v8 }
 0xc68   :  { %v5423_v10 = vsub.f32 %v2129_v47, %v2156_v60  ;;  %2178 = vadd.xlane.f32.xlu0 %v2170_v3  ;;  %v2171_v37 = vmul.f32 %v5419_v26, %v5419_v26  ;;  %v3945_v47 = vld [vmem:[#allocation13 + $0x68] ss:$16 sps:$4 sm:$0xff]   ;;  %2480 = vmatprep.subr.bf16.mxu1 %v3950_v22 }
 0xc69   :  { %v2144_v61 = vpop.xlane.xlu0 %2143  ;;  %2552 = vmatpush1.bf16.msra.mxu0 %v3945_v47 }
 0xc6a   :  { %v2157_v5 = vmul.f32 0.0078125, %v2144_v61  ;;  %2180 = vadd.xlane.f32.xlu1 %v2171_v37  ;;  %v2172_v40 = vmul.f32 %v5423_v10, %v5423_v10  ;;  %2553 = vmatprep.subr.bf16.mxu0 %v3953_v51  ;;  %v3974_v51 = vld [vmem:[#allocation16] sm:$0xff]  }
 0xc6b   :  { %v2148_v48 = vpop.xlane.xlu1 %2147  ;;  %2481 = vmatpush1.bf16.msra.mxu1 %v3948_v14  ;;  %v3975_v14 = vld [vmem:[#allocation16 + $0x80] sm:$0xff]  }
 0xc6c   :  { %v5429_v53 = vsub.f32 %v2130_v50, %v2157_v5  ;;  %v2159_v42 = vmul.f32 0.0078125, %v2148_v48  ;;  %2182 = vadd.xlane.f32.xlu0 %v2172_v40  ;;  %v3959_v50 = vld [vmem:[#allocation13 + $0xac] ss:$16 sps:$4 sm:$0xff]   ;;  %2482 = vmatprep.subr.bf16.mxu1 %v3956_v63 }
 0xc6d   :  { %v2146_v19 = vpop.xlane.xlu0 %2145  ;;  %2554 = vmatpush1.bf16.msra.mxu0 %v3951_v52  ;;  %v3976_v52 = vld [vmem:[#allocation16 + $0x48] sm:$0xff]  }
 0xc6e   :  { %v5431_v20 = vsub.f32 %v2132_v11, %v2159_v42  ;;  %v2158_v43 = vmul.f32 0.0078125, %v2146_v19  ;;  %v2173_v25 = vmul.f32 %v5429_v53, %v5429_v53  ;;  %2555 = vmatprep.subr.bf16.mxu0 %v3959_v50  ;;  %v3965_v11 = vld [vmem:[#allocation13 + $0xcc] ss:$16 sps:$4 sm:$0xff]   ;;  %v5449_v19 = vld [vmem:[#allocation19] ss:$0 sm:$0xff] }
 0xc6f   :  { %v2152_v6 = vpop.xlane.xlu1 %2151  ;;  %2483 = vmatpush1.bf16.msra.mxu1 %v3954_v21  ;;  %v3977_v63 = vld [vmem:[#allocation16 + $0xc8] sm:$0xff]  }
 0xc70   :  { %v5435_v23 = vsub.f32 %v2131_v13, %v2158_v43  ;;  %v2161_v39 = vmul.f32 0.0078125, %v2152_v6  ;;  %2184 = vadd.xlane.f32.xlu1 %v2173_v25  ;;  %v2175_v58 = vmul.f32 %v5431_v20, %v5431_v20  ;;  %v3963_v13 = vld [vmem:[#allocation13 + $0xc8] ss:$16 sps:$4 sm:$0xff]   ;;  %2484 = vmatprep.subr.bf16.mxu1 %v3962_v18 }
 0xc71   :  { %v2150_v55 = vpop.xlane.xlu0 %2149  ;;  %2556 = vmatpush1.bf16.msra.mxu0 %v3957_v12 }
 0xc72   :  { %v5437_v41 = vsub.f32 %v2134_v27, %v2161_v39  ;;  %v2160_v17 = vmul.f32 0.0078125, %v2150_v55  ;;  %v2174_v9 = vmul.f32 %v5435_v23, %v5435_v23  ;;  %2557 = vmatprep.subr.bf16.mxu0 %v3965_v11  ;;  %v3968_v27 = vld [vmem:[#allocation13 + $0xe4] ss:$16 sps:$4 sm:$0xff]   ;;  %v3978_v11 = vld [vmem:[#allocation16 + $0x8] sm:$0xff]  }
 0xc73   :  { %2485 = vmatpush1.bf16.msra.mxu1 %v3960_v15  ;;  %v3979_v15 = vld [vmem:[#allocation16 + $0x88] sm:$0xff]  }
 0xc74   :  { %v5443_v35 = vsub.f32 %v2133_v56, %v2160_v17  ;;  %2186 = vadd.xlane.f32.xlu0 %v2174_v9  ;;  %2188 = vadd.xlane.f32.xlu1 %v2175_v58  ;;  %v2177_v7 = vmul.f32 %v5437_v41, %v5437_v41  ;;  %v3971_v56 = vld [vmem:[#allocation13 + $0xec] ss:$16 sps:$4 sm:$0xff]  }
 0xc75   :  { %2558 = vmatpush1.bf16.msra.mxu0 %v3963_v13  ;;  %2486 = vmatprep.subr.bf16.mxu1 %v3968_v27  ;;  %v3980_v27 = vld [vmem:[#allocation16 + $0x50] sm:$0xff]  }
 0xc76   :  { %v2176_v57 = vmul.f32 %v5443_v35, %v5443_v35  ;;  %2559 = vmatprep.subr.bf16.mxu0 %v3971_v56  ;;  %v3981_v56 = vld [vmem:[#allocation16 + $0xd0] sm:$0xff]  }
 0xc77   :  { %2487 = vmatpush1.bf16.msra.mxu1 %v3966_v59 }
 0xc78   :  { %2190 = vadd.xlane.f32.xlu0 %v2176_v57  ;;  %2192 = vadd.xlane.f32.xlu1 %v2177_v7 }
 0xc79   :  { %2560 = vmatpush1.bf16.msra.mxu0 %v3969_v36  ;;  %3538 = vmatprep.subr.bf16.mxu1 %v3972_v29 }
 0xc7a   :  { %3578 = vmatprep.subr.bf16.mxu0 %v3973_v62 }
 0xcf5   :  { %v2179_v24 = vpop.xlane.xlu0 %2178 }
 0xcf6   :  { %v2194_v49 = vmul.f32 0.0078125, %v2179_v24  ;;  %v3982_v24 = vld [vmem:[#allocation16 + $0x10] sm:$0xff]  }
 0xcf7   :  { %v2181_v31 = vpop.xlane.xlu1 %2180 }
 0xcf8   :  { %v2202_v30 = vadd.f32 1e-05, %v2194_v49  ;;  %v2195_v33 = vmul.f32 0.0078125, %v2181_v31  ;;  %v3983_v49 = vld [vmem:[#allocation16 + $0x90] sm:$0xff]   ;;  %v3984_v31 = vld [vmem:[#allocation16 + $0x58] sm:$0xff]  }
 0xcf9   :  { %v2183_v32 = vpop.xlane.xlu0 %2182 }
 0xcfa   :  { %4132 = vrsqrt.f32 %v2202_v30  ;;  %v2203_v16 = vadd.f32 1e-05, %v2195_v33  ;;  %v2196_v45 = vmul.f32 0.0078125, %v2183_v32  ;;  %v3985_v30 = vld [vmem:[#allocation16 + $0xd8] sm:$0xff]  }
 0xcfc   :  { %4134 = vrsqrt.f32 %v2203_v16  ;;  %v2204_v44 = vadd.f32 1e-05, %v2196_v45 }
 0xcfd   :  { %v2185_v60 = vpop.xlane.xlu1 %2184 }
 0xcfe   :  { %4136 = vrsqrt.f32 %v2204_v44  ;;  %v2197_v3 = vmul.f32 0.0078125, %v2185_v60  ;;  %v3986_v44 = vld [vmem:[#allocation16 + $0x18] sm:$0xff]  }
 0xcff   :  { %v3987_v60 = vld [vmem:[#allocation16 + $0x98] sm:$0xff]  }
 0xd00   :  { %v2205_v37 = vadd.f32 1e-05, %v2197_v3  ;;  %v3988_v3 = vld [vmem:[#allocation16 + $0x60] sm:$0xff]  }
 0xd01   :  { %v2187_v61 = vpop.xlane.xlu0 %2186  ;;  %v2189_v5 = vpop.xlane.xlu1 %2188 }
 0xd02   :  { %4138 = vrsqrt.f32 %v2205_v37  ;;  %v2198_v40 = vmul.f32 0.0078125, %v2187_v61  ;;  %v2199_v48 = vmul.f32 0.0078125, %v2189_v5  ;;  %v3989_v37 = vld [vmem:[#allocation16 + $0xe0] sm:$0xff]  }
 0xd04   :  { %v4133_v42 = vpop.eup %4132  ;;  %v2206_v43 = vadd.f32 1e-05, %v2198_v40  ;;  %v2207_v25 = vadd.f32 1e-05, %v2199_v48  ;;  %v3991_v48 = vld [vmem:[#allocation16 + $0xa0] sm:$0xff]  }
 0xd05   :  { %v2218_v6 = vmul.f32 %v4133_v42, %v5417_v2  ;;  %v2191_v39 = vpop.xlane.xlu0 %2190  ;;  %v2193_v55 = vpop.xlane.xlu1 %2192  ;;  %v3993_v42 = vld [vmem:[#allocation16 + $0xe8] sm:$0xff]  }
 0xd06   :  { %v4135_v17 = vpop.eup %4134  ;;  %4140 = vrsqrt.f32 %v2206_v43  ;;  %v2200_v9 = vmul.f32 0.0078125, %v2191_v39  ;;  %v2201_v58 = vmul.f32 0.0078125, %v2193_v55  ;;  %v3995_v39 = vld [vmem:[#allocation16 + $0xa8] sm:$0xff]   ;;  %v3997_v55 = vld [vmem:[#allocation16 + $0xf0] sm:$0xff]  }
 0xd07   :  { %v2232_v57 = vmul.f32 %v5449_v19, %v2218_v6  ;;  %v2219_v7 = vmul.f32 %v4135_v17, %v5419_v26  ;;  %4142 = vrsqrt.f32 %v2207_v25  ;;  %v3994_v6 = vld [vmem:[#allocation16 + $0x28] sm:$0xff]   ;;  %v3998_v17 = vld [vmem:[#allocation16 + $0x30] sm:$0xff]  }
 0xd08   :  { %v4137_v54 = vpop.eup %4136  ;;  %v2208_v34 = vadd.f32 1e-05, %v2200_v9  ;;  %v2209_v1 = vadd.f32 1e-05, %v2201_v58  ;;  %v3999_v9 = vld [vmem:[#allocation16 + $0xb0] sm:$0xff]   ;;  %v4000_v58 = vld [vmem:[#allocation16 + $0x78] sm:$0xff]  }
 0xd09   :  { %v2233_v28 = vmul.f32 %v5449_v19, %v2219_v7  ;;  %v5458_v2 = vadd.f32 %v5454_v4, %v2232_v57  ;;  %v2220_v8 = vmul.f32 %v4137_v54, %v5423_v10  ;;  %v4001_v57 = vld [vmem:[#allocation16 + $0xf8] sm:$0xff]  }
 0xd0a   :  { %4144 = vrsqrt.f32 %v2208_v34  ;;  %v4002_v7 = vld [vmem:[#allocation16 + $0x38] sm:$0xff]  }
 0xd0b   :  { %v5461_v46 = vadd.f32 %v5454_v4, %v2233_v28  ;;  %4146 = vrsqrt.f32 %v2209_v1  ;;  %v2234_v50 = vmul.f32 %v5449_v19, %v2220_v8  ;;  %v4003_v54 = vld [vmem:[#allocation16 + $0xb8] sm:$0xff]   ;;  %v2306_v1 = vsub.s32 3, %v4853_v38 }
 0xd0c   :  { %v4139_v47 = vpop.eup %4138  ;;  %v2290_v34 = vld [vmem:[#allocation14] sm:$0xf]  ;;  %v5637_v8 = vsub.s32 2, %v4853_v38 }
 0xd0d   :  { %v2254_v26 = vpack.c.bf16 %v5461_v46, %v5458_v2  ;;  %v2221_v22 = vmul.f32 %v4139_v47, %v5429_v53  ;;  %v5477_v59 = vadd.f32 %v5454_v4, %v2234_v50 }
 0xd0e   :  { %v5514_v47 = vrot.slane %v2290_v34, %v5637_v8 }
 0xd0f   :  { %2505 = vmatmul.mubr.bf16.vlgmr.msra.gmra.mrb[48].mxu1 %v2254_v26  ;;  %2578 = vmatmul.mubr.bf16.vlgmr.msra.gmra.mrb[48].mxu0 %v2254_v26  ;;  %v2235_v21 = vmul.f32 %v5449_v19, %v2221_v22  ;;  %v5638_v26 = vsub.s32 1, %v4853_v38 }
 0xd10   :  { %v4141_v12 = vpop.eup %4140  ;;  %2514 = vmatprep.mubr.bf16.mxu1 %v4542_v0  ;;  %2587 = vmatprep.mubr.bf16.mxu0 %v4542_v0 }
 0xd11   :  { %v4143_v10 = vpop.eup %4142  ;;  %v5472_v18 = vadd.f32 %v5454_v4, %v2235_v21  ;;  %v2222_v53 = vmul.f32 %v4141_v12, %v5435_v23  ;;  %3539 = vmatpush3.bf16.msra.mxu1 %v3974_v51  ;;  %3579 = vmatpush3.bf16.msra.mxu0 %v3975_v14  ;;  %v5518_v22 = vrot.slane %v2290_v34, %v5638_v26 }
 0xd12   :  { %v2223_v13 = vmul.f32 %v4143_v10, %v5431_v20  ;;  %3540 = vmatprep.subr.bf16.mxu1 %v3976_v52  ;;  %3580 = vmatprep.subr.bf16.mxu0 %v3977_v63  ;;  %v5520_v51 = vrot.slane %v2290_v34, %v2306_v1 }
 0xd13   :  { %v2236_v36 = vmul.f32 %v5449_v19, %v2222_v53  ;;  %v2255_v62 = vpack.c.bf16 %v5472_v18, %v5477_v59 }
 0xd14   :  { %v4145_v29 = vpop.eup %4144  ;;  %v2237_v23 = vmul.f32 %v5449_v19, %v2223_v13 }
 0xd15   :  { %3541 = vmatpush3.bf16.msra.mxu1 %v3978_v11  ;;  %3581 = vmatpush3.bf16.msra.mxu0 %v3979_v15  ;;  %v4147_v20 = vpop.eup %4146  ;;  %v5486_v33 = vadd.f32 %v5454_v4, %v2236_v36  ;;  %v2224_v16 = vmul.f32 %v4145_v29, %v5443_v35  ;;  %v3990_v35 = vld [vmem:[#allocation16 + $0x20] sm:$0xff]  }
 0xd16   :  { %3542 = vmatprep.subr.bf16.mxu1 %v3980_v27  ;;  %3582 = vmatprep.subr.bf16.mxu0 %v3981_v56  ;;  %v5489_v32 = vadd.f32 %v5454_v4, %v2237_v23  ;;  %v2225_v45 = vmul.f32 %v4147_v20, %v5437_v41  ;;  %v3992_v41 = vld [vmem:[#allocation16 + $0x68] sm:$0xff]  }
 0xd17   :  { %2515 = vmatmul.mubr.bf16.gmra.mrb[52].mxu1 %v2255_v62  ;;  %2588 = vmatmul.mubr.bf16.gmra.mrb[52].mxu0 %v2255_v62  ;;  %v2238_v5 = vmul.f32 %v5449_v19, %v2224_v16 }
 0xd18   :  { %2524 = vmatprep.mubr.bf16.mxu1 %v4542_v0  ;;  %2597 = vmatprep.mubr.bf16.mxu0 %v4542_v0  ;;  %v2256_v61 = vpack.c.bf16 %v5489_v32, %v5486_v33  ;;  %v2239_v40 = vmul.f32 %v5449_v19, %v2225_v45 }
 0xd19   :  { %3543 = vmatpush3.bf16.msra.mxu1 %v3982_v24  ;;  %3583 = vmatpush3.bf16.msra.mxu0 %v3983_v49  ;;  %v5500_v43 = vadd.f32 %v5454_v4, %v2238_v5 }
 0xd1a   :  { %3544 = vmatprep.subr.bf16.mxu1 %v3984_v31  ;;  %3584 = vmatprep.subr.bf16.mxu0 %v3985_v30  ;;  %v5503_v25 = vadd.f32 %v5454_v4, %v2239_v40  ;;  %v5636_v4 = vsub.s32 0, %v4853_v38 }
 0xd1c   :  { %v2257_v19 = vpack.c.bf16 %v5503_v25, %v5500_v43  ;;  %v5510_v28 = vrot.slane %v2290_v34, %v5636_v4 }
 0xd1d   :  { %3545 = vmatpush3.bf16.msra.mxu1 %v3986_v44  ;;  %3585 = vmatpush3.bf16.msra.mxu0 %v3987_v60 }
 0xd1e   :  { %3546 = vmatprep.subr.bf16.mxu1 %v3988_v3  ;;  %3586 = vmatprep.subr.bf16.mxu0 %v3989_v37 }
 0xd1f   :  { %2525 = vmatmul.mubr.bf16.gmra.mrb[56].mxu1 %v2256_v61  ;;  %2598 = vmatmul.mubr.bf16.gmra.mrb[56].mxu0 %v2256_v61 }
 0xd20   :  { %2534 = vmatprep.mubr.bf16.mxu1 %v4542_v0  ;;  %2607 = vmatprep.mubr.bf16.mxu0 %v4542_v0  ;;  %v3996_v0 = vld [vmem:[#allocation16 + $0x70] sm:$0xff]  }
 0xd21   :  { %3547 = vmatpush3.bf16.msra.mxu1 %v3990_v35  ;;  %3587 = vmatpush3.bf16.msra.mxu0 %v3991_v48 }
 0xd22   :  { %3548 = vmatprep.subr.bf16.mxu1 %v3992_v41  ;;  %3588 = vmatprep.subr.bf16.mxu0 %v3993_v42 }
 0xd25   :  { %3549 = vmatpush3.bf16.msra.mxu1 %v3994_v6  ;;  %3589 = vmatpush3.bf16.msra.mxu0 %v3995_v39 }
 0xd26   :  { %3550 = vmatprep.subr.bf16.mxu1 %v3996_v0  ;;  %3590 = vmatprep.subr.bf16.mxu0 %v3997_v55 }
 0xd27   :  { %2535 = vmatmul.mubr.bf16.gmra.mrb[60].mxu1 %v2257_v19  ;;  %2608 = vmatmul.mubr.bf16.gmra.mrb[60].mxu0 %v2257_v19 }
 0xd29   :  { %3551 = vmatpush3.bf16.msra.mxu1 %v3998_v17  ;;  %3591 = vmatpush3.bf16.msra.mxu0 %v3999_v9 }
 0xd2a   :  { %3552 = vmatprep.subr.bf16.mxu1 %v4000_v58  ;;  %3592 = vmatprep.subr.bf16.mxu0 %v4001_v57 }
 0xd2d   :  { %3553 = vmatpush3.bf16.msra.mxu1 %v4002_v7  ;;  %3593 = vmatpush3.bf16.msra.mxu0 %v4003_v54 }
 0xde2   :  { %v2506_v14 = vpop.f32.mrb[48].mxu1  ;;  %v2579_v52 = vpop.f32.mrb[48].mxu0 }
 0xde3   :  { %v2507_v63 = vadd.f32 %v2506_v14, %v5510_v28  ;;  %v2580_v50 = vadd.f32 %v2579_v52, %v5514_v47  ;;  %v2508_v21 = vpop.f32.mrb[49].mxu1  ;;  %v2581_v12 = vpop.f32.mrb[49].mxu0 }
 0xde4   :  { %v2509_v10 = vadd.f32 %v2508_v21, %v5518_v22  ;;  %v2582_v53 = vadd.f32 %v2581_v12, %v5520_v51  ;;  %v2510_v11 = vpop.f32.mrb[50].mxu1  ;;  %v2583_v15 = vpop.f32.mrb[50].mxu0 }
 0xde5   :  { %v2511_v38 = vadd.f32 %v2510_v11, %v5510_v28  ;;  %v2584_v13 = vadd.f32 %v2583_v15, %v5514_v47  ;;  %v2512_v27 = vpop.f32.mrb[51].mxu1  ;;  %v2585_v56 = vpop.f32.mrb[51].mxu0  ;;  %v2618_v62 = vmax.f32 %v2507_v63, 0.0  ;;  %v2620_v23 = vmax.f32 %v2580_v50, 0.0 }
 0xde6   :  { %v2513_v36 = vadd.f32 %v2512_v27, %v5518_v22  ;;  %v2586_v29 = vadd.f32 %v2585_v56, %v5520_v51  ;;  %v2619_v20 = vmax.f32 %v2509_v10, 0.0  ;;  %v2621_v31 = vmax.f32 %v2582_v53, 0.0 }
 0xde7   :  { %v2622_v24 = vmax.f32 %v2511_v38, 0.0  ;;  %v2624_v49 = vmax.f32 %v2584_v13, 0.0 }
 0xde8   :  { %v2623_v30 = vmax.f32 %v2513_v36, 0.0  ;;  %v2625_v16 = vmax.f32 %v2586_v29, 0.0 }
 0xde9   :  { %v2650_v45 = vpack.c.bf16 %v2622_v24, %v2618_v62  ;;  %v2652_v44 = vpack.c.bf16 %v2624_v49, %v2620_v23 }
 0xdea   :  { %v2651_v60 = vpack.c.bf16 %v2623_v30, %v2619_v20  ;;  %v2653_v3 = vpack.c.bf16 %v2625_v16, %v2621_v31  ;;  %v2516_v37 = vpop.f32.mrb[52].mxu1  ;;  %v2589_v61 = vpop.f32.mrb[52].mxu0 }
 0xdeb   :  { %v2517_v5 = vadd.f32 %v2516_v37, %v5510_v28  ;;  %v2590_v40 = vadd.f32 %v2589_v61, %v5514_v47  ;;  %v2518_v35 = vpop.f32.mrb[53].mxu1  ;;  %v2591_v48 = vpop.f32.mrb[53].mxu0 }
 0xdec   :  { %v2519_v41 = vadd.f32 %v2518_v35, %v5518_v22  ;;  %v2592_v42 = vadd.f32 %v2591_v48, %v5520_v51  ;;  %v2520_v19 = vpop.f32.mrb[54].mxu1  ;;  %v2593_v6 = vpop.f32.mrb[54].mxu0  ;;  %2961 = vmatprep.mubr.bf16.mxu1 %v2651_v60  ;;  %3026 = vmatprep.mubr.bf16.mxu0 %v2653_v3 }
 0xded   :  { %v2521_v39 = vadd.f32 %v2520_v19, %v5510_v28  ;;  %v2594_v0 = vadd.f32 %v2593_v6, %v5514_v47  ;;  %v2522_v55 = vpop.f32.mrb[55].mxu1  ;;  %v2595_v17 = vpop.f32.mrb[55].mxu0  ;;  %2962 = vmatmul.mubr.bf16.vlgmr.msra.gmra.mrb[64].mxu1 %v2650_v45  ;;  %3027 = vmatmul.mubr.bf16.vlgmr.msra.gmra.mrb[64].mxu0 %v2652_v44  ;;  %v2626_v57 = vmax.f32 %v2517_v5, 0.0  ;;  %v2628_v7 = vmax.f32 %v2590_v40, 0.0 }
 0xdee   :  { %v2523_v9 = vadd.f32 %v2522_v55, %v5518_v22  ;;  %v2596_v58 = vadd.f32 %v2595_v17, %v5520_v51  ;;  %v2627_v1 = vmax.f32 %v2519_v41, 0.0  ;;  %v2629_v4 = vmax.f32 %v2592_v42, 0.0 }
 0xdef   :  { %v2630_v54 = vmax.f32 %v2521_v39, 0.0  ;;  %v2632_v34 = vmax.f32 %v2594_v0, 0.0 }
 0xdf0   :  { %v2631_v8 = vmax.f32 %v2523_v9, 0.0  ;;  %v2633_v26 = vmax.f32 %v2596_v58, 0.0 }
 0xdf1   :  { %v2654_v14 = vpack.c.bf16 %v2630_v54, %v2626_v57  ;;  %v2656_v52 = vpack.c.bf16 %v2632_v34, %v2628_v7 }
 0xdf2   :  { %v2655_v63 = vpack.c.bf16 %v2631_v8, %v2627_v1  ;;  %v2657_v50 = vpack.c.bf16 %v2633_v26, %v2629_v4  ;;  %v2526_v21 = vpop.f32.mrb[56].mxu1  ;;  %v2599_v12 = vpop.f32.mrb[56].mxu0 }
 0xdf3   :  { %v2527_v10 = vadd.f32 %v2526_v21, %v5510_v28  ;;  %v2600_v53 = vadd.f32 %v2599_v12, %v5514_v47  ;;  %v2528_v11 = vpop.f32.mrb[57].mxu1  ;;  %v2601_v15 = vpop.f32.mrb[57].mxu0 }
 0xdf4   :  { %v2529_v38 = vadd.f32 %v2528_v11, %v5518_v22  ;;  %v2602_v13 = vadd.f32 %v2601_v15, %v5520_v51  ;;  %v2530_v27 = vpop.f32.mrb[58].mxu1  ;;  %v2603_v56 = vpop.f32.mrb[58].mxu0  ;;  %2969 = vmatprep.mubr.bf16.mxu1 %v2655_v63  ;;  %3034 = vmatprep.mubr.bf16.mxu0 %v2657_v50 }
 0xdf5   :  { %v2531_v36 = vadd.f32 %v2530_v27, %v5510_v28  ;;  %v2604_v29 = vadd.f32 %v2603_v56, %v5514_v47  ;;  %v2532_v62 = vpop.f32.mrb[59].mxu1  ;;  %v2605_v23 = vpop.f32.mrb[59].mxu0  ;;  %2970 = vmatmul.mubr.bf16.gmra.mrb[68].mxu1 %v2654_v14  ;;  %3035 = vmatmul.mubr.bf16.gmra.mrb[68].mxu0 %v2656_v52  ;;  %v2634_v20 = vmax.f32 %v2527_v10, 0.0  ;;  %v2636_v31 = vmax.f32 %v2600_v53, 0.0  ;;  %v5554_v53 = vld [vmem:[#allocation17] ss:$0 sm:$0xff] }
 0xdf6   :  { %v2533_v24 = vadd.f32 %v2532_v62, %v5518_v22  ;;  %v2606_v49 = vadd.f32 %v2605_v23, %v5520_v51  ;;  %v2635_v45 = vmax.f32 %v2529_v38, 0.0  ;;  %v2637_v44 = vmax.f32 %v2602_v13, 0.0 }
 0xdf7   :  { %v2638_v30 = vmax.f32 %v2531_v36, 0.0  ;;  %v2640_v16 = vmax.f32 %v2604_v29, 0.0 }
 0xdf8   :  { %v2639_v60 = vmax.f32 %v2533_v24, 0.0  ;;  %v2641_v3 = vmax.f32 %v2606_v49, 0.0 }
 0xdf9   :  { %v2658_v37 = vpack.c.bf16 %v2638_v30, %v2634_v20  ;;  %v2660_v61 = vpack.c.bf16 %v2640_v16, %v2636_v31 }
 0xdfa   :  { %v2659_v5 = vpack.c.bf16 %v2639_v60, %v2635_v45  ;;  %v2661_v40 = vpack.c.bf16 %v2641_v3, %v2637_v44  ;;  %v2536_v35 = vpop.f32.mrb[60].mxu1  ;;  %v2609_v48 = vpop.f32.mrb[60].mxu0 }
 0xdfb   :  { %v2537_v41 = vadd.f32 %v2536_v35, %v5510_v28  ;;  %v2610_v42 = vadd.f32 %v2609_v48, %v5514_v47  ;;  %v2538_v19 = vpop.f32.mrb[61].mxu1  ;;  %v2611_v6 = vpop.f32.mrb[61].mxu0 }
 0xdfc   :  { %v2539_v39 = vadd.f32 %v2538_v19, %v5518_v22  ;;  %v2612_v0 = vadd.f32 %v2611_v6, %v5520_v51  ;;  %v2540_v55 = vpop.f32.mrb[62].mxu1  ;;  %v2613_v17 = vpop.f32.mrb[62].mxu0  ;;  %2977 = vmatprep.mubr.bf16.mxu1 %v2659_v5  ;;  %3042 = vmatprep.mubr.bf16.mxu0 %v2661_v40 }
 0xdfd   :  { %v2541_v9 = vadd.f32 %v2540_v55, %v5510_v28  ;;  %v2614_v58 = vadd.f32 %v2613_v17, %v5514_v47  ;;  %v2542_v57 = vpop.f32.mrb[63].mxu1  ;;  %v2615_v7 = vpop.f32.mrb[63].mxu0  ;;  %2978 = vmatmul.mubr.bf16.gmra.mrb[72].mxu1 %v2658_v37  ;;  %3043 = vmatmul.mubr.bf16.gmra.mrb[72].mxu0 %v2660_v61  ;;  %v2642_v1 = vmax.f32 %v2537_v41, 0.0  ;;  %v2644_v4 = vmax.f32 %v2610_v42, 0.0 }
 0xdfe   :  { %v2543_v54 = vadd.f32 %v2542_v57, %v5518_v22  ;;  %v2616_v34 = vadd.f32 %v2615_v7, %v5520_v51  ;;  %v2643_v14 = vmax.f32 %v2539_v39, 0.0  ;;  %v2645_v52 = vmax.f32 %v2612_v0, 0.0 }
 0xdff   :  { %v2646_v8 = vmax.f32 %v2541_v9, 0.0  ;;  %v2648_v26 = vmax.f32 %v2614_v58, 0.0 }
 0xe00   :  { %v2647_v63 = vmax.f32 %v2543_v54, 0.0  ;;  %v2649_v50 = vmax.f32 %v2616_v34, 0.0 }
 0xe01   :  { %v2662_v21 = vpack.c.bf16 %v2646_v8, %v2642_v1  ;;  %v2664_v28 = vpack.c.bf16 %v2648_v26, %v2644_v4 }
 0xe02   :  { %v2663_v12 = vpack.c.bf16 %v2647_v63, %v2643_v14  ;;  %v2665_v47 = vpack.c.bf16 %v2649_v50, %v2645_v52 }
 0xe04   :  { %2985 = vmatprep.mubr.bf16.mxu1 %v2663_v12  ;;  %3050 = vmatprep.mubr.bf16.mxu0 %v2665_v47 }
 0xe05   :  { %2986 = vmatmul.mubr.bf16.gmra.mrb[76].mxu1 %v2662_v21  ;;  %3051 = vmatmul.mubr.bf16.gmra.mrb[76].mxu0 %v2664_v28 }
 0xec0   :  { %v3554_v10 = vpop.f32.mrb[64].mxu1  ;;  %v3594_v22 = vpop.f32.mrb[64].mxu0 }
 0xec1   :  { %v3555_v51 = vpop.f32.mrb[65].mxu1  ;;  %v3595_v11 = vpop.f32.mrb[65].mxu0 }
 0xec2   :  { %v3556_v15 = vadd.f32 %v3555_v51, %v3554_v10  ;;  %v3596_v38 = vadd.f32 %v3595_v11, %v3594_v22  ;;  %v3557_v13 = vpop.f32.mrb[66].mxu1  ;;  %v3597_v27 = vpop.f32.mrb[66].mxu0 }
 0xec3   :  { %v3558_v56 = vpop.f32.mrb[67].mxu1  ;;  %v3598_v36 = vpop.f32.mrb[67].mxu0 }
 0xec4   :  { %v2964_v29 = vadd.f32 %v3556_v15, %v5554_v53  ;;  %v3559_v62 = vadd.f32 %v3558_v56, %v3557_v13  ;;  %v3599_v23 = vadd.f32 %v3598_v36, %v3597_v27 }
 0xec6   :  { %v3029_v24 = vadd.f32 %v3596_v38, %v2964_v29  ;;  %v2967_v49 = vadd.f32 %v3559_v62, %v5554_v53 }
 0xec8   :  { %v3032_v20 = vadd.f32 %v3599_v23, %v2967_v49  ;;  %v3560_v31 = vpop.f32.mrb[68].mxu1  ;;  %v3600_v30 = vpop.f32.mrb[68].mxu0  ;;  %v5559_v16 = vadd.f32 %v3029_v24, %v5458_v2 }
 0xec9   :  { %v3561_v45 = vpop.f32.mrb[69].mxu1  ;;  %v3601_v44 = vpop.f32.mrb[69].mxu0 }
 0xeca   :  { %v3562_v60 = vadd.f32 %v3561_v45, %v3560_v31  ;;  %v3602_v3 = vadd.f32 %v3601_v44, %v3600_v30  ;;  %v3563_v37 = vpop.f32.mrb[70].mxu1  ;;  %v3603_v61 = vpop.f32.mrb[70].mxu0  ;;  %3069 = vadd.xlane.f32.xlu0 %v5559_v16  ;;  %v3060_v5 = vadd.f32 %v3032_v20, %v5461_v46 }
 0xecb   :  { %v3564_v40 = vpop.f32.mrb[71].mxu1  ;;  %v3604_v35 = vpop.f32.mrb[71].mxu0 }
 0xecc   :  { %v2972_v48 = vadd.f32 %v3562_v60, %v5554_v53  ;;  %v3565_v41 = vadd.f32 %v3564_v40, %v3563_v37  ;;  %v3605_v42 = vadd.f32 %v3604_v35, %v3603_v61  ;;  %3071 = vadd.xlane.f32.xlu1 %v3060_v5 }
 0xece   :  { %v3037_v19 = vadd.f32 %v3602_v3, %v2972_v48  ;;  %v2975_v2 = vadd.f32 %v3565_v41, %v5554_v53 }
 0xed0   :  { %v3040_v6 = vadd.f32 %v3605_v42, %v2975_v2  ;;  %v3566_v39 = vpop.f32.mrb[72].mxu1  ;;  %v3606_v0 = vpop.f32.mrb[72].mxu0  ;;  %v3061_v55 = vadd.f32 %v3037_v19, %v5477_v59 }
 0xed1   :  { %v3567_v17 = vpop.f32.mrb[73].mxu1  ;;  %v3607_v9 = vpop.f32.mrb[73].mxu0 }
 0xed2   :  { %v3568_v58 = vadd.f32 %v3567_v17, %v3566_v39  ;;  %v3608_v57 = vadd.f32 %v3607_v9, %v3606_v0  ;;  %v3569_v46 = vpop.f32.mrb[74].mxu1  ;;  %v3609_v7 = vpop.f32.mrb[74].mxu0  ;;  %3073 = vadd.xlane.f32.xlu0 %v3061_v55  ;;  %v3062_v54 = vadd.f32 %v3040_v6, %v5472_v18 }
 0xed3   :  { %v3570_v34 = vpop.f32.mrb[75].mxu1  ;;  %v3610_v1 = vpop.f32.mrb[75].mxu0 }
 0xed4   :  { %v2980_v4 = vadd.f32 %v3568_v58, %v5554_v53  ;;  %v3571_v8 = vadd.f32 %v3570_v34, %v3569_v46  ;;  %v3611_v26 = vadd.f32 %v3610_v1, %v3609_v7  ;;  %3075 = vadd.xlane.f32.xlu1 %v3062_v54 }
 0xed6   :  { %v3045_v14 = vadd.f32 %v3608_v57, %v2980_v4  ;;  %v2983_v52 = vadd.f32 %v3571_v8, %v5554_v53 }
 0xed8   :  { %v3048_v59 = vadd.f32 %v3611_v26, %v2983_v52  ;;  %v3572_v63 = vpop.f32.mrb[76].mxu1  ;;  %v3612_v50 = vpop.f32.mrb[76].mxu0  ;;  %v3063_v21 = vadd.f32 %v3045_v14, %v5486_v33 }
 0xed9   :  { %v3573_v28 = vpop.f32.mrb[77].mxu1  ;;  %v3613_v12 = vpop.f32.mrb[77].mxu0 }
 0xeda   :  { %v3574_v47 = vadd.f32 %v3573_v28, %v3572_v63  ;;  %v3614_v10 = vadd.f32 %v3613_v12, %v3612_v50  ;;  %v3615_v18 = vpop.f32.mrb[78].mxu0  ;;  %3077 = vadd.xlane.f32.xlu0 %v3063_v21  ;;  %v3575_v22 = vpop.f32.mrb[78].mxu1  ;;  %v3064_v51 = vadd.f32 %v3048_v59, %v5489_v32  ;;  %v3397_v50 = vld [vmem:[#allocation22] ss:$0 sm:$0xff] }
 0xedb   :  { %v3576_v11 = vpop.f32.mrb[79].mxu1  ;;  %v3616_v15 = vpop.f32.mrb[79].mxu0 }
 0xedc   :  { %v2988_v38 = vadd.f32 %v3574_v47, %v5554_v53  ;;  %v3577_v13 = vadd.f32 %v3576_v11, %v3575_v22  ;;  %v3617_v27 = vadd.f32 %v3616_v15, %v3615_v18  ;;  %3079 = vadd.xlane.f32.xlu1 %v3064_v51  ;;  %v3398_v15 = vld [vmem:[#allocation23] ss:$0 sm:$0xff] }
 0xede   :  { %v3053_v56 = vadd.f32 %v3614_v10, %v2988_v38  ;;  %v2991_v36 = vadd.f32 %v3577_v13, %v5554_v53 }
 0xee0   :  { %v3056_v33 = vadd.f32 %v3617_v27, %v2991_v36  ;;  %v3065_v29 = vadd.f32 %v3053_v56, %v5500_v43 }
 0xee2   :  { %3081 = vadd.xlane.f32.xlu0 %v3065_v29  ;;  %v3066_v62 = vadd.f32 %v3056_v33, %v5503_v25 }
 0xee4   :  { %3083 = vadd.xlane.f32.xlu1 %v3066_v62 }
 0xf57   :  { %v3070_v23 = vpop.xlane.xlu0 %3069 }
 0xf58   :  { %v3085_v24 = vmul.f32 0.0078125, %v3070_v23 }
 0xf59   :  { %v3072_v32 = vpop.xlane.xlu1 %3071 }
 0xf5a   :  { %v3093_v49 = vsub.f32 %v5559_v16, %v3085_v24  ;;  %v3086_v20 = vmul.f32 0.0078125, %v3072_v32 }
 0xf5c   :  { %v3094_v31 = vsub.f32 %v3060_v5, %v3086_v20  ;;  %v3101_v30 = vmul.f32 %v3093_v49, %v3093_v49 }
 0xf5e   :  { %3109 = vadd.xlane.f32.xlu0 %v3101_v30  ;;  %v3102_v45 = vmul.f32 %v3094_v31, %v3094_v31 }
 0xf5f   :  { %v3074_v44 = vpop.xlane.xlu0 %3073 }
 0xf60   :  { %v3087_v60 = vmul.f32 0.0078125, %v3074_v44  ;;  %3111 = vadd.xlane.f32.xlu1 %v3102_v45 }
 0xf61   :  { %v3076_v53 = vpop.xlane.xlu1 %3075 }
 0xf62   :  { %v3095_v3 = vsub.f32 %v3061_v55, %v3087_v60  ;;  %v3088_v43 = vmul.f32 0.0078125, %v3076_v53 }
 0xf64   :  { %v5576_v37 = vsub.f32 %v3062_v54, %v3088_v43  ;;  %v3103_v25 = vmul.f32 %v3095_v3, %v3095_v3 }
 0xf66   :  { %3113 = vadd.xlane.f32.xlu0 %v3103_v25  ;;  %v3104_v61 = vmul.f32 %v5576_v37, %v5576_v37 }
 0xf67   :  { %v3078_v40 = vpop.xlane.xlu0 %3077 }
 0xf68   :  { %v3089_v16 = vmul.f32 0.0078125, %v3078_v40  ;;  %3115 = vadd.xlane.f32.xlu1 %v3104_v61 }
 0xf69   :  { %v3080_v5 = vpop.xlane.xlu1 %3079 }
 0xf6a   :  { %v5580_v35 = vsub.f32 %v3063_v21, %v3089_v16  ;;  %v3090_v48 = vmul.f32 0.0078125, %v3080_v5 }
 0xf6c   :  { %v5582_v41 = vsub.f32 %v3064_v51, %v3090_v48  ;;  %v3105_v42 = vmul.f32 %v5580_v35, %v5580_v35 }
 0xf6e   :  { %3117 = vadd.xlane.f32.xlu0 %v3105_v42  ;;  %v3106_v19 = vmul.f32 %v5582_v41, %v5582_v41 }
 0xf6f   :  { %v3082_v2 = vpop.xlane.xlu0 %3081 }
 0xf70   :  { %v3091_v6 = vmul.f32 0.0078125, %v3082_v2  ;;  %3119 = vadd.xlane.f32.xlu1 %v3106_v19 }
 0xf71   :  { %v3084_v39 = vpop.xlane.xlu1 %3083 }
 0xf72   :  { %v5588_v0 = vsub.f32 %v3065_v29, %v3091_v6  ;;  %v3092_v55 = vmul.f32 0.0078125, %v3084_v39 }
 0xf74   :  { %v5590_v17 = vsub.f32 %v3066_v62, %v3092_v55  ;;  %v3107_v9 = vmul.f32 %v5588_v0, %v5588_v0 }
 0xf76   :  { %3121 = vadd.xlane.f32.xlu0 %v3107_v9  ;;  %v3108_v58 = vmul.f32 %v5590_v17, %v5590_v17 }
 0xf78   :  { %3123 = vadd.xlane.f32.xlu1 %v3108_v58 }
 0xfeb   :  { %v3110_v57 = vpop.xlane.xlu0 %3109 }
 0xfec   :  { %v3125_v46 = vmul.f32 0.0078125, %v3110_v57 }
 0xfed   :  { %v3112_v7 = vpop.xlane.xlu1 %3111 }
 0xfee   :  { %v3133_v54 = vadd.f32 1e-05, %v3125_v46  ;;  %v3126_v34 = vmul.f32 0.0078125, %v3112_v7 }
 0xff0   :  { %4148 = vrsqrt.f32 %v3133_v54  ;;  %v3134_v1 = vadd.f32 1e-05, %v3126_v34 }
 0xff2   :  { %4150 = vrsqrt.f32 %v3134_v1 }
 0xff3   :  { %v3114_v4 = vpop.xlane.xlu0 %3113 }
 0xff4   :  { %v3127_v8 = vmul.f32 0.0078125, %v3114_v4 }
 0xff5   :  { %v3116_v26 = vpop.xlane.xlu1 %3115 }
 0xff6   :  { %v3135_v14 = vadd.f32 1e-05, %v3127_v8  ;;  %v3128_v52 = vmul.f32 0.0078125, %v3116_v26 }
 0xff8   :  { %4152 = vrsqrt.f32 %v3135_v14  ;;  %v3136_v59 = vadd.f32 1e-05, %v3128_v52 }
 0xffa   :  { %v4149_v63 = vpop.eup %4148  ;;  %4154 = vrsqrt.f32 %v3136_v59 }
 0xffb   :  { %v3149_v21 = vmul.f32 %v4149_v63, %v3093_v49  ;;  %v3118_v28 = vpop.xlane.xlu0 %3117 }
 0xffc   :  { %v4151_v12 = vpop.eup %4150  ;;  %v3129_v47 = vmul.f32 0.0078125, %v3118_v28 }
 0xffd   :  { %v3150_v10 = vmul.f32 %v4151_v12, %v3094_v31  ;;  %v3120_v18 = vpop.xlane.xlu1 %3119  ;;  %v3163_v22 = vmul.f32 %v3397_v50, %v3149_v21 }
 0xffe   :  { %v3137_v51 = vadd.f32 1e-05, %v3129_v47  ;;  %v3130_v11 = vmul.f32 0.0078125, %v3120_v18 }
 0xfff   :  { %v3164_v38 = vmul.f32 %v3397_v50, %v3150_v10  ;;  %v3177_v27 = vadd.f32 %v3398_v15, %v3163_v22 }
0x1000   :  { %4156 = vrsqrt.f32 %v3137_v51  ;;  %v3138_v13 = vadd.f32 1e-05, %v3130_v11 }
0x1001   :  { %v3178_v56 = vadd.f32 %v3398_v15, %v3164_v38 }
0x1002   :  { %v4153_v36 = vpop.eup %4152  ;;  %4158 = vrsqrt.f32 %v3138_v13 }
0x1003   :  { %v3151_v33 = vmul.f32 %v4153_v36, %v3095_v3  ;;  %v3122_v29 = vpop.xlane.xlu0 %3121  ;;  %v3418_v62 = vpack.c.bf16 %v3178_v56, %v3177_v27 }
0x1004   :  { %v4155_v23 = vpop.eup %4154  ;;  %v3131_v24 = vmul.f32 0.0078125, %v3122_v29 }
0x1005   :  { %v3152_v32 = vmul.f32 %v4155_v23, %v5576_v37  ;;  %v3124_v49 = vpop.xlane.xlu1 %3123  ;;  %v3165_v20 = vmul.f32 %v3397_v50, %v3151_v33  ;;  %3419 = vst [vmem:[#allocation25] sm:$0xff] %v3418_v62  }
0x1006   :  { %v3139_v31 = vadd.f32 1e-05, %v3131_v24  ;;  %v3132_v30 = vmul.f32 0.0078125, %v3124_v49 }
0x1007   :  { %v3166_v45 = vmul.f32 %v3397_v50, %v3152_v32  ;;  %v3179_v60 = vadd.f32 %v3398_v15, %v3165_v20 }
0x1008   :  { %4160 = vrsqrt.f32 %v3139_v31  ;;  %v3140_v44 = vadd.f32 1e-05, %v3132_v30 }
0x1009   :  { %v3180_v53 = vadd.f32 %v3398_v15, %v3166_v45 }
0x100a   :  { %v4157_v43 = vpop.eup %4156  ;;  %4162 = vrsqrt.f32 %v3140_v44 }
0x100b   :  { %v3153_v3 = vmul.f32 %v4157_v43, %v5580_v35  ;;  %v3423_v25 = vpack.c.bf16 %v3180_v53, %v3179_v60 }
0x100c   :  { %v4159_v61 = vpop.eup %4158 }
0x100d   :  { %v3154_v40 = vmul.f32 %v4159_v61, %v5582_v41  ;;  %v3167_v16 = vmul.f32 %v3397_v50, %v3153_v3  ;;  %3435 = vst [vmem:[#allocation25 + $0x8] sm:$0xff] %v3423_v25  }
0x100f   :  { %v3168_v37 = vmul.f32 %v3397_v50, %v3154_v40  ;;  %v3181_v5 = vadd.f32 %v3398_v15, %v3167_v16 }
0x1011   :  { %v3182_v48 = vadd.f32 %v3398_v15, %v3168_v37 }
0x1012   :  { %v4161_v42 = vpop.eup %4160 }
0x1013   :  { %v3155_v19 = vmul.f32 %v4161_v42, %v5588_v0  ;;  %v3428_v2 = vpack.c.bf16 %v3182_v48, %v3181_v5 }
0x1014   :  { %v4163_v6 = vpop.eup %4162 }
0x1015   :  { %v3169_v39 = vmul.f32 %v3397_v50, %v3155_v19  ;;  %v3156_v55 = vmul.f32 %v4163_v6, %v5590_v17  ;;  %3436 = vst [vmem:[#allocation25 + $0x10] sm:$0xff] %v3428_v2  }
0x1017   :  { %v3170_v9 = vmul.f32 %v3397_v50, %v3156_v55  ;;  %v3183_v35 = vadd.f32 %v3398_v15, %v3169_v39 }
0x1019   :  { %v3184_v58 = vadd.f32 %v3398_v15, %v3170_v9 }
0x101b   :  { %v3433_v41 = vpack.c.bf16 %v3184_v58, %v3183_v35 }
0x101d   :  { %3437 = vst [vmem:[#allocation25 + $0x18] sm:$0xff] %v3433_v41  }
0x101e   :  { %4491 = shalt.err (!%p4488_p4)
}
0x101f   :  { %s4492_s3 = scalar_lea.hbm %s5630_s14, 512 }
0x1020   :  { %p4493_p5 = scmp.ne.s32.totalorder %s5630_s14, %s4492_s3  ;;  %p4496_p6 = scmp.lt.u32.totalorder %s4492_s3, %s5630_s14 }
0x1022   :  { %p4498_p7 = pnand %p4496_p6, %p4493_p5 }
0x1024   :  { %4501 = shalt.err (!%p4498_p7)
}
0x1025   :  { %3236 = dma.vmem_to_hbm [thread:$0]  %s3231_s5, 512, %s5630_s14, [#allocation4], %s4533_s2, %s4533_s2, %s4534_s7  }
0x1026   :  { %4518 = dma.done.wait [#allocation4], 512  }
0x1027   :  { %4519 = vsyncadd [#allocation4], 4294966784 }
0x1028   :  { %3240 = vsyncpa [#allocation3], 1 }
0x1029   :  { %3241 = vsyncpa [#allocation6], 1 }
0x102a   :  { %3242 = vsyncpa [#allocation9], 1 }
0x102b   :  { %3243 = vsyncpa [#allocation12], 1 }
0x102c   :  { %3244 = vsyncpa [#allocation15], 1 }
0x102d   :  { %3245 = vsyncpa [#allocation18], 1 }
0x102e   :  { %3246 = vsyncpa [#allocation21], 1 }
0x102f   :  { %3247 = vsyncpa [#allocation24], 1 }
0x1030   :  { %3248 = vsyncpa [#allocation4], 1 }

// kernel: st_transformer_forward.5
= control target key start
LH: loop header
LB: loop body
LE: loop exit
PB: predicated region body
PF: predicated region fallthrough
CT: control target
= control target key end

     0   :  { %19 = vsyncpa [#allocation3], 0  ;;  %s5609_s0 = inlined_call_operand.hbm [shape: bf16[64,128], index: 0, kind: input, shape index: {}]   ;;  %s5610_s1 = inlined_call_operand.hbm [shape: f32[64,64], index: 1, kind: input, shape index: {}]   ;;  %s5611_s2 = inlined_call_operand.hbm [shape: bf16[128,384], index: 2, kind: input, shape index: {}]   ;;  %s5612_s3 = inlined_call_operand.hbm [shape: f32[1,384], index: 3, kind: input, shape index: {}]   ;;  %s5613_s4 = inlined_call_operand.hbm [shape: bf16[128,128], index: 4, kind: input, shape index: {}]   ;;  %s5614_s5 = inlined_call_operand.hbm [shape: f32[1,128], index: 5, kind: input, shape index: {}]   ;;  %s5615_s6 = inlined_call_operand.hbm [shape: bf16[128,512], index: 6, kind: input, shape index: {}]   ;;  %s5616_s7 = inlined_call_operand.hbm [shape: f32[1,512], index: 7, kind: input, shape index: {}]   ;;  %s5617_s8 = inlined_call_operand.hbm [shape: bf16[512,128], index: 8, kind: input, shape index: {}]   ;;  %s5618_s9 = inlined_call_operand.hbm [shape: f32[1,128], index: 9, kind: input, shape index: {}]   ;;  %s5619_s10 = inlined_call_operand.hbm [shape: f32[1,128], index: 10, kind: input, shape index: {}]   ;;  %s5620_s11 = inlined_call_operand.hbm [shape: f32[1,128], index: 11, kind: input, shape index: {}]   ;;  %s5621_s12 = inlined_call_operand.hbm [shape: f32[1,128], index: 12, kind: input, shape index: {}]   ;;  %s5622_s13 = inlined_call_operand.hbm [shape: f32[1,128], index: 13, kind: input, shape index: {}]   ;;  %s5623_s14 = inlined_call_operand.hbm [shape: bf16[64,128], index: 14, kind: output, shape index: {}]  }
   0x1   :  { %20 = vsyncpa [#allocation6], 0 }
   0x2   :  { %21 = vsyncpa [#allocation9], 0 }
   0x3   :  { %22 = vsyncpa [#allocation12], 0 }
   0x4   :  { %23 = vsyncpa [#allocation15], 0 }
   0x5   :  { %24 = vsyncpa [#allocation18], 0 }
   0x6   :  { %25 = vsyncpa [#allocation21], 0 }
   0x7   :  { %26 = vsyncpa [#allocation24], 0 }
   0x8   :  { %27 = vsyncpa [#allocation4], 0  ;;  %s4556_s29 = smov [#allocation5]   ;;  %s4208_s17 = scalar_lea.hbm %s5610_s1, 1024 }
   0x9   :  { %s45_s30 = sshll.u32 %s4556_s29, 4  ;;  %p4209_p0 = scmp.ne.s32.totalorder %s5610_s1, %s4208_s17  ;;  %s46_s30 = int_to_ptr.vmem [resolvable:$true] %s45_s30 }
   0xa   :  { %p4212_p1 = scmp.lt.u32.totalorder %s4208_s17, %s5610_s1 }
   0xc   :  { %p4214_p2 = pnand %p4212_p1, %p4209_p0 }
   0xe   :  { %4217 = shalt.err (!%p4214_p2)
}
   0xf   :  { %s4218_s22 = scalar_lea.vmem %s46_s30, 1024  ;;  %p4223_p4 = scmp.lt.s32.totalorder %s46_s30, %s46_s30 }
  0x10   :  { %p4219_p3 = scmp.ne.s32.totalorder %s46_s30, %s4218_s22  ;;  %p4224_p5 = scmp.lt.s32.totalorder %s4218_s22, %s4218_s22 }
  0x12   :  { %p4225_p6 = por %p4224_p5, %p4223_p4 }
  0x14   :  { %p4226_p7 = pnand %p4225_p6, %p4219_p3 }
  0x16   :  { %4229 = shalt.err (!%p4226_p7)
}
  0x17   :  { %s4557_s23 = smov 128   ;;  %s4558_s24 = smov 8  }
  0x18   :  { %51 = dma.hbm_to_vmem [thread:$0]  %s5610_s1, 1024, %s46_s30, [#allocation6], %s4557_s23, %s4557_s23, %s4558_s24  }
  0x19   :  { %s4559_s27 = smov [#allocation8]   ;;  %s4560_s29 = smov [#allocation11]  }
  0x1a   :  { %s70_s28 = sshll.u32 %s4559_s27, 4  ;;  %s92_s15 = sshll.u32 %s4560_s29, 4  ;;  %s71_s28 = int_to_ptr.vmem [resolvable:$true] %s70_s28  ;;  %s93_s15 = int_to_ptr.vmem [resolvable:$true] %s92_s15 }
  0x1b   :  { %s4230_s18 = scalar_lea.hbm %s5612_s3, 48 }
  0x1c   :  { %p4231_p8 = scmp.ne.s32.totalorder %s5612_s3, %s4230_s18  ;;  %p4234_p9 = scmp.lt.u32.totalorder %s4230_s18, %s5612_s3 }
  0x1e   :  { %p4236_p10 = pnand %p4234_p9, %p4231_p8 }
  0x20   :  { %4239 = shalt.err (!%p4236_p10)
}
  0x21   :  { %s4240_s1 = scalar_lea.vmem %s71_s28, 48  ;;  %s4244_s30 = scalar_lea.vmem %s71_s28, 64 }
  0x22   :  { %p4241_p11 = scmp.ne.s32.totalorder %s71_s28, %s4240_s1  ;;  %p4245_p12 = scmp.lt.s32.totalorder %s71_s28, %s71_s28 }
  0x23   :  { %p4246_p13 = scmp.lt.s32.totalorder %s4244_s30, %s4240_s1 }
  0x25   :  { %p4247_p0 = por %p4246_p13, %p4245_p12 }
  0x27   :  { %p4248_p1 = pnand %p4247_p0, %p4241_p11 }
  0x29   :  { %4251 = shalt.err (!%p4248_p1)
}
  0x2a   :  { %73 = dma.hbm_to_vmem [thread:$0]  %s5612_s3, 48, %s71_s28, [#allocation9]  }
  0x2b   :  { %s4252_s27 = scalar_lea.hbm %s5614_s5, 16 }
  0x2c   :  { %p4253_p2 = scmp.ne.s32.totalorder %s5614_s5, %s4252_s27  ;;  %p4256_p3 = scmp.lt.u32.totalorder %s4252_s27, %s5614_s5 }
  0x2e   :  { %p4258_p4 = pnand %p4256_p3, %p4253_p2 }
  0x30   :  { %4261 = shalt.err (!%p4258_p4)
}
  0x31   :  { %s4262_s19 = scalar_lea.vmem %s93_s15, 16  ;;  %s4266_s20 = scalar_lea.vmem %s93_s15, 32 }
  0x32   :  { %p4263_p5 = scmp.ne.s32.totalorder %s93_s15, %s4262_s19  ;;  %p4267_p6 = scmp.lt.s32.totalorder %s93_s15, %s93_s15 }
  0x33   :  { %p4268_p7 = scmp.lt.s32.totalorder %s4266_s20, %s4262_s19 }
  0x35   :  { %p4269_p8 = por %p4268_p7, %p4267_p6 }
  0x37   :  { %p4270_p9 = pnand %p4269_p8, %p4263_p5 }
  0x39   :  { %4273 = shalt.err (!%p4270_p9)
}
  0x3a   :  { %95 = dma.hbm_to_vmem [thread:$0]  %s5614_s5, 16, %s93_s15, [#allocation12]  }
  0x3b   :  { %s4561_s21 = smov [#allocation14]   ;;  %s4562_s1 = smov [#allocation17]  }
  0x3c   :  { %s114_s22 = sshll.u32 %s4561_s21, 4  ;;  %s136_s30 = sshll.u32 %s4562_s1, 4  ;;  %s115_s22 = int_to_ptr.vmem [resolvable:$true] %s114_s22  ;;  %s137_s30 = int_to_ptr.vmem [resolvable:$true] %s136_s30 }
  0x3d   :  { %s4274_s25 = scalar_lea.hbm %s5616_s7, 64 }
  0x3e   :  { %p4275_p10 = scmp.ne.s32.totalorder %s5616_s7, %s4274_s25  ;;  %p4278_p11 = scmp.lt.u32.totalorder %s4274_s25, %s5616_s7 }
  0x40   :  { %p4280_p12 = pnand %p4278_p11, %p4275_p10 }
  0x42   :  { %4283 = shalt.err (!%p4280_p12)
}
  0x43   :  { %s4284_s5 = scalar_lea.vmem %s115_s22, 64  ;;  %p4289_p0 = scmp.lt.s32.totalorder %s115_s22, %s115_s22 }
  0x44   :  { %p4285_p13 = scmp.ne.s32.totalorder %s115_s22, %s4284_s5  ;;  %p4290_p1 = scmp.lt.s32.totalorder %s4284_s5, %s4284_s5 }
  0x46   :  { %p4291_p2 = por %p4290_p1, %p4289_p0 }
  0x48   :  { %p4292_p3 = pnand %p4291_p2, %p4285_p13 }
  0x4a   :  { %4295 = shalt.err (!%p4292_p3)
}
  0x4b   :  { %117 = dma.hbm_to_vmem [thread:$0]  %s5616_s7, 64, %s115_s22, [#allocation15]  }
  0x4c   :  { %s4296_s20 = scalar_lea.hbm %s5618_s9, 16 }
  0x4d   :  { %p4297_p4 = scmp.ne.s32.totalorder %s5618_s9, %s4296_s20  ;;  %p4300_p5 = scmp.lt.u32.totalorder %s4296_s20, %s5618_s9 }
  0x4f   :  { %p4302_p6 = pnand %p4300_p5, %p4297_p4 }
  0x51   :  { %4305 = shalt.err (!%p4302_p6)
}
  0x52   :  { %s4306_s23 = scalar_lea.vmem %s137_s30, 16  ;;  %s4310_s24 = scalar_lea.vmem %s137_s30, 32 }
  0x53   :  { %p4307_p7 = scmp.ne.s32.totalorder %s137_s30, %s4306_s23  ;;  %p4311_p8 = scmp.lt.s32.totalorder %s137_s30, %s137_s30 }
  0x54   :  { %p4312_p9 = scmp.lt.s32.totalorder %s4310_s24, %s4306_s23 }
  0x56   :  { %p4313_p10 = por %p4312_p9, %p4311_p8 }
  0x58   :  { %p4314_p11 = pnand %p4313_p10, %p4307_p7 }
  0x5a   :  { %4317 = shalt.err (!%p4314_p11)
}
  0x5b   :  { %139 = dma.hbm_to_vmem [thread:$0]  %s5618_s9, 16, %s137_s30, [#allocation18]  }
  0x5c   :  { %s4563_s25 = smov [#allocation20]   ;;  %s4564_s27 = smov [#allocation2]  }
  0x5d   :  { %s156_s26 = sshll.u32 %s4563_s25, 4  ;;  %s33_s29 = sshll.u32 %s4564_s27, 4  ;;  %s157_s26 = int_to_ptr.vmem [resolvable:$true] %s156_s26  ;;  %s34_s29 = int_to_ptr.vmem [resolvable:$true] %s33_s29 }
  0x5e   :  { %s4318_s15 = scalar_lea.hbm %s5620_s11, 16 }
  0x5f   :  { %p4319_p12 = scmp.ne.s32.totalorder %s5620_s11, %s4318_s15  ;;  %p4322_p13 = scmp.lt.u32.totalorder %s4318_s15, %s5620_s11 }
  0x61   :  { %p4324_p0 = pnand %p4322_p13, %p4319_p12 }
  0x63   :  { %4327 = shalt.err (!%p4324_p0)
}
  0x64   :  { %s4328_s9 = scalar_lea.vmem %s157_s26, 16  ;;  %s4332_s30 = scalar_lea.vmem %s157_s26, 32 }
  0x65   :  { %p4329_p1 = scmp.ne.s32.totalorder %s157_s26, %s4328_s9  ;;  %p4333_p2 = scmp.lt.s32.totalorder %s157_s26, %s157_s26 }
  0x66   :  { %p4334_p3 = scmp.lt.s32.totalorder %s4332_s30, %s4328_s9 }
  0x68   :  { %p4335_p4 = por %p4334_p3, %p4333_p2 }
  0x6a   :  { %p4336_p5 = pnand %p4335_p4, %p4329_p1 }
  0x6c   :  { %4339 = shalt.err (!%p4336_p5)
}
  0x6d   :  { %159 = dma.hbm_to_vmem [thread:$0]  %s5620_s11, 16, %s157_s26, [#allocation21]  }
  0x6e   :  { %s4340_s23 = scalar_lea.hbm %s5609_s0, 512 }
  0x6f   :  { %p4341_p6 = scmp.ne.s32.totalorder %s5609_s0, %s4340_s23  ;;  %p4344_p7 = scmp.lt.u32.totalorder %s4340_s23, %s5609_s0 }
  0x71   :  { %p4346_p8 = pnand %p4344_p7, %p4341_p6 }
  0x73   :  { %4349 = shalt.err (!%p4346_p8)
}
  0x74   :  { %s4350_s27 = scalar_lea.vmem %s34_s29, 512  ;;  %p4355_p10 = scmp.lt.s32.totalorder %s34_s29, %s34_s29 }
  0x75   :  { %p4351_p9 = scmp.ne.s32.totalorder %s34_s29, %s4350_s27  ;;  %p4356_p11 = scmp.lt.s32.totalorder %s4350_s27, %s4350_s27 }
  0x77   :  { %p4357_p12 = por %p4356_p11, %p4355_p10 }
  0x79   :  { %p4358_p13 = pnand %p4357_p12, %p4351_p9 }
  0x7b   :  { %4361 = shalt.err (!%p4358_p13)
}
  0x7c   :  { %s4565_s11 = smov 64   ;;  %s4566_s26 = smov 4  }
  0x7d   :  { %39 = dma.hbm_to_vmem [thread:$0]  %s5609_s0, 512, %s34_s29, [#allocation3], %s4565_s11, %s4565_s11, %s4566_s26  }
  0x7e   :  { %s4567_s15 = smov [#allocation7]   ;;  %s4362_s20 = scalar_lea.hbm %s5611_s2, 3072 }
  0x7f   :  { %s57_s17 = sshll.u32 %s4567_s15, 4  ;;  %p4363_p0 = scmp.ne.s32.totalorder %s5611_s2, %s4362_s20  ;;  %s58_s17 = int_to_ptr.vmem [resolvable:$true] %s57_s17 }
  0x80   :  { %p4366_p1 = scmp.lt.u32.totalorder %s4362_s20, %s5611_s2 }
  0x82   :  { %p4368_p2 = pnand %p4366_p1, %p4363_p0 }
  0x84   :  { %4371 = shalt.err (!%p4368_p2)
}
  0x85   :  { %s4372_s21 = scalar_lea.vmem %s58_s17, 3072  ;;  %p4377_p4 = scmp.lt.s32.totalorder %s58_s17, %s58_s17 }
  0x86   :  { %p4373_p3 = scmp.ne.s32.totalorder %s58_s17, %s4372_s21  ;;  %p4378_p5 = scmp.lt.s32.totalorder %s4372_s21, %s4372_s21 }
  0x88   :  { %p4379_p6 = por %p4378_p5, %p4377_p4 }
  0x8a   :  { %p4380_p7 = pnand %p4379_p6, %p4373_p3 }
  0x8c   :  { %4383 = shalt.err (!%p4380_p7)
}
  0x8d   :  { %s4568_s0 = smov 192   ;;  %s4569_s29 = smov 12  }
  0x8e   :  { %63 = dma.hbm_to_vmem [thread:$0]  %s5611_s2, 3072, %s58_s17, [#allocation6], %s4568_s0, %s4568_s0, %s4569_s29  }
  0x8f   :  { %s4570_s24 = smov [#allocation10]   ;;  %s4571_s22 = smov [#allocation13]  }
  0x90   :  { %s79_s7 = sshll.u32 %s4570_s24, 4  ;;  %s101_s25 = sshll.u32 %s4571_s22, 4  ;;  %s80_s7 = int_to_ptr.vmem [resolvable:$true] %s79_s7  ;;  %s4756_s25 = int_to_ptr.vmem [resolvable:$true] %s101_s25 }
  0x91   :  { %s4384_s5 = scalar_lea.hbm %s5613_s4, 1024 }
  0x92   :  { %p4385_p8 = scmp.ne.s32.totalorder %s5613_s4, %s4384_s5  ;;  %p4388_p9 = scmp.lt.u32.totalorder %s4384_s5, %s5613_s4 }
  0x94   :  { %p4390_p10 = pnand %p4388_p9, %p4385_p8 }
  0x96   :  { %4393 = shalt.err (!%p4390_p10)
}
  0x97   :  { %s4394_s2 = scalar_lea.vmem %s80_s7, 1024  ;;  %p4399_p12 = scmp.lt.s32.totalorder %s80_s7, %s80_s7 }
  0x98   :  { %p4395_p11 = scmp.ne.s32.totalorder %s80_s7, %s4394_s2  ;;  %p4400_p13 = scmp.lt.s32.totalorder %s4394_s2, %s4394_s2 }
  0x9a   :  { %p4401_p0 = por %p4400_p13, %p4399_p12 }
  0x9c   :  { %p4402_p1 = pnand %p4401_p0, %p4395_p11 }
  0x9e   :  { %4405 = shalt.err (!%p4402_p1)
}
  0x9f   :  { %85 = dma.hbm_to_vmem [thread:$0]  %s5613_s4, 1024, %s80_s7, [#allocation9], %s4565_s11, %s4565_s11, %s4566_s26  }
  0xa0   :  { %s4406_s28 = scalar_lea.hbm %s5615_s6, 4096 }
  0xa1   :  { %p4407_p2 = scmp.ne.s32.totalorder %s5615_s6, %s4406_s28  ;;  %p4410_p3 = scmp.lt.u32.totalorder %s4406_s28, %s5615_s6 }
  0xa3   :  { %p4412_p4 = pnand %p4410_p3, %p4407_p2 }
  0xa5   :  { %4415 = shalt.err (!%p4412_p4)
}
  0xa6   :  { %s4416_s23 = scalar_lea.vmem %s4756_s25, 4096  ;;  %p4421_p6 = scmp.lt.s32.totalorder %s4756_s25, %s4756_s25 }
  0xa7   :  { %p4417_p5 = scmp.ne.s32.totalorder %s4756_s25, %s4416_s23  ;;  %p4422_p7 = scmp.lt.s32.totalorder %s4416_s23, %s4416_s23 }
  0xa9   :  { %p4423_p8 = por %p4422_p7, %p4421_p6 }
  0xab   :  { %p4424_p9 = pnand %p4423_p8, %p4417_p5 }
  0xad   :  { %4427 = shalt.err (!%p4424_p9)
}
  0xae   :  { %s4572_s4 = smov 256   ;;  %s4573_s24 = smov 16  }
  0xaf   :  { %107 = dma.hbm_to_vmem [thread:$0]  %s5615_s6, 4096, %s4756_s25, [#allocation12], %s4572_s4, %s4572_s4, %s4573_s24  }
  0xb0   :  { %s4574_s27 = smov [#allocation16]   ;;  %s4575_s5 = smov [#allocation19]  }
  0xb1   :  { %s123_s16 = sshll.u32 %s4574_s27, 4  ;;  %s146_s15 = sshll.u32 %s4575_s5, 4  ;;  %s124_s16 = int_to_ptr.vmem [resolvable:$true] %s123_s16  ;;  %s147_s15 = int_to_ptr.vmem [resolvable:$true] %s146_s15 }
  0xb2   :  { %s4428_s20 = scalar_lea.hbm %s5617_s8, 4096 }
  0xb3   :  { %p4429_p10 = scmp.ne.s32.totalorder %s5617_s8, %s4428_s20  ;;  %p4432_p11 = scmp.lt.u32.totalorder %s4428_s20, %s5617_s8 }
  0xb5   :  { %p4434_p12 = pnand %p4432_p11, %p4429_p10 }
  0xb7   :  { %4437 = shalt.err (!%p4434_p12)
}
  0xb8   :  { %s4438_s6 = scalar_lea.vmem %s124_s16, 4096  ;;  %p4443_p0 = scmp.lt.s32.totalorder %s124_s16, %s124_s16 }
  0xb9   :  { %p4439_p13 = scmp.ne.s32.totalorder %s124_s16, %s4438_s6  ;;  %p4444_p1 = scmp.lt.s32.totalorder %s4438_s6, %s4438_s6 }
  0xbb   :  { %p4445_p2 = por %p4444_p1, %p4443_p0 }
  0xbd   :  { %p4446_p3 = pnand %p4445_p2, %p4439_p13 }
  0xbf   :  { %4449 = shalt.err (!%p4446_p3)
}
  0xc0   :  { %129 = dma.hbm_to_vmem [thread:$0]  %s5617_s8, 4096, %s124_s16, [#allocation15], %s4565_s11, %s4565_s11, %s4566_s26  }
  0xc1   :  { %s4450_s0 = scalar_lea.hbm %s5619_s10, 16 }
  0xc2   :  { %p4451_p4 = scmp.ne.s32.totalorder %s5619_s10, %s4450_s0  ;;  %p4454_p5 = scmp.lt.u32.totalorder %s4450_s0, %s5619_s10 }
  0xc4   :  { %p4456_p6 = pnand %p4454_p5, %p4451_p4 }
  0xc6   :  { %4459 = shalt.err (!%p4456_p6)
}
  0xc7   :  { %s4460_s24 = scalar_lea.vmem %s147_s15, 16  ;;  %s4464_s7 = scalar_lea.vmem %s147_s15, 32 }
  0xc8   :  { %p4461_p7 = scmp.ne.s32.totalorder %s147_s15, %s4460_s24  ;;  %p4465_p8 = scmp.lt.s32.totalorder %s147_s15, %s147_s15 }
  0xc9   :  { %p4466_p9 = scmp.lt.s32.totalorder %s4464_s7, %s4460_s24 }
  0xcb   :  { %p4467_p10 = por %p4466_p9, %p4465_p8 }
  0xcd   :  { %p4468_p11 = pnand %p4467_p10, %p4461_p7 }
  0xcf   :  { %4471 = shalt.err (!%p4468_p11)
}
  0xd0   :  { %149 = dma.hbm_to_vmem [thread:$0]  %s5619_s10, 16, %s147_s15, [#allocation18]  }
  0xd1   :  { %s4576_s27 = smov [#allocation22]   ;;  %s4577_s5 = smov [#allocation23]  }
  0xd2   :  { %s166_s16 = sshll.u32 %s4576_s27, 4  ;;  %s176_s18 = sshll.u32 %s4577_s5, 4  ;;  %s167_s16 = int_to_ptr.vmem [resolvable:$true] %s166_s16  ;;  %s177_s18 = int_to_ptr.vmem [resolvable:$true] %s176_s18 }
  0xd3   :  { %s4472_s2 = scalar_lea.hbm %s5621_s12, 16 }
  0xd4   :  { %p4473_p12 = scmp.ne.s32.totalorder %s5621_s12, %s4472_s2  ;;  %p4476_p13 = scmp.lt.u32.totalorder %s4472_s2, %s5621_s12 }
  0xd6   :  { %p4478_p0 = pnand %p4476_p13, %p4473_p12 }
  0xd8   :  { %4481 = shalt.err (!%p4478_p0)
}
  0xd9   :  { %s4482_s10 = scalar_lea.vmem %s167_s16, 16  ;;  %s4486_s15 = scalar_lea.vmem %s167_s16, 32 }
  0xda   :  { %p4483_p1 = scmp.ne.s32.totalorder %s167_s16, %s4482_s10  ;;  %p4487_p2 = scmp.lt.s32.totalorder %s167_s16, %s167_s16 }
  0xdb   :  { %p4488_p3 = scmp.lt.s32.totalorder %s4486_s15, %s4482_s10 }
  0xdd   :  { %p4489_p4 = por %p4488_p3, %p4487_p2 }
  0xdf   :  { %p4490_p5 = pnand %p4489_p4, %p4483_p1 }
  0xe1   :  { %4493 = shalt.err (!%p4490_p5)
}
  0xe2   :  { %169 = dma.hbm_to_vmem [thread:$0]  %s5621_s12, 16, %s167_s16, [#allocation21]  }
  0xe3   :  { %s4494_s0 = scalar_lea.hbm %s5622_s13, 16 }
  0xe4   :  { %p4495_p6 = scmp.ne.s32.totalorder %s5622_s13, %s4494_s0  ;;  %p4498_p7 = scmp.lt.u32.totalorder %s4494_s0, %s5622_s13 }
  0xe6   :  { %p4500_p8 = pnand %p4498_p7, %p4495_p6 }
  0xe8   :  { %4503 = shalt.err (!%p4500_p8)
}
  0xe9   :  { %s4504_s24 = scalar_lea.vmem %s177_s18, 16  ;;  %s4508_s7 = scalar_lea.vmem %s177_s18, 32 }
  0xea   :  { %p4505_p9 = scmp.ne.s32.totalorder %s177_s18, %s4504_s24  ;;  %p4509_p10 = scmp.lt.s32.totalorder %s177_s18, %s177_s18 }
  0xeb   :  { %p4510_p11 = scmp.lt.s32.totalorder %s4508_s7, %s4504_s24 }
  0xed   :  { %p4511_p12 = por %p4510_p11, %p4509_p10 }
  0xef   :  { %p4512_p13 = pnand %p4511_p12, %p4505_p9 }
  0xf1   :  { %4515 = shalt.err (!%p4512_p13)
}
  0xf2   :  { %179 = dma.hbm_to_vmem [thread:$0]  %s5622_s13, 16, %s177_s18, [#allocation24]  }
  0xf3   :  { %4538 = dma.done.wait [#allocation3], 512  }
  0xf4   :  { %4539 = vsyncadd [#allocation3], 4294966784 }
  0xf5   :  { %4540 = dma.done.wait [#allocation6], 4096  }
  0xf6   :  { %4541 = vsyncadd [#allocation6], 4294963200 }
  0xf7   :  { %4542 = dma.done.wait [#allocation9], 1072  }
  0xf8   :  { %4543 = vsyncadd [#allocation9], 4294966224 }
  0xf9   :  { %4544 = dma.done.wait [#allocation12], 4112  }
  0xfa   :  { %4545 = vsyncadd [#allocation12], 4294963184 }
  0xfb   :  { %4546 = dma.done.wait [#allocation15], 4160  }
  0xfc   :  { %4547 = vsyncadd [#allocation15], 4294963136 }
  0xfd   :  { %4548 = dma.done.wait [#allocation18], 32  }
  0xfe   :  { %4549 = vsyncadd [#allocation18], 4294967264 }
  0xff   :  { %4550 = dma.done.wait [#allocation21], 32  }
 0x100   :  { %4551 = vsyncadd [#allocation21], 4294967264 }
 0x101   :  { %4552 = dma.done.wait [#allocation24], 16  }
 0x102   :  { %4553 = vsyncadd [#allocation24], 4294967280  ;;  %v4578_v0 = vmov 0   ;;  %v3908_v1 = vld [vmem:[#allocation7 + $0x4] ss:$12 sps:$4 sm:$0xff]   ;;  %v4842_v18 = vld [vmem:[#allocation2 + $0x8] sm:$0xff]   ;;  %v273_v21 = vlaneseq }
 0x103   :  { %472 = vmatprep.mubr.bf16.mxu0 %v4578_v0  ;;  %v3910_v2 = vld [vmem:[#allocation7] ss:$12 sps:$4 sm:$0xff]   ;;  %440 = vmatprep.subr.bf16.mxu0 %v3908_v1  ;;  %v3911_v3 = vld [vmem:[#allocation7 + $0x1c] ss:$12 sps:$4 sm:$0xff]   ;;  %v3913_v4 = vld [vmem:[#allocation7 + $0x18] ss:$12 sps:$4 sm:$0xff]  }
 0x104   :  { %441 = vmatpush1.bf16.msra.mxu0 %v3910_v2  ;;  %v3914_v5 = vld [vmem:[#allocation7 + $0x34] ss:$12 sps:$4 sm:$0xff]   ;;  %v3916_v6 = vld [vmem:[#allocation7 + $0x30] ss:$12 sps:$4 sm:$0xff]   ;;  %v3917_v7 = vld [vmem:[#allocation7 + $0x4c] ss:$12 sps:$4 sm:$0xff]  }
 0x105   :  { %442 = vmatprep.subr.bf16.mxu0 %v3911_v3  ;;  %v223_v8 = vld [vmem:[#allocation2] sm:$0xff]   ;;  %v3919_v9 = vld [vmem:[#allocation7 + $0x48] ss:$12 sps:$4 sm:$0xff]   ;;  %v3928_v15 = vld [vmem:[#allocation7 + $0x90] ss:$12 sps:$4 sm:$0xff]   ;;  %v4854_v22 = vshrl.u32 %v273_v21, 7 }
 0x106   :  { %v3920_v10 = vld [vmem:[#allocation7 + $0x64] ss:$12 sps:$4 sm:$0xff]   ;;  %v3922_v11 = vld [vmem:[#allocation7 + $0x60] ss:$12 sps:$4 sm:$0xff]   ;;  %3658 = vmatprep.mubr.bf16.mxu1 %v223_v8  ;;  %v3923_v12 = vld [vmem:[#allocation7 + $0x7c] ss:$12 sps:$4 sm:$0xff]  }
 0x107   :  { %v3925_v13 = vld [vmem:[#allocation7 + $0x78] ss:$12 sps:$4 sm:$0xff]   ;;  %v3926_v14 = vld [vmem:[#allocation7 + $0x94] ss:$12 sps:$4 sm:$0xff]   ;;  %v275_v23 = vsub.s32 0, %v4854_v22  ;;  %v279_v25 = vsub.s32 1, %v4854_v22 }
 0x108   :  { %443 = vmatpush1.bf16.msra.mxu0 %v3913_v4  ;;  %v3929_v16 = vld [vmem:[#allocation7 + $0xac] ss:$12 sps:$4 sm:$0xff]   ;;  %v3931_v17 = vld [vmem:[#allocation7 + $0xa8] ss:$12 sps:$4 sm:$0xff]   ;;  %v4857_v24 = vld [vmem:[#allocation8] sm:$0x7] }
 0x109   :  { %444 = vmatprep.subr.bf16.mxu0 %v3914_v5  ;;  %v4845_v19 = vld [vmem:[#allocation2 + $0x10] sm:$0xff]   ;;  %v4849_v20 = vld [vmem:[#allocation2 + $0x18] sm:$0xff]   ;;  %v276_v26 = vrot.slane %v4857_v24, %v275_v23  ;;  %v280_v28 = vrot.slane %v4857_v24, %v279_v25  ;;  %vm614_vm0 = vcmask 261120   ;;  %v4911_v21 = vld [vmem:[#allocation5] sm:$0xff]  ;;  %vm704_vm1 = vcmask 523264   ;;  %s4579_s13 = smov 96  }
 0x10a   :  { %s4580_s22 = smov 32   ;;  %s4581_s27 = smov [#allocation25]  }
 0x10b   :  { %s3250_s16 = sshll.u32 %s4581_s27, 4  ;;  %s3251_s16 = int_to_ptr.vmem [resolvable:$true] %s3250_s16 }
 0x10c   :  { %445 = vmatpush1.bf16.msra.mxu0 %v3916_v6  ;;  %s4516_s5 = scalar_lea.vmem %s3251_s16, 512  ;;  %p4521_p1 = scmp.lt.s32.totalorder %s3251_s16, %s3251_s16 }
 0x10d   :  { %446 = vmatprep.subr.bf16.mxu0 %v3917_v7  ;;  %p4517_p0 = scmp.ne.s32.totalorder %s3251_s16, %s4516_s5  ;;  %p4522_p2 = scmp.lt.s32.totalorder %s4516_s5, %s4516_s5 }
 0x10f   :  { %p4523_p3 = por %p4522_p2, %p4521_p1 }
 0x110   :  { %447 = vmatpush1.bf16.msra.mxu0 %v3919_v9  ;;  %v3936_v9 = vld [vmem:[#allocation7 + $0x8] ss:$12 sps:$4 sm:$0xff]  }
 0x111   :  { %448 = vmatprep.subr.bf16.mxu0 %v3920_v10  ;;  %v3937_v10 = vld [vmem:[#allocation7 + $0x20] ss:$12 sps:$4 sm:$0xff]   ;;  %3642 = vmatprep.subr.bf16.mxu1 %v3936_v9  ;;  %p4524_p4 = pnand %p4523_p3, %p4517_p0 }
 0x112   :  { %3643 = vmatpush3.bf16.msra.mxu1 %v3936_v9 }
 0x113   :  { %3644 = vmatprep.subr.bf16.mxu1 %v3937_v10 }
 0x114   :  { %449 = vmatpush1.bf16.msra.mxu0 %v3922_v11  ;;  %v3938_v11 = vld [vmem:[#allocation7 + $0x38] ss:$12 sps:$4 sm:$0xff]  }
 0x115   :  { %450 = vmatprep.subr.bf16.mxu0 %v3923_v12  ;;  %v3939_v12 = vld [vmem:[#allocation7 + $0x50] ss:$12 sps:$4 sm:$0xff]  }
 0x116   :  { %3645 = vmatpush3.bf16.msra.mxu1 %v3937_v10 }
 0x117   :  { %3646 = vmatprep.subr.bf16.mxu1 %v3938_v11 }
 0x118   :  { %451 = vmatpush1.bf16.msra.mxu0 %v3925_v13  ;;  %v3940_v13 = vld [vmem:[#allocation7 + $0x68] ss:$12 sps:$4 sm:$0xff]  }
 0x119   :  { %452 = vmatprep.subr.bf16.mxu0 %v3926_v14  ;;  %v3941_v14 = vld [vmem:[#allocation7 + $0x80] ss:$12 sps:$4 sm:$0xff]  }
 0x11a   :  { %3647 = vmatpush3.bf16.msra.mxu1 %v3938_v11 }
 0x11b   :  { %3648 = vmatprep.subr.bf16.mxu1 %v3939_v12 }
 0x11c   :  { %453 = vmatpush1.bf16.msra.mxu0 %v3928_v15  ;;  %v3942_v15 = vld [vmem:[#allocation7 + $0x98] ss:$12 sps:$4 sm:$0xff]  }
 0x11d   :  { %454 = vmatprep.subr.bf16.mxu0 %v3929_v16  ;;  %v3943_v16 = vld [vmem:[#allocation7 + $0xb0] ss:$12 sps:$4 sm:$0xff]  }
 0x11e   :  { %3649 = vmatpush3.bf16.msra.mxu1 %v3939_v12 }
 0x11f   :  { %3650 = vmatprep.subr.bf16.mxu1 %v3940_v13 }
 0x120   :  { %455 = vmatpush1.bf16.msra.mxu0 %v3931_v17  ;;  %v4909_v17 = vld [vmem:[#allocation5 + $0x10] sm:$0xff] }
 0x122   :  { %3651 = vmatpush3.bf16.msra.mxu1 %v3940_v13 }
 0x123   :  { %473 = vmatmul.mubr.bf16.vlgmr.msra.gmra.mrb[0].mxu0 %v223_v8  ;;  %3652 = vmatprep.subr.bf16.mxu1 %v3941_v14 }
 0x124   :  { %482 = vmatprep.mubr.bf16.mxu0 %v4578_v0 }
 0x126   :  { %3653 = vmatpush3.bf16.msra.mxu1 %v3941_v14 }
 0x127   :  { %3654 = vmatprep.subr.bf16.mxu1 %v3942_v15 }
 0x12a   :  { %3655 = vmatpush3.bf16.msra.mxu1 %v3942_v15 }
 0x12b   :  { %483 = vmatmul.mubr.bf16.gmra.mrb[4].mxu0 %v4842_v18  ;;  %3656 = vmatprep.subr.bf16.mxu1 %v3943_v16 }
 0x12c   :  { %492 = vmatprep.mubr.bf16.mxu0 %v4578_v0 }
 0x12e   :  { %3657 = vmatpush3.bf16.msra.mxu1 %v3943_v16 }
 0x131   :  { %3659 = vmatmul.mubr.bf16.vlgmr.msra.gmra.mrb[0].mxu1 %v4842_v18 }
 0x132   :  { %3662 = vmatprep.mubr.bf16.mxu1 %v4845_v19 }
 0x133   :  { %493 = vmatmul.mubr.bf16.gmra.mrb[8].mxu0 %v4845_v19 }
 0x134   :  { %502 = vmatprep.mubr.bf16.mxu0 %v4578_v0 }
 0x139   :  { %3663 = vmatmul.mubr.bf16.gmra.mrb[4].mxu1 %v4849_v20 }
 0x13b   :  { %503 = vmatmul.mubr.bf16.gmra.mrb[12].mxu0 %v4849_v20 }
 0x1f6   :  { %v474_v27 = vpop.f32.mrb[0].mxu0 }
 0x1f7   :  { %v476_v29 = vpop.f32.mrb[1].mxu0  ;;  %v475_v31 = vadd.f32 %v474_v27, %v276_v26  ;;  %v4913_v27 = vld [vmem:[#allocation5 + $0x18] sm:$0xff] }
 0x1f8   :  { %v478_v30 = vpop.f32.mrb[2].mxu0  ;;  %v477_v34 = vadd.f32 %v476_v29, %v280_v28 }
 0x1f9   :  { %v479_v32 = vadd.f32 %v478_v30, %v276_v26  ;;  %v480_v33 = vpop.f32.mrb[3].mxu0  ;;  %v4916_v30 = vld [vmem:[#allocation5 + $0x8] sm:$0xff] }
 0x1fa   :  { %v481_v35 = vadd.f32 %v480_v33, %v280_v28 }
 0x1fb   :  { %v4866_v36 = vpack.c.bf16 %v479_v32, %v475_v31 }
 0x1fc   :  { %v4868_v37 = vpack.c.bf16 %v481_v35, %v477_v34 }
 0x1fd   :  { %3674 = vmatprep.mubr.msk.bf16.mxu0 %vm614_vm0, %v4866_v36 }
 0x1fe   :  { %v484_v38 = vpop.f32.mrb[4].mxu0  ;;  %3866 = vmatprep.subr.msk.bf16.mxu0 %vm614_vm0, %v4868_v37  ;;  %v628_v39 = vsel %vm614_vm0, %v4868_v37, 0 }
 0x1ff   :  { %v486_v40 = vpop.f32.mrb[5].mxu0  ;;  %3667 = vmatpush3.bf16.xpose.msra.mxu0 %v628_v39  ;;  %v485_v42 = vadd.f32 %v484_v38, %v276_v26  ;;  %v4924_v38 = vld [vmem:[#allocation5 + $0x20] sm:$0xff] }
 0x200   :  { %v488_v41 = vpop.f32.mrb[6].mxu0  ;;  %v487_v45 = vadd.f32 %v486_v40, %v280_v28 }
 0x201   :  { %v489_v43 = vadd.f32 %v488_v41, %v276_v26  ;;  %v490_v44 = vpop.f32.mrb[7].mxu0  ;;  %v4927_v41 = vld [vmem:[#allocation5 + $0x30] sm:$0xff] }
 0x202   :  { %v491_v46 = vadd.f32 %v490_v44, %v280_v28 }
 0x203   :  { %v4876_v47 = vpack.c.bf16 %v489_v43, %v485_v42  ;;  %v4929_v43 = vld [vmem:[#allocation5 + $0x28] sm:$0xff] }
 0x204   :  { %v4878_v48 = vpack.c.bf16 %v491_v46, %v487_v45  ;;  %v4932_v46 = vld [vmem:[#allocation5 + $0x38] sm:$0xff] }
 0x206   :  { %v494_v49 = vpop.f32.mrb[8].mxu0  ;;  %3867 = vmatprep.subr.msk.bf16.mxu0 %vm614_vm0, %v4878_v48  ;;  %v631_v50 = vsel %vm614_vm0, %v4878_v48, 0 }
 0x207   :  { %v496_v51 = vpop.f32.mrb[9].mxu0  ;;  %3669 = vmatpush3.bf16.xpose.msra.mxu0 %v631_v50  ;;  %v495_v53 = vadd.f32 %v494_v49, %v276_v26 }
 0x208   :  { %v498_v52 = vpop.f32.mrb[10].mxu0  ;;  %v497_v56 = vadd.f32 %v496_v51, %v280_v28 }
 0x209   :  { %v499_v54 = vadd.f32 %v498_v52, %v276_v26  ;;  %v500_v55 = vpop.f32.mrb[11].mxu0 }
 0x20a   :  { %v501_v57 = vadd.f32 %v500_v55, %v280_v28 }
 0x20b   :  { %v4884_v58 = vpack.c.bf16 %v499_v54, %v495_v53 }
 0x20c   :  { %v4886_v59 = vpack.c.bf16 %v501_v57, %v497_v56  ;;  %v283_v57 = vsub.s32 2, %v4854_v22 }
 0x20e   :  { %v504_v60 = vpop.f32.mrb[12].mxu0  ;;  %3868 = vmatprep.subr.msk.bf16.mxu0 %vm614_vm0, %v4886_v59  ;;  %v634_v61 = vsel %vm614_vm0, %v4886_v59, 0 }
 0x20f   :  { %v506_v62 = vpop.f32.mrb[13].mxu0  ;;  %3671 = vmatpush3.bf16.xpose.msra.mxu0 %v634_v61  ;;  %v505_v1 = vadd.f32 %v504_v60, %v276_v26  ;;  %v4951_v60 = vrot.slane %v4857_v24, %v283_v57  ;;  %v3660_v61 = vpop.f32.mrb[0].mxu1 }
 0x210   :  { %v508_v63 = vpop.f32.mrb[14].mxu0  ;;  %v507_v4 = vadd.f32 %v506_v62, %v280_v28 }
 0x211   :  { %v509_v2 = vadd.f32 %v508_v63, %v276_v26  ;;  %v510_v3 = vpop.f32.mrb[15].mxu0  ;;  %v556_v62 = vadd.f32 %v3660_v61, %v4951_v60  ;;  %v547_v63 = vpop.f32.mrb[1].mxu1 }
 0x212   :  { %v511_v5 = vadd.f32 %v510_v3, %v280_v28 }
 0x213   :  { %v4892_v6 = vpack.c.bf16 %v509_v2, %v505_v1  ;;  %v548_v1 = vadd.f32 %v547_v63, %v4951_v60  ;;  %v3661_v2 = vpop.f32.mrb[2].mxu1 }
 0x214   :  { %v4894_v7 = vpack.c.bf16 %v511_v5, %v507_v4  ;;  %v559_v3 = vadd.f32 %v3661_v2, %v4951_v60  ;;  %v550_v4 = vpop.f32.mrb[3].mxu1 }
 0x215   :  { %v551_v5 = vadd.f32 %v550_v4, %v4951_v60  ;;  %v3664_v61 = vpop.f32.mrb[4].mxu1 }
 0x216   :  { %3869 = vmatprep.subr.msk.bf16.mxu0 %vm614_vm0, %v4894_v7  ;;  %v637_v8 = vsel %vm614_vm0, %v4894_v7, 0 }
 0x217   :  { %3673 = vmatpush3.bf16.xpose.msra.mxu0 %v637_v8  ;;  %v4957_v8 = vpack.c.bf16 %v559_v3, %v556_v62  ;;  %v4959_v9 = vpack.c.bf16 %v551_v5, %v548_v1  ;;  %v563_v62 = vpop.f32.mrb[5].mxu1  ;;  %v572_v5 = vadd.f32 %v3664_v61, %v4951_v60 }
 0x218   :  { %v3665_v63 = vpop.f32.mrb[6].mxu1  ;;  %v564_v1 = vadd.f32 %v563_v62, %v4951_v60 }
 0x219   :  { %3682 = vmatprep.subr.bf16.mxu1 %v4959_v9  ;;  %v566_v2 = vpop.f32.mrb[7].mxu1 }
 0x21a   :  { %3683 = vmatpush3.bf16.msra.mxu1 %v4959_v9  ;;  %v567_v3 = vadd.f32 %v566_v2, %v4951_v60 }
 0x21b   :  { %3684 = vmatprep.subr.bf16.mxu1 %v4957_v8 }
 0x21c   :  { %v4991_v4 = vpack.c.bf16 %v567_v3, %v564_v1 }
 0x21e   :  { %3675 = vmatmul.mubr.msk.bf16.vlgmr.msra.gmra.mrb[16].mxu0 %vm614_vm0, %v4876_v47  ;;  %3685 = vmatpush3.bf16.msra.mxu1 %v4957_v8 }
 0x21f   :  { %3678 = vmatprep.mubr.msk.bf16.mxu0 %vm614_vm0, %v4884_v58  ;;  %3686 = vmatprep.subr.bf16.mxu1 %v4991_v4 }
 0x222   :  { %3687 = vmatpush3.bf16.msra.mxu1 %v4991_v4 }
 0x226   :  { %3679 = vmatmul.mubr.msk.bf16.gmra.mrb[20].mxu0 %vm614_vm0, %v4892_v6 }
 0x2f1   :  { %v3676_v26 = vpop.f32.mrb[16].mxu0 }
 0x2f2   :  { %v682_v28 = vadd.f32 %v3676_v26, %v4909_v17  ;;  %v673_v29 = vpop.f32.mrb[17].mxu0 }
 0x2f3   :  { %v674_v31 = vadd.f32 %v673_v29, %v4911_v21  ;;  %v3677_v18 = vpop.f32.mrb[18].mxu0 }
 0x2f4   :  { %v685_v19 = vadd.f32 %v3677_v18, %v4913_v27  ;;  %v676_v32 = vpop.f32.mrb[19].mxu0  ;;  %v711_v20 = vsel %vm704_vm1, %v682_v28, -inf }
 0x2f5   :  { %v677_v33 = vadd.f32 %v676_v32, %v4916_v30  ;;  %712 = vmax.xlane.f32.xlu1 %v711_v20  ;;  %v705_v34 = vsel %vm704_vm1, %v674_v31, -inf }
 0x2f6   :  { %706 = vmax.xlane.f32.xlu0 %v705_v34  ;;  %v714_v35 = vsel %vm704_vm1, %v685_v19, -inf }
 0x2f7   :  { %v708_v40 = vsel %vm704_vm1, %v677_v33, -inf }
 0x2f9   :  { %715 = vmax.xlane.f32.xlu1 %v714_v35  ;;  %v3680_v39 = vpop.f32.mrb[20].mxu0 }
 0x2fa   :  { %v689_v42 = vpop.f32.mrb[21].mxu0  ;;  %709 = vmax.xlane.f32.xlu0 %v708_v40  ;;  %v698_v50 = vadd.f32 %v3680_v39, %v4927_v41 }
 0x2fb   :  { %v690_v44 = vadd.f32 %v689_v42, %v4924_v38  ;;  %v3681_v45 = vpop.f32.mrb[22].mxu0 }
 0x2fc   :  { %v692_v49 = vpop.f32.mrb[23].mxu0  ;;  %v4940_v53 = vadd.f32 %v3681_v45, %v4932_v46  ;;  %v723_v55 = vsel %vm704_vm1, %v698_v50, -inf }
 0x2fd   :  { %v4936_v51 = vadd.f32 %v692_v49, %v4929_v43  ;;  %v717_v52 = vsel %vm704_vm1, %v690_v44, -inf }
 0x2fe   :  { %718 = vmax.xlane.f32.xlu0 %v717_v52  ;;  %v726_v56 = vsel %vm704_vm1, %v4940_v53, -inf }
 0x2ff   :  { %v720_v54 = vsel %vm704_vm1, %v4936_v51, -inf }
 0x300   :  { %721 = vmax.xlane.f32.xlu1 %v720_v54 }
 0x302   :  { %724 = vmax.xlane.f32.xlu0 %v723_v55 }
 0x304   :  { %727 = vmax.xlane.f32.xlu1 %v726_v56 }
 0x382   :  { %v713_v24 = vpop.xlane.xlu1 %712 }
 0x383   :  { %v731_v10 = vsub.f32 %v682_v28, %v713_v24  ;;  %v707_v11 = vpop.xlane.xlu0 %706  ;;  %v575_v24 = vadd.f32 %v3665_v63, %v4951_v60 }
 0x384   :  { %v729_v12 = vsub.f32 %v674_v31, %v707_v11 }
 0x385   :  { %v741_v13 = vmul.f32 1.442695, %v731_v10  ;;  %v4999_v10 = vpack.c.bf16 %v575_v24, %v572_v5 }
 0x386   :  { %v737_v14 = vmul.f32 1.442695, %v729_v12  ;;  %v716_v15 = vpop.xlane.xlu1 %715 }
 0x387   :  { %4036 = vpow2.f32 %v741_v13  ;;  %v732_v16 = vsub.f32 %v685_v19, %v716_v15  ;;  %v710_v26 = vpop.xlane.xlu0 %709  ;;  %3688 = vmatprep.subr.bf16.mxu1 %v4999_v10 }
 0x388   :  { %v730_v29 = vsub.f32 %v677_v33, %v710_v26  ;;  %4038 = vpow2.f32 %v737_v14  ;;  %3689 = vmatpush3.bf16.msra.mxu1 %v4999_v10 }
 0x389   :  { %v743_v18 = vmul.f32 1.442695, %v732_v16 }
 0x38a   :  { %v739_v32 = vmul.f32 1.442695, %v730_v29 }
 0x38b   :  { %4040 = vpow2.f32 %v743_v18  ;;  %v719_v20 = vpop.xlane.xlu0 %718 }
 0x38c   :  { %4042 = vpow2.f32 %v739_v32  ;;  %v733_v28 = vsub.f32 %v690_v44, %v719_v20 }
 0x38d   :  { %v722_v11 = vpop.xlane.xlu1 %721 }
 0x38e   :  { %v745_v31 = vmul.f32 1.442695, %v733_v28  ;;  %v734_v13 = vsub.f32 %v4936_v51, %v722_v11 }
 0x38f   :  { %v725_v34 = vpop.xlane.xlu0 %724 }
 0x390   :  { %v735_v35 = vsub.f32 %v698_v50, %v725_v34  ;;  %v747_v15 = vmul.f32 1.442695, %v734_v13 }
 0x391   :  { %v4965_v39 = vpop.eup %4036  ;;  %v728_v12 = vpop.xlane.xlu1 %727 }
 0x392   :  { %v749_v40 = vmul.f32 1.442695, %v735_v35  ;;  %v759_v42 = vsel %vm704_vm1, %v4965_v39, 0.0  ;;  %v4969_v45 = vpop.eup %4038  ;;  %v736_v60 = vsub.f32 %v4940_v53, %v728_v12 }
 0x393   :  { %760 = vadd.xlane.f32.xlu0 %v759_v42  ;;  %v753_v44 = vsel %vm704_vm1, %v4969_v45, 0.0 }
 0x394   :  { %4044 = vpow2.f32 %v749_v40  ;;  %v751_v14 = vmul.f32 1.442695, %v736_v60 }
 0x395   :  { %v4971_v19 = vpop.eup %4040  ;;  %4046 = vpow2.f32 %v745_v31 }
 0x396   :  { %v762_v33 = vsel %vm704_vm1, %v4971_v19, 0.0  ;;  %v4977_v49 = vpop.eup %4042  ;;  %4048 = vpow2.f32 %v751_v14 }
 0x397   :  { %763 = vadd.xlane.f32.xlu1 %v762_v33  ;;  %754 = vadd.xlane.f32.xlu0 %v753_v44  ;;  %v756_v50 = vsel %vm704_vm1, %v4977_v49, 0.0  ;;  %4050 = vpow2.f32 %v747_v15 }
 0x39b   :  { %757 = vadd.xlane.f32.xlu1 %v756_v50 }
 0x39e   :  { %v4981_v52 = vpop.eup %4044 }
 0x39f   :  { %v771_v54 = vsel %vm704_vm1, %v4981_v52, 0.0  ;;  %v4985_v55 = vpop.eup %4046 }
 0x3a0   :  { %772 = vadd.xlane.f32.xlu0 %v771_v54  ;;  %v765_v56 = vsel %vm704_vm1, %v4985_v55, 0.0  ;;  %v4049_v16 = vpop.eup %4048 }
 0x3a1   :  { %v774_v26 = vsel %vm704_vm1, %v4049_v16, 0.0  ;;  %v4051_v29 = vpop.eup %4050 }
 0x3a2   :  { %v768_v18 = vsel %vm704_vm1, %v4051_v29, 0.0 }
 0x3a4   :  { %766 = vadd.xlane.f32.xlu0 %v765_v56 }
 0x3ac   :  { %896 = vrot.lane.b32.xlu1 %v4878_v48, %s4579_s13 }
 0x3b0   :  { %898 = vrot.lane.b32.xlu1 %v4886_v59, %s4579_s13 }
 0x3ba   :  { %894 = vrot.lane.b32.xlu0 %v4868_v37, %s4579_s13 }
 0x3be   :  { %882 = vrot.lane.b32.xlu0 %v4866_v36, %s4579_s13 }
 0x3c2   :  { %886 = vrot.lane.b32.xlu0 %v4884_v58, %s4579_s13 }
 0x3d4   :  { %775 = vadd.xlane.f32.xlu1 %v774_v26 }
 0x3d8   :  { %769 = vadd.xlane.f32.xlu1 %v768_v18 }
 0x3e9   :  { %900 = vrot.lane.b32.xlu1 %v4894_v7, %s4579_s13 }
 0x3ed   :  { %884 = vrot.lane.b32.xlu1 %v4876_v47, %s4579_s13 }
 0x3f1   :  { %888 = vrot.lane.b32.xlu1 %v4892_v6, %s4579_s13 }
 0x420   :  { %v761_v51 = vpop.xlane.xlu0 %760 }
 0x424   :  { %v764_v53 = vpop.xlane.xlu1 %763  ;;  %v755_v32 = vpop.xlane.xlu0 %754 }
 0x425   :  { %4052 = vrcp.f32 %v764_v53 }
 0x426   :  { %4054 = vrcp.f32 %v755_v32 }
 0x427   :  { %4056 = vrcp.f32 %v761_v51 }
 0x428   :  { %v758_v20 = vpop.xlane.xlu1 %757 }
 0x429   :  { %4058 = vrcp.f32 %v758_v20 }
 0x42c   :  { %v897_v1 = vpop.permute.xlu1 %896 }
 0x42d   :  { %v773_v28 = vpop.xlane.xlu0 %772 }
 0x42f   :  { %v4053_v34 = vpop.eup %4052 }
 0x430   :  { %v4055_v35 = vpop.eup %4054  ;;  %v788_v33 = vmul.f32 %v4053_v34, %v4971_v19  ;;  %v899_v19 = vpop.permute.xlu1 %898 }
 0x431   :  { %v767_v31 = vpop.xlane.xlu0 %766  ;;  %v4057_v40 = vpop.eup %4056  ;;  %v785_v44 = vmul.f32 %v4055_v35, %v4969_v45  ;;  %v918_v45 = vsel %vm614_vm0, %v897_v1, 0 }
 0x432   :  { %v787_v54 = vmul.f32 %v4057_v40, %v4965_v39  ;;  %v921_v39 = vsel %vm614_vm0, %v899_v19, 0 }
 0x433   :  { %v4059_v42 = vpop.eup %4058 }
 0x434   :  { %v786_v50 = vmul.f32 %v4059_v42, %v4977_v49  ;;  %v794_v62 = vpack.c.bf16 %v788_v33, %v787_v54 }
 0x435   :  { %v895_v56 = vpop.permute.xlu0 %894 }
 0x436   :  { %3870 = vmatprep.subr.msk.bf16.mxu1 %vm614_vm0, %v895_v56  ;;  %v793_v61 = vpack.c.bf16 %v786_v50, %v785_v44  ;;  %v915_v63 = vsel %vm614_vm0, %v895_v56, 0 }
 0x438   :  { %3690 = vmatprep.mubr.msk.bf16.mxu1 %vm704_vm1, %v793_v61 }
 0x439   :  { %3691 = vmatmul.mubr.msk.bf16.vlgmr.msra.gmra.mrb[8].mxu1 %vm704_vm1, %v794_v62  ;;  %v883_v53 = vpop.permute.xlu0 %882 }
 0x43a   :  { %3699 = vmatpush3.bf16.xpose.msra.mxu1 %v915_v63 }
 0x43b   :  { %3871 = vmatprep.subr.msk.bf16.mxu1 %vm614_vm0, %v897_v1 }
 0x43d   :  { %v887_v20 = vpop.permute.xlu0 %886 }
 0x442   :  { %3701 = vmatpush3.bf16.xpose.msra.mxu1 %v918_v45 }
 0x443   :  { %3872 = vmatprep.subr.msk.bf16.mxu1 %vm614_vm0, %v899_v19 }
 0x44a   :  { %3703 = vmatpush3.bf16.xpose.msra.mxu1 %v921_v39 }
 0x461   :  { %v776_v49 = vpop.xlane.xlu1 %775 }
 0x462   :  { %4060 = vrcp.f32 %v776_v49 }
 0x463   :  { %4062 = vrcp.f32 %v767_v31 }
 0x464   :  { %4064 = vrcp.f32 %v773_v28 }
 0x465   :  { %v770_v2 = vpop.xlane.xlu1 %769 }
 0x466   :  { %4066 = vrcp.f32 %v770_v2 }
 0x469   :  { %v901_v3 = vpop.permute.xlu1 %900 }
 0x46a   :  { %3873 = vmatprep.subr.msk.bf16.mxu1 %vm614_vm0, %v901_v3  ;;  %v924_v5 = vsel %vm614_vm0, %v901_v3, 0 }
 0x46b   :  { %3705 = vmatpush3.bf16.xpose.msra.mxu1 %v924_v5 }
 0x46c   :  { %v4061_v24 = vpop.eup %4060 }
 0x46d   :  { %v4063_v11 = vpop.eup %4062  ;;  %v792_v13 = vmul.f32 %v4061_v24, %v4049_v16  ;;  %v885_v32 = vpop.permute.xlu1 %884 }
 0x46e   :  { %v4065_v12 = vpop.eup %4064  ;;  %v789_v14 = vmul.f32 %v4063_v11, %v4985_v55 }
 0x46f   :  { %v791_v26 = vmul.f32 %v4065_v12, %v4981_v52 }
 0x470   :  { %v4067_v60 = vpop.eup %4066 }
 0x471   :  { %v790_v15 = vmul.f32 %v4067_v60, %v4051_v29  ;;  %v796_v51 = vpack.c.bf16 %v792_v13, %v791_v26  ;;  %v889_v16 = vpop.permute.xlu1 %888 }
 0x473   :  { %v795_v18 = vpack.c.bf16 %v790_v15, %v789_v14 }
 0x475   :  { %3694 = vmatprep.mubr.msk.bf16.mxu1 %vm704_vm1, %v795_v18 }
 0x476   :  { %3695 = vmatmul.mubr.msk.bf16.gmra.mrb[12].mxu1 %vm704_vm1, %v796_v51 }
 0x477   :  { %3706 = vmatprep.mubr.msk.bf16.mxu1 %vm614_vm0, %v883_v53 }
 0x47e   :  { %3707 = vmatmul.mubr.msk.bf16.vlgmr.msra.gmra.mrb[16].mxu1 %vm614_vm0, %v885_v32 }
 0x47f   :  { %3710 = vmatprep.mubr.msk.bf16.mxu1 %vm614_vm0, %v887_v20 }
 0x486   :  { %3711 = vmatmul.mubr.msk.bf16.gmra.mrb[20].mxu1 %vm614_vm0, %v889_v16 }
 0x50c   :  { %v5043_v55 = vpop.f32.mrb[8].mxu1 }
 0x50d   :  { %v5045_v52 = vpop.f32.mrb[9].mxu1 }
 0x50e   :  { %v5047_v29 = vpop.f32.mrb[10].mxu1 }
 0x50f   :  { %v875_v28 = vpack.c.bf16 %v5047_v29, %v5043_v55  ;;  %v5051_v34 = vpop.f32.mrb[11].mxu1 }
 0x510   :  { %v874_v35 = vpack.c.bf16 %v5051_v34, %v5045_v52 }
 0x549   :  { %v5055_v31 = vpop.f32.mrb[12].mxu1 }
 0x54a   :  { %v5057_v40 = vpop.f32.mrb[13].mxu1 }
 0x54b   :  { %v5059_v42 = vpop.f32.mrb[14].mxu1 }
 0x54c   :  { %v877_v33 = vpack.c.bf16 %v5059_v42, %v5055_v31  ;;  %v5063_v44 = vpop.f32.mrb[15].mxu1 }
 0x54d   :  { %v876_v50 = vpack.c.bf16 %v5063_v44, %v5057_v40 }
 0x551   :  { %v3708_v54 = vpop.f32.mrb[16].mxu1 }
 0x552   :  { %v969_v56 = vadd.f32 %v3708_v54, %v4909_v17  ;;  %v960_v61 = vpop.f32.mrb[17].mxu1 }
 0x553   :  { %v3709_v62 = vpop.f32.mrb[18].mxu1  ;;  %v961_v63 = vadd.f32 %v960_v61, %v4911_v21 }
 0x554   :  { %v963_v1 = vpop.f32.mrb[19].mxu1  ;;  %v997_v45 = vsel %vm704_vm1, %v969_v56, -inf  ;;  %v972_v49 = vadd.f32 %v3709_v62, %v4913_v27 }
 0x555   :  { %v964_v19 = vadd.f32 %v963_v1, %v4916_v30  ;;  %998 = vmax.xlane.f32.xlu0 %v997_v45  ;;  %v991_v2 = vsel %vm704_vm1, %v961_v63, -inf }
 0x556   :  { %v1000_v60 = vsel %vm704_vm1, %v972_v49, -inf }
 0x557   :  { %v994_v39 = vsel %vm704_vm1, %v964_v19, -inf }
 0x558   :  { %995 = vmax.xlane.f32.xlu1 %v994_v39 }
 0x559   :  { %992 = vmax.xlane.f32.xlu0 %v991_v2  ;;  %v3712_v3 = vpop.f32.mrb[20].mxu1 }
 0x55a   :  { %v976_v5 = vpop.f32.mrb[21].mxu1  ;;  %v985_v11 = vadd.f32 %v3712_v3, %v4927_v41 }
 0x55b   :  { %v3713_v24 = vpop.f32.mrb[22].mxu1  ;;  %v977_v13 = vadd.f32 %v976_v5, %v4924_v38 }
 0x55c   :  { %v979_v12 = vpop.f32.mrb[23].mxu1  ;;  %v1009_v14 = vsel %vm704_vm1, %v985_v11, -inf  ;;  %v988_v26 = vadd.f32 %v3713_v24, %v4932_v46 }
 0x55d   :  { %1001 = vmax.xlane.f32.xlu0 %v1000_v60  ;;  %v1003_v15 = vsel %vm704_vm1, %v977_v13, -inf  ;;  %v5087_v18 = vadd.f32 %v979_v12, %v4929_v43 }
 0x55e   :  { %v1012_v51 = vsel %vm704_vm1, %v988_v26, -inf }
 0x55f   :  { %v1006_v53 = vsel %vm704_vm1, %v5087_v18, -inf }
 0x561   :  { %1010 = vmax.xlane.f32.xlu0 %v1009_v14 }
 0x565   :  { %1004 = vmax.xlane.f32.xlu0 %v1003_v15 }
 0x569   :  { %1089 = vrot.lane.b32.xlu1 %v4957_v8, %s4579_s13 }
 0x56d   :  { %1091 = vrot.lane.b32.xlu1 %v4991_v4, %s4579_s13 }
 0x57b   :  { %1087 = vrot.lane.b32.xlu0 %v4959_v9, %s4579_s13 }
 0x591   :  { %1013 = vmax.xlane.f32.xlu1 %v1012_v51 }
 0x595   :  { %1007 = vmax.xlane.f32.xlu1 %v1006_v53 }
 0x5a6   :  { %1093 = vrot.lane.b32.xlu1 %v4999_v10, %s4579_s13 }
 0x5e2   :  { %v999_v32 = vpop.xlane.xlu0 %998 }
 0x5e3   :  { %v1017_v20 = vsub.f32 %v969_v56, %v999_v32 }
 0x5e5   :  { %v1027_v16 = vmul.f32 1.442695, %v1017_v20  ;;  %v996_v54 = vpop.xlane.xlu1 %995 }
 0x5e6   :  { %v993_v61 = vpop.xlane.xlu0 %992  ;;  %v1016_v1 = vsub.f32 %v964_v19, %v996_v54 }
 0x5e7   :  { %4068 = vpow2.f32 %v1027_v16  ;;  %v1015_v62 = vsub.f32 %v961_v63, %v993_v61 }
 0x5e8   :  { %v1025_v3 = vmul.f32 1.442695, %v1016_v1 }
 0x5e9   :  { %v1023_v45 = vmul.f32 1.442695, %v1015_v62 }
 0x5ea   :  { %v1002_v39 = vpop.xlane.xlu0 %1001 }
 0x5eb   :  { %4070 = vpow2.f32 %v1023_v45  ;;  %v1018_v2 = vsub.f32 %v972_v49, %v1002_v39  ;;  %v1090_v49 = vpop.permute.xlu1 %1089 }
 0x5ed   :  { %v1029_v5 = vmul.f32 1.442695, %v1018_v2 }
 0x5ee   :  { %v1011_v24 = vpop.xlane.xlu0 %1010 }
 0x5ef   :  { %4072 = vpow2.f32 %v1029_v5  ;;  %v1021_v12 = vsub.f32 %v985_v11, %v1011_v24  ;;  %v1092_v16 = vpop.permute.xlu1 %1091 }
 0x5f0   :  { %4074 = vpow2.f32 %v1025_v3 }
 0x5f1   :  { %v5094_v60 = vpop.eup %4068  ;;  %v1035_v14 = vmul.f32 1.442695, %v1021_v12 }
 0x5f2   :  { %v1005_v56 = vpop.xlane.xlu0 %1004  ;;  %v1045_v15 = vsel %vm704_vm1, %v5094_v60, 0.0 }
 0x5f3   :  { %4076 = vpow2.f32 %v1035_v14  ;;  %v1019_v63 = vsub.f32 %v977_v13, %v1005_v56  ;;  %1046 = vadd.xlane.f32.xlu0 %v1045_v15 }
 0x5f5   :  { %v5098_v19 = vpop.eup %4070  ;;  %v1031_v51 = vmul.f32 1.442695, %v1019_v63 }
 0x5f6   :  { %v1088_v53 = vpop.permute.xlu0 %1087  ;;  %v1039_v32 = vsel %vm704_vm1, %v5098_v19, 0.0 }
 0x5f7   :  { %4078 = vpow2.f32 %v1031_v51  ;;  %1040 = vadd.xlane.f32.xlu0 %v1039_v32  ;;  %3714 = vmatprep.subr.bf16.mxu1 %v1088_v53  ;;  %v3944_v51 = vld [vmem:[#allocation10 + $0x10] sm:$0xff]  }
 0x5f8   :  { %3715 = vmatpush3.bf16.msra.mxu1 %v1088_v53  ;;  %3730 = vmatprep.subr.bf16.mxu0 %v3944_v51 }
 0x5f9   :  { %v5102_v11 = vpop.eup %4072  ;;  %3716 = vmatprep.subr.bf16.mxu1 %v1090_v49  ;;  %3731 = vmatpush3.bf16.msra.mxu0 %v3944_v51 }
 0x5fa   :  { %v1048_v20 = vsel %vm704_vm1, %v5102_v11, 0.0  ;;  %v5106_v13 = vpop.eup %4074 }
 0x5fb   :  { %1049 = vadd.xlane.f32.xlu1 %v1048_v20  ;;  %v1042_v61 = vsel %vm704_vm1, %v5106_v13, 0.0 }
 0x5fc   :  { %3717 = vmatpush3.bf16.msra.mxu1 %v1090_v49 }
 0x5fd   :  { %v5108_v54 = vpop.eup %4076  ;;  %3718 = vmatprep.subr.bf16.mxu1 %v1092_v16 }
 0x5fe   :  { %v1057_v62 = vsel %vm704_vm1, %v5108_v54, 0.0 }
 0x5ff   :  { %1043 = vadd.xlane.f32.xlu1 %v1042_v61  ;;  %1058 = vadd.xlane.f32.xlu0 %v1057_v62 }
 0x600   :  { %3719 = vmatpush3.bf16.msra.mxu1 %v1092_v16 }
 0x601   :  { %v5114_v1 = vpop.eup %4078 }
 0x602   :  { %v1051_v45 = vsel %vm704_vm1, %v5114_v1, 0.0 }
 0x603   :  { %1052 = vadd.xlane.f32.xlu0 %v1051_v45 }
 0x610   :  { %1368 = vrot.lane.b32.xlu1 %v4878_v48, %s4565_s11 }
 0x614   :  { %1370 = vrot.lane.b32.xlu1 %v4886_v59, %s4565_s11 }
 0x61e   :  { %v1014_v39 = vpop.xlane.xlu1 %1013 }
 0x61f   :  { %v1022_v2 = vsub.f32 %v988_v26, %v1014_v39 }
 0x621   :  { %v1037_v3 = vmul.f32 1.442695, %v1022_v2 }
 0x622   :  { %v1008_v5 = vpop.xlane.xlu1 %1007 }
 0x623   :  { %4080 = vpow2.f32 %v1037_v3  ;;  %v1020_v24 = vsub.f32 %v5087_v18, %v1008_v5 }
 0x625   :  { %v1033_v12 = vmul.f32 1.442695, %v1020_v24 }
 0x626   :  { %v1094_v14 = vpop.permute.xlu1 %1093 }
 0x627   :  { %3720 = vmatprep.subr.bf16.mxu1 %v1094_v14  ;;  %4082 = vpow2.f32 %v1033_v12 }
 0x628   :  { %3721 = vmatpush3.bf16.msra.mxu1 %v1094_v14 }
 0x62d   :  { %v5123_v56 = vpop.eup %4080 }
 0x62e   :  { %v1060_v15 = vsel %vm704_vm1, %v5123_v56, 0.0 }
 0x62f   :  { %1061 = vadd.xlane.f32.xlu0 %v1060_v15 }
 0x631   :  { %v5127_v63 = vpop.eup %4082 }
 0x632   :  { %v1054_v26 = vsel %vm704_vm1, %v5127_v63, 0.0 }
 0x638   :  { %1055 = vadd.xlane.f32.xlu1 %v1054_v26 }
 0x645   :  { %1366 = vrot.lane.b32.xlu0 %v4868_v37, %s4565_s11 }
 0x649   :  { %1372 = vrot.lane.b32.xlu1 %v4894_v7, %s4565_s11  ;;  %1358 = vrot.lane.b32.xlu0 %v4866_v36, %s4565_s11 }
 0x64d   :  { %1360 = vrot.lane.b32.xlu1 %v4876_v47, %s4565_s11  ;;  %1362 = vrot.lane.b32.xlu0 %v4884_v58, %s4565_s11 }
 0x651   :  { %1364 = vrot.lane.b32.xlu1 %v4892_v6, %s4565_s11  ;;  %1753 = vrot.lane.b32.xlu0 %v4868_v37, %s4580_s22 }
 0x655   :  { %1755 = vrot.lane.b32.xlu1 %v4878_v48, %s4580_s22  ;;  %1757 = vrot.lane.b32.xlu0 %v4886_v59, %s4580_s22 }
 0x659   :  { %1759 = vrot.lane.b32.xlu1 %v4894_v7, %s4580_s22  ;;  %1745 = vrot.lane.b32.xlu0 %v4866_v36, %s4580_s22 }
 0x65d   :  { %1747 = vrot.lane.b32.xlu1 %v4876_v47, %s4580_s22  ;;  %1749 = vrot.lane.b32.xlu0 %v4884_v58, %s4580_s22 }
 0x661   :  { %1751 = vrot.lane.b32.xlu1 %v4892_v6, %s4580_s22 }
 0x680   :  { %v1047_v37 = vpop.xlane.xlu0 %1046 }
 0x684   :  { %v1041_v48 = vpop.xlane.xlu0 %1040 }
 0x688   :  { %v1050_v18 = vpop.xlane.xlu1 %1049 }
 0x689   :  { %4084 = vrcp.f32 %v1050_v18 }
 0x68a   :  { %4086 = vrcp.f32 %v1041_v48 }
 0x68b   :  { %4088 = vrcp.f32 %v1047_v37 }
 0x68c   :  { %v1044_v59 = vpop.xlane.xlu1 %1043  ;;  %v1059_v61 = vpop.xlane.xlu0 %1058 }
 0x68d   :  { %4090 = vrcp.f32 %v1044_v59 }
 0x690   :  { %v1053_v62 = vpop.xlane.xlu0 %1052  ;;  %v1369_v45 = vpop.permute.xlu1 %1368 }
 0x693   :  { %v4085_v36 = vpop.eup %4084 }
 0x694   :  { %v4087_v7 = vpop.eup %4086  ;;  %v1074_v58 = vmul.f32 %v4085_v36, %v5102_v11  ;;  %v1371_v3 = vpop.permute.xlu1 %1370 }
 0x695   :  { %v4089_v47 = vpop.eup %4088  ;;  %v1071_v53 = vmul.f32 %v4087_v7, %v5098_v19  ;;  %v1390_v19 = vsel %vm614_vm0, %v1369_v45, 0  ;;  %v1393_v37 = vsel %vm614_vm0, %v1371_v3, 0 }
 0x696   :  { %v1073_v32 = vmul.f32 %v4089_v47, %v5094_v60 }
 0x697   :  { %v4091_v49 = vpop.eup %4090 }
 0x698   :  { %v1072_v6 = vmul.f32 %v4091_v49, %v5106_v13  ;;  %v1080_v16 = vpack.c.bf16 %v1074_v58, %v1073_v32 }
 0x69a   :  { %v1079_v20 = vpack.c.bf16 %v1072_v6, %v1071_v53 }
 0x69c   :  { %3722 = vmatprep.mubr.msk.bf16.mxu1 %vm704_vm1, %v1079_v20 }
 0x69d   :  { %3723 = vmatmul.mubr.msk.bf16.vlgmr.msra.gmra.mrb[24].mxu1 %vm704_vm1, %v1080_v16  ;;  %v3945_v16 = vld [vmem:[#allocation10 + $0x18] sm:$0xff]  }
 0x69e   :  { %3732 = vmatprep.subr.bf16.mxu0 %v3945_v16 }
 0x69f   :  { %3733 = vmatpush3.bf16.msra.mxu0 %v3945_v16 }
 0x6bc   :  { %v1062_v39 = vpop.xlane.xlu0 %1061 }
 0x6bd   :  { %4092 = vrcp.f32 %v1062_v39 }
 0x6be   :  { %4094 = vrcp.f32 %v1053_v62 }
 0x6bf   :  { %4096 = vrcp.f32 %v1059_v61 }
 0x6c0   :  { %v1367_v2 = vpop.permute.xlu0 %1366 }
 0x6c1   :  { %v1387_v11 = vsel %vm614_vm0, %v1367_v2, 0  ;;  %3874 = vmatprep.subr.msk.bf16.mxu1 %vm614_vm0, %v1367_v2  ;;  %v3946_v2 = vld [vmem:[#allocation10] sm:$0xff]  }
 0x6c2   :  { %3755 = vmatpush3.bf16.xpose.msra.mxu1 %v1387_v11  ;;  %3742 = vmatprep.subr.bf16.mxu0 %v3946_v2 }
 0x6c3   :  { %3875 = vmatprep.subr.msk.bf16.mxu1 %vm614_vm0, %v1369_v45 }
 0x6c4   :  { %v1359_v24 = vpop.permute.xlu0 %1358 }
 0x6c5   :  { %v1056_v60 = vpop.xlane.xlu1 %1055 }
 0x6c6   :  { %4098 = vrcp.f32 %v1056_v60 }
 0x6c7   :  { %v4093_v13 = vpop.eup %4092 }
 0x6c8   :  { %v4095_v5 = vpop.eup %4094  ;;  %v1078_v26 = vmul.f32 %v4093_v13, %v5123_v56  ;;  %v1363_v36 = vpop.permute.xlu0 %1362 }
 0x6c9   :  { %v4097_v12 = vpop.eup %4096  ;;  %v1373_v15 = vpop.permute.xlu1 %1372  ;;  %v1075_v48 = vmul.f32 %v4095_v5, %v5114_v1 }
 0x6ca   :  { %3757 = vmatpush3.bf16.xpose.msra.mxu1 %v1390_v19  ;;  %v1077_v51 = vmul.f32 %v4097_v12, %v5108_v54  ;;  %v1396_v56 = vsel %vm614_vm0, %v1373_v15, 0 }
 0x6cb   :  { %3876 = vmatprep.subr.msk.bf16.mxu1 %vm614_vm0, %v1371_v3 }
 0x6cc   :  { %v1082_v7 = vpack.c.bf16 %v1078_v26, %v1077_v51  ;;  %v1754_v1 = vpop.permute.xlu0 %1753 }
 0x6cd   :  { %v1361_v47 = vpop.permute.xlu1 %1360  ;;  %v1774_v54 = vsel %vm614_vm0, %v1754_v1, 0 }
 0x6d0   :  { %v4099_v14 = vpop.eup %4098  ;;  %v1758_v58 = vpop.permute.xlu0 %1757 }
 0x6d1   :  { %v1076_v18 = vmul.f32 %v4099_v14, %v5127_v63  ;;  %v1365_v63 = vpop.permute.xlu1 %1364  ;;  %v1780_v32 = vsel %vm614_vm0, %v1758_v58, 0 }
 0x6d2   :  { %3759 = vmatpush3.bf16.xpose.msra.mxu1 %v1393_v37 }
 0x6d3   :  { %3877 = vmatprep.subr.msk.bf16.mxu1 %vm614_vm0, %v1373_v15  ;;  %v1081_v59 = vpack.c.bf16 %v1076_v18, %v1075_v48 }
 0x6d4   :  { %v1746_v53 = vpop.permute.xlu0 %1745 }
 0x6d5   :  { %3726 = vmatprep.mubr.msk.bf16.mxu1 %vm704_vm1, %v1081_v59  ;;  %v1756_v49 = vpop.permute.xlu1 %1755 }
 0x6d6   :  { %3727 = vmatmul.mubr.msk.bf16.gmra.mrb[28].mxu1 %vm704_vm1, %v1082_v7  ;;  %v1777_v6 = vsel %vm614_vm0, %v1756_v49, 0 }
 0x6d7   :  { %3762 = vmatprep.mubr.msk.bf16.mxu1 %vm614_vm0, %v1359_v24  ;;  %v3947_v24 = vld [vmem:[#allocation10 + $0x8] sm:$0xff]  }
 0x6d8   :  { %v1750_v45 = vpop.permute.xlu0 %1749 }
 0x6d9   :  { %v1760_v20 = vpop.permute.xlu1 %1759 }
 0x6da   :  { %3761 = vmatpush3.bf16.xpose.msra.mxu1 %v1396_v56  ;;  %v1783_v61 = vsel %vm614_vm0, %v1760_v20, 0 }
 0x6db   :  { %3878 = vmatprep.subr.msk.bf16.mxu1 %vm614_vm0, %v1754_v1 }
 0x6dd   :  { %v1748_v62 = vpop.permute.xlu1 %1747 }
 0x6e1   :  { %3763 = vmatmul.mubr.msk.bf16.vlgmr.msra.gmra.mrb[32].mxu1 %vm614_vm0, %v1361_v47  ;;  %v1752_v39 = vpop.permute.xlu1 %1751 }
 0x6e2   :  { %3766 = vmatprep.mubr.msk.bf16.mxu1 %vm614_vm0, %v1363_v36  ;;  %3799 = vmatpush3.bf16.xpose.msra.mxu1 %v1774_v54 }
 0x6e3   :  { %3879 = vmatprep.subr.msk.bf16.mxu1 %vm614_vm0, %v1756_v49 }
 0x6e9   :  { %3767 = vmatmul.mubr.msk.bf16.gmra.mrb[36].mxu1 %vm614_vm0, %v1365_v63 }
 0x6ea   :  { %3801 = vmatpush3.bf16.xpose.msra.mxu1 %v1777_v6  ;;  %3806 = vmatprep.mubr.msk.bf16.mxu1 %vm614_vm0, %v1746_v53 }
 0x6eb   :  { %3880 = vmatprep.subr.msk.bf16.mxu1 %vm614_vm0, %v1758_v58 }
 0x6f2   :  { %3803 = vmatpush3.bf16.xpose.msra.mxu1 %v1780_v32 }
 0x6f3   :  { %3881 = vmatprep.subr.msk.bf16.mxu1 %vm614_vm0, %v1760_v20 }
 0x6fa   :  { %3805 = vmatpush3.bf16.xpose.msra.mxu1 %v1783_v61 }
 0x701   :  { %3807 = vmatmul.mubr.msk.bf16.vlgmr.msra.gmra.mrb[40].mxu1 %vm614_vm0, %v1748_v62 }
 0x702   :  { %3810 = vmatprep.mubr.msk.bf16.mxu1 %vm614_vm0, %v1750_v45 }
 0x709   :  { %3811 = vmatmul.mubr.msk.bf16.gmra.mrb[44].mxu1 %vm614_vm0, %v1752_v39 }
 0x70a   :  { %2524 = vmatprep.mubr.bf16.mxu1 %v4578_v0 }
 0x770   :  { %v3724_v3 = vpop.f32.mrb[24].mxu1 }
 0x771   :  { %v1145_v11 = vpop.f32.mrb[25].mxu1 }
 0x772   :  { %v3725_v60 = vpop.f32.mrb[26].mxu1 }
 0x773   :  { %v1177_v19 = vpack.c.bf16 %v3725_v60, %v3724_v3  ;;  %v1148_v13 = vpop.f32.mrb[27].mxu1 }
 0x774   :  { %v1176_v5 = vpack.c.bf16 %v1148_v13, %v1145_v11 }
 0x776   :  { %3734 = vmatprep.mubr.msk.bf16.mxu0 %vm614_vm0, %v1176_v5 }
 0x777   :  { %3735 = vmatmul.mubr.msk.bf16.vlgmr.msra.gmra.mrb[24].mxu0 %vm614_vm0, %v1177_v19 }
 0x778   :  { %3743 = vmatpush3.bf16.msra.mxu0 %v3946_v2 }
 0x779   :  { %3744 = vmatprep.subr.bf16.mxu0 %v3947_v24 }
 0x77c   :  { %3745 = vmatpush3.bf16.msra.mxu0 %v3947_v24 }
 0x7a9   :  { %v3728_v12 = vpop.f32.mrb[28].mxu1 }
 0x7aa   :  { %v1161_v14 = vpop.f32.mrb[29].mxu1 }
 0x7ab   :  { %v3729_v15 = vpop.f32.mrb[30].mxu1 }
 0x7ac   :  { %v1179_v26 = vpack.c.bf16 %v3729_v15, %v3728_v12  ;;  %v1164_v37 = vpop.f32.mrb[31].mxu1 }
 0x7ad   :  { %v1178_v48 = vpack.c.bf16 %v1164_v37, %v1161_v14 }
 0x7af   :  { %3738 = vmatprep.mubr.msk.bf16.mxu0 %vm614_vm0, %v1178_v48 }
 0x7b0   :  { %3739 = vmatmul.mubr.msk.bf16.gmra.mrb[28].mxu0 %vm614_vm0, %v1179_v26 }
 0x7b1   :  { %3746 = vmatprep.mubr.msk.bf16.mxu0 %vm614_vm0, %v874_v35 }
 0x7b4   :  { %v3764_v18 = vpop.f32.mrb[32].mxu1 }
 0x7b5   :  { %v1432_v51 = vpop.f32.mrb[33].mxu1  ;;  %v1441_v47 = vadd.f32 %v3764_v18, %v4909_v17 }
 0x7b6   :  { %v1433_v59 = vadd.f32 %v1432_v51, %v4911_v21  ;;  %v3765_v36 = vpop.f32.mrb[34].mxu1 }
 0x7b7   :  { %v1435_v7 = vpop.f32.mrb[35].mxu1  ;;  %v1444_v17 = vadd.f32 %v3765_v36, %v4913_v27 }
 0x7b8   :  { %v1436_v56 = vadd.f32 %v1435_v7, %v4916_v30  ;;  %3747 = vmatmul.mubr.msk.bf16.vlgmr.msra.gmra.mrb[24].mxu0 %vm614_vm0, %v875_v28  ;;  %v1463_v1 = vsel %vm704_vm1, %v1433_v59, -inf  ;;  %v1469_v30 = vsel %vm704_vm1, %v1441_v47, -inf }
 0x7b9   :  { %3750 = vmatprep.mubr.msk.bf16.mxu0 %vm614_vm0, %v876_v50  ;;  %1464 = vmax.xlane.f32.xlu0 %v1463_v1  ;;  %v1472_v40 = vsel %vm704_vm1, %v1444_v17, -inf }
 0x7ba   :  { %v1466_v21 = vsel %vm704_vm1, %v1436_v56, -inf }
 0x7bb   :  { %1467 = vmax.xlane.f32.xlu1 %v1466_v21 }
 0x7bc   :  { %v3768_v52 = vpop.f32.mrb[36].mxu1 }
 0x7bd   :  { %1470 = vmax.xlane.f32.xlu0 %v1469_v30  ;;  %v1448_v55 = vpop.f32.mrb[37].mxu1 }
 0x7be   :  { %v3769_v29 = vpop.f32.mrb[38].mxu1  ;;  %v1449_v34 = vadd.f32 %v1448_v55, %v4924_v38  ;;  %v1457_v38 = vadd.f32 %v3768_v52, %v4927_v41 }
 0x7bf   :  { %v1451_v28 = vpop.f32.mrb[39].mxu1  ;;  %v5229_v27 = vadd.f32 %v3769_v29, %v4932_v46 }
 0x7c0   :  { %v5221_v35 = vadd.f32 %v1451_v28, %v4929_v43  ;;  %3751 = vmatmul.mubr.msk.bf16.gmra.mrb[28].mxu0 %vm614_vm0, %v877_v33  ;;  %v1475_v43 = vsel %vm704_vm1, %v1449_v34, -inf  ;;  %v1481_v42 = vsel %vm704_vm1, %v1457_v38, -inf  ;;  %v4196_v28 = vld [vmem:[#allocation5] sm:$0xff] }
 0x7c1   :  { %1473 = vmax.xlane.f32.xlu0 %v1472_v40  ;;  %v1484_v31 = vsel %vm704_vm1, %v5229_v27, -inf }
 0x7c2   :  { %v1478_v44 = vsel %vm704_vm1, %v5221_v35, -inf }
 0x7c3   :  { %1479 = vmax.xlane.f32.xlu1 %v1478_v44 }
 0x7c5   :  { %1476 = vmax.xlane.f32.xlu0 %v1475_v43 }
 0x7c7   :  { %1485 = vmax.xlane.f32.xlu1 %v1484_v31  ;;  %v4198_v31 = vld [vmem:[#allocation5 + $0x18] sm:$0xff] }
 0x7c9   :  { %1482 = vmax.xlane.f32.xlu0 %v1481_v42 }
 0x7d4   :  { %v5238_v33 = vpop.f32.mrb[40].mxu1 }
 0x7d5   :  { %v1819_v46 = vpop.f32.mrb[41].mxu1 }
 0x7d6   :  { %v5240_v50 = vpop.f32.mrb[42].mxu1 }
 0x7d7   :  { %v5242_v63 = vpop.f32.mrb[43].mxu1  ;;  %v5300_v42 = vadd.f32 %v4198_v31, %v5240_v50  ;;  %v3949_v31 = vld [vmem:[#allocation10 + $0x28] sm:$0xff]  }
 0x7dc   :  { %v5244_v54 = vpop.f32.mrb[44].mxu1 }
 0x7dd   :  { %v5246_v41 = vpop.f32.mrb[45].mxu1 }
 0x7de   :  { %v5248_v49 = vpop.f32.mrb[46].mxu1 }
 0x7df   :  { %v5250_v58 = vpop.f32.mrb[47].mxu1 }
 0x846   :  { %v1465_v53 = vpop.xlane.xlu0 %1464 }
 0x847   :  { %v1487_v6 = vsub.f32 %v1433_v59, %v1465_v53  ;;  %v4199_v53 = vld [vmem:[#allocation5 + $0x20] sm:$0xff] }
 0x848   :  { %v1468_v32 = vpop.xlane.xlu1 %1467 }
 0x849   :  { %v1495_v61 = vmul.f32 1.442695, %v1487_v6  ;;  %v1488_v62 = vsub.f32 %v1436_v56, %v1468_v32  ;;  %v1859_v6 = vsel %vm704_vm1, %v5300_v42, -inf  ;;  %v4200_v32 = vld [vmem:[#allocation5 + $0x30] sm:$0xff] }
 0x84a   :  { %v1471_v20 = vpop.xlane.xlu0 %1470 }
 0x84b   :  { %v1489_v16 = vsub.f32 %v1441_v47, %v1471_v20  ;;  %v1497_v3 = vmul.f32 1.442695, %v1488_v62  ;;  %v5310_v20 = vadd.f32 %v4200_v32, %v5244_v54  ;;  %v4202_v54 = vld [vmem:[#allocation5 + $0x28] sm:$0xff] }
 0x84c   :  { %v5324_v62 = vadd.f32 %v4202_v54, %v5250_v58 }
 0x84d   :  { %v1499_v45 = vmul.f32 1.442695, %v1489_v16  ;;  %v1868_v16 = vsel %vm704_vm1, %v5310_v20, -inf }
 0x84e   :  { %v1474_v39 = vpop.xlane.xlu0 %1473 }
 0x84f   :  { %4100 = vpow2.f32 %v1499_v45  ;;  %v1490_v2 = vsub.f32 %v1444_v17, %v1474_v39  ;;  %v4203_v39 = vld [vmem:[#allocation5 + $0x38] sm:$0xff] }
 0x850   :  { %4102 = vpow2.f32 %v1495_v61  ;;  %v1480_v1 = vpop.xlane.xlu1 %1479 }
 0x851   :  { %v1501_v11 = vmul.f32 1.442695, %v1490_v2  ;;  %v1492_v52 = vsub.f32 %v5221_v35, %v1480_v1  ;;  %v5329_v2 = vadd.f32 %v4203_v39, %v5248_v49 }
 0x852   :  { %v1477_v60 = vpop.xlane.xlu0 %1476 }
 0x853   :  { %4104 = vpow2.f32 %v1501_v11  ;;  %v1491_v19 = vsub.f32 %v1449_v34, %v1477_v60  ;;  %v1505_v55 = vmul.f32 1.442695, %v1492_v52  ;;  %v5286_v34 = vadd.f32 %v4196_v28, %v1819_v46  ;;  %v3948_v52 = vld [vmem:[#allocation10 + $0x20] sm:$0xff]  }
 0x854   :  { %4106 = vpow2.f32 %v1497_v3  ;;  %v1486_v21 = vpop.xlane.xlu1 %1485  ;;  %v1865_v3 = vsel %vm704_vm1, %v5324_v62, -inf }
 0x855   :  { %v1503_v12 = vmul.f32 1.442695, %v1491_v19  ;;  %v1494_v17 = vsub.f32 %v5229_v27, %v1486_v21  ;;  %v1850_v43 = vsel %vm704_vm1, %v5286_v34, -inf }
 0x856   :  { %v1483_v13 = vpop.xlane.xlu0 %1482 }
 0x857   :  { %v1493_v5 = vsub.f32 %v1457_v38, %v1483_v13  ;;  %v1509_v30 = vmul.f32 1.442695, %v1494_v17  ;;  %v4197_v38 = vld [vmem:[#allocation5 + $0x10] sm:$0xff] }
 0x858   :  { %v5293_v27 = vadd.f32 %v4197_v38, %v5238_v33  ;;  %v5305_v33 = vadd.f32 %v4199_v53, %v5246_v41  ;;  %v4201_v41 = vld [vmem:[#allocation5 + $0x8] sm:$0xff] }
 0x859   :  { %v5252_v24 = vpop.eup %4100  ;;  %v1507_v14 = vmul.f32 1.442695, %v1493_v5  ;;  %v5321_v61 = vadd.f32 %v4201_v41, %v5242_v63 }
 0x85a   :  { %v1517_v15 = vsel %vm704_vm1, %v5252_v24, 0.0  ;;  %v5256_v26 = vpop.eup %4102  ;;  %v1856_v46 = vsel %vm704_vm1, %v5293_v27, -inf  ;;  %v1862_v50 = vsel %vm704_vm1, %v5305_v33, -inf }
 0x85b   :  { %4108 = vpow2.f32 %v1507_v14  ;;  %1518 = vadd.xlane.f32.xlu0 %v1517_v15  ;;  %v1511_v48 = vsel %vm704_vm1, %v5256_v26, 0.0  ;;  %v1853_v45 = vsel %vm704_vm1, %v5321_v61, -inf }
 0x85c   :  { %4110 = vpow2.f32 %v1503_v12 }
 0x85d   :  { %v5258_v37 = vpop.eup %4104  ;;  %4112 = vpow2.f32 %v1509_v30 }
 0x85e   :  { %v1520_v18 = vsel %vm704_vm1, %v5258_v37, 0.0  ;;  %v5264_v51 = vpop.eup %4106  ;;  %4114 = vpow2.f32 %v1505_v55 }
 0x85f   :  { %1512 = vadd.xlane.f32.xlu0 %v1511_v48  ;;  %1521 = vadd.xlane.f32.xlu1 %v1520_v18  ;;  %v1514_v59 = vsel %vm704_vm1, %v5264_v51, 0.0 }
 0x863   :  { %1515 = vadd.xlane.f32.xlu1 %v1514_v59 }
 0x865   :  { %v5268_v36 = vpop.eup %4108 }
 0x866   :  { %v1529_v7 = vsel %vm704_vm1, %v5268_v36, 0.0  ;;  %v5272_v47 = vpop.eup %4110 }
 0x867   :  { %1530 = vadd.xlane.f32.xlu0 %v1529_v7  ;;  %v1523_v56 = vsel %vm704_vm1, %v5272_v47, 0.0  ;;  %v5284_v29 = vpop.eup %4112 }
 0x868   :  { %v1532_v40 = vsel %vm704_vm1, %v5284_v29, 0.0  ;;  %v5290_v44 = vpop.eup %4114 }
 0x869   :  { %v1526_v35 = vsel %vm704_vm1, %v5290_v44, 0.0 }
 0x86b   :  { %1524 = vadd.xlane.f32.xlu0 %v1523_v56 }
 0x874   :  { %1557 = vrot.lane.b32.xlu1 %v4957_v8, %s4565_s11 }
 0x878   :  { %1559 = vrot.lane.b32.xlu1 %v4991_v4, %s4565_s11 }
 0x881   :  { %1555 = vrot.lane.b32.xlu0 %v4959_v9, %s4565_s11 }
 0x89c   :  { %1533 = vadd.xlane.f32.xlu1 %v1532_v40 }
 0x8a0   :  { %1527 = vadd.xlane.f32.xlu1 %v1526_v35  ;;  %1851 = vmax.xlane.f32.xlu0 %v1850_v43 }
 0x8a4   :  { %1857 = vmax.xlane.f32.xlu0 %v1856_v46 }
 0x8a8   :  { %1860 = vmax.xlane.f32.xlu0 %v1859_v6 }
 0x8ac   :  { %1863 = vmax.xlane.f32.xlu0 %v1862_v50 }
 0x8b0   :  { %1869 = vmax.xlane.f32.xlu0 %v1868_v16 }
 0x8b1   :  { %1561 = vrot.lane.b32.xlu1 %v4999_v10, %s4565_s11 }
 0x8c6   :  { %1942 = vrot.lane.b32.xlu0 %v4959_v9, %s4580_s22  ;;  %v1871_v9 = vsel %vm704_vm1, %v5329_v2, -inf }
 0x8d5   :  { %1854 = vmax.xlane.f32.xlu1 %v1853_v45 }
 0x8d9   :  { %1866 = vmax.xlane.f32.xlu1 %v1865_v3 }
 0x8dd   :  { %1872 = vmax.xlane.f32.xlu1 %v1871_v9 }
 0x8e8   :  { %v1519_v63 = vpop.xlane.xlu0 %1518 }
 0x8ec   :  { %v1522_v11 = vpop.xlane.xlu1 %1521  ;;  %v1513_v58 = vpop.xlane.xlu0 %1512 }
 0x8ed   :  { %4116 = vrcp.f32 %v1513_v58 }
 0x8f0   :  { %v1516_v60 = vpop.xlane.xlu1 %1515 }
 0x8f1   :  { %4118 = vrcp.f32 %v1516_v60 }
 0x8f2   :  { %4120 = vrcp.f32 %v1522_v11 }
 0x8f3   :  { %4122 = vrcp.f32 %v1519_v63 }
 0x8f4   :  { %v1531_v19 = vpop.xlane.xlu0 %1530  ;;  %v1558_v49 = vpop.permute.xlu1 %1557 }
 0x8f7   :  { %v4117_v5 = vpop.eup %4116 }
 0x8f8   :  { %v1525_v13 = vpop.xlane.xlu0 %1524  ;;  %v1543_v15 = vmul.f32 %v4117_v5, %v5256_v26  ;;  %v1560_v59 = vpop.permute.xlu1 %1559 }
 0x8fb   :  { %v4119_v12 = vpop.eup %4118 }
 0x8fc   :  { %v1556_v14 = vpop.permute.xlu0 %1555  ;;  %v1544_v48 = vmul.f32 %v4119_v12, %v5264_v51  ;;  %v4121_v56 = vpop.eup %4120 }
 0x8fd   :  { %3770 = vmatprep.subr.bf16.mxu0 %v1556_v14  ;;  %v4123_v51 = vpop.eup %4122  ;;  %v1546_v21 = vmul.f32 %v4121_v56, %v5258_v37 }
 0x8fe   :  { %3771 = vmatpush3.bf16.msra.mxu0 %v1556_v14  ;;  %v1551_v18 = vpack.c.bf16 %v1544_v48, %v1543_v15  ;;  %v1545_v28 = vmul.f32 %v4123_v51, %v5252_v24 }
 0x8ff   :  { %3772 = vmatprep.subr.bf16.mxu0 %v1558_v49 }
 0x900   :  { %3778 = vmatprep.mubr.msk.bf16.mxu0 %vm704_vm1, %v1551_v18  ;;  %v1552_v38 = vpack.c.bf16 %v1546_v21, %v1545_v28 }
 0x902   :  { %3773 = vmatpush3.bf16.msra.mxu0 %v1558_v49 }
 0x903   :  { %3774 = vmatprep.subr.bf16.mxu0 %v1560_v59 }
 0x906   :  { %3775 = vmatpush3.bf16.msra.mxu0 %v1560_v59 }
 0x929   :  { %v1534_v7 = vpop.xlane.xlu1 %1533 }
 0x92a   :  { %4124 = vrcp.f32 %v1534_v7 }
 0x92b   :  { %4126 = vrcp.f32 %v1525_v13 }
 0x92c   :  { %4128 = vrcp.f32 %v1531_v19 }
 0x92d   :  { %v1528_v26 = vpop.xlane.xlu1 %1527  ;;  %v1852_v1 = vpop.xlane.xlu0 %1851 }
 0x92e   :  { %4130 = vrcp.f32 %v1528_v26  ;;  %v1874_v17 = vsub.f32 %v5286_v34, %v1852_v1 }
 0x930   :  { %v1882_v35 = vmul.f32 1.442695, %v1874_v17 }
 0x931   :  { %v1562_v30 = vpop.permute.xlu1 %1561  ;;  %v1858_v55 = vpop.xlane.xlu0 %1857 }
 0x932   :  { %v1876_v40 = vsub.f32 %v5293_v27, %v1858_v55  ;;  %3776 = vmatprep.subr.bf16.mxu0 %v1562_v30 }
 0x933   :  { %3777 = vmatpush3.bf16.msra.mxu0 %v1562_v30 }
 0x934   :  { %v1886_v43 = vmul.f32 1.442695, %v1876_v40  ;;  %3786 = vmatprep.subr.bf16.mxu0 %v3948_v52  ;;  %v4125_v46 = vpop.eup %4124 }
 0x935   :  { %v1861_v53 = vpop.xlane.xlu0 %1860  ;;  %v4127_v6 = vpop.eup %4126  ;;  %v1550_v32 = vmul.f32 %v4125_v46, %v5284_v29 }
 0x936   :  { %4132 = vpow2.f32 %v1886_v43  ;;  %v1877_v37 = vsub.f32 %v5300_v42, %v1861_v53  ;;  %3779 = vmatmul.mubr.msk.bf16.vlgmr.msra.gmra.mrb[32].mxu0 %vm704_vm1, %v1552_v38  ;;  %v4129_v34 = vpop.eup %4128  ;;  %v1547_v16 = vmul.f32 %v4127_v6, %v5272_v47 }
 0x937   :  { %3787 = vmatpush3.bf16.msra.mxu0 %v3948_v52  ;;  %4134 = vpow2.f32 %v1882_v35  ;;  %v1549_v54 = vmul.f32 %v4129_v34, %v5268_v36 }
 0x938   :  { %v4131_v24 = vpop.eup %4130  ;;  %v1888_v27 = vmul.f32 1.442695, %v1877_v37  ;;  %3788 = vmatprep.subr.bf16.mxu0 %v3949_v31 }
 0x939   :  { %v1864_v50 = vpop.xlane.xlu0 %1863  ;;  %v1548_v41 = vmul.f32 %v4131_v24, %v5290_v44  ;;  %v1554_v42 = vpack.c.bf16 %v1550_v32, %v1549_v54 }
 0x93a   :  { %4136 = vpow2.f32 %v1888_v27  ;;  %v1878_v19 = vsub.f32 %v5305_v33, %v1864_v50 }
 0x93b   :  { %v1553_v45 = vpack.c.bf16 %v1548_v41, %v1547_v16  ;;  %3789 = vmatpush3.bf16.msra.mxu0 %v3949_v31 }
 0x93c   :  { %v1890_v49 = vmul.f32 1.442695, %v1878_v19 }
 0x93d   :  { %3782 = vmatprep.mubr.msk.bf16.mxu0 %vm704_vm1, %v1553_v45  ;;  %v1870_v39 = vpop.xlane.xlu0 %1869 }
 0x93e   :  { %3783 = vmatmul.mubr.msk.bf16.gmra.mrb[36].mxu0 %vm704_vm1, %v1554_v42  ;;  %v1880_v11 = vsub.f32 %v5310_v20, %v1870_v39 }
 0x940   :  { %v5350_v3 = vpop.eup %4132  ;;  %v1894_v13 = vmul.f32 1.442695, %v1880_v11 }
 0x941   :  { %v5352_v29 = vpop.permute.xlu0 %1942  ;;  %v1904_v47 = vsel %vm704_vm1, %v5350_v3, 0.0  ;;  %v5356_v9 = vpop.eup %4134 }
 0x942   :  { %1905 = vadd.xlane.f32.xlu0 %v1904_v47  ;;  %3814 = vmatprep.subr.bf16.mxu0 %v5352_v29  ;;  %v1898_v44 = vsel %vm704_vm1, %v5356_v9, 0.0 }
 0x944   :  { %v5359_v36 = vpop.eup %4136 }
 0x945   :  { %v1907_v63 = vsel %vm704_vm1, %v5359_v36, 0.0 }
 0x946   :  { %1899 = vadd.xlane.f32.xlu0 %v1898_v44  ;;  %1908 = vadd.xlane.f32.xlu1 %v1907_v63 }
 0x95c   :  { %1946 = vrot.lane.b32.xlu0 %v4991_v4, %s4580_s22 }
 0x960   :  { %1948 = vrot.lane.b32.xlu0 %v4999_v10, %s4580_s22 }
 0x962   :  { %v1855_v58 = vpop.xlane.xlu1 %1854 }
 0x963   :  { %v1875_v60 = vsub.f32 %v5321_v61, %v1855_v58 }
 0x965   :  { %v1884_v5 = vmul.f32 1.442695, %v1875_v60 }
 0x966   :  { %v1867_v12 = vpop.xlane.xlu1 %1866 }
 0x967   :  { %4138 = vpow2.f32 %v1884_v5  ;;  %v1879_v4 = vsub.f32 %v5324_v62, %v1867_v12 }
 0x968   :  { %4140 = vpow2.f32 %v1894_v13  ;;  %v3951_v13 = vld [vmem:[#allocation10 + $0x38] sm:$0xff]  }
 0x969   :  { %4142 = vpow2.f32 %v1890_v49  ;;  %v1892_v20 = vmul.f32 1.442695, %v1879_v4 }
 0x96a   :  { %v1873_v14 = vpop.xlane.xlu1 %1872 }
 0x96b   :  { %v1881_v15 = vsub.f32 %v5329_v2, %v1873_v14 }
 0x96d   :  { %v1896_v10 = vmul.f32 1.442695, %v1881_v15 }
 0x96f   :  { %4144 = vpow2.f32 %v1896_v10 }
 0x970   :  { %4146 = vpow2.f32 %v1892_v20 }
 0x971   :  { %v4139_v48 = vpop.eup %4138 }
 0x972   :  { %v1901_v61 = vsel %vm704_vm1, %v4139_v48, 0.0  ;;  %v5375_v18 = vpop.eup %4140 }
 0x973   :  { %1902 = vadd.xlane.f32.xlu1 %v1901_v61  ;;  %v1916_v33 = vsel %vm704_vm1, %v5375_v18, 0.0  ;;  %v5379_v59 = vpop.eup %4142 }
 0x974   :  { %v1910_v2 = vsel %vm704_vm1, %v5379_v59, 0.0 }
 0x977   :  { %1917 = vadd.xlane.f32.xlu1 %v1916_v33 }
 0x979   :  { %v5383_v62 = vpop.eup %4144 }
 0x97a   :  { %v1919_v7 = vsel %vm704_vm1, %v5383_v62, 0.0  ;;  %v4147_v56 = vpop.eup %4146 }
 0x97b   :  { %1911 = vadd.xlane.f32.xlu1 %v1910_v2  ;;  %v1913_v26 = vsel %vm704_vm1, %v4147_v56, 0.0 }
 0x97f   :  { %1920 = vadd.xlane.f32.xlu1 %v1919_v7 }
 0x983   :  { %1914 = vadd.xlane.f32.xlu1 %v1913_v26 }
 0x994   :  { %1944 = vrot.lane.b32.xlu1 %v4957_v8, %s4580_s22 }
 0x9cf   :  { %v1906_v51 = vpop.xlane.xlu0 %1905 }
 0x9d3   :  { %v1909_v1 = vpop.xlane.xlu1 %1908  ;;  %v1900_v52 = vpop.xlane.xlu0 %1899 }
 0x9d7   :  { %v1947_v34 = vpop.permute.xlu0 %1946 }
 0x9db   :  { %v1949_v47 = vpop.permute.xlu0 %1948 }
 0xa00   :  { %v1903_v21 = vpop.xlane.xlu1 %1902 }
 0xa01   :  { %4148 = vrcp.f32 %v1903_v21 }
 0xa02   :  { %4150 = vrcp.f32 %v1900_v52 }
 0xa03   :  { %4152 = vrcp.f32 %v1909_v1  ;;  %v4204_v1 = vld [vmem:[#allocation2] sm:$0xff]  }
 0xa04   :  { %v1918_v17 = vpop.xlane.xlu1 %1917  ;;  %4154 = vrcp.f32 %v1906_v51  ;;  %v231_v51 = vunpack.c.l.bf16 %v4204_v1 }
 0xa08   :  { %v1912_v30 = vpop.xlane.xlu1 %1911 }
 0xa09   :  { %v3780_v55 = vpop.f32.mrb[32].mxu0  ;;  %4156 = vrcp.f32 %v1912_v30  ;;  %v232_v30 = vunpack.c.h.bf16 %v4204_v1 }
 0xa0a   :  { %v1613_v28 = vpop.f32.mrb[33].mxu0 }
 0xa0b   :  { %v3781_v40 = vpop.f32.mrb[34].mxu0  ;;  %v4149_v8 = vpop.eup %4148 }
 0xa0c   :  { %v1645_v38 = vpack.c.bf16 %v3781_v40, %v3780_v55  ;;  %v1616_v35 = vpop.f32.mrb[35].mxu0  ;;  %v1921_v43 = vpop.xlane.xlu1 %1920  ;;  %v1931_v27 = vmul.f32 %v4149_v8, %v4139_v48 }
 0xa0d   :  { %v1644_v31 = vpack.c.bf16 %v1616_v35, %v1613_v28  ;;  %v4151_v6 = vpop.eup %4150  ;;  %v4205_v28 = vld [vmem:[#allocation2 + $0x8] sm:$0xff]  }
 0xa0e   :  { %v1930_v54 = vmul.f32 %v4151_v6, %v5356_v9  ;;  %v4153_v42 = vpop.eup %4152  ;;  %v3950_v9 = vld [vmem:[#allocation10 + $0x30] sm:$0xff]   ;;  %v233_v40 = vunpack.c.l.bf16 %v4205_v28 }
 0xa0f   :  { %3790 = vmatprep.mubr.msk.bf16.mxu0 %vm614_vm0, %v1644_v31  ;;  %v4155_v39 = vpop.eup %4154  ;;  %v1933_v63 = vmul.f32 %v4153_v42, %v5359_v36 }
 0xa10   :  { %3791 = vmatmul.mubr.msk.bf16.vlgmr.msra.gmra.mrb[24].mxu0 %vm614_vm0, %v1645_v38  ;;  %v1915_v46 = vpop.xlane.xlu1 %1914  ;;  %v1938_v45 = vpack.c.bf16 %v1931_v27, %v1930_v54  ;;  %v1932_v58 = vmul.f32 %v4155_v39, %v5350_v3 }
 0xa11   :  { %4158 = vrcp.f32 %v1915_v46  ;;  %3815 = vmatpush3.bf16.msra.mxu0 %v5352_v29  ;;  %v3784_v53 = vpop.f32.mrb[36].mxu0  ;;  %v234_v46 = vunpack.c.h.bf16 %v4205_v28 }
 0xa12   :  { %v1629_v37 = vpop.f32.mrb[37].mxu0  ;;  %4160 = vrcp.f32 %v1921_v43  ;;  %v1939_v19 = vpack.c.bf16 %v1933_v63, %v1932_v58  ;;  %v3952_v58 = vld [vmem:[#allocation13] ss:$16 sps:$4 sm:$0xff]  }
 0xa13   :  { %v3785_v24 = vpop.f32.mrb[38].mxu0  ;;  %4162 = vrcp.f32 %v1918_v17  ;;  %v4157_v29 = vpop.eup %4156 }
 0xa14   :  { %v1647_v32 = vpack.c.bf16 %v3785_v24, %v3784_v53  ;;  %v1632_v50 = vpop.f32.mrb[39].mxu0  ;;  %v1945_v16 = vpop.permute.xlu1 %1944  ;;  %v1934_v60 = vmul.f32 %v4157_v29, %v5379_v59  ;;  %v4206_v24 = vld [vmem:[#allocation2 + $0x10] sm:$0xff]  }
 0xa15   :  { %v1646_v41 = vpack.c.bf16 %v1632_v50, %v1629_v37  ;;  %3816 = vmatprep.subr.bf16.mxu0 %v1945_v16  ;;  %v236_v27 = vunpack.c.h.bf16 %v4206_v24 }
 0xa16   :  { %3817 = vmatpush3.bf16.msra.mxu0 %v1945_v16  ;;  %v235_v16 = vunpack.c.l.bf16 %v4206_v24  ;;  %v3967_v24 = vld [vmem:[#allocation13 + $0x48] ss:$16 sps:$4 sm:$0xff]  }
 0xa17   :  { %3794 = vmatprep.mubr.msk.bf16.mxu0 %vm614_vm0, %v1646_v41  ;;  %3818 = vmatprep.subr.bf16.mxu0 %v1947_v34 }
 0xa18   :  { %3795 = vmatmul.mubr.msk.bf16.gmra.mrb[28].mxu0 %vm614_vm0, %v1647_v32 }
 0xa19   :  { %3822 = vmatprep.mubr.msk.bf16.mxu0 %vm704_vm1, %v1938_v45  ;;  %v4207_v45 = vld [vmem:[#allocation2 + $0x18] sm:$0xff]  }
 0xa1a   :  { %3819 = vmatpush3.bf16.msra.mxu0 %v1947_v34  ;;  %v238_v42 = vunpack.c.h.bf16 %v4207_v45 }
 0xa1b   :  { %v4159_v44 = vpop.eup %4158  ;;  %3820 = vmatprep.subr.bf16.mxu0 %v1949_v47 }
 0xa1c   :  { %v1935_v11 = vmul.f32 %v4159_v44, %v4147_v56  ;;  %v4161_v5 = vpop.eup %4160  ;;  %v3353_v56 = vld [vmem:[#allocation11] ss:$0 sm:$0xff] }
 0xa1d   :  { %v4163_v49 = vpop.eup %4162  ;;  %v1937_v36 = vmul.f32 %v4161_v5, %v5383_v62  ;;  %v3960_v5 = vld [vmem:[#allocation13 + $0x24] ss:$16 sps:$4 sm:$0xff]  }
 0xa1e   :  { %3821 = vmatpush3.bf16.msra.mxu0 %v1949_v47  ;;  %v1940_v12 = vpack.c.bf16 %v1935_v11, %v1934_v60  ;;  %v1936_v14 = vmul.f32 %v4163_v49, %v5375_v18  ;;  %v237_v47 = vunpack.c.l.bf16 %v4207_v45  ;;  %v3954_v60 = vld [vmem:[#allocation13 + $0x4] ss:$16 sps:$4 sm:$0xff]   ;;  %v3958_v49 = vld [vmem:[#allocation13 + $0x20] ss:$16 sps:$4 sm:$0xff]  }
 0xa1f   :  { %3830 = vmatprep.subr.bf16.mxu0 %v3950_v9  ;;  %2492 = vmatprep.subr.bf16.mxu1 %v3954_v60  ;;  %v3976_v45 = vld [vmem:[#allocation13 + $0x80] ss:$16 sps:$4 sm:$0xff]   ;;  %v3996_v60 = vld [vmem:[#allocation13 + $0xe4] ss:$16 sps:$4 sm:$0xff]  }
 0xa20   :  { %v1941_v3 = vpack.c.bf16 %v1937_v36, %v1936_v14  ;;  %2493 = vmatpush1.bf16.msra.mxu1 %v3952_v58  ;;  %v3961_v36 = vld [vmem:[#allocation13 + $0x28] ss:$16 sps:$4 sm:$0xff]  }
 0xa21   :  { %3823 = vmatmul.mubr.msk.bf16.vlgmr.msra.gmra.mrb[40].mxu0 %vm704_vm1, %v1939_v19  ;;  %v3955_v19 = vld [vmem:[#allocation13 + $0x8] ss:$16 sps:$4 sm:$0xff]   ;;  %2494 = vmatprep.subr.bf16.mxu1 %v3960_v5 }
 0xa22   :  { %3826 = vmatprep.mubr.msk.bf16.mxu0 %vm704_vm1, %v1940_v12  ;;  %3831 = vmatpush3.bf16.msra.mxu0 %v3950_v9  ;;  %v3963_v12 = vld [vmem:[#allocation13 + $0x2c] ss:$16 sps:$4 sm:$0xff]   ;;  %v3991_v58 = vld [vmem:[#allocation13 + $0xc8] ss:$16 sps:$4 sm:$0xff]  }
 0xa23   :  { %3832 = vmatprep.subr.bf16.mxu0 %v3951_v13  ;;  %v3997_v5 = vld [vmem:[#allocation13 + $0xe8] ss:$16 sps:$4 sm:$0xff]  }
 0xa24   :  { %2495 = vmatpush1.bf16.msra.mxu1 %v3958_v49  ;;  %v4001_v49 = vld [vmem:[#allocation16 + $0xc0] sm:$0xff]  }
 0xa26   :  { %3833 = vmatpush3.bf16.msra.mxu0 %v3951_v13  ;;  %v3957_v13 = vld [vmem:[#allocation13 + $0xc] ss:$16 sps:$4 sm:$0xff]  }
 0xa27   :  { %2565 = vmatprep.subr.bf16.mxu0 %v3957_v13  ;;  %v3994_v13 = vld [vmem:[#allocation13 + $0xe0] ss:$16 sps:$4 sm:$0xff]  }
 0xa29   :  { %3827 = vmatmul.mubr.msk.bf16.gmra.mrb[44].mxu0 %vm704_vm1, %v1941_v3 }
 0xaf4   :  { %v3824_v15 = vpop.f32.mrb[40].mxu0 }
 0xaf5   :  { %v2000_v4 = vpop.f32.mrb[41].mxu0 }
 0xaf6   :  { %v3825_v10 = vpop.f32.mrb[42].mxu0 }
 0xaf7   :  { %v2032_v48 = vpack.c.bf16 %v3825_v10, %v3824_v15  ;;  %v2003_v20 = vpop.f32.mrb[43].mxu0 }
 0xaf8   :  { %v2031_v61 = vpack.c.bf16 %v2003_v20, %v2000_v4 }
 0xafa   :  { %3834 = vmatprep.mubr.msk.bf16.mxu0 %vm614_vm0, %v2031_v61 }
 0xafb   :  { %3835 = vmatmul.mubr.msk.bf16.vlgmr.msra.gmra.mrb[24].mxu0 %vm614_vm0, %v2032_v48 }
 0xafc   :  { %v3828_v33 = vpop.f32.mrb[44].mxu0  ;;  %2566 = vmatpush1.bf16.msra.mxu0 %v3955_v19  ;;  %v3999_v19 = vld [vmem:[#allocation13 + $0xec] ss:$16 sps:$4 sm:$0xff]  }
 0xafd   :  { %v2016_v59 = vpop.f32.mrb[45].mxu0  ;;  %2567 = vmatprep.subr.bf16.mxu0 %v3963_v12  ;;  %v4000_v12 = vld [vmem:[#allocation16 + $0x40] sm:$0xff]  }
 0xafe   :  { %v3829_v2 = vpop.f32.mrb[46].mxu0 }
 0xaff   :  { %v2034_v62 = vpack.c.bf16 %v3829_v2, %v3828_v33  ;;  %v2019_v7 = vpop.f32.mrb[47].mxu0 }
 0xb00   :  { %v2033_v18 = vpack.c.bf16 %v2019_v7, %v2016_v59  ;;  %2568 = vmatpush1.bf16.msra.mxu0 %v3961_v36 }
 0xb02   :  { %3838 = vmatprep.mubr.msk.bf16.mxu0 %vm614_vm0, %v2033_v18 }
 0xb03   :  { %3839 = vmatmul.mubr.msk.bf16.gmra.mrb[28].mxu0 %vm614_vm0, %v2034_v62 }
 0xb04   :  { %2597 = vmatprep.mubr.bf16.mxu0 %v4578_v0 }
 0xbce   :  { %v3836_v26 = vpop.f32.mrb[24].mxu0 }
 0xbcf   :  { %v2093_v21 = vpop.f32.mrb[25].mxu0  ;;  %v2141_v38 = vadd.f32 %v3836_v26, %v3353_v56 }
 0xbd0   :  { %v2139_v17 = vadd.f32 %v3353_v56, %v2093_v21  ;;  %v3837_v52 = vpop.f32.mrb[26].mxu0 }
 0xbd1   :  { %v2096_v55 = vpop.f32.mrb[27].mxu0  ;;  %v2149_v8 = vadd.f32 %v2141_v38, %v233_v40  ;;  %v2142_v53 = vadd.f32 %v3837_v52, %v3353_v56 }
 0xbd2   :  { %v2147_v35 = vadd.f32 %v2139_v17, %v231_v51  ;;  %v2140_v43 = vadd.f32 %v3353_v56, %v2096_v55 }
 0xbd3   :  { %v2150_v50 = vadd.f32 %v2142_v53, %v234_v46 }
 0xbd4   :  { %v2148_v31 = vadd.f32 %v2140_v43, %v232_v30  ;;  %2157 = vadd.xlane.f32.xlu0 %v2147_v35 }
 0xbd6   :  { %2159 = vadd.xlane.f32.xlu1 %v2148_v31  ;;  %v3840_v6 = vpop.f32.mrb[28].mxu0 }
 0xbd7   :  { %v2109_v37 = vpop.f32.mrb[29].mxu0  ;;  %v2145_v44 = vadd.f32 %v3840_v6, %v3353_v56  ;;  %v3966_v6 = vld [vmem:[#allocation13 + $0x44] ss:$16 sps:$4 sm:$0xff]  }
 0xbd8   :  { %v3841_v34 = vpop.f32.mrb[30].mxu0  ;;  %2161 = vadd.xlane.f32.xlu0 %v2149_v8  ;;  %v2143_v41 = vadd.f32 %v3353_v56, %v2109_v37  ;;  %v3969_v37 = vld [vmem:[#allocation13 + $0x4c] ss:$16 sps:$4 sm:$0xff]   ;;  %2496 = vmatprep.subr.bf16.mxu1 %v3966_v6 }
 0xbd9   :  { %v2112_v32 = vpop.f32.mrb[31].mxu0  ;;  %v2146_v39 = vadd.f32 %v3841_v34, %v3353_v56  ;;  %v2153_v11 = vadd.f32 %v2145_v44, %v237_v47  ;;  %v3964_v34 = vld [vmem:[#allocation13 + $0x40] ss:$16 sps:$4 sm:$0xff]   ;;  %2569 = vmatprep.subr.bf16.mxu0 %v3969_v37  ;;  %v3985_v44 = vld [vmem:[#allocation13 + $0xa8] ss:$16 sps:$4 sm:$0xff]  }
 0xbda   :  { %v2144_v54 = vadd.f32 %v3353_v56, %v2112_v32  ;;  %v2151_v63 = vadd.f32 %v2143_v41, %v235_v16  ;;  %2497 = vmatpush1.bf16.msra.mxu1 %v3964_v34  ;;  %2570 = vmatpush1.bf16.msra.mxu0 %v3967_v24  ;;  %v3975_v32 = vld [vmem:[#allocation13 + $0x6c] ss:$16 sps:$4 sm:$0xff]   ;;  %v3973_v16 = vld [vmem:[#allocation13 + $0x68] ss:$16 sps:$4 sm:$0xff]   ;;  %v3978_v41 = vld [vmem:[#allocation13 + $0x84] ss:$16 sps:$4 sm:$0xff]  }
 0xbdb   :  { %v2154_v9 = vadd.f32 %v2146_v39, %v238_v42  ;;  %2571 = vmatprep.subr.bf16.mxu0 %v3975_v32  ;;  %v3979_v42 = vld [vmem:[#allocation13 + $0x88] ss:$16 sps:$4 sm:$0xff]   ;;  %v3984_v39 = vld [vmem:[#allocation13 + $0xa4] ss:$16 sps:$4 sm:$0xff]   ;;  %v3982_v47 = vld [vmem:[#allocation13 + $0xa0] ss:$16 sps:$4 sm:$0xff]  }
 0xbdc   :  { %v2152_v29 = vadd.f32 %v2144_v54, %v236_v27  ;;  %2163 = vadd.xlane.f32.xlu0 %v2150_v50  ;;  %v3972_v27 = vld [vmem:[#allocation13 + $0x64] ss:$16 sps:$4 sm:$0xff]   ;;  %v3981_v54 = vld [vmem:[#allocation13 + $0x8c] ss:$16 sps:$4 sm:$0xff]  }
 0xbdd   :  { %2498 = vmatprep.subr.bf16.mxu1 %v3972_v27 }
 0xbde   :  { %2167 = vadd.xlane.f32.xlu1 %v2152_v29  ;;  %2572 = vmatpush1.bf16.msra.mxu0 %v3973_v16 }
 0xbdf   :  { %2573 = vmatprep.subr.bf16.mxu0 %v3981_v54 }
 0xbe0   :  { %2165 = vadd.xlane.f32.xlu0 %v2151_v63 }
 0xbe2   :  { %2171 = vadd.xlane.f32.xlu1 %v2154_v9  ;;  %2574 = vmatpush1.bf16.msra.mxu0 %v3979_v42 }
 0xbe4   :  { %2169 = vadd.xlane.f32.xlu0 %v2153_v11 }
 0xc61   :  { %v2158_v14 = vpop.xlane.xlu0 %2157 }
 0xc62   :  { %v2174_v3 = vmul.f32 0.0078125, %v2158_v14 }
 0xc63   :  { %v2160_v15 = vpop.xlane.xlu1 %2159 }
 0xc64   :  { %v5410_v4 = vsub.f32 %v2147_v35, %v2174_v3  ;;  %v2175_v10 = vmul.f32 0.0078125, %v2160_v15 }
 0xc65   :  { %v2162_v48 = vpop.xlane.xlu0 %2161 }
 0xc66   :  { %v5412_v20 = vsub.f32 %v2148_v31, %v2175_v10  ;;  %v2176_v61 = vmul.f32 0.0078125, %v2162_v48  ;;  %v2190_v33 = vmul.f32 %v5410_v4, %v5410_v4 }
 0xc68   :  { %v5416_v59 = vsub.f32 %v2149_v8, %v2176_v61  ;;  %2198 = vadd.xlane.f32.xlu0 %v2190_v33  ;;  %v2191_v2 = vmul.f32 %v5412_v20, %v5412_v20 }
 0xc69   :  { %v2164_v62 = vpop.xlane.xlu0 %2163 }
 0xc6a   :  { %v2177_v7 = vmul.f32 0.0078125, %v2164_v62  ;;  %2200 = vadd.xlane.f32.xlu1 %v2191_v2  ;;  %v2192_v18 = vmul.f32 %v5416_v59, %v5416_v59 }
 0xc6b   :  { %v2168_v56 = vpop.xlane.xlu1 %2167 }
 0xc6c   :  { %v5422_v26 = vsub.f32 %v2150_v50, %v2177_v7  ;;  %v2179_v1 = vmul.f32 0.0078125, %v2168_v56  ;;  %2202 = vadd.xlane.f32.xlu0 %v2192_v18  ;;  %v3970_v50 = vld [vmem:[#allocation13 + $0x60] ss:$16 sps:$4 sm:$0xff]  }
 0xc6d   :  { %v2166_v51 = vpop.xlane.xlu0 %2165  ;;  %2499 = vmatpush1.bf16.msra.mxu1 %v3970_v50  ;;  %v5447_v50 = vld [vmem:[#allocation20] ss:$0 sm:$0xff] }
 0xc6e   :  { %v5424_v21 = vsub.f32 %v2152_v29, %v2179_v1  ;;  %v2178_v17 = vmul.f32 0.0078125, %v2166_v51  ;;  %v2193_v52 = vmul.f32 %v5422_v26, %v5422_v26  ;;  %2500 = vmatprep.subr.bf16.mxu1 %v3978_v41  ;;  %v3987_v29 = vld [vmem:[#allocation13 + $0xac] ss:$16 sps:$4 sm:$0xff]  }
 0xc6f   :  { %v2172_v30 = vpop.xlane.xlu1 %2171  ;;  %2575 = vmatprep.subr.bf16.mxu0 %v3987_v29  ;;  %v4003_v29 = vld [vmem:[#allocation16 + $0x80] sm:$0xff]  }
 0xc70   :  { %v5428_v55 = vsub.f32 %v2151_v63, %v2178_v17  ;;  %v2181_v28 = vmul.f32 0.0078125, %v2172_v30  ;;  %2204 = vadd.xlane.f32.xlu1 %v2193_v52  ;;  %v2195_v43 = vmul.f32 %v5424_v21, %v5424_v21  ;;  %2576 = vmatpush1.bf16.msra.mxu0 %v3985_v44  ;;  %v3990_v63 = vld [vmem:[#allocation13 + $0xc4] ss:$16 sps:$4 sm:$0xff]   ;;  %v4005_v44 = vld [vmem:[#allocation16 + $0xc8] sm:$0xff]  }
 0xc71   :  { %v2170_v40 = vpop.xlane.xlu0 %2169  ;;  %2501 = vmatpush1.bf16.msra.mxu1 %v3976_v45  ;;  %v5442_v30 = vld [vmem:[#allocation19] ss:$0 sm:$0xff] }
 0xc72   :  { %v5430_v38 = vsub.f32 %v2154_v9, %v2181_v28  ;;  %v2180_v35 = vmul.f32 0.0078125, %v2170_v40  ;;  %v2194_v31 = vmul.f32 %v5428_v55, %v5428_v55  ;;  %2502 = vmatprep.subr.bf16.mxu1 %v3984_v39  ;;  %v3993_v9 = vld [vmem:[#allocation13 + $0xcc] ss:$16 sps:$4 sm:$0xff]   ;;  %v4002_v39 = vld [vmem:[#allocation16] sm:$0xff]  }
 0xc73   :  { %2577 = vmatprep.subr.bf16.mxu0 %v3993_v9 }
 0xc74   :  { %v5436_v8 = vsub.f32 %v2153_v11, %v2180_v35  ;;  %2208 = vadd.xlane.f32.xlu1 %v2195_v43  ;;  %2206 = vadd.xlane.f32.xlu0 %v2194_v31  ;;  %v2197_v46 = vmul.f32 %v5430_v38, %v5430_v38  ;;  %v3988_v11 = vld [vmem:[#allocation13 + $0xc0] ss:$16 sps:$4 sm:$0xff]  }
 0xc75   :  { %2503 = vmatpush1.bf16.msra.mxu1 %v3982_v47  ;;  %2578 = vmatpush1.bf16.msra.mxu0 %v3991_v58  ;;  %v4004_v47 = vld [vmem:[#allocation16 + $0x48] sm:$0xff]  }
 0xc76   :  { %v2196_v53 = vmul.f32 %v5436_v8, %v5436_v8  ;;  %2504 = vmatprep.subr.bf16.mxu1 %v3990_v63  ;;  %2579 = vmatprep.subr.bf16.mxu0 %v3999_v19  ;;  %v4007_v19 = vld [vmem:[#allocation16 + $0x88] sm:$0xff]  }
 0xc78   :  { %2212 = vadd.xlane.f32.xlu1 %v2197_v46  ;;  %2210 = vadd.xlane.f32.xlu0 %v2196_v53 }
 0xc79   :  { %2505 = vmatpush1.bf16.msra.mxu1 %v3988_v11  ;;  %2580 = vmatpush1.bf16.msra.mxu0 %v3997_v5  ;;  %v4008_v5 = vld [vmem:[#allocation16 + $0x50] sm:$0xff]  }
 0xc7a   :  { %2506 = vmatprep.subr.bf16.mxu1 %v3996_v60  ;;  %3602 = vmatprep.subr.bf16.mxu0 %v4001_v49  ;;  %v4006_v60 = vld [vmem:[#allocation16 + $0x8] sm:$0xff]  }
 0xc7d   :  { %2507 = vmatpush1.bf16.msra.mxu1 %v3994_v13 }
 0xc7e   :  { %3562 = vmatprep.subr.bf16.mxu1 %v4000_v12  ;;  %v4009_v12 = vld [vmem:[#allocation16 + $0xd0] sm:$0xff]  }
 0xcf5   :  { %v2199_v36 = vpop.xlane.xlu0 %2198 }
 0xcf6   :  { %v2214_v14 = vmul.f32 0.0078125, %v2199_v36 }
 0xcf7   :  { %v2201_v3 = vpop.xlane.xlu1 %2200 }
 0xcf8   :  { %v2222_v15 = vadd.f32 1e-05, %v2214_v14  ;;  %v2215_v10 = vmul.f32 0.0078125, %v2201_v3 }
 0xcf9   :  { %v2203_v48 = vpop.xlane.xlu0 %2202 }
 0xcfa   :  { %4164 = vrsqrt.f32 %v2222_v15  ;;  %v2223_v61 = vadd.f32 1e-05, %v2215_v10  ;;  %v2216_v33 = vmul.f32 0.0078125, %v2203_v48  ;;  %v4010_v15 = vld [vmem:[#allocation16 + $0x10] sm:$0xff]   ;;  %v4012_v48 = vld [vmem:[#allocation16 + $0x58] sm:$0xff]  }
 0xcfb   :  { %v4011_v10 = vld [vmem:[#allocation16 + $0x90] sm:$0xff]  }
 0xcfc   :  { %4166 = vrsqrt.f32 %v2223_v61  ;;  %v2224_v2 = vadd.f32 1e-05, %v2216_v33  ;;  %v4013_v61 = vld [vmem:[#allocation16 + $0xd8] sm:$0xff]  }
 0xcfd   :  { %v2205_v62 = vpop.xlane.xlu1 %2204 }
 0xcfe   :  { %4168 = vrsqrt.f32 %v2224_v2  ;;  %v2217_v7 = vmul.f32 0.0078125, %v2205_v62 }
 0xd00   :  { %v2225_v18 = vadd.f32 1e-05, %v2217_v7 }
 0xd01   :  { %v2209_v56 = vpop.xlane.xlu1 %2208  ;;  %v2207_v1 = vpop.xlane.xlu0 %2206 }
 0xd02   :  { %4170 = vrsqrt.f32 %v2225_v18  ;;  %v2219_v51 = vmul.f32 0.0078125, %v2209_v56  ;;  %v2218_v17 = vmul.f32 0.0078125, %v2207_v1  ;;  %v4014_v18 = vld [vmem:[#allocation16 + $0x18] sm:$0xff]   ;;  %v4016_v1 = vld [vmem:[#allocation16 + $0x60] sm:$0xff]  }
 0xd03   :  { %v4015_v56 = vld [vmem:[#allocation16 + $0x98] sm:$0xff]  }
 0xd04   :  { %v4165_v52 = vpop.eup %4164  ;;  %v2227_v28 = vadd.f32 1e-05, %v2219_v51  ;;  %v2226_v40 = vadd.f32 1e-05, %v2218_v17  ;;  %v4017_v51 = vld [vmem:[#allocation16 + $0xe0] sm:$0xff]  }
 0xd05   :  { %v2238_v35 = vmul.f32 %v4165_v52, %v5410_v4  ;;  %v2213_v43 = vpop.xlane.xlu1 %2212  ;;  %v2211_v31 = vpop.xlane.xlu0 %2210 }
 0xd06   :  { %v4167_v46 = vpop.eup %4166  ;;  %4172 = vrsqrt.f32 %v2227_v28  ;;  %v2221_v53 = vmul.f32 0.0078125, %v2213_v43  ;;  %v2220_v6 = vmul.f32 0.0078125, %v2211_v31 }
 0xd07   :  { %v2252_v37 = vmul.f32 %v5442_v30, %v2238_v35  ;;  %v2239_v34 = vmul.f32 %v4167_v46, %v5412_v20  ;;  %4174 = vrsqrt.f32 %v2226_v40  ;;  %v4019_v40 = vld [vmem:[#allocation16 + $0xa0] sm:$0xff]   ;;  %v4021_v35 = vld [vmem:[#allocation16 + $0xe8] sm:$0xff]  }
 0xd08   :  { %v4169_v24 = vpop.eup %4168  ;;  %v2229_v27 = vadd.f32 1e-05, %v2221_v53  ;;  %v2228_v32 = vadd.f32 1e-05, %v2220_v6  ;;  %v4022_v46 = vld [vmem:[#allocation16 + $0x28] sm:$0xff]   ;;  %v4025_v6 = vld [vmem:[#allocation16 + $0xf0] sm:$0xff]  }
 0xd09   :  { %v2253_v16 = vmul.f32 %v5442_v30, %v2239_v34  ;;  %v5451_v4 = vadd.f32 %v5447_v50, %v2252_v37  ;;  %v2240_v54 = vmul.f32 %v4169_v24, %v5416_v59  ;;  %v4023_v53 = vld [vmem:[#allocation16 + $0xa8] sm:$0xff]   ;;  %v4026_v37 = vld [vmem:[#allocation16 + $0x30] sm:$0xff]   ;;  %v4028_v24 = vld [vmem:[#allocation16 + $0x78] sm:$0xff]  }
 0xd0a   :  { %4176 = vrsqrt.f32 %v2229_v27  ;;  %v4027_v34 = vld [vmem:[#allocation16 + $0xb0] sm:$0xff]   ;;  %v4029_v27 = vld [vmem:[#allocation16 + $0xf8] sm:$0xff]  }
 0xd0b   :  { %v5454_v41 = vadd.f32 %v5447_v50, %v2253_v16  ;;  %4178 = vrsqrt.f32 %v2228_v32  ;;  %v2254_v63 = vmul.f32 %v5442_v30, %v2240_v54  ;;  %v4030_v32 = vld [vmem:[#allocation16 + $0x38] sm:$0xff]   ;;  %v2326_v54 = vsub.s32 3, %v4854_v22 }
 0xd0c   :  { %v4171_v45 = vpop.eup %4170  ;;  %v2310_v16 = vld [vmem:[#allocation14] sm:$0xf] }
 0xd0d   :  { %v2274_v20 = vpack.c.bf16 %v5454_v41, %v5451_v4  ;;  %v2241_v42 = vmul.f32 %v4171_v45, %v5422_v26  ;;  %v5470_v49 = vadd.f32 %v5447_v50, %v2254_v63  ;;  %v5503_v45 = vrot.slane %v2310_v16, %v275_v23 }
 0xd0f   :  { %2525 = vmatmul.mubr.bf16.vlgmr.msra.gmra.mrb[48].mxu1 %v2274_v20  ;;  %2598 = vmatmul.mubr.bf16.vlgmr.msra.gmra.mrb[48].mxu0 %v2274_v20  ;;  %v2255_v9 = vmul.f32 %v5442_v30, %v2241_v42  ;;  %v5507_v20 = vrot.slane %v2310_v16, %v283_v57  ;;  %v5511_v42 = vrot.slane %v2310_v16, %v279_v25 }
 0xd10   :  { %v4173_v11 = vpop.eup %4172  ;;  %2534 = vmatprep.mubr.bf16.mxu1 %v4578_v0  ;;  %2607 = vmatprep.mubr.bf16.mxu0 %v4578_v0 }
 0xd11   :  { %v4175_v59 = vpop.eup %4174  ;;  %v5465_v58 = vadd.f32 %v5447_v50, %v2255_v9  ;;  %v2243_v26 = vmul.f32 %v4173_v11, %v5424_v21  ;;  %3563 = vmatpush3.bf16.msra.mxu1 %v4002_v39  ;;  %3603 = vmatpush3.bf16.msra.mxu0 %v4003_v29  ;;  %v5513_v39 = vrot.slane %v2310_v16, %v2326_v54 }
 0xd12   :  { %v2242_v13 = vmul.f32 %v4175_v59, %v5428_v55  ;;  %3564 = vmatprep.subr.bf16.mxu1 %v4004_v47  ;;  %3604 = vmatprep.subr.bf16.mxu0 %v4005_v44 }
 0xd13   :  { %v2257_v36 = vmul.f32 %v5442_v30, %v2243_v26  ;;  %v2275_v3 = vpack.c.bf16 %v5465_v58, %v5470_v49 }
 0xd14   :  { %v4177_v14 = vpop.eup %4176  ;;  %v2256_v21 = vmul.f32 %v5442_v30, %v2242_v13 }
 0xd15   :  { %3565 = vmatpush3.bf16.msra.mxu1 %v4006_v60  ;;  %3605 = vmatpush3.bf16.msra.mxu0 %v4007_v19  ;;  %v4179_v55 = vpop.eup %4178  ;;  %v5479_v33 = vadd.f32 %v5447_v50, %v2257_v36  ;;  %v2245_v7 = vmul.f32 %v4177_v14, %v5430_v38  ;;  %v4020_v38 = vld [vmem:[#allocation16 + $0x68] sm:$0xff]  }
 0xd16   :  { %3566 = vmatprep.subr.bf16.mxu1 %v4008_v5  ;;  %3606 = vmatprep.subr.bf16.mxu0 %v4009_v12  ;;  %v5482_v2 = vadd.f32 %v5447_v50, %v2256_v21  ;;  %v2244_v62 = vmul.f32 %v4179_v55, %v5436_v8  ;;  %v4018_v8 = vld [vmem:[#allocation16 + $0x20] sm:$0xff]  }
 0xd17   :  { %2535 = vmatmul.mubr.bf16.gmra.mrb[52].mxu1 %v2275_v3  ;;  %2608 = vmatmul.mubr.bf16.gmra.mrb[52].mxu0 %v2275_v3  ;;  %v2259_v28 = vmul.f32 %v5442_v30, %v2245_v7 }
 0xd18   :  { %2544 = vmatprep.mubr.bf16.mxu1 %v4578_v0  ;;  %2617 = vmatprep.mubr.bf16.mxu0 %v4578_v0  ;;  %v2276_v17 = vpack.c.bf16 %v5479_v33, %v5482_v2  ;;  %v2258_v52 = vmul.f32 %v5442_v30, %v2244_v62 }
 0xd19   :  { %3567 = vmatpush3.bf16.msra.mxu1 %v4010_v15  ;;  %3607 = vmatpush3.bf16.msra.mxu0 %v4011_v10  ;;  %v5496_v31 = vadd.f32 %v5447_v50, %v2259_v28 }
 0xd1a   :  { %3568 = vmatprep.subr.bf16.mxu1 %v4012_v48  ;;  %3608 = vmatprep.subr.bf16.mxu0 %v4013_v61  ;;  %v5493_v43 = vadd.f32 %v5447_v50, %v2258_v52  ;;  %v4031_v50 = vld [vmem:[#allocation16 + $0xb8] sm:$0xff]  }
 0xd1c   :  { %v2277_v30 = vpack.c.bf16 %v5496_v31, %v5493_v43 }
 0xd1d   :  { %3569 = vmatpush3.bf16.msra.mxu1 %v4014_v18  ;;  %3609 = vmatpush3.bf16.msra.mxu0 %v4015_v56 }
 0xd1e   :  { %3570 = vmatprep.subr.bf16.mxu1 %v4016_v1  ;;  %3610 = vmatprep.subr.bf16.mxu0 %v4017_v51 }
 0xd1f   :  { %2545 = vmatmul.mubr.bf16.gmra.mrb[56].mxu1 %v2276_v17  ;;  %2618 = vmatmul.mubr.bf16.gmra.mrb[56].mxu0 %v2276_v17 }
 0xd20   :  { %2554 = vmatprep.mubr.bf16.mxu1 %v4578_v0  ;;  %2627 = vmatprep.mubr.bf16.mxu0 %v4578_v0  ;;  %v4024_v0 = vld [vmem:[#allocation16 + $0x70] sm:$0xff]  }
 0xd21   :  { %3571 = vmatpush3.bf16.msra.mxu1 %v4018_v8  ;;  %3611 = vmatpush3.bf16.msra.mxu0 %v4019_v40 }
 0xd22   :  { %3572 = vmatprep.subr.bf16.mxu1 %v4020_v38  ;;  %3612 = vmatprep.subr.bf16.mxu0 %v4021_v35 }
 0xd25   :  { %3573 = vmatpush3.bf16.msra.mxu1 %v4022_v46  ;;  %3613 = vmatpush3.bf16.msra.mxu0 %v4023_v53 }
 0xd26   :  { %3574 = vmatprep.subr.bf16.mxu1 %v4024_v0  ;;  %3614 = vmatprep.subr.bf16.mxu0 %v4025_v6 }
 0xd27   :  { %2555 = vmatmul.mubr.bf16.gmra.mrb[60].mxu1 %v2277_v30  ;;  %2628 = vmatmul.mubr.bf16.gmra.mrb[60].mxu0 %v2277_v30 }
 0xd29   :  { %3575 = vmatpush3.bf16.msra.mxu1 %v4026_v37  ;;  %3615 = vmatpush3.bf16.msra.mxu0 %v4027_v34 }
 0xd2a   :  { %3576 = vmatprep.subr.bf16.mxu1 %v4028_v24  ;;  %3616 = vmatprep.subr.bf16.mxu0 %v4029_v27 }
 0xd2d   :  { %3577 = vmatpush3.bf16.msra.mxu1 %v4030_v32  ;;  %3617 = vmatpush3.bf16.msra.mxu0 %v4031_v50 }
 0xde2   :  { %v2526_v29 = vpop.f32.mrb[48].mxu1  ;;  %v2599_v47 = vpop.f32.mrb[48].mxu0 }
 0xde3   :  { %v2527_v44 = vadd.f32 %v2526_v29, %v5503_v45  ;;  %v2600_v63 = vadd.f32 %v2599_v47, %v5507_v20  ;;  %v2528_v9 = vpop.f32.mrb[49].mxu1  ;;  %v2601_v11 = vpop.f32.mrb[49].mxu0 }
 0xde4   :  { %v2529_v23 = vadd.f32 %v2528_v9, %v5511_v42  ;;  %v2602_v59 = vadd.f32 %v2601_v11, %v5513_v39  ;;  %v2530_v57 = vpop.f32.mrb[50].mxu1  ;;  %v2603_v26 = vpop.f32.mrb[50].mxu0 }
 0xde5   :  { %v2531_v22 = vadd.f32 %v2530_v57, %v5503_v45  ;;  %v2604_v25 = vadd.f32 %v2603_v26, %v5507_v20  ;;  %v2532_v60 = vpop.f32.mrb[51].mxu1  ;;  %v2605_v19 = vpop.f32.mrb[51].mxu0  ;;  %v2638_v12 = vmax.f32 %v2527_v44, 0.0  ;;  %v2640_v36 = vmax.f32 %v2600_v63, 0.0 }
 0xde6   :  { %v2533_v13 = vadd.f32 %v2532_v60, %v5511_v42  ;;  %v2606_v5 = vadd.f32 %v2605_v19, %v5513_v39  ;;  %v2639_v21 = vmax.f32 %v2529_v23, 0.0  ;;  %v2641_v15 = vmax.f32 %v2602_v59, 0.0 }
 0xde7   :  { %v2642_v14 = vmax.f32 %v2531_v22, 0.0  ;;  %v2644_v3 = vmax.f32 %v2604_v25, 0.0 }
 0xde8   :  { %v2643_v10 = vmax.f32 %v2533_v13, 0.0  ;;  %v2645_v55 = vmax.f32 %v2606_v5, 0.0 }
 0xde9   :  { %v2670_v48 = vpack.c.bf16 %v2642_v14, %v2638_v12  ;;  %v2672_v61 = vpack.c.bf16 %v2644_v3, %v2640_v36 }
 0xdea   :  { %v2671_v62 = vpack.c.bf16 %v2643_v10, %v2639_v21  ;;  %v2673_v7 = vpack.c.bf16 %v2645_v55, %v2641_v15  ;;  %v2536_v18 = vpop.f32.mrb[52].mxu1  ;;  %v2609_v56 = vpop.f32.mrb[52].mxu0 }
 0xdeb   :  { %v2537_v1 = vadd.f32 %v2536_v18, %v5503_v45  ;;  %v2610_v51 = vadd.f32 %v2609_v56, %v5507_v20  ;;  %v2538_v17 = vpop.f32.mrb[53].mxu1  ;;  %v2611_v52 = vpop.f32.mrb[53].mxu0 }
 0xdec   :  { %v2539_v28 = vadd.f32 %v2538_v17, %v5511_v42  ;;  %v2612_v8 = vadd.f32 %v2611_v52, %v5513_v39  ;;  %v2540_v40 = vpop.f32.mrb[54].mxu1  ;;  %v2613_v38 = vpop.f32.mrb[54].mxu0  ;;  %2981 = vmatprep.mubr.bf16.mxu1 %v2671_v62  ;;  %3046 = vmatprep.mubr.bf16.mxu0 %v2673_v7 }
 0xded   :  { %v2541_v35 = vadd.f32 %v2540_v40, %v5503_v45  ;;  %v2614_v30 = vadd.f32 %v2613_v38, %v5507_v20  ;;  %v2542_v46 = vpop.f32.mrb[55].mxu1  ;;  %v2615_v53 = vpop.f32.mrb[55].mxu0  ;;  %2982 = vmatmul.mubr.bf16.vlgmr.msra.gmra.mrb[64].mxu1 %v2670_v48  ;;  %3047 = vmatmul.mubr.bf16.vlgmr.msra.gmra.mrb[64].mxu0 %v2672_v61  ;;  %v2646_v37 = vmax.f32 %v2537_v1, 0.0  ;;  %v2648_v34 = vmax.f32 %v2610_v51, 0.0 }
 0xdee   :  { %v2543_v0 = vadd.f32 %v2542_v46, %v5511_v42  ;;  %v2616_v6 = vadd.f32 %v2615_v53, %v5513_v39  ;;  %v2647_v32 = vmax.f32 %v2539_v28, 0.0  ;;  %v2649_v50 = vmax.f32 %v2612_v8, 0.0 }
 0xdef   :  { %v2650_v24 = vmax.f32 %v2541_v35, 0.0  ;;  %v2652_v27 = vmax.f32 %v2614_v30, 0.0 }
 0xdf0   :  { %v2651_v16 = vmax.f32 %v2543_v0, 0.0  ;;  %v2653_v54 = vmax.f32 %v2616_v6, 0.0 }
 0xdf1   :  { %v2674_v29 = vpack.c.bf16 %v2650_v24, %v2646_v37  ;;  %v2676_v47 = vpack.c.bf16 %v2652_v27, %v2648_v34 }
 0xdf2   :  { %v2675_v44 = vpack.c.bf16 %v2651_v16, %v2647_v32  ;;  %v2677_v63 = vpack.c.bf16 %v2653_v54, %v2649_v50  ;;  %v2546_v9 = vpop.f32.mrb[56].mxu1  ;;  %v2619_v11 = vpop.f32.mrb[56].mxu0 }
 0xdf3   :  { %v2547_v23 = vadd.f32 %v2546_v9, %v5503_v45  ;;  %v2620_v59 = vadd.f32 %v2619_v11, %v5507_v20  ;;  %v2548_v57 = vpop.f32.mrb[57].mxu1  ;;  %v2621_v26 = vpop.f32.mrb[57].mxu0 }
 0xdf4   :  { %v2549_v22 = vadd.f32 %v2548_v57, %v5511_v42  ;;  %v2622_v25 = vadd.f32 %v2621_v26, %v5513_v39  ;;  %v2550_v60 = vpop.f32.mrb[58].mxu1  ;;  %v2623_v19 = vpop.f32.mrb[58].mxu0  ;;  %2989 = vmatprep.mubr.bf16.mxu1 %v2675_v44  ;;  %3054 = vmatprep.mubr.bf16.mxu0 %v2677_v63 }
 0xdf5   :  { %v2551_v13 = vadd.f32 %v2550_v60, %v5503_v45  ;;  %v2624_v5 = vadd.f32 %v2623_v19, %v5507_v20  ;;  %v2552_v12 = vpop.f32.mrb[59].mxu1  ;;  %v2625_v36 = vpop.f32.mrb[59].mxu0  ;;  %2990 = vmatmul.mubr.bf16.gmra.mrb[68].mxu1 %v2674_v29  ;;  %3055 = vmatmul.mubr.bf16.gmra.mrb[68].mxu0 %v2676_v47  ;;  %v2654_v21 = vmax.f32 %v2547_v23, 0.0  ;;  %v2656_v15 = vmax.f32 %v2620_v59, 0.0  ;;  %v5547_v59 = vld [vmem:[#allocation17] ss:$0 sm:$0xff] }
 0xdf6   :  { %v2553_v14 = vadd.f32 %v2552_v12, %v5511_v42  ;;  %v2626_v3 = vadd.f32 %v2625_v36, %v5513_v39  ;;  %v2655_v48 = vmax.f32 %v2549_v22, 0.0  ;;  %v2657_v61 = vmax.f32 %v2622_v25, 0.0 }
 0xdf7   :  { %v2658_v10 = vmax.f32 %v2551_v13, 0.0  ;;  %v2660_v55 = vmax.f32 %v2624_v5, 0.0 }
 0xdf8   :  { %v2659_v62 = vmax.f32 %v2553_v14, 0.0  ;;  %v2661_v7 = vmax.f32 %v2626_v3, 0.0 }
 0xdf9   :  { %v2678_v18 = vpack.c.bf16 %v2658_v10, %v2654_v21  ;;  %v2680_v56 = vpack.c.bf16 %v2660_v55, %v2656_v15 }
 0xdfa   :  { %v2679_v1 = vpack.c.bf16 %v2659_v62, %v2655_v48  ;;  %v2681_v51 = vpack.c.bf16 %v2661_v7, %v2657_v61  ;;  %v2556_v17 = vpop.f32.mrb[60].mxu1  ;;  %v2629_v52 = vpop.f32.mrb[60].mxu0 }
 0xdfb   :  { %v2557_v28 = vadd.f32 %v2556_v17, %v5503_v45  ;;  %v2630_v8 = vadd.f32 %v2629_v52, %v5507_v20  ;;  %v2558_v40 = vpop.f32.mrb[61].mxu1  ;;  %v2631_v38 = vpop.f32.mrb[61].mxu0 }
 0xdfc   :  { %v2559_v35 = vadd.f32 %v2558_v40, %v5511_v42  ;;  %v2632_v30 = vadd.f32 %v2631_v38, %v5513_v39  ;;  %v2560_v46 = vpop.f32.mrb[62].mxu1  ;;  %v2633_v53 = vpop.f32.mrb[62].mxu0  ;;  %2997 = vmatprep.mubr.bf16.mxu1 %v2679_v1  ;;  %3062 = vmatprep.mubr.bf16.mxu0 %v2681_v51 }
 0xdfd   :  { %v2561_v0 = vadd.f32 %v2560_v46, %v5503_v45  ;;  %v2634_v6 = vadd.f32 %v2633_v53, %v5507_v20  ;;  %v2562_v37 = vpop.f32.mrb[63].mxu1  ;;  %v2635_v34 = vpop.f32.mrb[63].mxu0  ;;  %2998 = vmatmul.mubr.bf16.gmra.mrb[72].mxu1 %v2678_v18  ;;  %3063 = vmatmul.mubr.bf16.gmra.mrb[72].mxu0 %v2680_v56  ;;  %v2662_v32 = vmax.f32 %v2557_v28, 0.0  ;;  %v2664_v50 = vmax.f32 %v2630_v8, 0.0 }
 0xdfe   :  { %v2563_v24 = vadd.f32 %v2562_v37, %v5511_v42  ;;  %v2636_v27 = vadd.f32 %v2635_v34, %v5513_v39  ;;  %v2663_v29 = vmax.f32 %v2559_v35, 0.0  ;;  %v2665_v47 = vmax.f32 %v2632_v30, 0.0 }
 0xdff   :  { %v2666_v16 = vmax.f32 %v2561_v0, 0.0  ;;  %v2668_v54 = vmax.f32 %v2634_v6, 0.0 }
 0xe00   :  { %v2667_v44 = vmax.f32 %v2563_v24, 0.0  ;;  %v2669_v63 = vmax.f32 %v2636_v27, 0.0 }
 0xe01   :  { %v2682_v9 = vpack.c.bf16 %v2666_v16, %v2662_v32  ;;  %v2684_v45 = vpack.c.bf16 %v2668_v54, %v2664_v50 }
 0xe02   :  { %v2683_v11 = vpack.c.bf16 %v2667_v44, %v2663_v29  ;;  %v2685_v20 = vpack.c.bf16 %v2669_v63, %v2665_v47 }
 0xe04   :  { %3005 = vmatprep.mubr.bf16.mxu1 %v2683_v11  ;;  %3070 = vmatprep.mubr.bf16.mxu0 %v2685_v20 }
 0xe05   :  { %3006 = vmatmul.mubr.bf16.gmra.mrb[76].mxu1 %v2682_v9  ;;  %3071 = vmatmul.mubr.bf16.gmra.mrb[76].mxu0 %v2684_v45 }
 0xec0   :  { %v3578_v23 = vpop.f32.mrb[64].mxu1  ;;  %v3618_v42 = vpop.f32.mrb[64].mxu0 }
 0xec1   :  { %v3579_v39 = vpop.f32.mrb[65].mxu1  ;;  %v3619_v57 = vpop.f32.mrb[65].mxu0 }
 0xec2   :  { %v3580_v26 = vadd.f32 %v3579_v39, %v3578_v23  ;;  %v3620_v22 = vadd.f32 %v3619_v57, %v3618_v42  ;;  %v3581_v25 = vpop.f32.mrb[66].mxu1  ;;  %v3621_v60 = vpop.f32.mrb[66].mxu0 }
 0xec3   :  { %v3582_v19 = vpop.f32.mrb[67].mxu1  ;;  %v3622_v13 = vpop.f32.mrb[67].mxu0 }
 0xec4   :  { %v2984_v5 = vadd.f32 %v3580_v26, %v5547_v59  ;;  %v3583_v12 = vadd.f32 %v3582_v19, %v3581_v25  ;;  %v3623_v36 = vadd.f32 %v3622_v13, %v3621_v60 }
 0xec6   :  { %v3049_v14 = vadd.f32 %v3620_v22, %v2984_v5  ;;  %v2987_v3 = vadd.f32 %v3583_v12, %v5547_v59 }
 0xec8   :  { %v3052_v21 = vadd.f32 %v3623_v36, %v2987_v3  ;;  %v3584_v15 = vpop.f32.mrb[68].mxu1  ;;  %v3624_v10 = vpop.f32.mrb[68].mxu0  ;;  %v5552_v55 = vadd.f32 %v3049_v14, %v5451_v4 }
 0xec9   :  { %v3585_v48 = vpop.f32.mrb[69].mxu1  ;;  %v3625_v61 = vpop.f32.mrb[69].mxu0 }
 0xeca   :  { %v3586_v62 = vadd.f32 %v3585_v48, %v3584_v15  ;;  %v3626_v7 = vadd.f32 %v3625_v61, %v3624_v10  ;;  %v3587_v18 = vpop.f32.mrb[70].mxu1  ;;  %v3627_v56 = vpop.f32.mrb[70].mxu0  ;;  %3089 = vadd.xlane.f32.xlu0 %v5552_v55  ;;  %v3080_v1 = vadd.f32 %v3052_v21, %v5454_v41 }
 0xecb   :  { %v3588_v51 = vpop.f32.mrb[71].mxu1  ;;  %v3628_v17 = vpop.f32.mrb[71].mxu0 }
 0xecc   :  { %v2992_v52 = vadd.f32 %v3586_v62, %v5547_v59  ;;  %v3589_v28 = vadd.f32 %v3588_v51, %v3587_v18  ;;  %v3629_v8 = vadd.f32 %v3628_v17, %v3627_v56  ;;  %3091 = vadd.xlane.f32.xlu1 %v3080_v1 }
 0xece   :  { %v3057_v40 = vadd.f32 %v3626_v7, %v2992_v52  ;;  %v2995_v4 = vadd.f32 %v3589_v28, %v5547_v59 }
 0xed0   :  { %v3060_v38 = vadd.f32 %v3629_v8, %v2995_v4  ;;  %v3590_v35 = vpop.f32.mrb[72].mxu1  ;;  %v3630_v30 = vpop.f32.mrb[72].mxu0  ;;  %v3081_v46 = vadd.f32 %v3057_v40, %v5470_v49 }
 0xed1   :  { %v3591_v53 = vpop.f32.mrb[73].mxu1  ;;  %v3631_v0 = vpop.f32.mrb[73].mxu0 }
 0xed2   :  { %v3592_v6 = vadd.f32 %v3591_v53, %v3590_v35  ;;  %v3632_v37 = vadd.f32 %v3631_v0, %v3630_v30  ;;  %v3593_v41 = vpop.f32.mrb[74].mxu1  ;;  %v3633_v34 = vpop.f32.mrb[74].mxu0  ;;  %3093 = vadd.xlane.f32.xlu0 %v3081_v46  ;;  %v3082_v24 = vadd.f32 %v3060_v38, %v5465_v58 }
 0xed3   :  { %v3594_v27 = vpop.f32.mrb[75].mxu1  ;;  %v3634_v32 = vpop.f32.mrb[75].mxu0 }
 0xed4   :  { %v3000_v50 = vadd.f32 %v3592_v6, %v5547_v59  ;;  %v3595_v16 = vadd.f32 %v3594_v27, %v3593_v41  ;;  %v3635_v54 = vadd.f32 %v3634_v32, %v3633_v34  ;;  %3095 = vadd.xlane.f32.xlu1 %v3082_v24 }
 0xed6   :  { %v3065_v29 = vadd.f32 %v3632_v37, %v3000_v50  ;;  %v3003_v47 = vadd.f32 %v3595_v16, %v5547_v59 }
 0xed8   :  { %v3068_v49 = vadd.f32 %v3635_v54, %v3003_v47  ;;  %v3596_v44 = vpop.f32.mrb[76].mxu1  ;;  %v3636_v63 = vpop.f32.mrb[76].mxu0  ;;  %v3083_v9 = vadd.f32 %v3065_v29, %v5482_v2 }
 0xed9   :  { %v3597_v45 = vpop.f32.mrb[77].mxu1  ;;  %v3637_v11 = vpop.f32.mrb[77].mxu0 }
 0xeda   :  { %v3598_v20 = vadd.f32 %v3597_v45, %v3596_v44  ;;  %v3638_v23 = vadd.f32 %v3637_v11, %v3636_v63  ;;  %v3639_v58 = vpop.f32.mrb[78].mxu0  ;;  %3097 = vadd.xlane.f32.xlu0 %v3083_v9  ;;  %v3599_v42 = vpop.f32.mrb[78].mxu1  ;;  %v3084_v39 = vadd.f32 %v3068_v49, %v5479_v33  ;;  %v3421_v63 = vld [vmem:[#allocation22] ss:$0 sm:$0xff] }
 0xedb   :  { %v3600_v57 = vpop.f32.mrb[79].mxu1  ;;  %v3640_v26 = vpop.f32.mrb[79].mxu0 }
 0xedc   :  { %v3008_v22 = vadd.f32 %v3598_v20, %v5547_v59  ;;  %v3601_v25 = vadd.f32 %v3600_v57, %v3599_v42  ;;  %v3641_v60 = vadd.f32 %v3640_v26, %v3639_v58  ;;  %3099 = vadd.xlane.f32.xlu1 %v3084_v39  ;;  %v3422_v26 = vld [vmem:[#allocation23] ss:$0 sm:$0xff] }
 0xede   :  { %v3073_v19 = vadd.f32 %v3638_v23, %v3008_v22  ;;  %v3011_v13 = vadd.f32 %v3601_v25, %v5547_v59 }
 0xee0   :  { %v3076_v2 = vadd.f32 %v3641_v60, %v3011_v13  ;;  %v3085_v5 = vadd.f32 %v3073_v19, %v5493_v43 }
 0xee2   :  { %3101 = vadd.xlane.f32.xlu0 %v3085_v5  ;;  %v3086_v12 = vadd.f32 %v3076_v2, %v5496_v31 }
 0xee4   :  { %3103 = vadd.xlane.f32.xlu1 %v3086_v12 }
 0xf57   :  { %v3090_v36 = vpop.xlane.xlu0 %3089 }
 0xf58   :  { %v3105_v14 = vmul.f32 0.0078125, %v3090_v36 }
 0xf59   :  { %v3092_v33 = vpop.xlane.xlu1 %3091 }
 0xf5a   :  { %v3113_v3 = vsub.f32 %v5552_v55, %v3105_v14  ;;  %v3106_v21 = vmul.f32 0.0078125, %v3092_v33 }
 0xf5c   :  { %v3114_v15 = vsub.f32 %v3080_v1, %v3106_v21  ;;  %v3121_v10 = vmul.f32 %v3113_v3, %v3113_v3 }
 0xf5e   :  { %3129 = vadd.xlane.f32.xlu0 %v3121_v10  ;;  %v3122_v48 = vmul.f32 %v3114_v15, %v3114_v15 }
 0xf5f   :  { %v3094_v61 = vpop.xlane.xlu0 %3093 }
 0xf60   :  { %v3107_v62 = vmul.f32 0.0078125, %v3094_v61  ;;  %3131 = vadd.xlane.f32.xlu1 %v3122_v48 }
 0xf61   :  { %v3096_v59 = vpop.xlane.xlu1 %3095 }
 0xf62   :  { %v3115_v7 = vsub.f32 %v3081_v46, %v3107_v62  ;;  %v3108_v43 = vmul.f32 0.0078125, %v3096_v59 }
 0xf64   :  { %v5569_v18 = vsub.f32 %v3082_v24, %v3108_v43  ;;  %v3123_v31 = vmul.f32 %v3115_v7, %v3115_v7 }
 0xf66   :  { %3133 = vadd.xlane.f32.xlu0 %v3123_v31  ;;  %v3124_v56 = vmul.f32 %v5569_v18, %v5569_v18 }
 0xf67   :  { %v3098_v51 = vpop.xlane.xlu0 %3097 }
 0xf68   :  { %v3109_v55 = vmul.f32 0.0078125, %v3098_v51  ;;  %3135 = vadd.xlane.f32.xlu1 %v3124_v56 }
 0xf69   :  { %v3100_v1 = vpop.xlane.xlu1 %3099 }
 0xf6a   :  { %v5573_v17 = vsub.f32 %v3083_v9, %v3109_v55  ;;  %v3110_v52 = vmul.f32 0.0078125, %v3100_v1 }
 0xf6c   :  { %v5575_v28 = vsub.f32 %v3084_v39, %v3110_v52  ;;  %v3125_v8 = vmul.f32 %v5573_v17, %v5573_v17 }
 0xf6e   :  { %3137 = vadd.xlane.f32.xlu0 %v3125_v8  ;;  %v3126_v40 = vmul.f32 %v5575_v28, %v5575_v28 }
 0xf6f   :  { %v3102_v4 = vpop.xlane.xlu0 %3101 }
 0xf70   :  { %v3111_v38 = vmul.f32 0.0078125, %v3102_v4  ;;  %3139 = vadd.xlane.f32.xlu1 %v3126_v40 }
 0xf71   :  { %v3104_v35 = vpop.xlane.xlu1 %3103 }
 0xf72   :  { %v5581_v30 = vsub.f32 %v3085_v5, %v3111_v38  ;;  %v3112_v46 = vmul.f32 0.0078125, %v3104_v35 }
 0xf74   :  { %v5583_v53 = vsub.f32 %v3086_v12, %v3112_v46  ;;  %v3127_v0 = vmul.f32 %v5581_v30, %v5581_v30 }
 0xf76   :  { %3141 = vadd.xlane.f32.xlu0 %v3127_v0  ;;  %v3128_v6 = vmul.f32 %v5583_v53, %v5583_v53 }
 0xf78   :  { %3143 = vadd.xlane.f32.xlu1 %v3128_v6 }
 0xfeb   :  { %v3130_v37 = vpop.xlane.xlu0 %3129 }
 0xfec   :  { %v3145_v41 = vmul.f32 0.0078125, %v3130_v37 }
 0xfed   :  { %v3132_v34 = vpop.xlane.xlu1 %3131 }
 0xfee   :  { %v3153_v24 = vadd.f32 1e-05, %v3145_v41  ;;  %v3146_v27 = vmul.f32 0.0078125, %v3132_v34 }
 0xff0   :  { %4180 = vrsqrt.f32 %v3153_v24  ;;  %v3154_v32 = vadd.f32 1e-05, %v3146_v27 }
 0xff2   :  { %4182 = vrsqrt.f32 %v3154_v32 }
 0xff3   :  { %v3134_v50 = vpop.xlane.xlu0 %3133 }
 0xff4   :  { %v3147_v16 = vmul.f32 0.0078125, %v3134_v50 }
 0xff5   :  { %v3136_v54 = vpop.xlane.xlu1 %3135 }
 0xff6   :  { %v3155_v29 = vadd.f32 1e-05, %v3147_v16  ;;  %v3148_v47 = vmul.f32 0.0078125, %v3136_v54 }
 0xff8   :  { %4184 = vrsqrt.f32 %v3155_v29  ;;  %v3156_v49 = vadd.f32 1e-05, %v3148_v47 }
 0xffa   :  { %v4181_v44 = vpop.eup %4180  ;;  %4186 = vrsqrt.f32 %v3156_v49 }
 0xffb   :  { %v3169_v9 = vmul.f32 %v4181_v44, %v3113_v3  ;;  %v3138_v45 = vpop.xlane.xlu0 %3137 }
 0xffc   :  { %v4183_v11 = vpop.eup %4182  ;;  %v3149_v20 = vmul.f32 0.0078125, %v3138_v45 }
 0xffd   :  { %v3170_v23 = vmul.f32 %v4183_v11, %v3114_v15  ;;  %v3140_v58 = vpop.xlane.xlu1 %3139  ;;  %v3183_v42 = vmul.f32 %v3421_v63, %v3169_v9 }
 0xffe   :  { %v3157_v39 = vadd.f32 1e-05, %v3149_v20  ;;  %v3150_v57 = vmul.f32 0.0078125, %v3140_v58 }
 0xfff   :  { %v3184_v22 = vmul.f32 %v3421_v63, %v3170_v23  ;;  %v3197_v60 = vadd.f32 %v3422_v26, %v3183_v42 }
0x1000   :  { %4188 = vrsqrt.f32 %v3157_v39  ;;  %v3158_v25 = vadd.f32 1e-05, %v3150_v57 }
0x1001   :  { %v3198_v19 = vadd.f32 %v3422_v26, %v3184_v22 }
0x1002   :  { %v4185_v13 = vpop.eup %4184  ;;  %4190 = vrsqrt.f32 %v3158_v25 }
0x1003   :  { %v3171_v2 = vmul.f32 %v4185_v13, %v3115_v7  ;;  %v3142_v5 = vpop.xlane.xlu0 %3141  ;;  %v3442_v12 = vpack.c.bf16 %v3198_v19, %v3197_v60 }
0x1004   :  { %v4187_v36 = vpop.eup %4186  ;;  %v3151_v14 = vmul.f32 0.0078125, %v3142_v5 }
0x1005   :  { %v3172_v33 = vmul.f32 %v4187_v36, %v5569_v18  ;;  %v3144_v3 = vpop.xlane.xlu1 %3143  ;;  %v3185_v21 = vmul.f32 %v3421_v63, %v3171_v2  ;;  %3443 = vst [vmem:[#allocation25] sm:$0xff] %v3442_v12  }
0x1006   :  { %v3159_v15 = vadd.f32 1e-05, %v3151_v14  ;;  %v3152_v10 = vmul.f32 0.0078125, %v3144_v3 }
0x1007   :  { %v3186_v48 = vmul.f32 %v3421_v63, %v3172_v33  ;;  %v3199_v62 = vadd.f32 %v3422_v26, %v3185_v21 }
0x1008   :  { %4192 = vrsqrt.f32 %v3159_v15  ;;  %v3160_v61 = vadd.f32 1e-05, %v3152_v10 }
0x1009   :  { %v3200_v59 = vadd.f32 %v3422_v26, %v3186_v48 }
0x100a   :  { %v4189_v43 = vpop.eup %4188  ;;  %4194 = vrsqrt.f32 %v3160_v61 }
0x100b   :  { %v3173_v7 = vmul.f32 %v4189_v43, %v5573_v17  ;;  %v3447_v31 = vpack.c.bf16 %v3200_v59, %v3199_v62 }
0x100c   :  { %v4191_v56 = vpop.eup %4190 }
0x100d   :  { %v3174_v51 = vmul.f32 %v4191_v56, %v5575_v28  ;;  %v3187_v55 = vmul.f32 %v3421_v63, %v3173_v7  ;;  %3459 = vst [vmem:[#allocation25 + $0x8] sm:$0xff] %v3447_v31  }
0x100f   :  { %v3188_v18 = vmul.f32 %v3421_v63, %v3174_v51  ;;  %v3201_v1 = vadd.f32 %v3422_v26, %v3187_v55 }
0x1011   :  { %v3202_v52 = vadd.f32 %v3422_v26, %v3188_v18 }
0x1012   :  { %v4193_v8 = vpop.eup %4192 }
0x1013   :  { %v3175_v40 = vmul.f32 %v4193_v8, %v5581_v30  ;;  %v3452_v4 = vpack.c.bf16 %v3202_v52, %v3201_v1 }
0x1014   :  { %v4195_v38 = vpop.eup %4194 }
0x1015   :  { %v3189_v35 = vmul.f32 %v3421_v63, %v3175_v40  ;;  %v3176_v46 = vmul.f32 %v4195_v38, %v5583_v53  ;;  %3460 = vst [vmem:[#allocation25 + $0x10] sm:$0xff] %v3452_v4  }
0x1017   :  { %v3190_v0 = vmul.f32 %v3421_v63, %v3176_v46  ;;  %v3203_v17 = vadd.f32 %v3422_v26, %v3189_v35 }
0x1019   :  { %v3204_v6 = vadd.f32 %v3422_v26, %v3190_v0 }
0x101b   :  { %v3457_v28 = vpack.c.bf16 %v3204_v6, %v3203_v17 }
0x101d   :  { %3461 = vst [vmem:[#allocation25 + $0x18] sm:$0xff] %v3457_v28  }
0x101e   :  { %4527 = shalt.err (!%p4524_p4)
}
0x101f   :  { %s4528_s20 = scalar_lea.hbm %s5623_s14, 512 }
0x1020   :  { %p4529_p5 = scmp.ne.s32.totalorder %s5623_s14, %s4528_s20  ;;  %p4532_p6 = scmp.lt.u32.totalorder %s4528_s20, %s5623_s14 }
0x1022   :  { %p4534_p7 = pnand %p4532_p6, %p4529_p5 }
0x1024   :  { %4537 = shalt.err (!%p4534_p7)
}
0x1025   :  { %3256 = dma.vmem_to_hbm [thread:$0]  %s3251_s16, 512, %s5623_s14, [#allocation4], %s4565_s11, %s4565_s11, %s4566_s26  }
0x1026   :  { %4554 = dma.done.wait [#allocation4], 512  }
0x1027   :  { %4555 = vsyncadd [#allocation4], 4294966784 }
0x1028   :  { %3260 = vsyncpa [#allocation3], 1 }
0x1029   :  { %3261 = vsyncpa [#allocation6], 1 }
0x102a   :  { %3262 = vsyncpa [#allocation9], 1 }
0x102b   :  { %3263 = vsyncpa [#allocation12], 1 }
0x102c   :  { %3264 = vsyncpa [#allocation15], 1 }
0x102d   :  { %3265 = vsyncpa [#allocation18], 1 }
0x102e   :  { %3266 = vsyncpa [#allocation21], 1 }
0x102f   :  { %3267 = vsyncpa [#allocation24], 1 }
0x1030   :  { %3268 = vsyncpa [#allocation4], 1 }

// kernel: st_transformer_forward.7
= control target key start
LH: loop header
LB: loop body
LE: loop exit
PB: predicated region body
PF: predicated region fallthrough
CT: control target
= control target key end

     0   :  { %19 = vsyncpa [#allocation3], 0  ;;  %s5546_s0 = inlined_call_operand.hbm [shape: bf16[64,128], index: 0, kind: input, shape index: {}]   ;;  %s5547_s1 = inlined_call_operand.hbm [shape: f32[64,64], index: 1, kind: input, shape index: {}]   ;;  %s5548_s2 = inlined_call_operand.hbm [shape: bf16[128,384], index: 2, kind: input, shape index: {}]   ;;  %s5549_s3 = inlined_call_operand.hbm [shape: f32[1,384], index: 3, kind: input, shape index: {}]   ;;  %s5550_s4 = inlined_call_operand.hbm [shape: bf16[128,128], index: 4, kind: input, shape index: {}]   ;;  %s5551_s5 = inlined_call_operand.hbm [shape: f32[1,128], index: 5, kind: input, shape index: {}]   ;;  %s5552_s6 = inlined_call_operand.hbm [shape: bf16[128,512], index: 6, kind: input, shape index: {}]   ;;  %s5553_s7 = inlined_call_operand.hbm [shape: f32[1,512], index: 7, kind: input, shape index: {}]   ;;  %s5554_s8 = inlined_call_operand.hbm [shape: bf16[512,128], index: 8, kind: input, shape index: {}]   ;;  %s5555_s9 = inlined_call_operand.hbm [shape: f32[1,128], index: 9, kind: input, shape index: {}]   ;;  %s5556_s10 = inlined_call_operand.hbm [shape: f32[1,128], index: 10, kind: input, shape index: {}]   ;;  %s5557_s11 = inlined_call_operand.hbm [shape: f32[1,128], index: 11, kind: input, shape index: {}]   ;;  %s5558_s12 = inlined_call_operand.hbm [shape: f32[1,128], index: 12, kind: input, shape index: {}]   ;;  %s5559_s13 = inlined_call_operand.hbm [shape: f32[1,128], index: 13, kind: input, shape index: {}]   ;;  %s5560_s14 = inlined_call_operand.hbm [shape: f32[64,128], index: 14, kind: output, shape index: {}]  }
   0x1   :  { %20 = vsyncpa [#allocation6], 0 }
   0x2   :  { %21 = vsyncpa [#allocation9], 0 }
   0x3   :  { %22 = vsyncpa [#allocation12], 0 }
   0x4   :  { %23 = vsyncpa [#allocation15], 0 }
   0x5   :  { %24 = vsyncpa [#allocation18], 0 }
   0x6   :  { %25 = vsyncpa [#allocation21], 0 }
   0x7   :  { %26 = vsyncpa [#allocation24], 0 }
   0x8   :  { %27 = vsyncpa [#allocation4], 0  ;;  %s4485_s29 = smov [#allocation5]   ;;  %s4137_s17 = scalar_lea.hbm %s5547_s1, 1024 }
   0x9   :  { %s45_s30 = sshll.u32 %s4485_s29, 4  ;;  %p4138_p0 = scmp.ne.s32.totalorder %s5547_s1, %s4137_s17  ;;  %s46_s30 = int_to_ptr.vmem [resolvable:$true] %s45_s30 }
   0xa   :  { %p4141_p1 = scmp.lt.u32.totalorder %s4137_s17, %s5547_s1 }
   0xc   :  { %p4143_p2 = pnand %p4141_p1, %p4138_p0 }
   0xe   :  { %4146 = shalt.err (!%p4143_p2)
}
   0xf   :  { %s4147_s22 = scalar_lea.vmem %s46_s30, 1024  ;;  %p4152_p4 = scmp.lt.s32.totalorder %s46_s30, %s46_s30 }
  0x10   :  { %p4148_p3 = scmp.ne.s32.totalorder %s46_s30, %s4147_s22  ;;  %p4153_p5 = scmp.lt.s32.totalorder %s4147_s22, %s4147_s22 }
  0x12   :  { %p4154_p6 = por %p4153_p5, %p4152_p4 }
  0x14   :  { %p4155_p7 = pnand %p4154_p6, %p4148_p3 }
  0x16   :  { %4158 = shalt.err (!%p4155_p7)
}
  0x17   :  { %s4486_s23 = smov 128   ;;  %s4487_s24 = smov 8  }
  0x18   :  { %51 = dma.hbm_to_vmem [thread:$0]  %s5547_s1, 1024, %s46_s30, [#allocation6], %s4486_s23, %s4486_s23, %s4487_s24  }
  0x19   :  { %s4488_s27 = smov [#allocation8]   ;;  %s4489_s29 = smov [#allocation11]  }
  0x1a   :  { %s70_s28 = sshll.u32 %s4488_s27, 4  ;;  %s92_s15 = sshll.u32 %s4489_s29, 4  ;;  %s71_s28 = int_to_ptr.vmem [resolvable:$true] %s70_s28  ;;  %s93_s15 = int_to_ptr.vmem [resolvable:$true] %s92_s15 }
  0x1b   :  { %s4159_s18 = scalar_lea.hbm %s5549_s3, 48 }
  0x1c   :  { %p4160_p8 = scmp.ne.s32.totalorder %s5549_s3, %s4159_s18  ;;  %p4163_p9 = scmp.lt.u32.totalorder %s4159_s18, %s5549_s3 }
  0x1e   :  { %p4165_p10 = pnand %p4163_p9, %p4160_p8 }
  0x20   :  { %4168 = shalt.err (!%p4165_p10)
}
  0x21   :  { %s4169_s1 = scalar_lea.vmem %s71_s28, 48  ;;  %s4173_s30 = scalar_lea.vmem %s71_s28, 64 }
  0x22   :  { %p4170_p11 = scmp.ne.s32.totalorder %s71_s28, %s4169_s1  ;;  %p4174_p12 = scmp.lt.s32.totalorder %s71_s28, %s71_s28 }
  0x23   :  { %p4175_p13 = scmp.lt.s32.totalorder %s4173_s30, %s4169_s1 }
  0x25   :  { %p4176_p0 = por %p4175_p13, %p4174_p12 }
  0x27   :  { %p4177_p1 = pnand %p4176_p0, %p4170_p11 }
  0x29   :  { %4180 = shalt.err (!%p4177_p1)
}
  0x2a   :  { %73 = dma.hbm_to_vmem [thread:$0]  %s5549_s3, 48, %s71_s28, [#allocation9]  }
  0x2b   :  { %s4181_s16 = scalar_lea.hbm %s5551_s5, 16 }
  0x2c   :  { %p4182_p2 = scmp.ne.s32.totalorder %s5551_s5, %s4181_s16  ;;  %p4185_p3 = scmp.lt.u32.totalorder %s4181_s16, %s5551_s5 }
  0x2e   :  { %p4187_p4 = pnand %p4185_p3, %p4182_p2 }
  0x30   :  { %4190 = shalt.err (!%p4187_p4)
}
  0x31   :  { %s4191_s21 = scalar_lea.vmem %s93_s15, 16  ;;  %s4195_s22 = scalar_lea.vmem %s93_s15, 32 }
  0x32   :  { %p4192_p5 = scmp.ne.s32.totalorder %s93_s15, %s4191_s21  ;;  %p4196_p6 = scmp.lt.s32.totalorder %s93_s15, %s93_s15 }
  0x33   :  { %p4197_p7 = scmp.lt.s32.totalorder %s4195_s22, %s4191_s21 }
  0x35   :  { %p4198_p8 = por %p4197_p7, %p4196_p6 }
  0x37   :  { %p4199_p9 = pnand %p4198_p8, %p4192_p5 }
  0x39   :  { %4202 = shalt.err (!%p4199_p9)
}
  0x3a   :  { %95 = dma.hbm_to_vmem [thread:$0]  %s5551_s5, 16, %s93_s15, [#allocation12]  }
  0x3b   :  { %s4490_s1 = smov [#allocation14]   ;;  %s4491_s25 = smov [#allocation17]  }
  0x3c   :  { %s114_s30 = sshll.u32 %s4490_s1, 4  ;;  %s136_s26 = sshll.u32 %s4491_s25, 4  ;;  %s115_s30 = int_to_ptr.vmem [resolvable:$true] %s114_s30  ;;  %s137_s26 = int_to_ptr.vmem [resolvable:$true] %s136_s26 }
  0x3d   :  { %s4203_s16 = scalar_lea.hbm %s5553_s7, 64 }
  0x3e   :  { %p4204_p10 = scmp.ne.s32.totalorder %s5553_s7, %s4203_s16  ;;  %p4207_p11 = scmp.lt.u32.totalorder %s4203_s16, %s5553_s7 }
  0x40   :  { %p4209_p12 = pnand %p4207_p11, %p4204_p10 }
  0x42   :  { %4212 = shalt.err (!%p4209_p12)
}
  0x43   :  { %s4213_s5 = scalar_lea.vmem %s115_s30, 64  ;;  %p4218_p0 = scmp.lt.s32.totalorder %s115_s30, %s115_s30 }
  0x44   :  { %p4214_p13 = scmp.ne.s32.totalorder %s115_s30, %s4213_s5  ;;  %p4219_p1 = scmp.lt.s32.totalorder %s4213_s5, %s4213_s5 }
  0x46   :  { %p4220_p2 = por %p4219_p1, %p4218_p0 }
  0x48   :  { %p4221_p3 = pnand %p4220_p2, %p4214_p13 }
  0x4a   :  { %4224 = shalt.err (!%p4221_p3)
}
  0x4b   :  { %117 = dma.hbm_to_vmem [thread:$0]  %s5553_s7, 64, %s115_s30, [#allocation15]  }
  0x4c   :  { %s4225_s28 = scalar_lea.hbm %s5555_s9, 16 }
  0x4d   :  { %p4226_p4 = scmp.ne.s32.totalorder %s5555_s9, %s4225_s28  ;;  %p4229_p5 = scmp.lt.u32.totalorder %s4225_s28, %s5555_s9 }
  0x4f   :  { %p4231_p6 = pnand %p4229_p5, %p4226_p4 }
  0x51   :  { %4234 = shalt.err (!%p4231_p6)
}
  0x52   :  { %s4235_s16 = scalar_lea.vmem %s137_s26, 16  ;;  %s4239_s17 = scalar_lea.vmem %s137_s26, 32 }
  0x53   :  { %p4236_p7 = scmp.ne.s32.totalorder %s137_s26, %s4235_s16  ;;  %p4240_p8 = scmp.lt.s32.totalorder %s137_s26, %s137_s26 }
  0x54   :  { %p4241_p9 = scmp.lt.s32.totalorder %s4239_s17, %s4235_s16 }
  0x56   :  { %p4242_p10 = por %p4241_p9, %p4240_p8 }
  0x58   :  { %p4243_p11 = pnand %p4242_p10, %p4236_p7 }
  0x5a   :  { %4246 = shalt.err (!%p4243_p11)
}
  0x5b   :  { %139 = dma.hbm_to_vmem [thread:$0]  %s5555_s9, 16, %s137_s26, [#allocation18]  }
  0x5c   :  { %s4492_s18 = smov [#allocation20]   ;;  %s4493_s20 = smov [#allocation2]  }
  0x5d   :  { %s156_s19 = sshll.u32 %s4492_s18, 4  ;;  %s33_s5 = sshll.u32 %s4493_s20, 4  ;;  %s157_s19 = int_to_ptr.vmem [resolvable:$true] %s156_s19  ;;  %s34_s5 = int_to_ptr.vmem [resolvable:$true] %s33_s5 }
  0x5e   :  { %s4247_s22 = scalar_lea.hbm %s5557_s11, 16 }
  0x5f   :  { %p4248_p12 = scmp.ne.s32.totalorder %s5557_s11, %s4247_s22  ;;  %p4251_p13 = scmp.lt.u32.totalorder %s4247_s22, %s5557_s11 }
  0x61   :  { %p4253_p0 = pnand %p4251_p13, %p4248_p12 }
  0x63   :  { %4256 = shalt.err (!%p4253_p0)
}
  0x64   :  { %s4257_s9 = scalar_lea.vmem %s157_s19, 16  ;;  %s4261_s26 = scalar_lea.vmem %s157_s19, 32 }
  0x65   :  { %p4258_p1 = scmp.ne.s32.totalorder %s157_s19, %s4257_s9  ;;  %p4262_p2 = scmp.lt.s32.totalorder %s157_s19, %s157_s19 }
  0x66   :  { %p4263_p3 = scmp.lt.s32.totalorder %s4261_s26, %s4257_s9 }
  0x68   :  { %p4264_p4 = por %p4263_p3, %p4262_p2 }
  0x6a   :  { %p4265_p5 = pnand %p4264_p4, %p4258_p1 }
  0x6c   :  { %4268 = shalt.err (!%p4265_p5)
}
  0x6d   :  { %159 = dma.hbm_to_vmem [thread:$0]  %s5557_s11, 16, %s157_s19, [#allocation21]  }
  0x6e   :  { %s4269_s7 = scalar_lea.hbm %s5546_s0, 512 }
  0x6f   :  { %p4270_p6 = scmp.ne.s32.totalorder %s5546_s0, %s4269_s7  ;;  %p4273_p7 = scmp.lt.u32.totalorder %s4269_s7, %s5546_s0 }
  0x71   :  { %p4275_p8 = pnand %p4273_p7, %p4270_p6 }
  0x73   :  { %4278 = shalt.err (!%p4275_p8)
}
  0x74   :  { %s4279_s21 = scalar_lea.vmem %s34_s5, 512  ;;  %p4284_p10 = scmp.lt.s32.totalorder %s34_s5, %s34_s5 }
  0x75   :  { %p4280_p9 = scmp.ne.s32.totalorder %s34_s5, %s4279_s21  ;;  %p4285_p11 = scmp.lt.s32.totalorder %s4279_s21, %s4279_s21 }
  0x77   :  { %p4286_p12 = por %p4285_p11, %p4284_p10 }
  0x79   :  { %p4287_p13 = pnand %p4286_p12, %p4280_p9 }
  0x7b   :  { %4290 = shalt.err (!%p4287_p13)
}
  0x7c   :  { %s4494_s11 = smov 64   ;;  %s4495_s19 = smov 4  }
  0x7d   :  { %39 = dma.hbm_to_vmem [thread:$0]  %s5546_s0, 512, %s34_s5, [#allocation3], %s4494_s11, %s4494_s11, %s4495_s19  }
  0x7e   :  { %s4496_s28 = smov [#allocation7]   ;;  %s4291_s26 = scalar_lea.hbm %s5548_s2, 3072 }
  0x7f   :  { %s57_s1 = sshll.u32 %s4496_s28, 4  ;;  %p4292_p0 = scmp.ne.s32.totalorder %s5548_s2, %s4291_s26  ;;  %s58_s1 = int_to_ptr.vmem [resolvable:$true] %s57_s1 }
  0x80   :  { %p4295_p1 = scmp.lt.u32.totalorder %s4291_s26, %s5548_s2 }
  0x82   :  { %p4297_p2 = pnand %p4295_p1, %p4292_p0 }
  0x84   :  { %4300 = shalt.err (!%p4297_p2)
}
  0x85   :  { %s4301_s7 = scalar_lea.vmem %s58_s1, 3072  ;;  %p4306_p4 = scmp.lt.s32.totalorder %s58_s1, %s58_s1 }
  0x86   :  { %p4302_p3 = scmp.ne.s32.totalorder %s58_s1, %s4301_s7  ;;  %p4307_p5 = scmp.lt.s32.totalorder %s4301_s7, %s4301_s7 }
  0x88   :  { %p4308_p6 = por %p4307_p5, %p4306_p4 }
  0x8a   :  { %p4309_p7 = pnand %p4308_p6, %p4302_p3 }
  0x8c   :  { %4312 = shalt.err (!%p4309_p7)
}
  0x8d   :  { %s4497_s0 = smov 192   ;;  %s4498_s5 = smov 12  }
  0x8e   :  { %63 = dma.hbm_to_vmem [thread:$0]  %s5548_s2, 3072, %s58_s1, [#allocation6], %s4497_s0, %s4497_s0, %s4498_s5  }
  0x8f   :  { %s4499_s20 = smov [#allocation10]   ;;  %s4500_s21 = smov [#allocation13]  }
  0x90   :  { %s79_s15 = sshll.u32 %s4499_s20, 4  ;;  %s101_s22 = sshll.u32 %s4500_s21, 4  ;;  %s80_s15 = int_to_ptr.vmem [resolvable:$true] %s79_s15  ;;  %s4688_s22 = int_to_ptr.vmem [resolvable:$true] %s101_s22 }
  0x91   :  { %s4313_s25 = scalar_lea.hbm %s5550_s4, 1024 }
  0x92   :  { %p4314_p8 = scmp.ne.s32.totalorder %s5550_s4, %s4313_s25  ;;  %p4317_p9 = scmp.lt.u32.totalorder %s4313_s25, %s5550_s4 }
  0x94   :  { %p4319_p10 = pnand %p4317_p9, %p4314_p8 }
  0x96   :  { %4322 = shalt.err (!%p4319_p10)
}
  0x97   :  { %s4323_s2 = scalar_lea.vmem %s80_s15, 1024  ;;  %p4328_p12 = scmp.lt.s32.totalorder %s80_s15, %s80_s15 }
  0x98   :  { %p4324_p11 = scmp.ne.s32.totalorder %s80_s15, %s4323_s2  ;;  %p4329_p13 = scmp.lt.s32.totalorder %s4323_s2, %s4323_s2 }
  0x9a   :  { %p4330_p0 = por %p4329_p13, %p4328_p12 }
  0x9c   :  { %p4331_p1 = pnand %p4330_p0, %p4324_p11 }
  0x9e   :  { %4334 = shalt.err (!%p4331_p1)
}
  0x9f   :  { %85 = dma.hbm_to_vmem [thread:$0]  %s5550_s4, 1024, %s80_s15, [#allocation9], %s4494_s11, %s4494_s11, %s4495_s19  }
  0xa0   :  { %s4335_s0 = scalar_lea.hbm %s5552_s6, 4096 }
  0xa1   :  { %p4336_p2 = scmp.ne.s32.totalorder %s5552_s6, %s4335_s0  ;;  %p4339_p3 = scmp.lt.u32.totalorder %s4335_s0, %s5552_s6 }
  0xa3   :  { %p4341_p4 = pnand %p4339_p3, %p4336_p2 }
  0xa5   :  { %4344 = shalt.err (!%p4341_p4)
}
  0xa6   :  { %s4345_s21 = scalar_lea.vmem %s4688_s22, 4096  ;;  %p4350_p6 = scmp.lt.s32.totalorder %s4688_s22, %s4688_s22 }
  0xa7   :  { %p4346_p5 = scmp.ne.s32.totalorder %s4688_s22, %s4345_s21  ;;  %p4351_p7 = scmp.lt.s32.totalorder %s4345_s21, %s4345_s21 }
  0xa9   :  { %p4352_p8 = por %p4351_p7, %p4350_p6 }
  0xab   :  { %p4353_p9 = pnand %p4352_p8, %p4346_p5 }
  0xad   :  { %4356 = shalt.err (!%p4353_p9)
}
  0xae   :  { %s4501_s4 = smov 256   ;;  %s4502_s15 = smov 16  }
  0xaf   :  { %107 = dma.hbm_to_vmem [thread:$0]  %s5552_s6, 4096, %s4688_s22, [#allocation12], %s4501_s4, %s4501_s4, %s4502_s15  }
  0xb0   :  { %s4503_s25 = smov [#allocation16]   ;;  %s4504_s26 = smov [#allocation19]  }
  0xb1   :  { %s123_s9 = sshll.u32 %s4503_s25, 4  ;;  %s146_s27 = sshll.u32 %s4504_s26, 4  ;;  %s124_s9 = int_to_ptr.vmem [resolvable:$true] %s123_s9  ;;  %s147_s27 = int_to_ptr.vmem [resolvable:$true] %s146_s27 }
  0xb2   :  { %s4357_s1 = scalar_lea.hbm %s5554_s8, 4096 }
  0xb3   :  { %p4358_p10 = scmp.ne.s32.totalorder %s5554_s8, %s4357_s1  ;;  %p4361_p11 = scmp.lt.u32.totalorder %s4357_s1, %s5554_s8 }
  0xb5   :  { %p4363_p12 = pnand %p4361_p11, %p4358_p10 }
  0xb7   :  { %4366 = shalt.err (!%p4363_p12)
}
  0xb8   :  { %s4367_s6 = scalar_lea.vmem %s124_s9, 4096  ;;  %p4372_p0 = scmp.lt.s32.totalorder %s124_s9, %s124_s9 }
  0xb9   :  { %p4368_p13 = scmp.ne.s32.totalorder %s124_s9, %s4367_s6  ;;  %p4373_p1 = scmp.lt.s32.totalorder %s4367_s6, %s4367_s6 }
  0xbb   :  { %p4374_p2 = por %p4373_p1, %p4372_p0 }
  0xbd   :  { %p4375_p3 = pnand %p4374_p2, %p4368_p13 }
  0xbf   :  { %4378 = shalt.err (!%p4375_p3)
}
  0xc0   :  { %129 = dma.hbm_to_vmem [thread:$0]  %s5554_s8, 4096, %s124_s9, [#allocation15], %s4494_s11, %s4494_s11, %s4495_s19  }
  0xc1   :  { %s4379_s20 = scalar_lea.hbm %s5556_s10, 16 }
  0xc2   :  { %p4380_p4 = scmp.ne.s32.totalorder %s5556_s10, %s4379_s20  ;;  %p4383_p5 = scmp.lt.u32.totalorder %s4379_s20, %s5556_s10 }
  0xc4   :  { %p4385_p6 = pnand %p4383_p5, %p4380_p4 }
  0xc6   :  { %4388 = shalt.err (!%p4385_p6)
}
  0xc7   :  { %s4389_s28 = scalar_lea.vmem %s147_s27, 16  ;;  %s4393_s25 = scalar_lea.vmem %s147_s27, 32 }
  0xc8   :  { %p4390_p7 = scmp.ne.s32.totalorder %s147_s27, %s4389_s28  ;;  %p4394_p8 = scmp.lt.s32.totalorder %s147_s27, %s147_s27 }
  0xc9   :  { %p4395_p9 = scmp.lt.s32.totalorder %s4393_s25, %s4389_s28 }
  0xcb   :  { %p4396_p10 = por %p4395_p9, %p4394_p8 }
  0xcd   :  { %p4397_p11 = pnand %p4396_p10, %p4390_p7 }
  0xcf   :  { %4400 = shalt.err (!%p4397_p11)
}
  0xd0   :  { %149 = dma.hbm_to_vmem [thread:$0]  %s5556_s10, 16, %s147_s27, [#allocation18]  }
  0xd1   :  { %s4505_s9 = smov [#allocation22]   ;;  %s4506_s29 = smov [#allocation23]  }
  0xd2   :  { %s166_s26 = sshll.u32 %s4505_s9, 4  ;;  %s176_s2 = sshll.u32 %s4506_s29, 4  ;;  %s167_s26 = int_to_ptr.vmem [resolvable:$true] %s166_s26  ;;  %s177_s2 = int_to_ptr.vmem [resolvable:$true] %s176_s2 }
  0xd3   :  { %s4401_s17 = scalar_lea.hbm %s5558_s12, 16 }
  0xd4   :  { %p4402_p12 = scmp.ne.s32.totalorder %s5558_s12, %s4401_s17  ;;  %p4405_p13 = scmp.lt.u32.totalorder %s4401_s17, %s5558_s12 }
  0xd6   :  { %p4407_p0 = pnand %p4405_p13, %p4402_p12 }
  0xd8   :  { %4410 = shalt.err (!%p4407_p0)
}
  0xd9   :  { %s4411_s10 = scalar_lea.vmem %s167_s26, 16  ;;  %s4415_s27 = scalar_lea.vmem %s167_s26, 32 }
  0xda   :  { %p4412_p1 = scmp.ne.s32.totalorder %s167_s26, %s4411_s10  ;;  %p4416_p2 = scmp.lt.s32.totalorder %s167_s26, %s167_s26 }
  0xdb   :  { %p4417_p3 = scmp.lt.s32.totalorder %s4415_s27, %s4411_s10 }
  0xdd   :  { %p4418_p4 = por %p4417_p3, %p4416_p2 }
  0xdf   :  { %p4419_p5 = pnand %p4418_p4, %p4412_p1 }
  0xe1   :  { %4422 = shalt.err (!%p4419_p5)
}
  0xe2   :  { %169 = dma.hbm_to_vmem [thread:$0]  %s5558_s12, 16, %s167_s26, [#allocation21]  }
  0xe3   :  { %s4423_s21 = scalar_lea.hbm %s5559_s13, 16 }
  0xe4   :  { %p4424_p6 = scmp.ne.s32.totalorder %s5559_s13, %s4423_s21  ;;  %p4427_p7 = scmp.lt.u32.totalorder %s4423_s21, %s5559_s13 }
  0xe6   :  { %p4429_p8 = pnand %p4427_p7, %p4424_p6 }
  0xe8   :  { %4432 = shalt.err (!%p4429_p8)
}
  0xe9   :  { %s4433_s25 = scalar_lea.vmem %s177_s2, 16  ;;  %s4437_s8 = scalar_lea.vmem %s177_s2, 32 }
  0xea   :  { %p4434_p9 = scmp.ne.s32.totalorder %s177_s2, %s4433_s25  ;;  %p4438_p10 = scmp.lt.s32.totalorder %s177_s2, %s177_s2 }
  0xeb   :  { %p4439_p11 = scmp.lt.s32.totalorder %s4437_s8, %s4433_s25 }
  0xed   :  { %p4440_p12 = por %p4439_p11, %p4438_p10 }
  0xef   :  { %p4441_p13 = pnand %p4440_p12, %p4434_p9 }
  0xf1   :  { %4444 = shalt.err (!%p4441_p13)
}
  0xf2   :  { %179 = dma.hbm_to_vmem [thread:$0]  %s5559_s13, 16, %s177_s2, [#allocation24]  }
  0xf3   :  { %4467 = dma.done.wait [#allocation3], 512  }
  0xf4   :  { %4468 = vsyncadd [#allocation3], 4294966784 }
  0xf5   :  { %4469 = dma.done.wait [#allocation6], 4096  }
  0xf6   :  { %4470 = vsyncadd [#allocation6], 4294963200 }
  0xf7   :  { %4471 = dma.done.wait [#allocation9], 1072  }
  0xf8   :  { %4472 = vsyncadd [#allocation9], 4294966224 }
  0xf9   :  { %4473 = dma.done.wait [#allocation12], 4112  }
  0xfa   :  { %4474 = vsyncadd [#allocation12], 4294963184 }
  0xfb   :  { %4475 = dma.done.wait [#allocation15], 4160  }
  0xfc   :  { %4476 = vsyncadd [#allocation15], 4294963136 }
  0xfd   :  { %4477 = dma.done.wait [#allocation18], 32  }
  0xfe   :  { %4478 = vsyncadd [#allocation18], 4294967264 }
  0xff   :  { %4479 = dma.done.wait [#allocation21], 32  }
 0x100   :  { %4480 = vsyncadd [#allocation21], 4294967264 }
 0x101   :  { %4481 = dma.done.wait [#allocation24], 16  }
 0x102   :  { %4482 = vsyncadd [#allocation24], 4294967280  ;;  %v4507_v0 = vmov 0   ;;  %v3837_v1 = vld [vmem:[#allocation7 + $0x4] ss:$12 sps:$4 sm:$0xff]   ;;  %v4774_v18 = vld [vmem:[#allocation2 + $0x8] sm:$0xff]   ;;  %v273_v21 = vlaneseq }
 0x103   :  { %472 = vmatprep.mubr.bf16.mxu0 %v4507_v0  ;;  %v3839_v2 = vld [vmem:[#allocation7] ss:$12 sps:$4 sm:$0xff]   ;;  %440 = vmatprep.subr.bf16.mxu0 %v3837_v1  ;;  %v3840_v3 = vld [vmem:[#allocation7 + $0x1c] ss:$12 sps:$4 sm:$0xff]   ;;  %v3842_v4 = vld [vmem:[#allocation7 + $0x18] ss:$12 sps:$4 sm:$0xff]  }
 0x104   :  { %441 = vmatpush1.bf16.msra.mxu0 %v3839_v2  ;;  %v3843_v5 = vld [vmem:[#allocation7 + $0x34] ss:$12 sps:$4 sm:$0xff]   ;;  %v3845_v6 = vld [vmem:[#allocation7 + $0x30] ss:$12 sps:$4 sm:$0xff]   ;;  %v3846_v7 = vld [vmem:[#allocation7 + $0x4c] ss:$12 sps:$4 sm:$0xff]  }
 0x105   :  { %442 = vmatprep.subr.bf16.mxu0 %v3840_v3  ;;  %v223_v8 = vld [vmem:[#allocation2] sm:$0xff]   ;;  %v3848_v9 = vld [vmem:[#allocation7 + $0x48] ss:$12 sps:$4 sm:$0xff]   ;;  %v3857_v15 = vld [vmem:[#allocation7 + $0x90] ss:$12 sps:$4 sm:$0xff]   ;;  %v4786_v22 = vshrl.u32 %v273_v21, 7 }
 0x106   :  { %v3849_v10 = vld [vmem:[#allocation7 + $0x64] ss:$12 sps:$4 sm:$0xff]   ;;  %v3851_v11 = vld [vmem:[#allocation7 + $0x60] ss:$12 sps:$4 sm:$0xff]   ;;  %3587 = vmatprep.mubr.bf16.mxu1 %v223_v8  ;;  %v3852_v12 = vld [vmem:[#allocation7 + $0x7c] ss:$12 sps:$4 sm:$0xff]  }
 0x107   :  { %v3854_v13 = vld [vmem:[#allocation7 + $0x78] ss:$12 sps:$4 sm:$0xff]   ;;  %v3855_v14 = vld [vmem:[#allocation7 + $0x94] ss:$12 sps:$4 sm:$0xff]   ;;  %v275_v23 = vsub.s32 0, %v4786_v22  ;;  %v279_v25 = vsub.s32 1, %v4786_v22 }
 0x108   :  { %443 = vmatpush1.bf16.msra.mxu0 %v3842_v4  ;;  %v3858_v16 = vld [vmem:[#allocation7 + $0xac] ss:$12 sps:$4 sm:$0xff]   ;;  %v3860_v17 = vld [vmem:[#allocation7 + $0xa8] ss:$12 sps:$4 sm:$0xff]   ;;  %v4789_v24 = vld [vmem:[#allocation8] sm:$0x7] }
 0x109   :  { %444 = vmatprep.subr.bf16.mxu0 %v3843_v5  ;;  %v4777_v19 = vld [vmem:[#allocation2 + $0x10] sm:$0xff]   ;;  %v4781_v20 = vld [vmem:[#allocation2 + $0x18] sm:$0xff]   ;;  %v276_v26 = vrot.slane %v4789_v24, %v275_v23  ;;  %v280_v28 = vrot.slane %v4789_v24, %v279_v25  ;;  %vm614_vm0 = vcmask 261120   ;;  %v4843_v21 = vld [vmem:[#allocation5] sm:$0xff]  ;;  %vm704_vm1 = vcmask 523264   ;;  %s4508_s13 = smov 96  }
 0x10a   :  { %s4509_s9 = smov 32  }
 0x10c   :  { %445 = vmatpush1.bf16.msra.mxu0 %v3845_v6 }
 0x10d   :  { %446 = vmatprep.subr.bf16.mxu0 %v3846_v7 }
 0x110   :  { %447 = vmatpush1.bf16.msra.mxu0 %v3848_v9  ;;  %v3865_v9 = vld [vmem:[#allocation7 + $0x8] ss:$12 sps:$4 sm:$0xff]  }
 0x111   :  { %448 = vmatprep.subr.bf16.mxu0 %v3849_v10  ;;  %v3866_v10 = vld [vmem:[#allocation7 + $0x20] ss:$12 sps:$4 sm:$0xff]   ;;  %3571 = vmatprep.subr.bf16.mxu1 %v3865_v9 }
 0x112   :  { %3572 = vmatpush3.bf16.msra.mxu1 %v3865_v9 }
 0x113   :  { %3573 = vmatprep.subr.bf16.mxu1 %v3866_v10 }
 0x114   :  { %449 = vmatpush1.bf16.msra.mxu0 %v3851_v11  ;;  %v3867_v11 = vld [vmem:[#allocation7 + $0x38] ss:$12 sps:$4 sm:$0xff]  }
 0x115   :  { %450 = vmatprep.subr.bf16.mxu0 %v3852_v12  ;;  %v3868_v12 = vld [vmem:[#allocation7 + $0x50] ss:$12 sps:$4 sm:$0xff]  }
 0x116   :  { %3574 = vmatpush3.bf16.msra.mxu1 %v3866_v10 }
 0x117   :  { %3575 = vmatprep.subr.bf16.mxu1 %v3867_v11 }
 0x118   :  { %451 = vmatpush1.bf16.msra.mxu0 %v3854_v13  ;;  %v3869_v13 = vld [vmem:[#allocation7 + $0x68] ss:$12 sps:$4 sm:$0xff]  }
 0x119   :  { %452 = vmatprep.subr.bf16.mxu0 %v3855_v14  ;;  %v3870_v14 = vld [vmem:[#allocation7 + $0x80] ss:$12 sps:$4 sm:$0xff]  }
 0x11a   :  { %3576 = vmatpush3.bf16.msra.mxu1 %v3867_v11 }
 0x11b   :  { %3577 = vmatprep.subr.bf16.mxu1 %v3868_v12 }
 0x11c   :  { %453 = vmatpush1.bf16.msra.mxu0 %v3857_v15  ;;  %v3871_v15 = vld [vmem:[#allocation7 + $0x98] ss:$12 sps:$4 sm:$0xff]  }
 0x11d   :  { %454 = vmatprep.subr.bf16.mxu0 %v3858_v16  ;;  %v3872_v16 = vld [vmem:[#allocation7 + $0xb0] ss:$12 sps:$4 sm:$0xff]  }
 0x11e   :  { %3578 = vmatpush3.bf16.msra.mxu1 %v3868_v12 }
 0x11f   :  { %3579 = vmatprep.subr.bf16.mxu1 %v3869_v13 }
 0x120   :  { %455 = vmatpush1.bf16.msra.mxu0 %v3860_v17  ;;  %v4841_v17 = vld [vmem:[#allocation5 + $0x10] sm:$0xff] }
 0x122   :  { %3580 = vmatpush3.bf16.msra.mxu1 %v3869_v13 }
 0x123   :  { %473 = vmatmul.mubr.bf16.vlgmr.msra.gmra.mrb[0].mxu0 %v223_v8  ;;  %3581 = vmatprep.subr.bf16.mxu1 %v3870_v14 }
 0x124   :  { %482 = vmatprep.mubr.bf16.mxu0 %v4507_v0 }
 0x126   :  { %3582 = vmatpush3.bf16.msra.mxu1 %v3870_v14 }
 0x127   :  { %3583 = vmatprep.subr.bf16.mxu1 %v3871_v15 }
 0x12a   :  { %3584 = vmatpush3.bf16.msra.mxu1 %v3871_v15 }
 0x12b   :  { %483 = vmatmul.mubr.bf16.gmra.mrb[4].mxu0 %v4774_v18  ;;  %3585 = vmatprep.subr.bf16.mxu1 %v3872_v16 }
 0x12c   :  { %492 = vmatprep.mubr.bf16.mxu0 %v4507_v0 }
 0x12e   :  { %3586 = vmatpush3.bf16.msra.mxu1 %v3872_v16 }
 0x131   :  { %3588 = vmatmul.mubr.bf16.vlgmr.msra.gmra.mrb[0].mxu1 %v4774_v18 }
 0x132   :  { %3591 = vmatprep.mubr.bf16.mxu1 %v4777_v19 }
 0x133   :  { %493 = vmatmul.mubr.bf16.gmra.mrb[8].mxu0 %v4777_v19 }
 0x134   :  { %502 = vmatprep.mubr.bf16.mxu0 %v4507_v0 }
 0x139   :  { %3592 = vmatmul.mubr.bf16.gmra.mrb[4].mxu1 %v4781_v20 }
 0x13b   :  { %503 = vmatmul.mubr.bf16.gmra.mrb[12].mxu0 %v4781_v20 }
 0x1f6   :  { %v474_v27 = vpop.f32.mrb[0].mxu0 }
 0x1f7   :  { %v476_v29 = vpop.f32.mrb[1].mxu0  ;;  %v475_v31 = vadd.f32 %v474_v27, %v276_v26  ;;  %v4845_v27 = vld [vmem:[#allocation5 + $0x18] sm:$0xff] }
 0x1f8   :  { %v478_v30 = vpop.f32.mrb[2].mxu0  ;;  %v477_v34 = vadd.f32 %v476_v29, %v280_v28 }
 0x1f9   :  { %v479_v32 = vadd.f32 %v478_v30, %v276_v26  ;;  %v480_v33 = vpop.f32.mrb[3].mxu0  ;;  %v4848_v30 = vld [vmem:[#allocation5 + $0x8] sm:$0xff] }
 0x1fa   :  { %v481_v35 = vadd.f32 %v480_v33, %v280_v28 }
 0x1fb   :  { %v4798_v36 = vpack.c.bf16 %v479_v32, %v475_v31 }
 0x1fc   :  { %v4800_v37 = vpack.c.bf16 %v481_v35, %v477_v34 }
 0x1fd   :  { %3603 = vmatprep.mubr.msk.bf16.mxu0 %vm614_vm0, %v4798_v36 }
 0x1fe   :  { %v484_v38 = vpop.f32.mrb[4].mxu0  ;;  %3795 = vmatprep.subr.msk.bf16.mxu0 %vm614_vm0, %v4800_v37  ;;  %v628_v39 = vsel %vm614_vm0, %v4800_v37, 0 }
 0x1ff   :  { %v486_v40 = vpop.f32.mrb[5].mxu0  ;;  %3596 = vmatpush3.bf16.xpose.msra.mxu0 %v628_v39  ;;  %v485_v42 = vadd.f32 %v484_v38, %v276_v26  ;;  %v4856_v38 = vld [vmem:[#allocation5 + $0x20] sm:$0xff] }
 0x200   :  { %v488_v41 = vpop.f32.mrb[6].mxu0  ;;  %v487_v45 = vadd.f32 %v486_v40, %v280_v28 }
 0x201   :  { %v489_v43 = vadd.f32 %v488_v41, %v276_v26  ;;  %v490_v44 = vpop.f32.mrb[7].mxu0  ;;  %v4859_v41 = vld [vmem:[#allocation5 + $0x30] sm:$0xff] }
 0x202   :  { %v491_v46 = vadd.f32 %v490_v44, %v280_v28 }
 0x203   :  { %v4808_v47 = vpack.c.bf16 %v489_v43, %v485_v42  ;;  %v4861_v43 = vld [vmem:[#allocation5 + $0x28] sm:$0xff] }
 0x204   :  { %v4810_v48 = vpack.c.bf16 %v491_v46, %v487_v45  ;;  %v4864_v46 = vld [vmem:[#allocation5 + $0x38] sm:$0xff] }
 0x206   :  { %v494_v49 = vpop.f32.mrb[8].mxu0  ;;  %3796 = vmatprep.subr.msk.bf16.mxu0 %vm614_vm0, %v4810_v48  ;;  %v631_v50 = vsel %vm614_vm0, %v4810_v48, 0 }
 0x207   :  { %v496_v51 = vpop.f32.mrb[9].mxu0  ;;  %3598 = vmatpush3.bf16.xpose.msra.mxu0 %v631_v50  ;;  %v495_v53 = vadd.f32 %v494_v49, %v276_v26 }
 0x208   :  { %v498_v52 = vpop.f32.mrb[10].mxu0  ;;  %v497_v56 = vadd.f32 %v496_v51, %v280_v28 }
 0x209   :  { %v499_v54 = vadd.f32 %v498_v52, %v276_v26  ;;  %v500_v55 = vpop.f32.mrb[11].mxu0 }
 0x20a   :  { %v501_v57 = vadd.f32 %v500_v55, %v280_v28 }
 0x20b   :  { %v4816_v58 = vpack.c.bf16 %v499_v54, %v495_v53 }
 0x20c   :  { %v4818_v59 = vpack.c.bf16 %v501_v57, %v497_v56  ;;  %v283_v57 = vsub.s32 2, %v4786_v22 }
 0x20e   :  { %v504_v60 = vpop.f32.mrb[12].mxu0  ;;  %3797 = vmatprep.subr.msk.bf16.mxu0 %vm614_vm0, %v4818_v59  ;;  %v634_v61 = vsel %vm614_vm0, %v4818_v59, 0 }
 0x20f   :  { %v506_v62 = vpop.f32.mrb[13].mxu0  ;;  %3600 = vmatpush3.bf16.xpose.msra.mxu0 %v634_v61  ;;  %v505_v1 = vadd.f32 %v504_v60, %v276_v26  ;;  %v4883_v60 = vrot.slane %v4789_v24, %v283_v57  ;;  %v3589_v61 = vpop.f32.mrb[0].mxu1 }
 0x210   :  { %v508_v63 = vpop.f32.mrb[14].mxu0  ;;  %v507_v4 = vadd.f32 %v506_v62, %v280_v28 }
 0x211   :  { %v509_v2 = vadd.f32 %v508_v63, %v276_v26  ;;  %v510_v3 = vpop.f32.mrb[15].mxu0  ;;  %v556_v62 = vadd.f32 %v3589_v61, %v4883_v60  ;;  %v547_v63 = vpop.f32.mrb[1].mxu1 }
 0x212   :  { %v511_v5 = vadd.f32 %v510_v3, %v280_v28 }
 0x213   :  { %v4824_v6 = vpack.c.bf16 %v509_v2, %v505_v1  ;;  %v548_v1 = vadd.f32 %v547_v63, %v4883_v60  ;;  %v3590_v2 = vpop.f32.mrb[2].mxu1 }
 0x214   :  { %v4826_v7 = vpack.c.bf16 %v511_v5, %v507_v4  ;;  %v559_v3 = vadd.f32 %v3590_v2, %v4883_v60  ;;  %v550_v4 = vpop.f32.mrb[3].mxu1 }
 0x215   :  { %v551_v5 = vadd.f32 %v550_v4, %v4883_v60  ;;  %v3593_v61 = vpop.f32.mrb[4].mxu1 }
 0x216   :  { %3798 = vmatprep.subr.msk.bf16.mxu0 %vm614_vm0, %v4826_v7  ;;  %v637_v8 = vsel %vm614_vm0, %v4826_v7, 0 }
 0x217   :  { %3602 = vmatpush3.bf16.xpose.msra.mxu0 %v637_v8  ;;  %v4889_v8 = vpack.c.bf16 %v559_v3, %v556_v62  ;;  %v4891_v9 = vpack.c.bf16 %v551_v5, %v548_v1  ;;  %v563_v62 = vpop.f32.mrb[5].mxu1  ;;  %v572_v5 = vadd.f32 %v3593_v61, %v4883_v60 }
 0x218   :  { %v3594_v63 = vpop.f32.mrb[6].mxu1  ;;  %v564_v1 = vadd.f32 %v563_v62, %v4883_v60 }
 0x219   :  { %3611 = vmatprep.subr.bf16.mxu1 %v4891_v9  ;;  %v566_v2 = vpop.f32.mrb[7].mxu1 }
 0x21a   :  { %3612 = vmatpush3.bf16.msra.mxu1 %v4891_v9  ;;  %v567_v3 = vadd.f32 %v566_v2, %v4883_v60 }
 0x21b   :  { %3613 = vmatprep.subr.bf16.mxu1 %v4889_v8 }
 0x21c   :  { %v4923_v4 = vpack.c.bf16 %v567_v3, %v564_v1 }
 0x21e   :  { %3604 = vmatmul.mubr.msk.bf16.vlgmr.msra.gmra.mrb[16].mxu0 %vm614_vm0, %v4808_v47  ;;  %3614 = vmatpush3.bf16.msra.mxu1 %v4889_v8 }
 0x21f   :  { %3607 = vmatprep.mubr.msk.bf16.mxu0 %vm614_vm0, %v4816_v58  ;;  %3615 = vmatprep.subr.bf16.mxu1 %v4923_v4 }
 0x222   :  { %3616 = vmatpush3.bf16.msra.mxu1 %v4923_v4 }
 0x226   :  { %3608 = vmatmul.mubr.msk.bf16.gmra.mrb[20].mxu0 %vm614_vm0, %v4824_v6 }
 0x2f1   :  { %v3605_v26 = vpop.f32.mrb[16].mxu0 }
 0x2f2   :  { %v682_v28 = vadd.f32 %v3605_v26, %v4841_v17  ;;  %v673_v29 = vpop.f32.mrb[17].mxu0 }
 0x2f3   :  { %v674_v31 = vadd.f32 %v673_v29, %v4843_v21  ;;  %v3606_v18 = vpop.f32.mrb[18].mxu0 }
 0x2f4   :  { %v685_v19 = vadd.f32 %v3606_v18, %v4845_v27  ;;  %v676_v32 = vpop.f32.mrb[19].mxu0  ;;  %v711_v20 = vsel %vm704_vm1, %v682_v28, -inf }
 0x2f5   :  { %v677_v33 = vadd.f32 %v676_v32, %v4848_v30  ;;  %712 = vmax.xlane.f32.xlu1 %v711_v20  ;;  %v705_v34 = vsel %vm704_vm1, %v674_v31, -inf }
 0x2f6   :  { %706 = vmax.xlane.f32.xlu0 %v705_v34  ;;  %v714_v35 = vsel %vm704_vm1, %v685_v19, -inf }
 0x2f7   :  { %v708_v40 = vsel %vm704_vm1, %v677_v33, -inf }
 0x2f9   :  { %715 = vmax.xlane.f32.xlu1 %v714_v35  ;;  %v3609_v39 = vpop.f32.mrb[20].mxu0 }
 0x2fa   :  { %v689_v42 = vpop.f32.mrb[21].mxu0  ;;  %709 = vmax.xlane.f32.xlu0 %v708_v40  ;;  %v698_v50 = vadd.f32 %v3609_v39, %v4859_v41 }
 0x2fb   :  { %v690_v44 = vadd.f32 %v689_v42, %v4856_v38  ;;  %v3610_v45 = vpop.f32.mrb[22].mxu0 }
 0x2fc   :  { %v692_v49 = vpop.f32.mrb[23].mxu0  ;;  %v4872_v53 = vadd.f32 %v3610_v45, %v4864_v46  ;;  %v723_v55 = vsel %vm704_vm1, %v698_v50, -inf }
 0x2fd   :  { %v4868_v51 = vadd.f32 %v692_v49, %v4861_v43  ;;  %v717_v52 = vsel %vm704_vm1, %v690_v44, -inf }
 0x2fe   :  { %718 = vmax.xlane.f32.xlu0 %v717_v52  ;;  %v726_v56 = vsel %vm704_vm1, %v4872_v53, -inf }
 0x2ff   :  { %v720_v54 = vsel %vm704_vm1, %v4868_v51, -inf }
 0x300   :  { %721 = vmax.xlane.f32.xlu1 %v720_v54 }
 0x302   :  { %724 = vmax.xlane.f32.xlu0 %v723_v55 }
 0x304   :  { %727 = vmax.xlane.f32.xlu1 %v726_v56 }
 0x382   :  { %v713_v24 = vpop.xlane.xlu1 %712 }
 0x383   :  { %v731_v10 = vsub.f32 %v682_v28, %v713_v24  ;;  %v707_v11 = vpop.xlane.xlu0 %706  ;;  %v575_v24 = vadd.f32 %v3594_v63, %v4883_v60 }
 0x384   :  { %v729_v12 = vsub.f32 %v674_v31, %v707_v11 }
 0x385   :  { %v741_v13 = vmul.f32 1.442695, %v731_v10  ;;  %v4931_v10 = vpack.c.bf16 %v575_v24, %v572_v5 }
 0x386   :  { %v737_v14 = vmul.f32 1.442695, %v729_v12  ;;  %v716_v15 = vpop.xlane.xlu1 %715 }
 0x387   :  { %3965 = vpow2.f32 %v741_v13  ;;  %v732_v16 = vsub.f32 %v685_v19, %v716_v15  ;;  %v710_v26 = vpop.xlane.xlu0 %709  ;;  %3617 = vmatprep.subr.bf16.mxu1 %v4931_v10 }
 0x388   :  { %v730_v29 = vsub.f32 %v677_v33, %v710_v26  ;;  %3967 = vpow2.f32 %v737_v14  ;;  %3618 = vmatpush3.bf16.msra.mxu1 %v4931_v10 }
 0x389   :  { %v743_v18 = vmul.f32 1.442695, %v732_v16 }
 0x38a   :  { %v739_v32 = vmul.f32 1.442695, %v730_v29 }
 0x38b   :  { %3969 = vpow2.f32 %v743_v18  ;;  %v719_v20 = vpop.xlane.xlu0 %718 }
 0x38c   :  { %3971 = vpow2.f32 %v739_v32  ;;  %v733_v28 = vsub.f32 %v690_v44, %v719_v20 }
 0x38d   :  { %v722_v11 = vpop.xlane.xlu1 %721 }
 0x38e   :  { %v745_v31 = vmul.f32 1.442695, %v733_v28  ;;  %v734_v13 = vsub.f32 %v4868_v51, %v722_v11 }
 0x38f   :  { %v725_v34 = vpop.xlane.xlu0 %724 }
 0x390   :  { %v735_v35 = vsub.f32 %v698_v50, %v725_v34  ;;  %v747_v15 = vmul.f32 1.442695, %v734_v13 }
 0x391   :  { %v4897_v39 = vpop.eup %3965  ;;  %v728_v12 = vpop.xlane.xlu1 %727 }
 0x392   :  { %v749_v40 = vmul.f32 1.442695, %v735_v35  ;;  %v759_v42 = vsel %vm704_vm1, %v4897_v39, 0.0  ;;  %v4901_v45 = vpop.eup %3967  ;;  %v736_v60 = vsub.f32 %v4872_v53, %v728_v12 }
 0x393   :  { %760 = vadd.xlane.f32.xlu0 %v759_v42  ;;  %v753_v44 = vsel %vm704_vm1, %v4901_v45, 0.0 }
 0x394   :  { %3973 = vpow2.f32 %v749_v40  ;;  %v751_v14 = vmul.f32 1.442695, %v736_v60 }
 0x395   :  { %v4903_v19 = vpop.eup %3969  ;;  %3975 = vpow2.f32 %v745_v31 }
 0x396   :  { %v762_v33 = vsel %vm704_vm1, %v4903_v19, 0.0  ;;  %v4909_v49 = vpop.eup %3971  ;;  %3977 = vpow2.f32 %v751_v14 }
 0x397   :  { %763 = vadd.xlane.f32.xlu1 %v762_v33  ;;  %754 = vadd.xlane.f32.xlu0 %v753_v44  ;;  %v756_v50 = vsel %vm704_vm1, %v4909_v49, 0.0  ;;  %3979 = vpow2.f32 %v747_v15 }
 0x39b   :  { %757 = vadd.xlane.f32.xlu1 %v756_v50 }
 0x39e   :  { %v4913_v52 = vpop.eup %3973 }
 0x39f   :  { %v771_v54 = vsel %vm704_vm1, %v4913_v52, 0.0  ;;  %v4917_v55 = vpop.eup %3975 }
 0x3a0   :  { %772 = vadd.xlane.f32.xlu0 %v771_v54  ;;  %v765_v56 = vsel %vm704_vm1, %v4917_v55, 0.0  ;;  %v3978_v16 = vpop.eup %3977 }
 0x3a1   :  { %v774_v26 = vsel %vm704_vm1, %v3978_v16, 0.0  ;;  %v3980_v29 = vpop.eup %3979 }
 0x3a2   :  { %v768_v18 = vsel %vm704_vm1, %v3980_v29, 0.0 }
 0x3a4   :  { %766 = vadd.xlane.f32.xlu0 %v765_v56 }
 0x3ac   :  { %896 = vrot.lane.b32.xlu1 %v4810_v48, %s4508_s13 }
 0x3b0   :  { %898 = vrot.lane.b32.xlu1 %v4818_v59, %s4508_s13 }
 0x3ba   :  { %894 = vrot.lane.b32.xlu0 %v4800_v37, %s4508_s13 }
 0x3be   :  { %882 = vrot.lane.b32.xlu0 %v4798_v36, %s4508_s13 }
 0x3c2   :  { %886 = vrot.lane.b32.xlu0 %v4816_v58, %s4508_s13 }
 0x3d4   :  { %775 = vadd.xlane.f32.xlu1 %v774_v26 }
 0x3d8   :  { %769 = vadd.xlane.f32.xlu1 %v768_v18 }
 0x3e9   :  { %900 = vrot.lane.b32.xlu1 %v4826_v7, %s4508_s13 }
 0x3ed   :  { %884 = vrot.lane.b32.xlu1 %v4808_v47, %s4508_s13 }
 0x3f1   :  { %888 = vrot.lane.b32.xlu1 %v4824_v6, %s4508_s13 }
 0x420   :  { %v761_v51 = vpop.xlane.xlu0 %760 }
 0x424   :  { %v764_v53 = vpop.xlane.xlu1 %763  ;;  %v755_v32 = vpop.xlane.xlu0 %754 }
 0x425   :  { %3981 = vrcp.f32 %v764_v53 }
 0x426   :  { %3983 = vrcp.f32 %v755_v32 }
 0x427   :  { %3985 = vrcp.f32 %v761_v51 }
 0x428   :  { %v758_v20 = vpop.xlane.xlu1 %757 }
 0x429   :  { %3987 = vrcp.f32 %v758_v20 }
 0x42c   :  { %v897_v1 = vpop.permute.xlu1 %896 }
 0x42d   :  { %v773_v28 = vpop.xlane.xlu0 %772 }
 0x42f   :  { %v3982_v34 = vpop.eup %3981 }
 0x430   :  { %v3984_v35 = vpop.eup %3983  ;;  %v788_v33 = vmul.f32 %v3982_v34, %v4903_v19  ;;  %v899_v19 = vpop.permute.xlu1 %898 }
 0x431   :  { %v767_v31 = vpop.xlane.xlu0 %766  ;;  %v3986_v40 = vpop.eup %3985  ;;  %v785_v44 = vmul.f32 %v3984_v35, %v4901_v45  ;;  %v918_v45 = vsel %vm614_vm0, %v897_v1, 0 }
 0x432   :  { %v787_v54 = vmul.f32 %v3986_v40, %v4897_v39  ;;  %v921_v39 = vsel %vm614_vm0, %v899_v19, 0 }
 0x433   :  { %v3988_v42 = vpop.eup %3987 }
 0x434   :  { %v786_v50 = vmul.f32 %v3988_v42, %v4909_v49  ;;  %v794_v62 = vpack.c.bf16 %v788_v33, %v787_v54 }
 0x435   :  { %v895_v56 = vpop.permute.xlu0 %894 }
 0x436   :  { %3799 = vmatprep.subr.msk.bf16.mxu1 %vm614_vm0, %v895_v56  ;;  %v793_v61 = vpack.c.bf16 %v786_v50, %v785_v44  ;;  %v915_v63 = vsel %vm614_vm0, %v895_v56, 0 }
 0x438   :  { %3619 = vmatprep.mubr.msk.bf16.mxu1 %vm704_vm1, %v793_v61 }
 0x439   :  { %3620 = vmatmul.mubr.msk.bf16.vlgmr.msra.gmra.mrb[8].mxu1 %vm704_vm1, %v794_v62  ;;  %v883_v53 = vpop.permute.xlu0 %882 }
 0x43a   :  { %3628 = vmatpush3.bf16.xpose.msra.mxu1 %v915_v63 }
 0x43b   :  { %3800 = vmatprep.subr.msk.bf16.mxu1 %vm614_vm0, %v897_v1 }
 0x43d   :  { %v887_v20 = vpop.permute.xlu0 %886 }
 0x442   :  { %3630 = vmatpush3.bf16.xpose.msra.mxu1 %v918_v45 }
 0x443   :  { %3801 = vmatprep.subr.msk.bf16.mxu1 %vm614_vm0, %v899_v19 }
 0x44a   :  { %3632 = vmatpush3.bf16.xpose.msra.mxu1 %v921_v39 }
 0x461   :  { %v776_v49 = vpop.xlane.xlu1 %775 }
 0x462   :  { %3989 = vrcp.f32 %v776_v49 }
 0x463   :  { %3991 = vrcp.f32 %v767_v31 }
 0x464   :  { %3993 = vrcp.f32 %v773_v28 }
 0x465   :  { %v770_v2 = vpop.xlane.xlu1 %769 }
 0x466   :  { %3995 = vrcp.f32 %v770_v2 }
 0x469   :  { %v901_v3 = vpop.permute.xlu1 %900 }
 0x46a   :  { %3802 = vmatprep.subr.msk.bf16.mxu1 %vm614_vm0, %v901_v3  ;;  %v924_v5 = vsel %vm614_vm0, %v901_v3, 0 }
 0x46b   :  { %3634 = vmatpush3.bf16.xpose.msra.mxu1 %v924_v5 }
 0x46c   :  { %v3990_v24 = vpop.eup %3989 }
 0x46d   :  { %v3992_v11 = vpop.eup %3991  ;;  %v792_v13 = vmul.f32 %v3990_v24, %v3978_v16  ;;  %v885_v32 = vpop.permute.xlu1 %884 }
 0x46e   :  { %v3994_v12 = vpop.eup %3993  ;;  %v789_v14 = vmul.f32 %v3992_v11, %v4917_v55 }
 0x46f   :  { %v791_v26 = vmul.f32 %v3994_v12, %v4913_v52 }
 0x470   :  { %v3996_v60 = vpop.eup %3995 }
 0x471   :  { %v790_v15 = vmul.f32 %v3996_v60, %v3980_v29  ;;  %v796_v51 = vpack.c.bf16 %v792_v13, %v791_v26  ;;  %v889_v16 = vpop.permute.xlu1 %888 }
 0x473   :  { %v795_v18 = vpack.c.bf16 %v790_v15, %v789_v14 }
 0x475   :  { %3623 = vmatprep.mubr.msk.bf16.mxu1 %vm704_vm1, %v795_v18 }
 0x476   :  { %3624 = vmatmul.mubr.msk.bf16.gmra.mrb[12].mxu1 %vm704_vm1, %v796_v51 }
 0x477   :  { %3635 = vmatprep.mubr.msk.bf16.mxu1 %vm614_vm0, %v883_v53 }
 0x47e   :  { %3636 = vmatmul.mubr.msk.bf16.vlgmr.msra.gmra.mrb[16].mxu1 %vm614_vm0, %v885_v32 }
 0x47f   :  { %3639 = vmatprep.mubr.msk.bf16.mxu1 %vm614_vm0, %v887_v20 }
 0x486   :  { %3640 = vmatmul.mubr.msk.bf16.gmra.mrb[20].mxu1 %vm614_vm0, %v889_v16 }
 0x50c   :  { %v4975_v55 = vpop.f32.mrb[8].mxu1 }
 0x50d   :  { %v4977_v52 = vpop.f32.mrb[9].mxu1 }
 0x50e   :  { %v4979_v29 = vpop.f32.mrb[10].mxu1 }
 0x50f   :  { %v875_v28 = vpack.c.bf16 %v4979_v29, %v4975_v55  ;;  %v4983_v34 = vpop.f32.mrb[11].mxu1 }
 0x510   :  { %v874_v35 = vpack.c.bf16 %v4983_v34, %v4977_v52 }
 0x549   :  { %v4987_v31 = vpop.f32.mrb[12].mxu1 }
 0x54a   :  { %v4989_v40 = vpop.f32.mrb[13].mxu1 }
 0x54b   :  { %v4991_v42 = vpop.f32.mrb[14].mxu1 }
 0x54c   :  { %v877_v33 = vpack.c.bf16 %v4991_v42, %v4987_v31  ;;  %v4995_v44 = vpop.f32.mrb[15].mxu1 }
 0x54d   :  { %v876_v50 = vpack.c.bf16 %v4995_v44, %v4989_v40 }
 0x551   :  { %v3637_v54 = vpop.f32.mrb[16].mxu1 }
 0x552   :  { %v969_v56 = vadd.f32 %v3637_v54, %v4841_v17  ;;  %v960_v61 = vpop.f32.mrb[17].mxu1 }
 0x553   :  { %v3638_v62 = vpop.f32.mrb[18].mxu1  ;;  %v961_v63 = vadd.f32 %v960_v61, %v4843_v21 }
 0x554   :  { %v963_v1 = vpop.f32.mrb[19].mxu1  ;;  %v997_v45 = vsel %vm704_vm1, %v969_v56, -inf  ;;  %v972_v49 = vadd.f32 %v3638_v62, %v4845_v27 }
 0x555   :  { %v964_v19 = vadd.f32 %v963_v1, %v4848_v30  ;;  %998 = vmax.xlane.f32.xlu0 %v997_v45  ;;  %v991_v2 = vsel %vm704_vm1, %v961_v63, -inf }
 0x556   :  { %v1000_v60 = vsel %vm704_vm1, %v972_v49, -inf }
 0x557   :  { %v994_v39 = vsel %vm704_vm1, %v964_v19, -inf }
 0x558   :  { %995 = vmax.xlane.f32.xlu1 %v994_v39 }
 0x559   :  { %992 = vmax.xlane.f32.xlu0 %v991_v2  ;;  %v3641_v3 = vpop.f32.mrb[20].mxu1 }
 0x55a   :  { %v976_v5 = vpop.f32.mrb[21].mxu1  ;;  %v985_v11 = vadd.f32 %v3641_v3, %v4859_v41 }
 0x55b   :  { %v3642_v24 = vpop.f32.mrb[22].mxu1  ;;  %v977_v13 = vadd.f32 %v976_v5, %v4856_v38 }
 0x55c   :  { %v979_v12 = vpop.f32.mrb[23].mxu1  ;;  %v1009_v14 = vsel %vm704_vm1, %v985_v11, -inf  ;;  %v988_v26 = vadd.f32 %v3642_v24, %v4864_v46 }
 0x55d   :  { %1001 = vmax.xlane.f32.xlu0 %v1000_v60  ;;  %v1003_v15 = vsel %vm704_vm1, %v977_v13, -inf  ;;  %v5019_v18 = vadd.f32 %v979_v12, %v4861_v43 }
 0x55e   :  { %v1012_v51 = vsel %vm704_vm1, %v988_v26, -inf }
 0x55f   :  { %v1006_v53 = vsel %vm704_vm1, %v5019_v18, -inf }
 0x561   :  { %1010 = vmax.xlane.f32.xlu0 %v1009_v14 }
 0x565   :  { %1004 = vmax.xlane.f32.xlu0 %v1003_v15 }
 0x569   :  { %1089 = vrot.lane.b32.xlu1 %v4889_v8, %s4508_s13 }
 0x56d   :  { %1091 = vrot.lane.b32.xlu1 %v4923_v4, %s4508_s13 }
 0x57b   :  { %1087 = vrot.lane.b32.xlu0 %v4891_v9, %s4508_s13 }
 0x591   :  { %1013 = vmax.xlane.f32.xlu1 %v1012_v51 }
 0x595   :  { %1007 = vmax.xlane.f32.xlu1 %v1006_v53 }
 0x5a6   :  { %1093 = vrot.lane.b32.xlu1 %v4931_v10, %s4508_s13 }
 0x5e2   :  { %v999_v32 = vpop.xlane.xlu0 %998 }
 0x5e3   :  { %v1017_v20 = vsub.f32 %v969_v56, %v999_v32 }
 0x5e5   :  { %v1027_v16 = vmul.f32 1.442695, %v1017_v20  ;;  %v996_v54 = vpop.xlane.xlu1 %995 }
 0x5e6   :  { %v993_v61 = vpop.xlane.xlu0 %992  ;;  %v1016_v1 = vsub.f32 %v964_v19, %v996_v54 }
 0x5e7   :  { %3997 = vpow2.f32 %v1027_v16  ;;  %v1015_v62 = vsub.f32 %v961_v63, %v993_v61 }
 0x5e8   :  { %v1025_v3 = vmul.f32 1.442695, %v1016_v1 }
 0x5e9   :  { %v1023_v45 = vmul.f32 1.442695, %v1015_v62 }
 0x5ea   :  { %v1002_v39 = vpop.xlane.xlu0 %1001 }
 0x5eb   :  { %3999 = vpow2.f32 %v1023_v45  ;;  %v1018_v2 = vsub.f32 %v972_v49, %v1002_v39  ;;  %v1090_v49 = vpop.permute.xlu1 %1089 }
 0x5ed   :  { %v1029_v5 = vmul.f32 1.442695, %v1018_v2 }
 0x5ee   :  { %v1011_v24 = vpop.xlane.xlu0 %1010 }
 0x5ef   :  { %4001 = vpow2.f32 %v1029_v5  ;;  %v1021_v12 = vsub.f32 %v985_v11, %v1011_v24  ;;  %v1092_v16 = vpop.permute.xlu1 %1091 }
 0x5f0   :  { %4003 = vpow2.f32 %v1025_v3 }
 0x5f1   :  { %v5026_v60 = vpop.eup %3997  ;;  %v1035_v14 = vmul.f32 1.442695, %v1021_v12 }
 0x5f2   :  { %v1005_v56 = vpop.xlane.xlu0 %1004  ;;  %v1045_v15 = vsel %vm704_vm1, %v5026_v60, 0.0 }
 0x5f3   :  { %4005 = vpow2.f32 %v1035_v14  ;;  %v1019_v63 = vsub.f32 %v977_v13, %v1005_v56  ;;  %1046 = vadd.xlane.f32.xlu0 %v1045_v15 }
 0x5f5   :  { %v5030_v19 = vpop.eup %3999  ;;  %v1031_v51 = vmul.f32 1.442695, %v1019_v63 }
 0x5f6   :  { %v1088_v53 = vpop.permute.xlu0 %1087  ;;  %v1039_v32 = vsel %vm704_vm1, %v5030_v19, 0.0 }
 0x5f7   :  { %4007 = vpow2.f32 %v1031_v51  ;;  %1040 = vadd.xlane.f32.xlu0 %v1039_v32  ;;  %3643 = vmatprep.subr.bf16.mxu1 %v1088_v53  ;;  %v3873_v51 = vld [vmem:[#allocation10 + $0x10] sm:$0xff]  }
 0x5f8   :  { %3644 = vmatpush3.bf16.msra.mxu1 %v1088_v53  ;;  %3659 = vmatprep.subr.bf16.mxu0 %v3873_v51 }
 0x5f9   :  { %v5034_v11 = vpop.eup %4001  ;;  %3645 = vmatprep.subr.bf16.mxu1 %v1090_v49  ;;  %3660 = vmatpush3.bf16.msra.mxu0 %v3873_v51 }
 0x5fa   :  { %v1048_v20 = vsel %vm704_vm1, %v5034_v11, 0.0  ;;  %v5038_v13 = vpop.eup %4003 }
 0x5fb   :  { %1049 = vadd.xlane.f32.xlu1 %v1048_v20  ;;  %v1042_v61 = vsel %vm704_vm1, %v5038_v13, 0.0 }
 0x5fc   :  { %3646 = vmatpush3.bf16.msra.mxu1 %v1090_v49 }
 0x5fd   :  { %v5040_v54 = vpop.eup %4005  ;;  %3647 = vmatprep.subr.bf16.mxu1 %v1092_v16 }
 0x5fe   :  { %v1057_v62 = vsel %vm704_vm1, %v5040_v54, 0.0 }
 0x5ff   :  { %1043 = vadd.xlane.f32.xlu1 %v1042_v61  ;;  %1058 = vadd.xlane.f32.xlu0 %v1057_v62 }
 0x600   :  { %3648 = vmatpush3.bf16.msra.mxu1 %v1092_v16 }
 0x601   :  { %v5046_v1 = vpop.eup %4007 }
 0x602   :  { %v1051_v45 = vsel %vm704_vm1, %v5046_v1, 0.0 }
 0x603   :  { %1052 = vadd.xlane.f32.xlu0 %v1051_v45 }
 0x610   :  { %1368 = vrot.lane.b32.xlu1 %v4810_v48, %s4494_s11 }
 0x614   :  { %1370 = vrot.lane.b32.xlu1 %v4818_v59, %s4494_s11 }
 0x61e   :  { %v1014_v39 = vpop.xlane.xlu1 %1013 }
 0x61f   :  { %v1022_v2 = vsub.f32 %v988_v26, %v1014_v39 }
 0x621   :  { %v1037_v3 = vmul.f32 1.442695, %v1022_v2 }
 0x622   :  { %v1008_v5 = vpop.xlane.xlu1 %1007 }
 0x623   :  { %4009 = vpow2.f32 %v1037_v3  ;;  %v1020_v24 = vsub.f32 %v5019_v18, %v1008_v5 }
 0x625   :  { %v1033_v12 = vmul.f32 1.442695, %v1020_v24 }
 0x626   :  { %v1094_v14 = vpop.permute.xlu1 %1093 }
 0x627   :  { %3649 = vmatprep.subr.bf16.mxu1 %v1094_v14  ;;  %4011 = vpow2.f32 %v1033_v12 }
 0x628   :  { %3650 = vmatpush3.bf16.msra.mxu1 %v1094_v14 }
 0x62d   :  { %v5055_v56 = vpop.eup %4009 }
 0x62e   :  { %v1060_v15 = vsel %vm704_vm1, %v5055_v56, 0.0 }
 0x62f   :  { %1061 = vadd.xlane.f32.xlu0 %v1060_v15 }
 0x631   :  { %v5059_v63 = vpop.eup %4011 }
 0x632   :  { %v1054_v26 = vsel %vm704_vm1, %v5059_v63, 0.0 }
 0x638   :  { %1055 = vadd.xlane.f32.xlu1 %v1054_v26 }
 0x645   :  { %1366 = vrot.lane.b32.xlu0 %v4800_v37, %s4494_s11 }
 0x649   :  { %1372 = vrot.lane.b32.xlu1 %v4826_v7, %s4494_s11  ;;  %1358 = vrot.lane.b32.xlu0 %v4798_v36, %s4494_s11 }
 0x64d   :  { %1360 = vrot.lane.b32.xlu1 %v4808_v47, %s4494_s11  ;;  %1362 = vrot.lane.b32.xlu0 %v4816_v58, %s4494_s11 }
 0x651   :  { %1364 = vrot.lane.b32.xlu1 %v4824_v6, %s4494_s11  ;;  %1753 = vrot.lane.b32.xlu0 %v4800_v37, %s4509_s9 }
 0x655   :  { %1755 = vrot.lane.b32.xlu1 %v4810_v48, %s4509_s9  ;;  %1757 = vrot.lane.b32.xlu0 %v4818_v59, %s4509_s9 }
 0x659   :  { %1759 = vrot.lane.b32.xlu1 %v4826_v7, %s4509_s9  ;;  %1745 = vrot.lane.b32.xlu0 %v4798_v36, %s4509_s9 }
 0x65d   :  { %1747 = vrot.lane.b32.xlu1 %v4808_v47, %s4509_s9  ;;  %1749 = vrot.lane.b32.xlu0 %v4816_v58, %s4509_s9 }
 0x661   :  { %1751 = vrot.lane.b32.xlu1 %v4824_v6, %s4509_s9 }
 0x680   :  { %v1047_v37 = vpop.xlane.xlu0 %1046 }
 0x684   :  { %v1041_v48 = vpop.xlane.xlu0 %1040 }
 0x688   :  { %v1050_v18 = vpop.xlane.xlu1 %1049 }
 0x689   :  { %4013 = vrcp.f32 %v1050_v18 }
 0x68a   :  { %4015 = vrcp.f32 %v1041_v48 }
 0x68b   :  { %4017 = vrcp.f32 %v1047_v37 }
 0x68c   :  { %v1044_v59 = vpop.xlane.xlu1 %1043  ;;  %v1059_v61 = vpop.xlane.xlu0 %1058 }
 0x68d   :  { %4019 = vrcp.f32 %v1044_v59 }
 0x690   :  { %v1053_v62 = vpop.xlane.xlu0 %1052  ;;  %v1369_v45 = vpop.permute.xlu1 %1368 }
 0x693   :  { %v4014_v36 = vpop.eup %4013 }
 0x694   :  { %v4016_v7 = vpop.eup %4015  ;;  %v1074_v58 = vmul.f32 %v4014_v36, %v5034_v11  ;;  %v1371_v3 = vpop.permute.xlu1 %1370 }
 0x695   :  { %v4018_v47 = vpop.eup %4017  ;;  %v1071_v53 = vmul.f32 %v4016_v7, %v5030_v19  ;;  %v1390_v19 = vsel %vm614_vm0, %v1369_v45, 0  ;;  %v1393_v37 = vsel %vm614_vm0, %v1371_v3, 0 }
 0x696   :  { %v1073_v32 = vmul.f32 %v4018_v47, %v5026_v60 }
 0x697   :  { %v4020_v49 = vpop.eup %4019 }
 0x698   :  { %v1072_v6 = vmul.f32 %v4020_v49, %v5038_v13  ;;  %v1080_v16 = vpack.c.bf16 %v1074_v58, %v1073_v32 }
 0x69a   :  { %v1079_v20 = vpack.c.bf16 %v1072_v6, %v1071_v53 }
 0x69c   :  { %3651 = vmatprep.mubr.msk.bf16.mxu1 %vm704_vm1, %v1079_v20 }
 0x69d   :  { %3652 = vmatmul.mubr.msk.bf16.vlgmr.msra.gmra.mrb[24].mxu1 %vm704_vm1, %v1080_v16  ;;  %v3874_v16 = vld [vmem:[#allocation10 + $0x18] sm:$0xff]  }
 0x69e   :  { %3661 = vmatprep.subr.bf16.mxu0 %v3874_v16 }
 0x69f   :  { %3662 = vmatpush3.bf16.msra.mxu0 %v3874_v16 }
 0x6bc   :  { %v1062_v39 = vpop.xlane.xlu0 %1061 }
 0x6bd   :  { %4021 = vrcp.f32 %v1062_v39 }
 0x6be   :  { %4023 = vrcp.f32 %v1053_v62 }
 0x6bf   :  { %4025 = vrcp.f32 %v1059_v61 }
 0x6c0   :  { %v1367_v2 = vpop.permute.xlu0 %1366 }
 0x6c1   :  { %v1387_v11 = vsel %vm614_vm0, %v1367_v2, 0  ;;  %3803 = vmatprep.subr.msk.bf16.mxu1 %vm614_vm0, %v1367_v2  ;;  %v3875_v2 = vld [vmem:[#allocation10] sm:$0xff]  }
 0x6c2   :  { %3684 = vmatpush3.bf16.xpose.msra.mxu1 %v1387_v11  ;;  %3671 = vmatprep.subr.bf16.mxu0 %v3875_v2 }
 0x6c3   :  { %3804 = vmatprep.subr.msk.bf16.mxu1 %vm614_vm0, %v1369_v45 }
 0x6c4   :  { %v1359_v24 = vpop.permute.xlu0 %1358 }
 0x6c5   :  { %v1056_v60 = vpop.xlane.xlu1 %1055 }
 0x6c6   :  { %4027 = vrcp.f32 %v1056_v60 }
 0x6c7   :  { %v4022_v13 = vpop.eup %4021 }
 0x6c8   :  { %v4024_v5 = vpop.eup %4023  ;;  %v1078_v26 = vmul.f32 %v4022_v13, %v5055_v56  ;;  %v1363_v36 = vpop.permute.xlu0 %1362 }
 0x6c9   :  { %v4026_v12 = vpop.eup %4025  ;;  %v1373_v15 = vpop.permute.xlu1 %1372  ;;  %v1075_v48 = vmul.f32 %v4024_v5, %v5046_v1 }
 0x6ca   :  { %3686 = vmatpush3.bf16.xpose.msra.mxu1 %v1390_v19  ;;  %v1077_v51 = vmul.f32 %v4026_v12, %v5040_v54  ;;  %v1396_v56 = vsel %vm614_vm0, %v1373_v15, 0 }
 0x6cb   :  { %3805 = vmatprep.subr.msk.bf16.mxu1 %vm614_vm0, %v1371_v3 }
 0x6cc   :  { %v1082_v7 = vpack.c.bf16 %v1078_v26, %v1077_v51  ;;  %v1754_v1 = vpop.permute.xlu0 %1753 }
 0x6cd   :  { %v1361_v47 = vpop.permute.xlu1 %1360  ;;  %v1774_v54 = vsel %vm614_vm0, %v1754_v1, 0 }
 0x6d0   :  { %v4028_v14 = vpop.eup %4027  ;;  %v1758_v58 = vpop.permute.xlu0 %1757 }
 0x6d1   :  { %v1076_v18 = vmul.f32 %v4028_v14, %v5059_v63  ;;  %v1365_v63 = vpop.permute.xlu1 %1364  ;;  %v1780_v32 = vsel %vm614_vm0, %v1758_v58, 0 }
 0x6d2   :  { %3688 = vmatpush3.bf16.xpose.msra.mxu1 %v1393_v37 }
 0x6d3   :  { %3806 = vmatprep.subr.msk.bf16.mxu1 %vm614_vm0, %v1373_v15  ;;  %v1081_v59 = vpack.c.bf16 %v1076_v18, %v1075_v48 }
 0x6d4   :  { %v1746_v53 = vpop.permute.xlu0 %1745 }
 0x6d5   :  { %3655 = vmatprep.mubr.msk.bf16.mxu1 %vm704_vm1, %v1081_v59  ;;  %v1756_v49 = vpop.permute.xlu1 %1755 }
 0x6d6   :  { %3656 = vmatmul.mubr.msk.bf16.gmra.mrb[28].mxu1 %vm704_vm1, %v1082_v7  ;;  %v1777_v6 = vsel %vm614_vm0, %v1756_v49, 0 }
 0x6d7   :  { %3691 = vmatprep.mubr.msk.bf16.mxu1 %vm614_vm0, %v1359_v24  ;;  %v3876_v24 = vld [vmem:[#allocation10 + $0x8] sm:$0xff]  }
 0x6d8   :  { %v1750_v45 = vpop.permute.xlu0 %1749 }
 0x6d9   :  { %v1760_v20 = vpop.permute.xlu1 %1759 }
 0x6da   :  { %3690 = vmatpush3.bf16.xpose.msra.mxu1 %v1396_v56  ;;  %v1783_v61 = vsel %vm614_vm0, %v1760_v20, 0 }
 0x6db   :  { %3807 = vmatprep.subr.msk.bf16.mxu1 %vm614_vm0, %v1754_v1 }
 0x6dd   :  { %v1748_v62 = vpop.permute.xlu1 %1747 }
 0x6e1   :  { %3692 = vmatmul.mubr.msk.bf16.vlgmr.msra.gmra.mrb[32].mxu1 %vm614_vm0, %v1361_v47  ;;  %v1752_v39 = vpop.permute.xlu1 %1751 }
 0x6e2   :  { %3695 = vmatprep.mubr.msk.bf16.mxu1 %vm614_vm0, %v1363_v36  ;;  %3728 = vmatpush3.bf16.xpose.msra.mxu1 %v1774_v54 }
 0x6e3   :  { %3808 = vmatprep.subr.msk.bf16.mxu1 %vm614_vm0, %v1756_v49 }
 0x6e9   :  { %3696 = vmatmul.mubr.msk.bf16.gmra.mrb[36].mxu1 %vm614_vm0, %v1365_v63 }
 0x6ea   :  { %3730 = vmatpush3.bf16.xpose.msra.mxu1 %v1777_v6  ;;  %3735 = vmatprep.mubr.msk.bf16.mxu1 %vm614_vm0, %v1746_v53 }
 0x6eb   :  { %3809 = vmatprep.subr.msk.bf16.mxu1 %vm614_vm0, %v1758_v58 }
 0x6f2   :  { %3732 = vmatpush3.bf16.xpose.msra.mxu1 %v1780_v32 }
 0x6f3   :  { %3810 = vmatprep.subr.msk.bf16.mxu1 %vm614_vm0, %v1760_v20 }
 0x6fa   :  { %3734 = vmatpush3.bf16.xpose.msra.mxu1 %v1783_v61 }
 0x701   :  { %3736 = vmatmul.mubr.msk.bf16.vlgmr.msra.gmra.mrb[40].mxu1 %vm614_vm0, %v1748_v62 }
 0x702   :  { %3739 = vmatprep.mubr.msk.bf16.mxu1 %vm614_vm0, %v1750_v45 }
 0x709   :  { %3740 = vmatmul.mubr.msk.bf16.gmra.mrb[44].mxu1 %vm614_vm0, %v1752_v39 }
 0x70a   :  { %2524 = vmatprep.mubr.bf16.mxu1 %v4507_v0 }
 0x770   :  { %v3653_v3 = vpop.f32.mrb[24].mxu1 }
 0x771   :  { %v1145_v11 = vpop.f32.mrb[25].mxu1 }
 0x772   :  { %v3654_v60 = vpop.f32.mrb[26].mxu1 }
 0x773   :  { %v1177_v19 = vpack.c.bf16 %v3654_v60, %v3653_v3  ;;  %v1148_v13 = vpop.f32.mrb[27].mxu1 }
 0x774   :  { %v1176_v5 = vpack.c.bf16 %v1148_v13, %v1145_v11 }
 0x776   :  { %3663 = vmatprep.mubr.msk.bf16.mxu0 %vm614_vm0, %v1176_v5 }
 0x777   :  { %3664 = vmatmul.mubr.msk.bf16.vlgmr.msra.gmra.mrb[24].mxu0 %vm614_vm0, %v1177_v19 }
 0x778   :  { %3672 = vmatpush3.bf16.msra.mxu0 %v3875_v2 }
 0x779   :  { %3673 = vmatprep.subr.bf16.mxu0 %v3876_v24 }
 0x77c   :  { %3674 = vmatpush3.bf16.msra.mxu0 %v3876_v24 }
 0x7a9   :  { %v3657_v12 = vpop.f32.mrb[28].mxu1 }
 0x7aa   :  { %v1161_v14 = vpop.f32.mrb[29].mxu1 }
 0x7ab   :  { %v3658_v15 = vpop.f32.mrb[30].mxu1 }
 0x7ac   :  { %v1179_v26 = vpack.c.bf16 %v3658_v15, %v3657_v12  ;;  %v1164_v37 = vpop.f32.mrb[31].mxu1 }
 0x7ad   :  { %v1178_v48 = vpack.c.bf16 %v1164_v37, %v1161_v14 }
 0x7af   :  { %3667 = vmatprep.mubr.msk.bf16.mxu0 %vm614_vm0, %v1178_v48 }
 0x7b0   :  { %3668 = vmatmul.mubr.msk.bf16.gmra.mrb[28].mxu0 %vm614_vm0, %v1179_v26 }
 0x7b1   :  { %3675 = vmatprep.mubr.msk.bf16.mxu0 %vm614_vm0, %v874_v35 }
 0x7b4   :  { %v3693_v18 = vpop.f32.mrb[32].mxu1 }
 0x7b5   :  { %v1432_v51 = vpop.f32.mrb[33].mxu1  ;;  %v1441_v47 = vadd.f32 %v3693_v18, %v4841_v17 }
 0x7b6   :  { %v1433_v59 = vadd.f32 %v1432_v51, %v4843_v21  ;;  %v3694_v36 = vpop.f32.mrb[34].mxu1 }
 0x7b7   :  { %v1435_v7 = vpop.f32.mrb[35].mxu1  ;;  %v1444_v17 = vadd.f32 %v3694_v36, %v4845_v27 }
 0x7b8   :  { %v1436_v56 = vadd.f32 %v1435_v7, %v4848_v30  ;;  %3676 = vmatmul.mubr.msk.bf16.vlgmr.msra.gmra.mrb[24].mxu0 %vm614_vm0, %v875_v28  ;;  %v1463_v1 = vsel %vm704_vm1, %v1433_v59, -inf  ;;  %v1469_v30 = vsel %vm704_vm1, %v1441_v47, -inf }
 0x7b9   :  { %3679 = vmatprep.mubr.msk.bf16.mxu0 %vm614_vm0, %v876_v50  ;;  %1464 = vmax.xlane.f32.xlu0 %v1463_v1  ;;  %v1472_v40 = vsel %vm704_vm1, %v1444_v17, -inf }
 0x7ba   :  { %v1466_v21 = vsel %vm704_vm1, %v1436_v56, -inf }
 0x7bb   :  { %1467 = vmax.xlane.f32.xlu1 %v1466_v21 }
 0x7bc   :  { %v3697_v52 = vpop.f32.mrb[36].mxu1 }
 0x7bd   :  { %1470 = vmax.xlane.f32.xlu0 %v1469_v30  ;;  %v1448_v55 = vpop.f32.mrb[37].mxu1 }
 0x7be   :  { %v3698_v29 = vpop.f32.mrb[38].mxu1  ;;  %v1449_v34 = vadd.f32 %v1448_v55, %v4856_v38  ;;  %v1457_v38 = vadd.f32 %v3697_v52, %v4859_v41 }
 0x7bf   :  { %v1451_v28 = vpop.f32.mrb[39].mxu1  ;;  %v5161_v27 = vadd.f32 %v3698_v29, %v4864_v46 }
 0x7c0   :  { %v5153_v35 = vadd.f32 %v1451_v28, %v4861_v43  ;;  %3680 = vmatmul.mubr.msk.bf16.gmra.mrb[28].mxu0 %vm614_vm0, %v877_v33  ;;  %v1475_v43 = vsel %vm704_vm1, %v1449_v34, -inf  ;;  %v1481_v42 = vsel %vm704_vm1, %v1457_v38, -inf  ;;  %v4125_v28 = vld [vmem:[#allocation5] sm:$0xff] }
 0x7c1   :  { %1473 = vmax.xlane.f32.xlu0 %v1472_v40  ;;  %v1484_v31 = vsel %vm704_vm1, %v5161_v27, -inf }
 0x7c2   :  { %v1478_v44 = vsel %vm704_vm1, %v5153_v35, -inf }
 0x7c3   :  { %1479 = vmax.xlane.f32.xlu1 %v1478_v44 }
 0x7c5   :  { %1476 = vmax.xlane.f32.xlu0 %v1475_v43 }
 0x7c7   :  { %1485 = vmax.xlane.f32.xlu1 %v1484_v31  ;;  %v4127_v31 = vld [vmem:[#allocation5 + $0x18] sm:$0xff] }
 0x7c9   :  { %1482 = vmax.xlane.f32.xlu0 %v1481_v42 }
 0x7d4   :  { %v5170_v33 = vpop.f32.mrb[40].mxu1 }
 0x7d5   :  { %v1819_v46 = vpop.f32.mrb[41].mxu1 }
 0x7d6   :  { %v5172_v50 = vpop.f32.mrb[42].mxu1 }
 0x7d7   :  { %v5174_v63 = vpop.f32.mrb[43].mxu1  ;;  %v5232_v42 = vadd.f32 %v4127_v31, %v5172_v50  ;;  %v3878_v31 = vld [vmem:[#allocation10 + $0x28] sm:$0xff]  }
 0x7dc   :  { %v5176_v54 = vpop.f32.mrb[44].mxu1 }
 0x7dd   :  { %v5178_v41 = vpop.f32.mrb[45].mxu1 }
 0x7de   :  { %v5180_v49 = vpop.f32.mrb[46].mxu1 }
 0x7df   :  { %v5182_v58 = vpop.f32.mrb[47].mxu1 }
 0x846   :  { %v1465_v53 = vpop.xlane.xlu0 %1464 }
 0x847   :  { %v1487_v6 = vsub.f32 %v1433_v59, %v1465_v53  ;;  %v4128_v53 = vld [vmem:[#allocation5 + $0x20] sm:$0xff] }
 0x848   :  { %v1468_v32 = vpop.xlane.xlu1 %1467 }
 0x849   :  { %v1495_v61 = vmul.f32 1.442695, %v1487_v6  ;;  %v1488_v62 = vsub.f32 %v1436_v56, %v1468_v32  ;;  %v1859_v6 = vsel %vm704_vm1, %v5232_v42, -inf  ;;  %v4129_v32 = vld [vmem:[#allocation5 + $0x30] sm:$0xff] }
 0x84a   :  { %v1471_v20 = vpop.xlane.xlu0 %1470 }
 0x84b   :  { %v1489_v16 = vsub.f32 %v1441_v47, %v1471_v20  ;;  %v1497_v3 = vmul.f32 1.442695, %v1488_v62  ;;  %v5242_v20 = vadd.f32 %v4129_v32, %v5176_v54  ;;  %v4131_v54 = vld [vmem:[#allocation5 + $0x28] sm:$0xff] }
 0x84c   :  { %v5256_v62 = vadd.f32 %v4131_v54, %v5182_v58 }
 0x84d   :  { %v1499_v45 = vmul.f32 1.442695, %v1489_v16  ;;  %v1868_v16 = vsel %vm704_vm1, %v5242_v20, -inf }
 0x84e   :  { %v1474_v39 = vpop.xlane.xlu0 %1473 }
 0x84f   :  { %4029 = vpow2.f32 %v1499_v45  ;;  %v1490_v2 = vsub.f32 %v1444_v17, %v1474_v39  ;;  %v4132_v39 = vld [vmem:[#allocation5 + $0x38] sm:$0xff] }
 0x850   :  { %4031 = vpow2.f32 %v1495_v61  ;;  %v1480_v1 = vpop.xlane.xlu1 %1479 }
 0x851   :  { %v1501_v11 = vmul.f32 1.442695, %v1490_v2  ;;  %v1492_v52 = vsub.f32 %v5153_v35, %v1480_v1  ;;  %v5261_v2 = vadd.f32 %v4132_v39, %v5180_v49 }
 0x852   :  { %v1477_v60 = vpop.xlane.xlu0 %1476 }
 0x853   :  { %4033 = vpow2.f32 %v1501_v11  ;;  %v1491_v19 = vsub.f32 %v1449_v34, %v1477_v60  ;;  %v1505_v55 = vmul.f32 1.442695, %v1492_v52  ;;  %v5218_v34 = vadd.f32 %v4125_v28, %v1819_v46  ;;  %v3877_v52 = vld [vmem:[#allocation10 + $0x20] sm:$0xff]  }
 0x854   :  { %4035 = vpow2.f32 %v1497_v3  ;;  %v1486_v21 = vpop.xlane.xlu1 %1485  ;;  %v1865_v3 = vsel %vm704_vm1, %v5256_v62, -inf }
 0x855   :  { %v1503_v12 = vmul.f32 1.442695, %v1491_v19  ;;  %v1494_v17 = vsub.f32 %v5161_v27, %v1486_v21  ;;  %v1850_v43 = vsel %vm704_vm1, %v5218_v34, -inf }
 0x856   :  { %v1483_v13 = vpop.xlane.xlu0 %1482 }
 0x857   :  { %v1493_v5 = vsub.f32 %v1457_v38, %v1483_v13  ;;  %v1509_v30 = vmul.f32 1.442695, %v1494_v17  ;;  %v4126_v38 = vld [vmem:[#allocation5 + $0x10] sm:$0xff] }
 0x858   :  { %v5225_v27 = vadd.f32 %v4126_v38, %v5170_v33  ;;  %v5237_v33 = vadd.f32 %v4128_v53, %v5178_v41  ;;  %v4130_v41 = vld [vmem:[#allocation5 + $0x8] sm:$0xff] }
 0x859   :  { %v5184_v24 = vpop.eup %4029  ;;  %v1507_v14 = vmul.f32 1.442695, %v1493_v5  ;;  %v5253_v61 = vadd.f32 %v4130_v41, %v5174_v63 }
 0x85a   :  { %v1517_v15 = vsel %vm704_vm1, %v5184_v24, 0.0  ;;  %v5188_v26 = vpop.eup %4031  ;;  %v1856_v46 = vsel %vm704_vm1, %v5225_v27, -inf  ;;  %v1862_v50 = vsel %vm704_vm1, %v5237_v33, -inf }
 0x85b   :  { %4037 = vpow2.f32 %v1507_v14  ;;  %1518 = vadd.xlane.f32.xlu0 %v1517_v15  ;;  %v1511_v48 = vsel %vm704_vm1, %v5188_v26, 0.0  ;;  %v1853_v45 = vsel %vm704_vm1, %v5253_v61, -inf }
 0x85c   :  { %4039 = vpow2.f32 %v1503_v12 }
 0x85d   :  { %v5190_v37 = vpop.eup %4033  ;;  %4041 = vpow2.f32 %v1509_v30 }
 0x85e   :  { %v1520_v18 = vsel %vm704_vm1, %v5190_v37, 0.0  ;;  %v5196_v51 = vpop.eup %4035  ;;  %4043 = vpow2.f32 %v1505_v55 }
 0x85f   :  { %1512 = vadd.xlane.f32.xlu0 %v1511_v48  ;;  %1521 = vadd.xlane.f32.xlu1 %v1520_v18  ;;  %v1514_v59 = vsel %vm704_vm1, %v5196_v51, 0.0 }
 0x863   :  { %1515 = vadd.xlane.f32.xlu1 %v1514_v59 }
 0x865   :  { %v5200_v36 = vpop.eup %4037 }
 0x866   :  { %v1529_v7 = vsel %vm704_vm1, %v5200_v36, 0.0  ;;  %v5204_v47 = vpop.eup %4039 }
 0x867   :  { %1530 = vadd.xlane.f32.xlu0 %v1529_v7  ;;  %v1523_v56 = vsel %vm704_vm1, %v5204_v47, 0.0  ;;  %v5216_v29 = vpop.eup %4041 }
 0x868   :  { %v1532_v40 = vsel %vm704_vm1, %v5216_v29, 0.0  ;;  %v5222_v44 = vpop.eup %4043 }
 0x869   :  { %v1526_v35 = vsel %vm704_vm1, %v5222_v44, 0.0 }
 0x86b   :  { %1524 = vadd.xlane.f32.xlu0 %v1523_v56 }
 0x874   :  { %1557 = vrot.lane.b32.xlu1 %v4889_v8, %s4494_s11 }
 0x878   :  { %1559 = vrot.lane.b32.xlu1 %v4923_v4, %s4494_s11 }
 0x881   :  { %1555 = vrot.lane.b32.xlu0 %v4891_v9, %s4494_s11 }
 0x89c   :  { %1533 = vadd.xlane.f32.xlu1 %v1532_v40 }
 0x8a0   :  { %1527 = vadd.xlane.f32.xlu1 %v1526_v35  ;;  %1851 = vmax.xlane.f32.xlu0 %v1850_v43 }
 0x8a4   :  { %1857 = vmax.xlane.f32.xlu0 %v1856_v46 }
 0x8a8   :  { %1860 = vmax.xlane.f32.xlu0 %v1859_v6 }
 0x8ac   :  { %1863 = vmax.xlane.f32.xlu0 %v1862_v50 }
 0x8b0   :  { %1869 = vmax.xlane.f32.xlu0 %v1868_v16 }
 0x8b1   :  { %1561 = vrot.lane.b32.xlu1 %v4931_v10, %s4494_s11  ;;  %s4510_s11 = smov [#allocation25]  }
 0x8b2   :  { %s3218_s26 = sshll.u32 %s4510_s11, 4  ;;  %s3219_s26 = int_to_ptr.vmem [resolvable:$true] %s3218_s26 }
 0x8b3   :  { %s4445_s29 = scalar_lea.vmem %s3219_s26, 1024  ;;  %p4450_p1 = scmp.lt.s32.totalorder %s3219_s26, %s3219_s26 }
 0x8b4   :  { %p4446_p0 = scmp.ne.s32.totalorder %s3219_s26, %s4445_s29  ;;  %p4451_p2 = scmp.lt.s32.totalorder %s4445_s29, %s4445_s29 }
 0x8b6   :  { %p4452_p3 = por %p4451_p2, %p4450_p1 }
 0x8b8   :  { %p4453_p4 = pnand %p4452_p3, %p4446_p0 }
 0x8c6   :  { %1942 = vrot.lane.b32.xlu0 %v4891_v9, %s4509_s9  ;;  %v1871_v9 = vsel %vm704_vm1, %v5261_v2, -inf }
 0x8d5   :  { %1854 = vmax.xlane.f32.xlu1 %v1853_v45 }
 0x8d9   :  { %1866 = vmax.xlane.f32.xlu1 %v1865_v3 }
 0x8dd   :  { %1872 = vmax.xlane.f32.xlu1 %v1871_v9 }
 0x8e8   :  { %v1519_v63 = vpop.xlane.xlu0 %1518 }
 0x8ec   :  { %v1522_v11 = vpop.xlane.xlu1 %1521  ;;  %v1513_v58 = vpop.xlane.xlu0 %1512 }
 0x8ed   :  { %4045 = vrcp.f32 %v1513_v58 }
 0x8f0   :  { %v1516_v60 = vpop.xlane.xlu1 %1515 }
 0x8f1   :  { %4047 = vrcp.f32 %v1516_v60 }
 0x8f2   :  { %4049 = vrcp.f32 %v1522_v11 }
 0x8f3   :  { %4051 = vrcp.f32 %v1519_v63 }
 0x8f4   :  { %v1531_v19 = vpop.xlane.xlu0 %1530  ;;  %v1558_v49 = vpop.permute.xlu1 %1557 }
 0x8f7   :  { %v4046_v5 = vpop.eup %4045 }
 0x8f8   :  { %v1525_v13 = vpop.xlane.xlu0 %1524  ;;  %v1543_v15 = vmul.f32 %v4046_v5, %v5188_v26  ;;  %v1560_v59 = vpop.permute.xlu1 %1559 }
 0x8fb   :  { %v4048_v12 = vpop.eup %4047 }
 0x8fc   :  { %v1556_v14 = vpop.permute.xlu0 %1555  ;;  %v1544_v48 = vmul.f32 %v4048_v12, %v5196_v51  ;;  %v4050_v56 = vpop.eup %4049 }
 0x8fd   :  { %3699 = vmatprep.subr.bf16.mxu0 %v1556_v14  ;;  %v4052_v51 = vpop.eup %4051  ;;  %v1546_v21 = vmul.f32 %v4050_v56, %v5190_v37 }
 0x8fe   :  { %3700 = vmatpush3.bf16.msra.mxu0 %v1556_v14  ;;  %v1551_v18 = vpack.c.bf16 %v1544_v48, %v1543_v15  ;;  %v1545_v28 = vmul.f32 %v4052_v51, %v5184_v24 }
 0x8ff   :  { %3701 = vmatprep.subr.bf16.mxu0 %v1558_v49 }
 0x900   :  { %3707 = vmatprep.mubr.msk.bf16.mxu0 %vm704_vm1, %v1551_v18  ;;  %v1552_v38 = vpack.c.bf16 %v1546_v21, %v1545_v28 }
 0x902   :  { %3702 = vmatpush3.bf16.msra.mxu0 %v1558_v49 }
 0x903   :  { %3703 = vmatprep.subr.bf16.mxu0 %v1560_v59 }
 0x906   :  { %3704 = vmatpush3.bf16.msra.mxu0 %v1560_v59 }
 0x929   :  { %v1534_v7 = vpop.xlane.xlu1 %1533 }
 0x92a   :  { %4053 = vrcp.f32 %v1534_v7 }
 0x92b   :  { %4055 = vrcp.f32 %v1525_v13 }
 0x92c   :  { %4057 = vrcp.f32 %v1531_v19 }
 0x92d   :  { %v1528_v26 = vpop.xlane.xlu1 %1527  ;;  %v1852_v1 = vpop.xlane.xlu0 %1851 }
 0x92e   :  { %4059 = vrcp.f32 %v1528_v26  ;;  %v1874_v17 = vsub.f32 %v5218_v34, %v1852_v1 }
 0x930   :  { %v1882_v35 = vmul.f32 1.442695, %v1874_v17 }
 0x931   :  { %v1562_v30 = vpop.permute.xlu1 %1561  ;;  %v1858_v55 = vpop.xlane.xlu0 %1857 }
 0x932   :  { %v1876_v40 = vsub.f32 %v5225_v27, %v1858_v55  ;;  %3705 = vmatprep.subr.bf16.mxu0 %v1562_v30 }
 0x933   :  { %3706 = vmatpush3.bf16.msra.mxu0 %v1562_v30 }
 0x934   :  { %v1886_v43 = vmul.f32 1.442695, %v1876_v40  ;;  %3715 = vmatprep.subr.bf16.mxu0 %v3877_v52  ;;  %v4054_v46 = vpop.eup %4053 }
 0x935   :  { %v1861_v53 = vpop.xlane.xlu0 %1860  ;;  %v4056_v6 = vpop.eup %4055  ;;  %v1550_v32 = vmul.f32 %v4054_v46, %v5216_v29 }
 0x936   :  { %4061 = vpow2.f32 %v1886_v43  ;;  %v1877_v37 = vsub.f32 %v5232_v42, %v1861_v53  ;;  %3708 = vmatmul.mubr.msk.bf16.vlgmr.msra.gmra.mrb[32].mxu0 %vm704_vm1, %v1552_v38  ;;  %v4058_v34 = vpop.eup %4057  ;;  %v1547_v16 = vmul.f32 %v4056_v6, %v5204_v47 }
 0x937   :  { %3716 = vmatpush3.bf16.msra.mxu0 %v3877_v52  ;;  %4063 = vpow2.f32 %v1882_v35  ;;  %v1549_v54 = vmul.f32 %v4058_v34, %v5200_v36 }
 0x938   :  { %v4060_v24 = vpop.eup %4059  ;;  %v1888_v27 = vmul.f32 1.442695, %v1877_v37  ;;  %3717 = vmatprep.subr.bf16.mxu0 %v3878_v31 }
 0x939   :  { %v1864_v50 = vpop.xlane.xlu0 %1863  ;;  %v1548_v41 = vmul.f32 %v4060_v24, %v5222_v44  ;;  %v1554_v42 = vpack.c.bf16 %v1550_v32, %v1549_v54 }
 0x93a   :  { %4065 = vpow2.f32 %v1888_v27  ;;  %v1878_v19 = vsub.f32 %v5237_v33, %v1864_v50 }
 0x93b   :  { %v1553_v45 = vpack.c.bf16 %v1548_v41, %v1547_v16  ;;  %3718 = vmatpush3.bf16.msra.mxu0 %v3878_v31 }
 0x93c   :  { %v1890_v49 = vmul.f32 1.442695, %v1878_v19 }
 0x93d   :  { %3711 = vmatprep.mubr.msk.bf16.mxu0 %vm704_vm1, %v1553_v45  ;;  %v1870_v39 = vpop.xlane.xlu0 %1869 }
 0x93e   :  { %3712 = vmatmul.mubr.msk.bf16.gmra.mrb[36].mxu0 %vm704_vm1, %v1554_v42  ;;  %v1880_v11 = vsub.f32 %v5242_v20, %v1870_v39 }
 0x940   :  { %v5282_v3 = vpop.eup %4061  ;;  %v1894_v13 = vmul.f32 1.442695, %v1880_v11 }
 0x941   :  { %v5284_v29 = vpop.permute.xlu0 %1942  ;;  %v1904_v47 = vsel %vm704_vm1, %v5282_v3, 0.0  ;;  %v5288_v9 = vpop.eup %4063 }
 0x942   :  { %1905 = vadd.xlane.f32.xlu0 %v1904_v47  ;;  %3743 = vmatprep.subr.bf16.mxu0 %v5284_v29  ;;  %v1898_v44 = vsel %vm704_vm1, %v5288_v9, 0.0 }
 0x944   :  { %v5291_v36 = vpop.eup %4065 }
 0x945   :  { %v1907_v63 = vsel %vm704_vm1, %v5291_v36, 0.0 }
 0x946   :  { %1899 = vadd.xlane.f32.xlu0 %v1898_v44  ;;  %1908 = vadd.xlane.f32.xlu1 %v1907_v63 }
 0x95c   :  { %1946 = vrot.lane.b32.xlu0 %v4923_v4, %s4509_s9 }
 0x960   :  { %1948 = vrot.lane.b32.xlu0 %v4931_v10, %s4509_s9 }
 0x962   :  { %v1855_v58 = vpop.xlane.xlu1 %1854 }
 0x963   :  { %v1875_v60 = vsub.f32 %v5253_v61, %v1855_v58 }
 0x965   :  { %v1884_v5 = vmul.f32 1.442695, %v1875_v60 }
 0x966   :  { %v1867_v12 = vpop.xlane.xlu1 %1866 }
 0x967   :  { %4067 = vpow2.f32 %v1884_v5  ;;  %v1879_v4 = vsub.f32 %v5256_v62, %v1867_v12 }
 0x968   :  { %4069 = vpow2.f32 %v1894_v13  ;;  %v3880_v13 = vld [vmem:[#allocation10 + $0x38] sm:$0xff]  }
 0x969   :  { %4071 = vpow2.f32 %v1890_v49  ;;  %v1892_v20 = vmul.f32 1.442695, %v1879_v4 }
 0x96a   :  { %v1873_v14 = vpop.xlane.xlu1 %1872 }
 0x96b   :  { %v1881_v15 = vsub.f32 %v5261_v2, %v1873_v14 }
 0x96d   :  { %v1896_v10 = vmul.f32 1.442695, %v1881_v15 }
 0x96f   :  { %4073 = vpow2.f32 %v1896_v10 }
 0x970   :  { %4075 = vpow2.f32 %v1892_v20 }
 0x971   :  { %v4068_v48 = vpop.eup %4067 }
 0x972   :  { %v1901_v61 = vsel %vm704_vm1, %v4068_v48, 0.0  ;;  %v5307_v18 = vpop.eup %4069 }
 0x973   :  { %1902 = vadd.xlane.f32.xlu1 %v1901_v61  ;;  %v1916_v33 = vsel %vm704_vm1, %v5307_v18, 0.0  ;;  %v5311_v59 = vpop.eup %4071 }
 0x974   :  { %v1910_v2 = vsel %vm704_vm1, %v5311_v59, 0.0 }
 0x977   :  { %1917 = vadd.xlane.f32.xlu1 %v1916_v33 }
 0x979   :  { %v5315_v62 = vpop.eup %4073 }
 0x97a   :  { %v1919_v7 = vsel %vm704_vm1, %v5315_v62, 0.0  ;;  %v4076_v56 = vpop.eup %4075 }
 0x97b   :  { %1911 = vadd.xlane.f32.xlu1 %v1910_v2  ;;  %v1913_v26 = vsel %vm704_vm1, %v4076_v56, 0.0 }
 0x97f   :  { %1920 = vadd.xlane.f32.xlu1 %v1919_v7 }
 0x983   :  { %1914 = vadd.xlane.f32.xlu1 %v1913_v26 }
 0x994   :  { %1944 = vrot.lane.b32.xlu1 %v4889_v8, %s4509_s9 }
 0x9cf   :  { %v1906_v51 = vpop.xlane.xlu0 %1905 }
 0x9d3   :  { %v1909_v1 = vpop.xlane.xlu1 %1908  ;;  %v1900_v52 = vpop.xlane.xlu0 %1899 }
 0x9d7   :  { %v1947_v34 = vpop.permute.xlu0 %1946 }
 0x9db   :  { %v1949_v47 = vpop.permute.xlu0 %1948 }
 0xa00   :  { %v1903_v21 = vpop.xlane.xlu1 %1902 }
 0xa01   :  { %4077 = vrcp.f32 %v1903_v21 }
 0xa02   :  { %4079 = vrcp.f32 %v1900_v52 }
 0xa03   :  { %4081 = vrcp.f32 %v1909_v1  ;;  %v4133_v1 = vld [vmem:[#allocation2] sm:$0xff]  }
 0xa04   :  { %v1918_v17 = vpop.xlane.xlu1 %1917  ;;  %4083 = vrcp.f32 %v1906_v51  ;;  %v231_v51 = vunpack.c.l.bf16 %v4133_v1 }
 0xa08   :  { %v1912_v30 = vpop.xlane.xlu1 %1911 }
 0xa09   :  { %v3709_v55 = vpop.f32.mrb[32].mxu0  ;;  %4085 = vrcp.f32 %v1912_v30  ;;  %v232_v30 = vunpack.c.h.bf16 %v4133_v1 }
 0xa0a   :  { %v1613_v28 = vpop.f32.mrb[33].mxu0 }
 0xa0b   :  { %v3710_v40 = vpop.f32.mrb[34].mxu0  ;;  %v4078_v8 = vpop.eup %4077 }
 0xa0c   :  { %v1645_v38 = vpack.c.bf16 %v3710_v40, %v3709_v55  ;;  %v1616_v35 = vpop.f32.mrb[35].mxu0  ;;  %v1921_v43 = vpop.xlane.xlu1 %1920  ;;  %v1931_v27 = vmul.f32 %v4078_v8, %v4068_v48 }
 0xa0d   :  { %v1644_v31 = vpack.c.bf16 %v1616_v35, %v1613_v28  ;;  %v4080_v6 = vpop.eup %4079  ;;  %v4134_v28 = vld [vmem:[#allocation2 + $0x8] sm:$0xff]  }
 0xa0e   :  { %v1930_v54 = vmul.f32 %v4080_v6, %v5288_v9  ;;  %v4082_v42 = vpop.eup %4081  ;;  %v3879_v9 = vld [vmem:[#allocation10 + $0x30] sm:$0xff]   ;;  %v233_v40 = vunpack.c.l.bf16 %v4134_v28 }
 0xa0f   :  { %3719 = vmatprep.mubr.msk.bf16.mxu0 %vm614_vm0, %v1644_v31  ;;  %v4084_v39 = vpop.eup %4083  ;;  %v1933_v63 = vmul.f32 %v4082_v42, %v5291_v36 }
 0xa10   :  { %3720 = vmatmul.mubr.msk.bf16.vlgmr.msra.gmra.mrb[24].mxu0 %vm614_vm0, %v1645_v38  ;;  %v1915_v46 = vpop.xlane.xlu1 %1914  ;;  %v1938_v45 = vpack.c.bf16 %v1931_v27, %v1930_v54  ;;  %v1932_v58 = vmul.f32 %v4084_v39, %v5282_v3 }
 0xa11   :  { %4087 = vrcp.f32 %v1915_v46  ;;  %3744 = vmatpush3.bf16.msra.mxu0 %v5284_v29  ;;  %v3713_v53 = vpop.f32.mrb[36].mxu0  ;;  %v234_v46 = vunpack.c.h.bf16 %v4134_v28 }
 0xa12   :  { %v1629_v37 = vpop.f32.mrb[37].mxu0  ;;  %4089 = vrcp.f32 %v1921_v43  ;;  %v1939_v19 = vpack.c.bf16 %v1933_v63, %v1932_v58  ;;  %v3881_v58 = vld [vmem:[#allocation13] ss:$16 sps:$4 sm:$0xff]  }
 0xa13   :  { %v3714_v24 = vpop.f32.mrb[38].mxu0  ;;  %4091 = vrcp.f32 %v1918_v17  ;;  %v4086_v29 = vpop.eup %4085 }
 0xa14   :  { %v1647_v32 = vpack.c.bf16 %v3714_v24, %v3713_v53  ;;  %v1632_v50 = vpop.f32.mrb[39].mxu0  ;;  %v1945_v16 = vpop.permute.xlu1 %1944  ;;  %v1934_v60 = vmul.f32 %v4086_v29, %v5311_v59  ;;  %v4135_v24 = vld [vmem:[#allocation2 + $0x10] sm:$0xff]  }
 0xa15   :  { %v1646_v41 = vpack.c.bf16 %v1632_v50, %v1629_v37  ;;  %3745 = vmatprep.subr.bf16.mxu0 %v1945_v16  ;;  %v236_v27 = vunpack.c.h.bf16 %v4135_v24 }
 0xa16   :  { %3746 = vmatpush3.bf16.msra.mxu0 %v1945_v16  ;;  %v235_v16 = vunpack.c.l.bf16 %v4135_v24  ;;  %v3896_v24 = vld [vmem:[#allocation13 + $0x48] ss:$16 sps:$4 sm:$0xff]  }
 0xa17   :  { %3723 = vmatprep.mubr.msk.bf16.mxu0 %vm614_vm0, %v1646_v41  ;;  %3747 = vmatprep.subr.bf16.mxu0 %v1947_v34 }
 0xa18   :  { %3724 = vmatmul.mubr.msk.bf16.gmra.mrb[28].mxu0 %vm614_vm0, %v1647_v32 }
 0xa19   :  { %3751 = vmatprep.mubr.msk.bf16.mxu0 %vm704_vm1, %v1938_v45  ;;  %v4136_v45 = vld [vmem:[#allocation2 + $0x18] sm:$0xff]  }
 0xa1a   :  { %3748 = vmatpush3.bf16.msra.mxu0 %v1947_v34  ;;  %v238_v42 = vunpack.c.h.bf16 %v4136_v45 }
 0xa1b   :  { %v4088_v44 = vpop.eup %4087  ;;  %3749 = vmatprep.subr.bf16.mxu0 %v1949_v47 }
 0xa1c   :  { %v1935_v11 = vmul.f32 %v4088_v44, %v4076_v56  ;;  %v4090_v5 = vpop.eup %4089  ;;  %v3321_v56 = vld [vmem:[#allocation11] ss:$0 sm:$0xff] }
 0xa1d   :  { %v4092_v49 = vpop.eup %4091  ;;  %v1937_v36 = vmul.f32 %v4090_v5, %v5315_v62  ;;  %v3889_v5 = vld [vmem:[#allocation13 + $0x24] ss:$16 sps:$4 sm:$0xff]  }
 0xa1e   :  { %3750 = vmatpush3.bf16.msra.mxu0 %v1949_v47  ;;  %v1940_v12 = vpack.c.bf16 %v1935_v11, %v1934_v60  ;;  %v1936_v14 = vmul.f32 %v4092_v49, %v5307_v18  ;;  %v237_v47 = vunpack.c.l.bf16 %v4136_v45  ;;  %v3883_v60 = vld [vmem:[#allocation13 + $0x4] ss:$16 sps:$4 sm:$0xff]   ;;  %v3887_v49 = vld [vmem:[#allocation13 + $0x20] ss:$16 sps:$4 sm:$0xff]  }
 0xa1f   :  { %3759 = vmatprep.subr.bf16.mxu0 %v3879_v9  ;;  %2492 = vmatprep.subr.bf16.mxu1 %v3883_v60  ;;  %v3905_v45 = vld [vmem:[#allocation13 + $0x80] ss:$16 sps:$4 sm:$0xff]   ;;  %v3925_v60 = vld [vmem:[#allocation13 + $0xe4] ss:$16 sps:$4 sm:$0xff]  }
 0xa20   :  { %v1941_v3 = vpack.c.bf16 %v1937_v36, %v1936_v14  ;;  %2493 = vmatpush1.bf16.msra.mxu1 %v3881_v58  ;;  %v3890_v36 = vld [vmem:[#allocation13 + $0x28] ss:$16 sps:$4 sm:$0xff]  }
 0xa21   :  { %3752 = vmatmul.mubr.msk.bf16.vlgmr.msra.gmra.mrb[40].mxu0 %vm704_vm1, %v1939_v19  ;;  %v3884_v19 = vld [vmem:[#allocation13 + $0x8] ss:$16 sps:$4 sm:$0xff]   ;;  %2494 = vmatprep.subr.bf16.mxu1 %v3889_v5 }
 0xa22   :  { %3755 = vmatprep.mubr.msk.bf16.mxu0 %vm704_vm1, %v1940_v12  ;;  %3760 = vmatpush3.bf16.msra.mxu0 %v3879_v9  ;;  %v3892_v12 = vld [vmem:[#allocation13 + $0x2c] ss:$16 sps:$4 sm:$0xff]   ;;  %v3920_v58 = vld [vmem:[#allocation13 + $0xc8] ss:$16 sps:$4 sm:$0xff]  }
 0xa23   :  { %3761 = vmatprep.subr.bf16.mxu0 %v3880_v13  ;;  %v3926_v5 = vld [vmem:[#allocation13 + $0xe8] ss:$16 sps:$4 sm:$0xff]  }
 0xa24   :  { %2495 = vmatpush1.bf16.msra.mxu1 %v3887_v49  ;;  %v3930_v49 = vld [vmem:[#allocation16 + $0xc0] sm:$0xff]  }
 0xa26   :  { %3762 = vmatpush3.bf16.msra.mxu0 %v3880_v13  ;;  %v3886_v13 = vld [vmem:[#allocation13 + $0xc] ss:$16 sps:$4 sm:$0xff]  }
 0xa27   :  { %2565 = vmatprep.subr.bf16.mxu0 %v3886_v13  ;;  %v3923_v13 = vld [vmem:[#allocation13 + $0xe0] ss:$16 sps:$4 sm:$0xff]  }
 0xa29   :  { %3756 = vmatmul.mubr.msk.bf16.gmra.mrb[44].mxu0 %vm704_vm1, %v1941_v3 }
 0xaf4   :  { %v3753_v15 = vpop.f32.mrb[40].mxu0 }
 0xaf5   :  { %v2000_v4 = vpop.f32.mrb[41].mxu0 }
 0xaf6   :  { %v3754_v10 = vpop.f32.mrb[42].mxu0 }
 0xaf7   :  { %v2032_v48 = vpack.c.bf16 %v3754_v10, %v3753_v15  ;;  %v2003_v20 = vpop.f32.mrb[43].mxu0 }
 0xaf8   :  { %v2031_v61 = vpack.c.bf16 %v2003_v20, %v2000_v4 }
 0xafa   :  { %3763 = vmatprep.mubr.msk.bf16.mxu0 %vm614_vm0, %v2031_v61 }
 0xafb   :  { %3764 = vmatmul.mubr.msk.bf16.vlgmr.msra.gmra.mrb[24].mxu0 %vm614_vm0, %v2032_v48 }
 0xafc   :  { %v3757_v33 = vpop.f32.mrb[44].mxu0  ;;  %2566 = vmatpush1.bf16.msra.mxu0 %v3884_v19  ;;  %v3928_v19 = vld [vmem:[#allocation13 + $0xec] ss:$16 sps:$4 sm:$0xff]  }
 0xafd   :  { %v2016_v59 = vpop.f32.mrb[45].mxu0  ;;  %2567 = vmatprep.subr.bf16.mxu0 %v3892_v12  ;;  %v3929_v12 = vld [vmem:[#allocation16 + $0x40] sm:$0xff]  }
 0xafe   :  { %v3758_v2 = vpop.f32.mrb[46].mxu0 }
 0xaff   :  { %v2034_v62 = vpack.c.bf16 %v3758_v2, %v3757_v33  ;;  %v2019_v7 = vpop.f32.mrb[47].mxu0 }
 0xb00   :  { %v2033_v18 = vpack.c.bf16 %v2019_v7, %v2016_v59  ;;  %2568 = vmatpush1.bf16.msra.mxu0 %v3890_v36 }
 0xb02   :  { %3767 = vmatprep.mubr.msk.bf16.mxu0 %vm614_vm0, %v2033_v18 }
 0xb03   :  { %3768 = vmatmul.mubr.msk.bf16.gmra.mrb[28].mxu0 %vm614_vm0, %v2034_v62 }
 0xb04   :  { %2597 = vmatprep.mubr.bf16.mxu0 %v4507_v0 }
 0xbce   :  { %v3765_v26 = vpop.f32.mrb[24].mxu0 }
 0xbcf   :  { %v2093_v21 = vpop.f32.mrb[25].mxu0  ;;  %v2141_v38 = vadd.f32 %v3765_v26, %v3321_v56 }
 0xbd0   :  { %v2139_v17 = vadd.f32 %v3321_v56, %v2093_v21  ;;  %v3766_v52 = vpop.f32.mrb[26].mxu0 }
 0xbd1   :  { %v2096_v55 = vpop.f32.mrb[27].mxu0  ;;  %v2149_v8 = vadd.f32 %v2141_v38, %v233_v40  ;;  %v2142_v53 = vadd.f32 %v3766_v52, %v3321_v56 }
 0xbd2   :  { %v2147_v35 = vadd.f32 %v2139_v17, %v231_v51  ;;  %v2140_v43 = vadd.f32 %v3321_v56, %v2096_v55 }
 0xbd3   :  { %v2150_v50 = vadd.f32 %v2142_v53, %v234_v46 }
 0xbd4   :  { %v2148_v31 = vadd.f32 %v2140_v43, %v232_v30  ;;  %2157 = vadd.xlane.f32.xlu0 %v2147_v35 }
 0xbd6   :  { %2159 = vadd.xlane.f32.xlu1 %v2148_v31  ;;  %v3769_v6 = vpop.f32.mrb[28].mxu0 }
 0xbd7   :  { %v2109_v37 = vpop.f32.mrb[29].mxu0  ;;  %v2145_v44 = vadd.f32 %v3769_v6, %v3321_v56  ;;  %v3895_v6 = vld [vmem:[#allocation13 + $0x44] ss:$16 sps:$4 sm:$0xff]  }
 0xbd8   :  { %v3770_v34 = vpop.f32.mrb[30].mxu0  ;;  %2161 = vadd.xlane.f32.xlu0 %v2149_v8  ;;  %v2143_v41 = vadd.f32 %v3321_v56, %v2109_v37  ;;  %v3898_v37 = vld [vmem:[#allocation13 + $0x4c] ss:$16 sps:$4 sm:$0xff]   ;;  %2496 = vmatprep.subr.bf16.mxu1 %v3895_v6 }
 0xbd9   :  { %v2112_v32 = vpop.f32.mrb[31].mxu0  ;;  %v2146_v39 = vadd.f32 %v3770_v34, %v3321_v56  ;;  %v2153_v11 = vadd.f32 %v2145_v44, %v237_v47  ;;  %v3893_v34 = vld [vmem:[#allocation13 + $0x40] ss:$16 sps:$4 sm:$0xff]   ;;  %2569 = vmatprep.subr.bf16.mxu0 %v3898_v37  ;;  %v3914_v44 = vld [vmem:[#allocation13 + $0xa8] ss:$16 sps:$4 sm:$0xff]  }
 0xbda   :  { %v2144_v54 = vadd.f32 %v3321_v56, %v2112_v32  ;;  %v2151_v63 = vadd.f32 %v2143_v41, %v235_v16  ;;  %2497 = vmatpush1.bf16.msra.mxu1 %v3893_v34  ;;  %2570 = vmatpush1.bf16.msra.mxu0 %v3896_v24  ;;  %v3904_v32 = vld [vmem:[#allocation13 + $0x6c] ss:$16 sps:$4 sm:$0xff]   ;;  %v3902_v16 = vld [vmem:[#allocation13 + $0x68] ss:$16 sps:$4 sm:$0xff]   ;;  %v3907_v41 = vld [vmem:[#allocation13 + $0x84] ss:$16 sps:$4 sm:$0xff]  }
 0xbdb   :  { %v2154_v9 = vadd.f32 %v2146_v39, %v238_v42  ;;  %2571 = vmatprep.subr.bf16.mxu0 %v3904_v32  ;;  %v3908_v42 = vld [vmem:[#allocation13 + $0x88] ss:$16 sps:$4 sm:$0xff]   ;;  %v3913_v39 = vld [vmem:[#allocation13 + $0xa4] ss:$16 sps:$4 sm:$0xff]   ;;  %v3911_v47 = vld [vmem:[#allocation13 + $0xa0] ss:$16 sps:$4 sm:$0xff]  }
 0xbdc   :  { %v2152_v29 = vadd.f32 %v2144_v54, %v236_v27  ;;  %2163 = vadd.xlane.f32.xlu0 %v2150_v50  ;;  %v3901_v27 = vld [vmem:[#allocation13 + $0x64] ss:$16 sps:$4 sm:$0xff]   ;;  %v3910_v54 = vld [vmem:[#allocation13 + $0x8c] ss:$16 sps:$4 sm:$0xff]  }
 0xbdd   :  { %2498 = vmatprep.subr.bf16.mxu1 %v3901_v27 }
 0xbde   :  { %2167 = vadd.xlane.f32.xlu1 %v2152_v29  ;;  %2572 = vmatpush1.bf16.msra.mxu0 %v3902_v16 }
 0xbdf   :  { %2573 = vmatprep.subr.bf16.mxu0 %v3910_v54 }
 0xbe0   :  { %2165 = vadd.xlane.f32.xlu0 %v2151_v63 }
 0xbe2   :  { %2171 = vadd.xlane.f32.xlu1 %v2154_v9  ;;  %2574 = vmatpush1.bf16.msra.mxu0 %v3908_v42 }
 0xbe4   :  { %2169 = vadd.xlane.f32.xlu0 %v2153_v11 }
 0xc61   :  { %v2158_v14 = vpop.xlane.xlu0 %2157 }
 0xc62   :  { %v2174_v3 = vmul.f32 0.0078125, %v2158_v14 }
 0xc63   :  { %v2160_v15 = vpop.xlane.xlu1 %2159 }
 0xc64   :  { %v5342_v4 = vsub.f32 %v2147_v35, %v2174_v3  ;;  %v2175_v10 = vmul.f32 0.0078125, %v2160_v15 }
 0xc65   :  { %v2162_v48 = vpop.xlane.xlu0 %2161 }
 0xc66   :  { %v5344_v20 = vsub.f32 %v2148_v31, %v2175_v10  ;;  %v2176_v61 = vmul.f32 0.0078125, %v2162_v48  ;;  %v2190_v33 = vmul.f32 %v5342_v4, %v5342_v4 }
 0xc68   :  { %v5348_v59 = vsub.f32 %v2149_v8, %v2176_v61  ;;  %2198 = vadd.xlane.f32.xlu0 %v2190_v33  ;;  %v2191_v2 = vmul.f32 %v5344_v20, %v5344_v20 }
 0xc69   :  { %v2164_v62 = vpop.xlane.xlu0 %2163 }
 0xc6a   :  { %v2177_v7 = vmul.f32 0.0078125, %v2164_v62  ;;  %2200 = vadd.xlane.f32.xlu1 %v2191_v2  ;;  %v2192_v18 = vmul.f32 %v5348_v59, %v5348_v59 }
 0xc6b   :  { %v2168_v56 = vpop.xlane.xlu1 %2167 }
 0xc6c   :  { %v5354_v26 = vsub.f32 %v2150_v50, %v2177_v7  ;;  %v2179_v1 = vmul.f32 0.0078125, %v2168_v56  ;;  %2202 = vadd.xlane.f32.xlu0 %v2192_v18  ;;  %v3899_v50 = vld [vmem:[#allocation13 + $0x60] ss:$16 sps:$4 sm:$0xff]  }
 0xc6d   :  { %v2166_v51 = vpop.xlane.xlu0 %2165  ;;  %2499 = vmatpush1.bf16.msra.mxu1 %v3899_v50  ;;  %v5379_v50 = vld [vmem:[#allocation20] ss:$0 sm:$0xff] }
 0xc6e   :  { %v5356_v21 = vsub.f32 %v2152_v29, %v2179_v1  ;;  %v2178_v17 = vmul.f32 0.0078125, %v2166_v51  ;;  %v2193_v52 = vmul.f32 %v5354_v26, %v5354_v26  ;;  %2500 = vmatprep.subr.bf16.mxu1 %v3907_v41  ;;  %v3916_v29 = vld [vmem:[#allocation13 + $0xac] ss:$16 sps:$4 sm:$0xff]  }
 0xc6f   :  { %v2172_v30 = vpop.xlane.xlu1 %2171  ;;  %2575 = vmatprep.subr.bf16.mxu0 %v3916_v29  ;;  %v3932_v29 = vld [vmem:[#allocation16 + $0x80] sm:$0xff]  }
 0xc70   :  { %v5360_v55 = vsub.f32 %v2151_v63, %v2178_v17  ;;  %v2181_v28 = vmul.f32 0.0078125, %v2172_v30  ;;  %2204 = vadd.xlane.f32.xlu1 %v2193_v52  ;;  %v2195_v43 = vmul.f32 %v5356_v21, %v5356_v21  ;;  %2576 = vmatpush1.bf16.msra.mxu0 %v3914_v44  ;;  %v3919_v63 = vld [vmem:[#allocation13 + $0xc4] ss:$16 sps:$4 sm:$0xff]   ;;  %v3934_v44 = vld [vmem:[#allocation16 + $0xc8] sm:$0xff]  }
 0xc71   :  { %v2170_v40 = vpop.xlane.xlu0 %2169  ;;  %2501 = vmatpush1.bf16.msra.mxu1 %v3905_v45  ;;  %v5374_v30 = vld [vmem:[#allocation19] ss:$0 sm:$0xff] }
 0xc72   :  { %v5362_v38 = vsub.f32 %v2154_v9, %v2181_v28  ;;  %v2180_v35 = vmul.f32 0.0078125, %v2170_v40  ;;  %v2194_v31 = vmul.f32 %v5360_v55, %v5360_v55  ;;  %2502 = vmatprep.subr.bf16.mxu1 %v3913_v39  ;;  %v3922_v9 = vld [vmem:[#allocation13 + $0xcc] ss:$16 sps:$4 sm:$0xff]   ;;  %v3931_v39 = vld [vmem:[#allocation16] sm:$0xff]  }
 0xc73   :  { %2577 = vmatprep.subr.bf16.mxu0 %v3922_v9 }
 0xc74   :  { %v5368_v8 = vsub.f32 %v2153_v11, %v2180_v35  ;;  %2208 = vadd.xlane.f32.xlu1 %v2195_v43  ;;  %2206 = vadd.xlane.f32.xlu0 %v2194_v31  ;;  %v2197_v46 = vmul.f32 %v5362_v38, %v5362_v38  ;;  %v3917_v11 = vld [vmem:[#allocation13 + $0xc0] ss:$16 sps:$4 sm:$0xff]  }
 0xc75   :  { %2503 = vmatpush1.bf16.msra.mxu1 %v3911_v47  ;;  %2578 = vmatpush1.bf16.msra.mxu0 %v3920_v58  ;;  %v3933_v47 = vld [vmem:[#allocation16 + $0x48] sm:$0xff]  }
 0xc76   :  { %v2196_v53 = vmul.f32 %v5368_v8, %v5368_v8  ;;  %2504 = vmatprep.subr.bf16.mxu1 %v3919_v63  ;;  %2579 = vmatprep.subr.bf16.mxu0 %v3928_v19  ;;  %v3936_v19 = vld [vmem:[#allocation16 + $0x88] sm:$0xff]  }
 0xc78   :  { %2212 = vadd.xlane.f32.xlu1 %v2197_v46  ;;  %2210 = vadd.xlane.f32.xlu0 %v2196_v53 }
 0xc79   :  { %2505 = vmatpush1.bf16.msra.mxu1 %v3917_v11  ;;  %2580 = vmatpush1.bf16.msra.mxu0 %v3926_v5  ;;  %v3937_v5 = vld [vmem:[#allocation16 + $0x50] sm:$0xff]  }
 0xc7a   :  { %2506 = vmatprep.subr.bf16.mxu1 %v3925_v60  ;;  %3531 = vmatprep.subr.bf16.mxu0 %v3930_v49  ;;  %v3935_v60 = vld [vmem:[#allocation16 + $0x8] sm:$0xff]  }
 0xc7d   :  { %2507 = vmatpush1.bf16.msra.mxu1 %v3923_v13 }
 0xc7e   :  { %3491 = vmatprep.subr.bf16.mxu1 %v3929_v12  ;;  %v3938_v12 = vld [vmem:[#allocation16 + $0xd0] sm:$0xff]  }
 0xcf5   :  { %v2199_v36 = vpop.xlane.xlu0 %2198 }
 0xcf6   :  { %v2214_v14 = vmul.f32 0.0078125, %v2199_v36 }
 0xcf7   :  { %v2201_v3 = vpop.xlane.xlu1 %2200 }
 0xcf8   :  { %v2222_v15 = vadd.f32 1e-05, %v2214_v14  ;;  %v2215_v10 = vmul.f32 0.0078125, %v2201_v3 }
 0xcf9   :  { %v2203_v48 = vpop.xlane.xlu0 %2202 }
 0xcfa   :  { %4093 = vrsqrt.f32 %v2222_v15  ;;  %v2223_v61 = vadd.f32 1e-05, %v2215_v10  ;;  %v2216_v33 = vmul.f32 0.0078125, %v2203_v48  ;;  %v3939_v15 = vld [vmem:[#allocation16 + $0x10] sm:$0xff]   ;;  %v3941_v48 = vld [vmem:[#allocation16 + $0x58] sm:$0xff]  }
 0xcfb   :  { %v3940_v10 = vld [vmem:[#allocation16 + $0x90] sm:$0xff]  }
 0xcfc   :  { %4095 = vrsqrt.f32 %v2223_v61  ;;  %v2224_v2 = vadd.f32 1e-05, %v2216_v33  ;;  %v3942_v61 = vld [vmem:[#allocation16 + $0xd8] sm:$0xff]  }
 0xcfd   :  { %v2205_v62 = vpop.xlane.xlu1 %2204 }
 0xcfe   :  { %4097 = vrsqrt.f32 %v2224_v2  ;;  %v2217_v7 = vmul.f32 0.0078125, %v2205_v62 }
 0xd00   :  { %v2225_v18 = vadd.f32 1e-05, %v2217_v7 }
 0xd01   :  { %v2209_v56 = vpop.xlane.xlu1 %2208  ;;  %v2207_v1 = vpop.xlane.xlu0 %2206 }
 0xd02   :  { %4099 = vrsqrt.f32 %v2225_v18  ;;  %v2219_v51 = vmul.f32 0.0078125, %v2209_v56  ;;  %v2218_v17 = vmul.f32 0.0078125, %v2207_v1  ;;  %v3943_v18 = vld [vmem:[#allocation16 + $0x18] sm:$0xff]   ;;  %v3945_v1 = vld [vmem:[#allocation16 + $0x60] sm:$0xff]  }
 0xd03   :  { %v3944_v56 = vld [vmem:[#allocation16 + $0x98] sm:$0xff]  }
 0xd04   :  { %v4094_v52 = vpop.eup %4093  ;;  %v2227_v28 = vadd.f32 1e-05, %v2219_v51  ;;  %v2226_v40 = vadd.f32 1e-05, %v2218_v17  ;;  %v3946_v51 = vld [vmem:[#allocation16 + $0xe0] sm:$0xff]  }
 0xd05   :  { %v2238_v35 = vmul.f32 %v4094_v52, %v5342_v4  ;;  %v2213_v43 = vpop.xlane.xlu1 %2212  ;;  %v2211_v31 = vpop.xlane.xlu0 %2210 }
 0xd06   :  { %v4096_v46 = vpop.eup %4095  ;;  %4101 = vrsqrt.f32 %v2227_v28  ;;  %v2221_v53 = vmul.f32 0.0078125, %v2213_v43  ;;  %v2220_v6 = vmul.f32 0.0078125, %v2211_v31 }
 0xd07   :  { %v2252_v37 = vmul.f32 %v5374_v30, %v2238_v35  ;;  %v2239_v34 = vmul.f32 %v4096_v46, %v5344_v20  ;;  %4103 = vrsqrt.f32 %v2226_v40  ;;  %v3948_v40 = vld [vmem:[#allocation16 + $0xa0] sm:$0xff]   ;;  %v3950_v35 = vld [vmem:[#allocation16 + $0xe8] sm:$0xff]  }
 0xd08   :  { %v4098_v24 = vpop.eup %4097  ;;  %v2229_v27 = vadd.f32 1e-05, %v2221_v53  ;;  %v2228_v32 = vadd.f32 1e-05, %v2220_v6  ;;  %v3951_v46 = vld [vmem:[#allocation16 + $0x28] sm:$0xff]   ;;  %v3954_v6 = vld [vmem:[#allocation16 + $0xf0] sm:$0xff]  }
 0xd09   :  { %v2253_v16 = vmul.f32 %v5374_v30, %v2239_v34  ;;  %v5383_v4 = vadd.f32 %v5379_v50, %v2252_v37  ;;  %v2240_v54 = vmul.f32 %v4098_v24, %v5348_v59  ;;  %v3952_v53 = vld [vmem:[#allocation16 + $0xa8] sm:$0xff]   ;;  %v3955_v37 = vld [vmem:[#allocation16 + $0x30] sm:$0xff]   ;;  %v3957_v24 = vld [vmem:[#allocation16 + $0x78] sm:$0xff]  }
 0xd0a   :  { %4105 = vrsqrt.f32 %v2229_v27  ;;  %v3956_v34 = vld [vmem:[#allocation16 + $0xb0] sm:$0xff]   ;;  %v3958_v27 = vld [vmem:[#allocation16 + $0xf8] sm:$0xff]  }
 0xd0b   :  { %v5386_v41 = vadd.f32 %v5379_v50, %v2253_v16  ;;  %4107 = vrsqrt.f32 %v2228_v32  ;;  %v2254_v63 = vmul.f32 %v5374_v30, %v2240_v54  ;;  %v3959_v32 = vld [vmem:[#allocation16 + $0x38] sm:$0xff]   ;;  %v2326_v54 = vsub.s32 3, %v4786_v22 }
 0xd0c   :  { %v4100_v45 = vpop.eup %4099  ;;  %v2310_v16 = vld [vmem:[#allocation14] sm:$0xf] }
 0xd0d   :  { %v2274_v20 = vpack.c.bf16 %v5386_v41, %v5383_v4  ;;  %v2241_v42 = vmul.f32 %v4100_v45, %v5354_v26  ;;  %v5402_v49 = vadd.f32 %v5379_v50, %v2254_v63  ;;  %v5435_v45 = vrot.slane %v2310_v16, %v275_v23 }
 0xd0f   :  { %2525 = vmatmul.mubr.bf16.vlgmr.msra.gmra.mrb[48].mxu1 %v2274_v20  ;;  %2598 = vmatmul.mubr.bf16.vlgmr.msra.gmra.mrb[48].mxu0 %v2274_v20  ;;  %v2255_v9 = vmul.f32 %v5374_v30, %v2241_v42  ;;  %v5439_v20 = vrot.slane %v2310_v16, %v283_v57  ;;  %v5443_v42 = vrot.slane %v2310_v16, %v279_v25 }
 0xd10   :  { %v4102_v11 = vpop.eup %4101  ;;  %2534 = vmatprep.mubr.bf16.mxu1 %v4507_v0  ;;  %2607 = vmatprep.mubr.bf16.mxu0 %v4507_v0 }
 0xd11   :  { %v4104_v59 = vpop.eup %4103  ;;  %v5397_v58 = vadd.f32 %v5379_v50, %v2255_v9  ;;  %v2243_v26 = vmul.f32 %v4102_v11, %v5356_v21  ;;  %3492 = vmatpush3.bf16.msra.mxu1 %v3931_v39  ;;  %3532 = vmatpush3.bf16.msra.mxu0 %v3932_v29  ;;  %v5445_v39 = vrot.slane %v2310_v16, %v2326_v54 }
 0xd12   :  { %v2242_v13 = vmul.f32 %v4104_v59, %v5360_v55  ;;  %3493 = vmatprep.subr.bf16.mxu1 %v3933_v47  ;;  %3533 = vmatprep.subr.bf16.mxu0 %v3934_v44 }
 0xd13   :  { %v2257_v36 = vmul.f32 %v5374_v30, %v2243_v26  ;;  %v2275_v3 = vpack.c.bf16 %v5397_v58, %v5402_v49 }
 0xd14   :  { %v4106_v14 = vpop.eup %4105  ;;  %v2256_v21 = vmul.f32 %v5374_v30, %v2242_v13 }
 0xd15   :  { %3494 = vmatpush3.bf16.msra.mxu1 %v3935_v60  ;;  %3534 = vmatpush3.bf16.msra.mxu0 %v3936_v19  ;;  %v4108_v55 = vpop.eup %4107  ;;  %v5411_v33 = vadd.f32 %v5379_v50, %v2257_v36  ;;  %v2245_v7 = vmul.f32 %v4106_v14, %v5362_v38  ;;  %v3949_v38 = vld [vmem:[#allocation16 + $0x68] sm:$0xff]  }
 0xd16   :  { %3495 = vmatprep.subr.bf16.mxu1 %v3937_v5  ;;  %3535 = vmatprep.subr.bf16.mxu0 %v3938_v12  ;;  %v5414_v2 = vadd.f32 %v5379_v50, %v2256_v21  ;;  %v2244_v62 = vmul.f32 %v4108_v55, %v5368_v8  ;;  %v3947_v8 = vld [vmem:[#allocation16 + $0x20] sm:$0xff]  }
 0xd17   :  { %2535 = vmatmul.mubr.bf16.gmra.mrb[52].mxu1 %v2275_v3  ;;  %2608 = vmatmul.mubr.bf16.gmra.mrb[52].mxu0 %v2275_v3  ;;  %v2259_v28 = vmul.f32 %v5374_v30, %v2245_v7 }
 0xd18   :  { %2544 = vmatprep.mubr.bf16.mxu1 %v4507_v0  ;;  %2617 = vmatprep.mubr.bf16.mxu0 %v4507_v0  ;;  %v2276_v17 = vpack.c.bf16 %v5411_v33, %v5414_v2  ;;  %v2258_v52 = vmul.f32 %v5374_v30, %v2244_v62 }
 0xd19   :  { %3496 = vmatpush3.bf16.msra.mxu1 %v3939_v15  ;;  %3536 = vmatpush3.bf16.msra.mxu0 %v3940_v10  ;;  %v5428_v31 = vadd.f32 %v5379_v50, %v2259_v28 }
 0xd1a   :  { %3497 = vmatprep.subr.bf16.mxu1 %v3941_v48  ;;  %3537 = vmatprep.subr.bf16.mxu0 %v3942_v61  ;;  %v5425_v43 = vadd.f32 %v5379_v50, %v2258_v52  ;;  %v3960_v50 = vld [vmem:[#allocation16 + $0xb8] sm:$0xff]  }
 0xd1c   :  { %v2277_v30 = vpack.c.bf16 %v5428_v31, %v5425_v43 }
 0xd1d   :  { %3498 = vmatpush3.bf16.msra.mxu1 %v3943_v18  ;;  %3538 = vmatpush3.bf16.msra.mxu0 %v3944_v56 }
 0xd1e   :  { %3499 = vmatprep.subr.bf16.mxu1 %v3945_v1  ;;  %3539 = vmatprep.subr.bf16.mxu0 %v3946_v51 }
 0xd1f   :  { %2545 = vmatmul.mubr.bf16.gmra.mrb[56].mxu1 %v2276_v17  ;;  %2618 = vmatmul.mubr.bf16.gmra.mrb[56].mxu0 %v2276_v17 }
 0xd20   :  { %2554 = vmatprep.mubr.bf16.mxu1 %v4507_v0  ;;  %2627 = vmatprep.mubr.bf16.mxu0 %v4507_v0  ;;  %v3953_v0 = vld [vmem:[#allocation16 + $0x70] sm:$0xff]  }
 0xd21   :  { %3500 = vmatpush3.bf16.msra.mxu1 %v3947_v8  ;;  %3540 = vmatpush3.bf16.msra.mxu0 %v3948_v40 }
 0xd22   :  { %3501 = vmatprep.subr.bf16.mxu1 %v3949_v38  ;;  %3541 = vmatprep.subr.bf16.mxu0 %v3950_v35 }
 0xd25   :  { %3502 = vmatpush3.bf16.msra.mxu1 %v3951_v46  ;;  %3542 = vmatpush3.bf16.msra.mxu0 %v3952_v53 }
 0xd26   :  { %3503 = vmatprep.subr.bf16.mxu1 %v3953_v0  ;;  %3543 = vmatprep.subr.bf16.mxu0 %v3954_v6 }
 0xd27   :  { %2555 = vmatmul.mubr.bf16.gmra.mrb[60].mxu1 %v2277_v30  ;;  %2628 = vmatmul.mubr.bf16.gmra.mrb[60].mxu0 %v2277_v30 }
 0xd29   :  { %3504 = vmatpush3.bf16.msra.mxu1 %v3955_v37  ;;  %3544 = vmatpush3.bf16.msra.mxu0 %v3956_v34 }
 0xd2a   :  { %3505 = vmatprep.subr.bf16.mxu1 %v3957_v24  ;;  %3545 = vmatprep.subr.bf16.mxu0 %v3958_v27 }
 0xd2d   :  { %3506 = vmatpush3.bf16.msra.mxu1 %v3959_v32  ;;  %3546 = vmatpush3.bf16.msra.mxu0 %v3960_v50 }
 0xde2   :  { %v2526_v29 = vpop.f32.mrb[48].mxu1  ;;  %v2599_v47 = vpop.f32.mrb[48].mxu0 }
 0xde3   :  { %v2527_v44 = vadd.f32 %v2526_v29, %v5435_v45  ;;  %v2600_v63 = vadd.f32 %v2599_v47, %v5439_v20  ;;  %v2528_v9 = vpop.f32.mrb[49].mxu1  ;;  %v2601_v11 = vpop.f32.mrb[49].mxu0 }
 0xde4   :  { %v2529_v23 = vadd.f32 %v2528_v9, %v5443_v42  ;;  %v2602_v59 = vadd.f32 %v2601_v11, %v5445_v39  ;;  %v2530_v57 = vpop.f32.mrb[50].mxu1  ;;  %v2603_v26 = vpop.f32.mrb[50].mxu0 }
 0xde5   :  { %v2531_v22 = vadd.f32 %v2530_v57, %v5435_v45  ;;  %v2604_v25 = vadd.f32 %v2603_v26, %v5439_v20  ;;  %v2532_v60 = vpop.f32.mrb[51].mxu1  ;;  %v2605_v19 = vpop.f32.mrb[51].mxu0  ;;  %v2638_v12 = vmax.f32 %v2527_v44, 0.0  ;;  %v2640_v36 = vmax.f32 %v2600_v63, 0.0 }
 0xde6   :  { %v2533_v13 = vadd.f32 %v2532_v60, %v5443_v42  ;;  %v2606_v5 = vadd.f32 %v2605_v19, %v5445_v39  ;;  %v2639_v21 = vmax.f32 %v2529_v23, 0.0  ;;  %v2641_v15 = vmax.f32 %v2602_v59, 0.0 }
 0xde7   :  { %v2642_v14 = vmax.f32 %v2531_v22, 0.0  ;;  %v2644_v3 = vmax.f32 %v2604_v25, 0.0 }
 0xde8   :  { %v2643_v10 = vmax.f32 %v2533_v13, 0.0  ;;  %v2645_v55 = vmax.f32 %v2606_v5, 0.0 }
 0xde9   :  { %v2670_v48 = vpack.c.bf16 %v2642_v14, %v2638_v12  ;;  %v2672_v61 = vpack.c.bf16 %v2644_v3, %v2640_v36 }
 0xdea   :  { %v2671_v62 = vpack.c.bf16 %v2643_v10, %v2639_v21  ;;  %v2673_v7 = vpack.c.bf16 %v2645_v55, %v2641_v15  ;;  %v2536_v18 = vpop.f32.mrb[52].mxu1  ;;  %v2609_v56 = vpop.f32.mrb[52].mxu0 }
 0xdeb   :  { %v2537_v1 = vadd.f32 %v2536_v18, %v5435_v45  ;;  %v2610_v51 = vadd.f32 %v2609_v56, %v5439_v20  ;;  %v2538_v17 = vpop.f32.mrb[53].mxu1  ;;  %v2611_v52 = vpop.f32.mrb[53].mxu0 }
 0xdec   :  { %v2539_v28 = vadd.f32 %v2538_v17, %v5443_v42  ;;  %v2612_v8 = vadd.f32 %v2611_v52, %v5445_v39  ;;  %v2540_v40 = vpop.f32.mrb[54].mxu1  ;;  %v2613_v38 = vpop.f32.mrb[54].mxu0  ;;  %2981 = vmatprep.mubr.bf16.mxu1 %v2671_v62  ;;  %3046 = vmatprep.mubr.bf16.mxu0 %v2673_v7 }
 0xded   :  { %v2541_v35 = vadd.f32 %v2540_v40, %v5435_v45  ;;  %v2614_v30 = vadd.f32 %v2613_v38, %v5439_v20  ;;  %v2542_v46 = vpop.f32.mrb[55].mxu1  ;;  %v2615_v53 = vpop.f32.mrb[55].mxu0  ;;  %2982 = vmatmul.mubr.bf16.vlgmr.msra.gmra.mrb[64].mxu1 %v2670_v48  ;;  %3047 = vmatmul.mubr.bf16.vlgmr.msra.gmra.mrb[64].mxu0 %v2672_v61  ;;  %v2646_v37 = vmax.f32 %v2537_v1, 0.0  ;;  %v2648_v34 = vmax.f32 %v2610_v51, 0.0 }
 0xdee   :  { %v2543_v0 = vadd.f32 %v2542_v46, %v5443_v42  ;;  %v2616_v6 = vadd.f32 %v2615_v53, %v5445_v39  ;;  %v2647_v32 = vmax.f32 %v2539_v28, 0.0  ;;  %v2649_v50 = vmax.f32 %v2612_v8, 0.0 }
 0xdef   :  { %v2650_v24 = vmax.f32 %v2541_v35, 0.0  ;;  %v2652_v27 = vmax.f32 %v2614_v30, 0.0 }
 0xdf0   :  { %v2651_v16 = vmax.f32 %v2543_v0, 0.0  ;;  %v2653_v54 = vmax.f32 %v2616_v6, 0.0 }
 0xdf1   :  { %v2674_v29 = vpack.c.bf16 %v2650_v24, %v2646_v37  ;;  %v2676_v47 = vpack.c.bf16 %v2652_v27, %v2648_v34 }
 0xdf2   :  { %v2675_v44 = vpack.c.bf16 %v2651_v16, %v2647_v32  ;;  %v2677_v63 = vpack.c.bf16 %v2653_v54, %v2649_v50  ;;  %v2546_v9 = vpop.f32.mrb[56].mxu1  ;;  %v2619_v11 = vpop.f32.mrb[56].mxu0 }
 0xdf3   :  { %v2547_v23 = vadd.f32 %v2546_v9, %v5435_v45  ;;  %v2620_v59 = vadd.f32 %v2619_v11, %v5439_v20  ;;  %v2548_v57 = vpop.f32.mrb[57].mxu1  ;;  %v2621_v26 = vpop.f32.mrb[57].mxu0 }
 0xdf4   :  { %v2549_v22 = vadd.f32 %v2548_v57, %v5443_v42  ;;  %v2622_v25 = vadd.f32 %v2621_v26, %v5445_v39  ;;  %v2550_v60 = vpop.f32.mrb[58].mxu1  ;;  %v2623_v19 = vpop.f32.mrb[58].mxu0  ;;  %2989 = vmatprep.mubr.bf16.mxu1 %v2675_v44  ;;  %3054 = vmatprep.mubr.bf16.mxu0 %v2677_v63 }
 0xdf5   :  { %v2551_v13 = vadd.f32 %v2550_v60, %v5435_v45  ;;  %v2624_v5 = vadd.f32 %v2623_v19, %v5439_v20  ;;  %v2552_v12 = vpop.f32.mrb[59].mxu1  ;;  %v2625_v36 = vpop.f32.mrb[59].mxu0  ;;  %2990 = vmatmul.mubr.bf16.gmra.mrb[68].mxu1 %v2674_v29  ;;  %3055 = vmatmul.mubr.bf16.gmra.mrb[68].mxu0 %v2676_v47  ;;  %v2654_v21 = vmax.f32 %v2547_v23, 0.0  ;;  %v2656_v15 = vmax.f32 %v2620_v59, 0.0  ;;  %v5479_v59 = vld [vmem:[#allocation17] ss:$0 sm:$0xff] }
 0xdf6   :  { %v2553_v14 = vadd.f32 %v2552_v12, %v5443_v42  ;;  %v2626_v3 = vadd.f32 %v2625_v36, %v5445_v39  ;;  %v2655_v48 = vmax.f32 %v2549_v22, 0.0  ;;  %v2657_v61 = vmax.f32 %v2622_v25, 0.0 }
 0xdf7   :  { %v2658_v10 = vmax.f32 %v2551_v13, 0.0  ;;  %v2660_v55 = vmax.f32 %v2624_v5, 0.0 }
 0xdf8   :  { %v2659_v62 = vmax.f32 %v2553_v14, 0.0  ;;  %v2661_v7 = vmax.f32 %v2626_v3, 0.0 }
 0xdf9   :  { %v2678_v18 = vpack.c.bf16 %v2658_v10, %v2654_v21  ;;  %v2680_v56 = vpack.c.bf16 %v2660_v55, %v2656_v15 }
 0xdfa   :  { %v2679_v1 = vpack.c.bf16 %v2659_v62, %v2655_v48  ;;  %v2681_v51 = vpack.c.bf16 %v2661_v7, %v2657_v61  ;;  %v2556_v17 = vpop.f32.mrb[60].mxu1  ;;  %v2629_v52 = vpop.f32.mrb[60].mxu0 }
 0xdfb   :  { %v2557_v28 = vadd.f32 %v2556_v17, %v5435_v45  ;;  %v2630_v8 = vadd.f32 %v2629_v52, %v5439_v20  ;;  %v2558_v40 = vpop.f32.mrb[61].mxu1  ;;  %v2631_v38 = vpop.f32.mrb[61].mxu0 }
 0xdfc   :  { %v2559_v35 = vadd.f32 %v2558_v40, %v5443_v42  ;;  %v2632_v30 = vadd.f32 %v2631_v38, %v5445_v39  ;;  %v2560_v46 = vpop.f32.mrb[62].mxu1  ;;  %v2633_v53 = vpop.f32.mrb[62].mxu0  ;;  %2997 = vmatprep.mubr.bf16.mxu1 %v2679_v1  ;;  %3062 = vmatprep.mubr.bf16.mxu0 %v2681_v51 }
 0xdfd   :  { %v2561_v0 = vadd.f32 %v2560_v46, %v5435_v45  ;;  %v2634_v6 = vadd.f32 %v2633_v53, %v5439_v20  ;;  %v2562_v37 = vpop.f32.mrb[63].mxu1  ;;  %v2635_v34 = vpop.f32.mrb[63].mxu0  ;;  %2998 = vmatmul.mubr.bf16.gmra.mrb[72].mxu1 %v2678_v18  ;;  %3063 = vmatmul.mubr.bf16.gmra.mrb[72].mxu0 %v2680_v56  ;;  %v2662_v32 = vmax.f32 %v2557_v28, 0.0  ;;  %v2664_v50 = vmax.f32 %v2630_v8, 0.0 }
 0xdfe   :  { %v2563_v24 = vadd.f32 %v2562_v37, %v5443_v42  ;;  %v2636_v27 = vadd.f32 %v2635_v34, %v5445_v39  ;;  %v2663_v29 = vmax.f32 %v2559_v35, 0.0  ;;  %v2665_v47 = vmax.f32 %v2632_v30, 0.0 }
 0xdff   :  { %v2666_v16 = vmax.f32 %v2561_v0, 0.0  ;;  %v2668_v54 = vmax.f32 %v2634_v6, 0.0 }
 0xe00   :  { %v2667_v44 = vmax.f32 %v2563_v24, 0.0  ;;  %v2669_v63 = vmax.f32 %v2636_v27, 0.0 }
 0xe01   :  { %v2682_v9 = vpack.c.bf16 %v2666_v16, %v2662_v32  ;;  %v2684_v45 = vpack.c.bf16 %v2668_v54, %v2664_v50 }
 0xe02   :  { %v2683_v11 = vpack.c.bf16 %v2667_v44, %v2663_v29  ;;  %v2685_v20 = vpack.c.bf16 %v2669_v63, %v2665_v47 }
 0xe04   :  { %3005 = vmatprep.mubr.bf16.mxu1 %v2683_v11  ;;  %3070 = vmatprep.mubr.bf16.mxu0 %v2685_v20 }
 0xe05   :  { %3006 = vmatmul.mubr.bf16.gmra.mrb[76].mxu1 %v2682_v9  ;;  %3071 = vmatmul.mubr.bf16.gmra.mrb[76].mxu0 %v2684_v45 }
 0xec0   :  { %v3507_v23 = vpop.f32.mrb[64].mxu1  ;;  %v3547_v42 = vpop.f32.mrb[64].mxu0 }
 0xec1   :  { %v3508_v39 = vpop.f32.mrb[65].mxu1  ;;  %v3548_v57 = vpop.f32.mrb[65].mxu0 }
 0xec2   :  { %v3509_v26 = vadd.f32 %v3508_v39, %v3507_v23  ;;  %v3549_v22 = vadd.f32 %v3548_v57, %v3547_v42  ;;  %v3510_v25 = vpop.f32.mrb[66].mxu1  ;;  %v3550_v60 = vpop.f32.mrb[66].mxu0 }
 0xec3   :  { %v3511_v19 = vpop.f32.mrb[67].mxu1  ;;  %v3551_v13 = vpop.f32.mrb[67].mxu0 }
 0xec4   :  { %v2984_v5 = vadd.f32 %v3509_v26, %v5479_v59  ;;  %v3512_v12 = vadd.f32 %v3511_v19, %v3510_v25  ;;  %v3552_v36 = vadd.f32 %v3551_v13, %v3550_v60 }
 0xec6   :  { %v3049_v14 = vadd.f32 %v3549_v22, %v2984_v5  ;;  %v2987_v3 = vadd.f32 %v3512_v12, %v5479_v59 }
 0xec8   :  { %v3052_v21 = vadd.f32 %v3552_v36, %v2987_v3  ;;  %v3513_v15 = vpop.f32.mrb[68].mxu1  ;;  %v3553_v10 = vpop.f32.mrb[68].mxu0  ;;  %v5484_v55 = vadd.f32 %v3049_v14, %v5383_v4 }
 0xec9   :  { %v3514_v48 = vpop.f32.mrb[69].mxu1  ;;  %v3554_v61 = vpop.f32.mrb[69].mxu0 }
 0xeca   :  { %v3515_v62 = vadd.f32 %v3514_v48, %v3513_v15  ;;  %v3555_v7 = vadd.f32 %v3554_v61, %v3553_v10  ;;  %v3516_v18 = vpop.f32.mrb[70].mxu1  ;;  %v3556_v56 = vpop.f32.mrb[70].mxu0  ;;  %3089 = vadd.xlane.f32.xlu0 %v5484_v55  ;;  %v3080_v1 = vadd.f32 %v3052_v21, %v5386_v41 }
 0xecb   :  { %v3517_v51 = vpop.f32.mrb[71].mxu1  ;;  %v3557_v17 = vpop.f32.mrb[71].mxu0 }
 0xecc   :  { %v2992_v52 = vadd.f32 %v3515_v62, %v5479_v59  ;;  %v3518_v28 = vadd.f32 %v3517_v51, %v3516_v18  ;;  %v3558_v8 = vadd.f32 %v3557_v17, %v3556_v56  ;;  %3091 = vadd.xlane.f32.xlu1 %v3080_v1 }
 0xece   :  { %v3057_v40 = vadd.f32 %v3555_v7, %v2992_v52  ;;  %v2995_v4 = vadd.f32 %v3518_v28, %v5479_v59 }
 0xed0   :  { %v3060_v38 = vadd.f32 %v3558_v8, %v2995_v4  ;;  %v3519_v35 = vpop.f32.mrb[72].mxu1  ;;  %v3559_v30 = vpop.f32.mrb[72].mxu0  ;;  %v3081_v46 = vadd.f32 %v3057_v40, %v5402_v49 }
 0xed1   :  { %v3520_v53 = vpop.f32.mrb[73].mxu1  ;;  %v3560_v0 = vpop.f32.mrb[73].mxu0 }
 0xed2   :  { %v3521_v6 = vadd.f32 %v3520_v53, %v3519_v35  ;;  %v3561_v37 = vadd.f32 %v3560_v0, %v3559_v30  ;;  %v3522_v41 = vpop.f32.mrb[74].mxu1  ;;  %v3562_v34 = vpop.f32.mrb[74].mxu0  ;;  %3093 = vadd.xlane.f32.xlu0 %v3081_v46  ;;  %v3082_v24 = vadd.f32 %v3060_v38, %v5397_v58 }
 0xed3   :  { %v3523_v27 = vpop.f32.mrb[75].mxu1  ;;  %v3563_v32 = vpop.f32.mrb[75].mxu0 }
 0xed4   :  { %v3000_v50 = vadd.f32 %v3521_v6, %v5479_v59  ;;  %v3524_v16 = vadd.f32 %v3523_v27, %v3522_v41  ;;  %v3564_v54 = vadd.f32 %v3563_v32, %v3562_v34  ;;  %3095 = vadd.xlane.f32.xlu1 %v3082_v24 }
 0xed6   :  { %v3065_v29 = vadd.f32 %v3561_v37, %v3000_v50  ;;  %v3003_v47 = vadd.f32 %v3524_v16, %v5479_v59 }
 0xed8   :  { %v3068_v49 = vadd.f32 %v3564_v54, %v3003_v47  ;;  %v3525_v44 = vpop.f32.mrb[76].mxu1  ;;  %v3565_v63 = vpop.f32.mrb[76].mxu0  ;;  %v3083_v9 = vadd.f32 %v3065_v29, %v5414_v2 }
 0xed9   :  { %v3526_v45 = vpop.f32.mrb[77].mxu1  ;;  %v3566_v11 = vpop.f32.mrb[77].mxu0 }
 0xeda   :  { %v3527_v20 = vadd.f32 %v3526_v45, %v3525_v44  ;;  %v3567_v23 = vadd.f32 %v3566_v11, %v3565_v63  ;;  %v3568_v58 = vpop.f32.mrb[78].mxu0  ;;  %3097 = vadd.xlane.f32.xlu0 %v3083_v9  ;;  %v3528_v42 = vpop.f32.mrb[78].mxu1  ;;  %v3084_v39 = vadd.f32 %v3068_v49, %v5411_v33  ;;  %v3389_v63 = vld [vmem:[#allocation22] ss:$0 sm:$0xff] }
 0xedb   :  { %v3529_v57 = vpop.f32.mrb[79].mxu1  ;;  %v3569_v26 = vpop.f32.mrb[79].mxu0 }
 0xedc   :  { %v3008_v22 = vadd.f32 %v3527_v20, %v5479_v59  ;;  %v3530_v25 = vadd.f32 %v3529_v57, %v3528_v42  ;;  %v3570_v60 = vadd.f32 %v3569_v26, %v3568_v58  ;;  %3099 = vadd.xlane.f32.xlu1 %v3084_v39  ;;  %v3390_v20 = vld [vmem:[#allocation23] ss:$0 sm:$0xff] }
 0xede   :  { %v3073_v19 = vadd.f32 %v3567_v23, %v3008_v22  ;;  %v3011_v13 = vadd.f32 %v3530_v25, %v5479_v59 }
 0xee0   :  { %v3076_v2 = vadd.f32 %v3570_v60, %v3011_v13  ;;  %v3085_v5 = vadd.f32 %v3073_v19, %v5425_v43 }
 0xee2   :  { %3101 = vadd.xlane.f32.xlu0 %v3085_v5  ;;  %v3086_v12 = vadd.f32 %v3076_v2, %v5428_v31 }
 0xee4   :  { %3103 = vadd.xlane.f32.xlu1 %v3086_v12 }
 0xf57   :  { %v3090_v36 = vpop.xlane.xlu0 %3089 }
 0xf58   :  { %v3105_v14 = vmul.f32 0.0078125, %v3090_v36 }
 0xf59   :  { %v3092_v33 = vpop.xlane.xlu1 %3091 }
 0xf5a   :  { %v3113_v3 = vsub.f32 %v5484_v55, %v3105_v14  ;;  %v3106_v21 = vmul.f32 0.0078125, %v3092_v33 }
 0xf5c   :  { %v3114_v15 = vsub.f32 %v3080_v1, %v3106_v21  ;;  %v3121_v10 = vmul.f32 %v3113_v3, %v3113_v3 }
 0xf5e   :  { %3129 = vadd.xlane.f32.xlu0 %v3121_v10  ;;  %v3122_v48 = vmul.f32 %v3114_v15, %v3114_v15 }
 0xf5f   :  { %v3094_v61 = vpop.xlane.xlu0 %3093 }
 0xf60   :  { %v3107_v62 = vmul.f32 0.0078125, %v3094_v61  ;;  %3131 = vadd.xlane.f32.xlu1 %v3122_v48 }
 0xf61   :  { %v3096_v59 = vpop.xlane.xlu1 %3095 }
 0xf62   :  { %v5501_v7 = vsub.f32 %v3081_v46, %v3107_v62  ;;  %v3108_v43 = vmul.f32 0.0078125, %v3096_v59 }
 0xf64   :  { %v5503_v18 = vsub.f32 %v3082_v24, %v3108_v43  ;;  %v3123_v31 = vmul.f32 %v5501_v7, %v5501_v7 }
 0xf66   :  { %3133 = vadd.xlane.f32.xlu0 %v3123_v31  ;;  %v3124_v55 = vmul.f32 %v5503_v18, %v5503_v18 }
 0xf67   :  { %v3098_v56 = vpop.xlane.xlu0 %3097 }
 0xf68   :  { %v3109_v1 = vmul.f32 0.0078125, %v3098_v56  ;;  %3135 = vadd.xlane.f32.xlu1 %v3124_v55 }
 0xf69   :  { %v3100_v51 = vpop.xlane.xlu1 %3099 }
 0xf6a   :  { %v5509_v17 = vsub.f32 %v3083_v9, %v3109_v1  ;;  %v3110_v52 = vmul.f32 0.0078125, %v3100_v51 }
 0xf6c   :  { %v5511_v28 = vsub.f32 %v3084_v39, %v3110_v52  ;;  %v3125_v8 = vmul.f32 %v5509_v17, %v5509_v17 }
 0xf6e   :  { %3137 = vadd.xlane.f32.xlu0 %v3125_v8  ;;  %v3126_v40 = vmul.f32 %v5511_v28, %v5511_v28 }
 0xf6f   :  { %v3102_v4 = vpop.xlane.xlu0 %3101 }
 0xf70   :  { %v3111_v38 = vmul.f32 0.0078125, %v3102_v4  ;;  %3139 = vadd.xlane.f32.xlu1 %v3126_v40 }
 0xf71   :  { %v3104_v35 = vpop.xlane.xlu1 %3103 }
 0xf72   :  { %v5517_v30 = vsub.f32 %v3085_v5, %v3111_v38  ;;  %v3112_v46 = vmul.f32 0.0078125, %v3104_v35 }
 0xf74   :  { %v5519_v53 = vsub.f32 %v3086_v12, %v3112_v46  ;;  %v3127_v0 = vmul.f32 %v5517_v30, %v5517_v30 }
 0xf76   :  { %3141 = vadd.xlane.f32.xlu0 %v3127_v0  ;;  %v3128_v6 = vmul.f32 %v5519_v53, %v5519_v53 }
 0xf78   :  { %3143 = vadd.xlane.f32.xlu1 %v3128_v6 }
 0xfeb   :  { %v3130_v37 = vpop.xlane.xlu0 %3129 }
 0xfec   :  { %v3145_v41 = vmul.f32 0.0078125, %v3130_v37 }
 0xfed   :  { %v3132_v34 = vpop.xlane.xlu1 %3131 }
 0xfee   :  { %v3153_v24 = vadd.f32 1e-05, %v3145_v41  ;;  %v3146_v27 = vmul.f32 0.0078125, %v3132_v34 }
 0xff0   :  { %4109 = vrsqrt.f32 %v3153_v24  ;;  %v3154_v32 = vadd.f32 1e-05, %v3146_v27 }
 0xff2   :  { %4111 = vrsqrt.f32 %v3154_v32 }
 0xff3   :  { %v3134_v50 = vpop.xlane.xlu0 %3133 }
 0xff4   :  { %v3147_v16 = vmul.f32 0.0078125, %v3134_v50 }
 0xff5   :  { %v3136_v54 = vpop.xlane.xlu1 %3135 }
 0xff6   :  { %v3155_v29 = vadd.f32 1e-05, %v3147_v16  ;;  %v3148_v47 = vmul.f32 0.0078125, %v3136_v54 }
 0xff8   :  { %4113 = vrsqrt.f32 %v3155_v29  ;;  %v3156_v49 = vadd.f32 1e-05, %v3148_v47 }
 0xffa   :  { %v4110_v44 = vpop.eup %4109  ;;  %4115 = vrsqrt.f32 %v3156_v49 }
 0xffb   :  { %v3169_v9 = vmul.f32 %v4110_v44, %v3113_v3  ;;  %v3138_v45 = vpop.xlane.xlu0 %3137 }
 0xffc   :  { %v4112_v11 = vpop.eup %4111  ;;  %v3149_v23 = vmul.f32 0.0078125, %v3138_v45 }
 0xffd   :  { %v3183_v58 = vmul.f32 %v3389_v63, %v3169_v9  ;;  %v3170_v42 = vmul.f32 %v4112_v11, %v3114_v15  ;;  %v3140_v39 = vpop.xlane.xlu1 %3139 }
 0xffe   :  { %v3157_v57 = vadd.f32 1e-05, %v3149_v23  ;;  %v3150_v26 = vmul.f32 0.0078125, %v3140_v39 }
 0xfff   :  { %v3197_v22 = vadd.f32 %v3390_v20, %v3183_v58  ;;  %v3184_v25 = vmul.f32 %v3389_v63, %v3170_v42 }
0x1000   :  { %4117 = vrsqrt.f32 %v3157_v57  ;;  %v3158_v60 = vadd.f32 1e-05, %v3150_v26 }
0x1001   :  { %3205 = vst [vmem:[#allocation25] sm:$0xff] %v3197_v22  ;;  %v3198_v19 = vadd.f32 %v3390_v20, %v3184_v25 }
0x1002   :  { %v4114_v13 = vpop.eup %4113  ;;  %4119 = vrsqrt.f32 %v3158_v60 }
0x1003   :  { %3206 = vst [vmem:[#allocation25 + $0x8] sm:$0xff] %v3198_v19  ;;  %v3171_v2 = vmul.f32 %v4114_v13, %v5501_v7  ;;  %v3142_v5 = vpop.xlane.xlu0 %3141 }
0x1004   :  { %v4116_v12 = vpop.eup %4115  ;;  %v3151_v36 = vmul.f32 0.0078125, %v3142_v5 }
0x1005   :  { %v3185_v14 = vmul.f32 %v3389_v63, %v3171_v2  ;;  %v3172_v33 = vmul.f32 %v4116_v12, %v5503_v18  ;;  %v3144_v3 = vpop.xlane.xlu1 %3143 }
0x1006   :  { %v3159_v21 = vadd.f32 1e-05, %v3151_v36  ;;  %v3152_v15 = vmul.f32 0.0078125, %v3144_v3 }
0x1007   :  { %v3199_v10 = vadd.f32 %v3390_v20, %v3185_v14  ;;  %v3186_v48 = vmul.f32 %v3389_v63, %v3172_v33 }
0x1008   :  { %4121 = vrsqrt.f32 %v3159_v21  ;;  %v3160_v61 = vadd.f32 1e-05, %v3152_v15 }
0x1009   :  { %3207 = vst [vmem:[#allocation25 + $0x10] sm:$0xff] %v3199_v10  ;;  %v3200_v62 = vadd.f32 %v3390_v20, %v3186_v48 }
0x100a   :  { %v4118_v59 = vpop.eup %4117  ;;  %4123 = vrsqrt.f32 %v3160_v61 }
0x100b   :  { %3208 = vst [vmem:[#allocation25 + $0x18] sm:$0xff] %v3200_v62  ;;  %v3173_v7 = vmul.f32 %v4118_v59, %v5509_v17 }
0x100c   :  { %v4120_v43 = vpop.eup %4119 }
0x100d   :  { %v3187_v31 = vmul.f32 %v3389_v63, %v3173_v7  ;;  %v3174_v55 = vmul.f32 %v4120_v43, %v5511_v28 }
0x100f   :  { %v3201_v56 = vadd.f32 %v3390_v20, %v3187_v31  ;;  %v3188_v18 = vmul.f32 %v3389_v63, %v3174_v55 }
0x1011   :  { %3209 = vst [vmem:[#allocation25 + $0x20] sm:$0xff] %v3201_v56  ;;  %v3202_v1 = vadd.f32 %v3390_v20, %v3188_v18 }
0x1012   :  { %v4122_v51 = vpop.eup %4121 }
0x1013   :  { %3210 = vst [vmem:[#allocation25 + $0x28] sm:$0xff] %v3202_v1  ;;  %v3175_v52 = vmul.f32 %v4122_v51, %v5517_v30 }
0x1014   :  { %v4124_v8 = vpop.eup %4123 }
0x1015   :  { %v3189_v40 = vmul.f32 %v3389_v63, %v3175_v52  ;;  %v3176_v4 = vmul.f32 %v4124_v8, %v5519_v53 }
0x1017   :  { %v3203_v38 = vadd.f32 %v3390_v20, %v3189_v40  ;;  %v3190_v17 = vmul.f32 %v3389_v63, %v3176_v4 }
0x1019   :  { %3211 = vst [vmem:[#allocation25 + $0x30] sm:$0xff] %v3203_v38  ;;  %v3204_v35 = vadd.f32 %v3390_v20, %v3190_v17 }
0x101b   :  { %3212 = vst [vmem:[#allocation25 + $0x38] sm:$0xff] %v3204_v35 }
0x101c   :  { %4456 = shalt.err (!%p4453_p4)
}
0x101d   :  { %s4457_s16 = scalar_lea.hbm %s5560_s14, 1024 }
0x101e   :  { %p4458_p5 = scmp.ne.s32.totalorder %s5560_s14, %s4457_s16  ;;  %p4461_p6 = scmp.lt.u32.totalorder %s4457_s16, %s5560_s14 }
0x1020   :  { %p4463_p7 = pnand %p4461_p6, %p4458_p5 }
0x1022   :  { %4466 = shalt.err (!%p4463_p7)
}
0x1023   :  { %3224 = dma.vmem_to_hbm [thread:$0]  %s3219_s26, 1024, %s5560_s14, [#allocation4], %s4486_s23, %s4486_s23, %s4487_s24  }
0x1024   :  { %4483 = dma.done.wait [#allocation4], 1024  }
0x1025   :  { %4484 = vsyncadd [#allocation4], 4294966272 }
0x1026   :  { %3228 = vsyncpa [#allocation3], 1 }
0x1027   :  { %3229 = vsyncpa [#allocation6], 1 }
0x1028   :  { %3230 = vsyncpa [#allocation9], 1 }
0x1029   :  { %3231 = vsyncpa [#allocation12], 1 }
0x102a   :  { %3232 = vsyncpa [#allocation15], 1 }
0x102b   :  { %3233 = vsyncpa [#allocation18], 1 }
0x102c   :  { %3234 = vsyncpa [#allocation21], 1 }
0x102d   :  { %3235 = vsyncpa [#allocation24], 1 }
0x102e   :  { %3236 = vsyncpa [#allocation4], 1 }

</bundles_post_ra>
